<compile_context>
chip_gen: v7x
topology: tpu7x:2x2x1
jax: 0.10.0
libtpu: 0.0.40
codegen_flags: <defaults>
</compile_context>

<pallas_src>
import jax
import jax.numpy as jnp
from jax.experimental import pallas as pl
from jax.experimental.pallas import tpu as pltpu


# --------------------------- fused kernel body -------------------------------
def _make_inr_kernel(num_hidden: int, L: int, compute_dtype):
    has_pe = L > 0

    def kernel(x_ref, *args):
        out_ref = args[-1]
        p = args[:-1]
        idx = 0

        x = x_ref[...]                                   # (TMp, K*D) f32

        if has_pe:
            f_bd, w0x, w0s, w0c, b0 = p[idx:idx + 5]
            idx += 5
            # PE arguments via one tiny f32 matmul (kept f32: args are ~2^L*pi).
            arg = jnp.dot(x, f_bd[...], preferred_element_type=jnp.float32)
            s = jnp.sin(arg)                             # single EUP sin
            c = jnp.cos(arg)                             # single EUP cos
            # First Linear split over the [x | sin | cos] row-blocks of W0
            # (no lane concatenate; three dots accumulate into one f32 buffer).
            h = jnp.dot(x.astype(compute_dtype), w0x[...],
                        preferred_element_type=jnp.float32)
            h = h + jnp.dot(s.astype(compute_dtype), w0s[...],
                            preferred_element_type=jnp.float32)
            h = h + jnp.dot(c.astype(compute_dtype), w0c[...],
                            preferred_element_type=jnp.float32)
            h = h + b0[...]
        else:
            w0, b0 = p[idx], p[idx + 1]
            idx += 2
            h = jnp.dot(x.astype(compute_dtype), w0[...],
                        preferred_element_type=jnp.float32) + b0[...]
        h = h * jax.nn.sigmoid(h)                        # SiLU (f32 on VPU/EUP)

        for _ in range(num_hidden):
            w, b = p[idx], p[idx + 1]
            idx += 2
            h = jnp.dot(h.astype(compute_dtype), w[...],
                        preferred_element_type=jnp.float32) + b[...]
            h = h * jax.nn.sigmoid(h)

        wl, bl = p[idx], p[idx + 1]
        # Final layer in transposed orientation so the output block is
        # lane-dense: (K*out, 32K) . (TMp, 32K)^T -> (K*out, TMp).
        out_t = jnp.einsum("kc,tc->kt", wl[...], h.astype(compute_dtype),
                           preferred_element_type=jnp.float32)
        out_t = out_t + bl[...]
        out_ref[...] = jax.nn.sigmoid(out_t).astype(out_ref.dtype)

    return kernel


# ------------------------------- wrapper --------------------------------------
def inr_forward_pallas(coords, weights, biases, L=6, K=8, tm=1024,
                       compute_dtype=jnp.float32):
    """coords: (N, D) f32.  weights[i]: (din_i, dout_i).  biases[i]: (1, dout_i).

    K  : block-diagonal lane-packing factor (4 for v5e, 8 for v6e/v7x).
    tm : original coordinate rows per grid step (rounded up to 128*K).
    """
    coords = coords.astype(jnp.float32)
    N, D = coords.shape
    n_lin = len(weights)
    out_dim = weights[-1].shape[1]
    assert n_lin >= 2
    assert weights[0].shape[0] == D * (2 * L + 1)

    eye_k = jnp.eye(K, dtype=jnp.float32)

    def bd(w):                       # block-diagonal K-fold replication
        return jnp.kron(eye_k, w)

    def tile_b(b):                   # (1, dout) -> (1, K*dout)
        return jnp.tile(b, (1, K))

    cd = compute_dtype
    params = []
    if L > 0:
        W0 = weights[0]
        # Frequency matrix: (x @ F)[:, l*D + d] = 2^l * pi * x[:, d].
        F = jnp.concatenate(
            [(2.0 ** l) * jnp.pi * jnp.eye(D, dtype=jnp.float32) for l in range(L)],
            axis=1)
        W0x = W0[:D]
        W0s = jnp.concatenate(
            [W0[D + 2 * l * D: D + (2 * l + 1) * D] for l in range(L)], axis=0)
        W0c = jnp.concatenate(
            [W0[D + (2 * l + 1) * D: D + (2 * l + 2) * D] for l in range(L)], axis=0)
        params += [bd(F),                                    # stays f32
                   bd(W0x).astype(cd), bd(W0s).astype(cd), bd(W0c).astype(cd),
                   tile_b(biases[0])]
    else:
        params += [bd(weights[0]).astype(cd), tile_b(biases[0])]
    for i in range(1, n_lin - 1):
        params += [bd(weights[i]).astype(cd), tile_b(biases[i])]
    params += [bd(weights[-1].T).astype(cd),                 # (K*out, K*H)
               jnp.tile(biases[-1].reshape(-1, 1), (K, 1))]  # (K*out, 1), f32

    # ---- tiling: tm_p packed rows (= tm_p*K original rows) per grid step ----
    tm_p = 128 * pl.cdiv(pl.cdiv(tm, K), 128)        # lane-dense & sublane aligned
    TM = tm_p * K                                    # original rows per step
    Np = TM * pl.cdiv(N, TM)
    if Np != N:
        coords = jnp.concatenate(
            [coords, jnp.zeros((Np - N, D), jnp.float32)], axis=0)
    # Host-side reshape packs K consecutive points into the lanes of one row.
    x_packed = coords.reshape(Np // K, K * D)
    grid = (Np // TM,)   # for large N this gives many "parallel" steps (feeds both v7x TCs)

    in_specs = [pl.BlockSpec((tm_p, K * D), lambda i: (i, 0))]
    in_specs += [pl.BlockSpec(w.shape, lambda i: (0, 0)) for w in params]
    out_specs = pl.BlockSpec((K * out_dim, tm_p), lambda i: (0, i))

    kernel = _make_inr_kernel(n_lin - 2, L, cd)
    out_t = pl.pallas_call(
        kernel,
        out_shape=jax.ShapeDtypeStruct((K * out_dim, Np // K), jnp.float32),
        grid=grid,
        in_specs=in_specs,
        out_specs=out_specs,
        compiler_params=pltpu.CompilerParams(
            dimension_semantics=("parallel",)),
    )(x_packed, *params)

    # Unpack: out_t[k*out + o, p] == y[p*K + k, o]
    y = out_t.reshape(K, out_dim, Np // K).transpose(2, 0, 1).reshape(Np, out_dim)
    return y[:N]


# ---------------- pure-JAX reference (mirrors the PyTorch forward) -----------
def inr_forward_ref(coords, weights, biases, L=6):
    x = coords
    if L > 0:
        encs = [x]
        for l in range(L):
            arg = (2.0 ** l) * jnp.pi * x
            encs.append(jnp.sin(arg))
            encs.append(jnp.cos(arg))
        h = jnp.concatenate(encs, axis=-1)
    else:
        h = x
    n = len(weights)
    for i in range(n):
        h = h @ weights[i] + biases[i]
        if i < n - 1:
            h = h * jax.nn.sigmoid(h)
    return jax.nn.sigmoid(h)


def init_params(key, input_coords_dim=4, output_value_dim=1,
                hidden_dim=32, num_layers=4, L=6):
    """Deterministic synthetic init matching the nn.Module layer shapes."""
    enc_dim = input_coords_dim * (2 * L + 1)
    dims = [enc_dim] + [hidden_dim] * num_layers + [output_value_dim]
    weights, biases = [], []
    for i in range(len(dims) - 1):
        key, kw, kb = jax.random.split(key, 3)
        fan_in = dims[i]
        w = jax.random.normal(kw, (dims[i], dims[i + 1]), jnp.float32) / jnp.sqrt(fan_in)
        b = 0.01 * jax.random.normal(kb, (1, dims[i + 1]), jnp.float32)
        weights.append(w)
        biases.append(b)
    return weights, biases


def _pick_packing_factor():
    # K=4 exactly fills the 128-wide MXU on v5e/older; K=8 fills v6e/v7x's 256-wide MXU.
    try:
        kind = jax.devices()[0].device_kind.lower()
    except Exception:
        kind = ""
    if any(t in kind for t in ("v2", "v3", "v4", "v5")):
        return 4
    return 8


if __name__ == "__main__":
    key = jax.random.PRNGKey(0)

    # Small shapes consistent with the module's forward:
    # coords (N, input_coords_dim) = (1500, 4), hidden=32, num_layers=4, L=6.
    # N is deliberately not a tile multiple to exercise the cdiv + padding path.
    N, D = 1500, 4
    HIDDEN, NUM_LAYERS, L = 32, 4, 6

    key, kc = jax.random.split(key)
    coords = jax.random.uniform(kc, (N, D), jnp.float32)
    weights, biases = init_params(key, input_coords_dim=D, output_value_dim=1,
                                  hidden_dim=HIDDEN, num_layers=NUM_LAYERS, L=L)

    ref = inr_forward_ref(coords, weights, biases, L=L)
    K = _pick_packing_factor()

    # f32 matmul operands: accurate path, valid on every TPU generation.
    out = inr_forward_pallas(coords, weights, biases, L=L, K=K, tm=1024)
    out = jax.block_until_ready(out)
    assert out.shape == (N, 1)
    assert jnp.allclose(out, ref, atol=1e-4, rtol=1e-4), "f32 kernel mismatch vs reference"

    # bf16 matmul operands: fast path for the v6e/v7x MXU (PE args stay f32).
    out_bf16 = inr_forward_pallas(coords, weights, biases, L=L, K=K, tm=1024,
                                  compute_dtype=jnp.bfloat16)
    out_bf16 = jax.block_until_ready(out_bf16)
    assert jnp.allclose(out_bf16, ref, atol=5e-2, rtol=0.0), "bf16 kernel mismatch vs reference"

    print("KERNEL_OK")
</pallas_src>

<mosaic_0001>
module attributes {stable_mosaic.version = 11 : i64} {
  func.func @kernel(%arg0: i32, %arg1: memref<128x32xf32, #tpu.memory_space<vmem>>, %arg2: memref<32x192xf32, #tpu.memory_space<vmem>>, %arg3: memref<32x256xf32, #tpu.memory_space<vmem>>, %arg4: memref<192x256xf32, #tpu.memory_space<vmem>>, %arg5: memref<192x256xf32, #tpu.memory_space<vmem>>, %arg6: memref<1x256xf32, #tpu.memory_space<vmem>>, %arg7: memref<256x256xf32, #tpu.memory_space<vmem>>, %arg8: memref<1x256xf32, #tpu.memory_space<vmem>>, %arg9: memref<256x256xf32, #tpu.memory_space<vmem>>, %arg10: memref<1x256xf32, #tpu.memory_space<vmem>>, %arg11: memref<256x256xf32, #tpu.memory_space<vmem>>, %arg12: memref<1x256xf32, #tpu.memory_space<vmem>>, %arg13: memref<8x256xf32, #tpu.memory_space<vmem>>, %arg14: memref<8x1xf32, #tpu.memory_space<vmem>>, %arg15: memref<8x128xf32, #tpu.memory_space<vmem>>) attributes {dimension_semantics = [#tpu.dimension_semantics<parallel>], iteration_bounds = array<i64: 2>, scalar_prefetch = 0 : i64, scratch_operands = 0 : i64, tpu.core_type = #tpu.core_type<tc>, window_params = [{transform_indices = @transform_0, window_bounds = array<i64: 128, 32>}, {pipeline_mode = #tpu.pipeline_mode<synchronous>, transform_indices = @transform_1, window_bounds = array<i64: 32, 192>}, {pipeline_mode = #tpu.pipeline_mode<synchronous>, transform_indices = @transform_2, window_bounds = array<i64: 32, 256>}, {pipeline_mode = #tpu.pipeline_mode<synchronous>, transform_indices = @transform_3, window_bounds = array<i64: 192, 256>}, {pipeline_mode = #tpu.pipeline_mode<synchronous>, transform_indices = @transform_4, window_bounds = array<i64: 192, 256>}, {pipeline_mode = #tpu.pipeline_mode<synchronous>, transform_indices = @transform_5, window_bounds = array<i64: 1, 256>}, {pipeline_mode = #tpu.pipeline_mode<synchronous>, transform_indices = @transform_6, window_bounds = array<i64: 256, 256>}, {pipeline_mode = #tpu.pipeline_mode<synchronous>, transform_indices = @transform_7, window_bounds = array<i64: 1, 256>}, {pipeline_mode = #tpu.pipeline_mode<synchronous>, transform_indices = @transform_8, window_bounds = array<i64: 256, 256>}, {pipeline_mode = #tpu.pipeline_mode<synchronous>, transform_indices = @transform_9, window_bounds = array<i64: 1, 256>}, {pipeline_mode = #tpu.pipeline_mode<synchronous>, transform_indices = @transform_10, window_bounds = array<i64: 256, 256>}, {pipeline_mode = #tpu.pipeline_mode<synchronous>, transform_indices = @transform_11, window_bounds = array<i64: 1, 256>}, {pipeline_mode = #tpu.pipeline_mode<synchronous>, transform_indices = @transform_12, window_bounds = array<i64: 8, 256>}, {pipeline_mode = #tpu.pipeline_mode<synchronous>, transform_indices = @transform_13, window_bounds = array<i64: 8, 1>}, {transform_indices = @transform_14, window_bounds = array<i64: 8, 128>}]} {
    %c0 = arith.constant 0 : index
    %c0_0 = arith.constant 0 : index
    %0 = vector.load %arg1[%c0, %c0_0] : memref<128x32xf32, #tpu.memory_space<vmem>>, vector<128x32xf32>
    %c0_1 = arith.constant 0 : index
    %c0_2 = arith.constant 0 : index
    %1 = vector.load %arg2[%c0_1, %c0_2] : memref<32x192xf32, #tpu.memory_space<vmem>>, vector<32x192xf32>
    %cst = arith.constant dense<0.000000e+00> : vector<128x192xf32>
    %2 = tpu.matmul %0, %1, %cst {dimension_numbers = #tpu.dot_dimension_numbers<[1], [0], [0], [1], [0, 0, 1, 1], [], []>} : vector<128x32xf32>, vector<32x192xf32>, vector<128x192xf32> -> vector<128x192xf32>
    %3 = math.sin %2 : vector<128x192xf32>
    %4 = math.cos %2 : vector<128x192xf32>
    %c0_3 = arith.constant 0 : index
    %c0_4 = arith.constant 0 : index
    %5 = vector.load %arg3[%c0_3, %c0_4] : memref<32x256xf32, #tpu.memory_space<vmem>>, vector<32x256xf32>
    %cst_5 = arith.constant dense<0.000000e+00> : vector<128x256xf32>
    %6 = tpu.matmul %0, %5, %cst_5 {dimension_numbers = #tpu.dot_dimension_numbers<[1], [0], [0], [1], [0, 0, 1, 1], [], []>} : vector<128x32xf32>, vector<32x256xf32>, vector<128x256xf32> -> vector<128x256xf32>
    %c0_6 = arith.constant 0 : index
    %c0_7 = arith.constant 0 : index
    %7 = vector.load %arg4[%c0_6, %c0_7] : memref<192x256xf32, #tpu.memory_space<vmem>>, vector<192x256xf32>
    %cst_8 = arith.constant dense<0.000000e+00> : vector<128x256xf32>
    %8 = tpu.matmul %3, %7, %cst_8 {dimension_numbers = #tpu.dot_dimension_numbers<[1], [0], [0], [1], [0, 0, 1, 1], [], []>} : vector<128x192xf32>, vector<192x256xf32>, vector<128x256xf32> -> vector<128x256xf32>
    %9 = arith.addf %6, %8 : vector<128x256xf32>
    %c0_9 = arith.constant 0 : index
    %c0_10 = arith.constant 0 : index
    %10 = vector.load %arg5[%c0_9, %c0_10] : memref<192x256xf32, #tpu.memory_space<vmem>>, vector<192x256xf32>
    %cst_11 = arith.constant dense<0.000000e+00> : vector<128x256xf32>
    %11 = tpu.matmul %4, %10, %cst_11 {dimension_numbers = #tpu.dot_dimension_numbers<[1], [0], [0], [1], [0, 0, 1, 1], [], []>} : vector<128x192xf32>, vector<192x256xf32>, vector<128x256xf32> -> vector<128x256xf32>
    %12 = arith.addf %9, %11 : vector<128x256xf32>
    %c0_12 = arith.constant 0 : index
    %c0_13 = arith.constant 0 : index
    %13 = vector.load %arg6[%c0_12, %c0_13] : memref<1x256xf32, #tpu.memory_space<vmem>>, vector<1x256xf32>
    %14 = vector.broadcast %13 : vector<1x256xf32> to vector<128x256xf32>
    %15 = arith.addf %12, %14 : vector<128x256xf32>
    %16 = arith.negf %15 : vector<128x256xf32>
    %17 = math.exp %16 : vector<128x256xf32>
    %cst_14 = arith.constant 1.000000e+00 : f32
    %18 = vector.broadcast %cst_14 : f32 to vector<128x256xf32>
    %19 = arith.addf %18, %17 : vector<128x256xf32>
    %20 = arith.divf %18, %19 : vector<128x256xf32>
    %21 = arith.mulf %15, %20 : vector<128x256xf32>
    %c0_15 = arith.constant 0 : index
    %c0_16 = arith.constant 0 : index
    %22 = vector.load %arg7[%c0_15, %c0_16] : memref<256x256xf32, #tpu.memory_space<vmem>>, vector<256x256xf32>
    %cst_17 = arith.constant dense<0.000000e+00> : vector<128x256xf32>
    %23 = tpu.matmul %21, %22, %cst_17 {dimension_numbers = #tpu.dot_dimension_numbers<[1], [0], [0], [1], [0, 0, 1, 1], [], []>} : vector<128x256xf32>, vector<256x256xf32>, vector<128x256xf32> -> vector<128x256xf32>
    %c0_18 = arith.constant 0 : index
    %c0_19 = arith.constant 0 : index
    %24 = vector.load %arg8[%c0_18, %c0_19] : memref<1x256xf32, #tpu.memory_space<vmem>>, vector<1x256xf32>
    %25 = vector.broadcast %24 : vector<1x256xf32> to vector<128x256xf32>
    %26 = arith.addf %23, %25 : vector<128x256xf32>
    %27 = arith.negf %26 : vector<128x256xf32>
    %28 = math.exp %27 : vector<128x256xf32>
    %cst_20 = arith.constant 1.000000e+00 : f32
    %29 = vector.broadcast %cst_20 : f32 to vector<128x256xf32>
    %30 = arith.addf %29, %28 : vector<128x256xf32>
    %31 = arith.divf %29, %30 : vector<128x256xf32>
    %32 = arith.mulf %26, %31 : vector<128x256xf32>
    %c0_21 = arith.constant 0 : index
    %c0_22 = arith.constant 0 : index
    %33 = vector.load %arg9[%c0_21, %c0_22] : memref<256x256xf32, #tpu.memory_space<vmem>>, vector<256x256xf32>
    %cst_23 = arith.constant dense<0.000000e+00> : vector<128x256xf32>
    %34 = tpu.matmul %32, %33, %cst_23 {dimension_numbers = #tpu.dot_dimension_numbers<[1], [0], [0], [1], [0, 0, 1, 1], [], []>} : vector<128x256xf32>, vector<256x256xf32>, vector<128x256xf32> -> vector<128x256xf32>
    %c0_24 = arith.constant 0 : index
    %c0_25 = arith.constant 0 : index
    %35 = vector.load %arg10[%c0_24, %c0_25] : memref<1x256xf32, #tpu.memory_space<vmem>>, vector<1x256xf32>
    %36 = vector.broadcast %35 : vector<1x256xf32> to vector<128x256xf32>
    %37 = arith.addf %34, %36 : vector<128x256xf32>
    %38 = arith.negf %37 : vector<128x256xf32>
    %39 = math.exp %38 : vector<128x256xf32>
    %cst_26 = arith.constant 1.000000e+00 : f32
    %40 = vector.broadcast %cst_26 : f32 to vector<128x256xf32>
    %41 = arith.addf %40, %39 : vector<128x256xf32>
    %42 = arith.divf %40, %41 : vector<128x256xf32>
    %43 = arith.mulf %37, %42 : vector<128x256xf32>
    %c0_27 = arith.constant 0 : index
    %c0_28 = arith.constant 0 : index
    %44 = vector.load %arg11[%c0_27, %c0_28] : memref<256x256xf32, #tpu.memory_space<vmem>>, vector<256x256xf32>
    %cst_29 = arith.constant dense<0.000000e+00> : vector<128x256xf32>
    %45 = tpu.matmul %43, %44, %cst_29 {dimension_numbers = #tpu.dot_dimension_numbers<[1], [0], [0], [1], [0, 0, 1, 1], [], []>} : vector<128x256xf32>, vector<256x256xf32>, vector<128x256xf32> -> vector<128x256xf32>
    %c0_30 = arith.constant 0 : index
    %c0_31 = arith.constant 0 : index
    %46 = vector.load %arg12[%c0_30, %c0_31] : memref<1x256xf32, #tpu.memory_space<vmem>>, vector<1x256xf32>
    %47 = vector.broadcast %46 : vector<1x256xf32> to vector<128x256xf32>
    %48 = arith.addf %45, %47 : vector<128x256xf32>
    %49 = arith.negf %48 : vector<128x256xf32>
    %50 = math.exp %49 : vector<128x256xf32>
    %cst_32 = arith.constant 1.000000e+00 : f32
    %51 = vector.broadcast %cst_32 : f32 to vector<128x256xf32>
    %52 = arith.addf %51, %50 : vector<128x256xf32>
    %53 = arith.divf %51, %52 : vector<128x256xf32>
    %54 = arith.mulf %48, %53 : vector<128x256xf32>
    %c0_33 = arith.constant 0 : index
    %c0_34 = arith.constant 0 : index
    %55 = vector.load %arg13[%c0_33, %c0_34] : memref<8x256xf32, #tpu.memory_space<vmem>>, vector<8x256xf32>
    "tpu.trace_start"() <{level = 10 : i32, message = "kc,tc->kt"}> : () -> ()
    %cst_35 = arith.constant dense<0.000000e+00> : vector<8x128xf32>
    %56 = tpu.matmul %55, %54, %cst_35 {dimension_numbers = #tpu.dot_dimension_numbers<[1], [1], [0], [0], [0, 0, 1, 0], [], []>} : vector<8x256xf32>, vector<128x256xf32>, vector<8x128xf32> -> vector<8x128xf32>
    "tpu.trace_stop"() : () -> ()
    %c0_36 = arith.constant 0 : index
    %c0_37 = arith.constant 0 : index
    %57 = vector.load %arg14[%c0_36, %c0_37] : memref<8x1xf32, #tpu.memory_space<vmem>>, vector<8x1xf32>
    %58 = vector.broadcast %57 : vector<8x1xf32> to vector<8x128xf32>
    %59 = arith.addf %56, %58 : vector<8x128xf32>
    %60 = arith.negf %59 : vector<8x128xf32>
    %61 = math.exp %60 : vector<8x128xf32>
    %cst_38 = arith.constant 1.000000e+00 : f32
    %62 = vector.broadcast %cst_38 : f32 to vector<8x128xf32>
    %63 = arith.addf %62, %61 : vector<8x128xf32>
    %64 = arith.divf %62, %63 : vector<8x128xf32>
    %c0_39 = arith.constant 0 : index
    %c0_40 = arith.constant 0 : index
    %65 = vector.load %arg15[%c0_39, %c0_40] : memref<8x128xf32, #tpu.memory_space<vmem>>, vector<8x128xf32>
    tpu.vector_store %arg15[%c0_39, %c0_40], %64 {strides = array<i32>} : memref<8x128xf32, #tpu.memory_space<vmem>>, vector<8x128xf32>,
    return
  }
  func.func @transform_0(%arg0: i32) -> (i32, i32) {
    %c0_i32 = arith.constant 0 : i32
    %c0_i32_0 = arith.constant 0 : i32
    return %arg0, %c0_i32 : i32, i32
  }
  func.func @transform_1(%arg0: i32) -> (i32, i32) {
    %c0_i32 = arith.constant 0 : i32
    %c0_i32_0 = arith.constant 0 : i32
    %c0_i32_1 = arith.constant 0 : i32
    return %c0_i32, %c0_i32_0 : i32, i32
  }
  func.func @transform_2(%arg0: i32) -> (i32, i32) {
    %c0_i32 = arith.constant 0 : i32
    %c0_i32_0 = arith.constant 0 : i32
    %c0_i32_1 = arith.constant 0 : i32
    return %c0_i32, %c0_i32_0 : i32, i32
  }
  func.func @transform_3(%arg0: i32) -> (i32, i32) {
    %c0_i32 = arith.constant 0 : i32
    %c0_i32_0 = arith.constant 0 : i32
    %c0_i32_1 = arith.constant 0 : i32
    return %c0_i32, %c0_i32_0 : i32, i32
  }
  func.func @transform_4(%arg0: i32) -> (i32, i32) {
    %c0_i32 = arith.constant 0 : i32
    %c0_i32_0 = arith.constant 0 : i32
    %c0_i32_1 = arith.constant 0 : i32
    return %c0_i32, %c0_i32_0 : i32, i32
  }
  func.func @transform_5(%arg0: i32) -> (i32, i32) {
    %c0_i32 = arith.constant 0 : i32
    %c0_i32_0 = arith.constant 0 : i32
    %c0_i32_1 = arith.constant 0 : i32
    return %c0_i32, %c0_i32_0 : i32, i32
  }
  func.func @transform_6(%arg0: i32) -> (i32, i32) {
    %c0_i32 = arith.constant 0 : i32
    %c0_i32_0 = arith.constant 0 : i32
    %c0_i32_1 = arith.constant 0 : i32
    return %c0_i32, %c0_i32_0 : i32, i32
  }
  func.func @transform_7(%arg0: i32) -> (i32, i32) {
    %c0_i32 = arith.constant 0 : i32
    %c0_i32_0 = arith.constant 0 : i32
    %c0_i32_1 = arith.constant 0 : i32
    return %c0_i32, %c0_i32_0 : i32, i32
  }
  func.func @transform_8(%arg0: i32) -> (i32, i32) {
    %c0_i32 = arith.constant 0 : i32
    %c0_i32_0 = arith.constant 0 : i32
    %c0_i32_1 = arith.constant 0 : i32
    return %c0_i32, %c0_i32_0 : i32, i32
  }
  func.func @transform_9(%arg0: i32) -> (i32, i32) {
    %c0_i32 = arith.constant 0 : i32
    %c0_i32_0 = arith.constant 0 : i32
    %c0_i32_1 = arith.constant 0 : i32
    return %c0_i32, %c0_i32_0 : i32, i32
  }
  func.func @transform_10(%arg0: i32) -> (i32, i32) {
    %c0_i32 = arith.constant 0 : i32
    %c0_i32_0 = arith.constant 0 : i32
    %c0_i32_1 = arith.constant 0 : i32
    return %c0_i32, %c0_i32_0 : i32, i32
  }
  func.func @transform_11(%arg0: i32) -> (i32, i32) {
    %c0_i32 = arith.constant 0 : i32
    %c0_i32_0 = arith.constant 0 : i32
    %c0_i32_1 = arith.constant 0 : i32
    return %c0_i32, %c0_i32_0 : i32, i32
  }
  func.func @transform_12(%arg0: i32) -> (i32, i32) {
    %c0_i32 = arith.constant 0 : i32
    %c0_i32_0 = arith.constant 0 : i32
    %c0_i32_1 = arith.constant 0 : i32
    return %c0_i32, %c0_i32_0 : i32, i32
  }
  func.func @transform_13(%arg0: i32) -> (i32, i32) {
    %c0_i32 = arith.constant 0 : i32
    %c0_i32_0 = arith.constant 0 : i32
    %c0_i32_1 = arith.constant 0 : i32
    return %c0_i32, %c0_i32_0 : i32, i32
  }
  func.func @transform_14(%arg0: i32) -> (i32, i32) {
    %c0_i32 = arith.constant 0 : i32
    %c0_i32_0 = arith.constant 0 : i32
    return %c0_i32, %arg0 : i32, i32
  }
}

</mosaic_0001>

<bundles_post_ra>
// kernel: tpu_custom_call.1
= control target key start
LH: loop header
LB: loop body
LE: loop exit
PB: predicated region body
PF: predicated region fallthrough
CT: control target
= control target key end

     0   :  { %s16670_s0 = inlined_call_operand.vmem [shape: f32[256,32], index: 0, kind: input, shape index: {}]   ;;  %s16671_s1 = inlined_call_operand.vmem [shape: f32[32,192], index: 1, kind: input, shape index: {}]   ;;  %s16672_s2 = inlined_call_operand.vmem [shape: f32[32,256], index: 2, kind: input, shape index: {}]   ;;  %s16673_s3 = inlined_call_operand.hbm [shape: f32[192,256], index: 3, kind: input, shape index: {}]   ;;  %s16674_s4 = inlined_call_operand.hbm [shape: f32[192,256], index: 4, kind: input, shape index: {}]   ;;  %s16675_s5 = inlined_call_operand.vmem [shape: f32[1,256], index: 5, kind: input, shape index: {}]   ;;  %s16676_s6 = inlined_call_operand.hbm [shape: f32[256,256], index: 6, kind: input, shape index: {}]   ;;  %s16677_s7 = inlined_call_operand.vmem [shape: f32[1,256], index: 7, kind: input, shape index: {}]   ;;  %s16678_s8 = inlined_call_operand.hbm [shape: f32[256,256], index: 8, kind: input, shape index: {}]   ;;  %s16679_s9 = inlined_call_operand.vmem [shape: f32[1,256], index: 9, kind: input, shape index: {}]   ;;  %s16680_s10 = inlined_call_operand.hbm [shape: f32[256,256], index: 10, kind: input, shape index: {}]   ;;  %s16681_s11 = inlined_call_operand.vmem [shape: f32[1,256], index: 11, kind: input, shape index: {}]   ;;  %s16682_s12 = inlined_call_operand.vmem [shape: f32[8,256], index: 12, kind: input, shape index: {}]   ;;  %s16683_s13 = inlined_call_operand.vmem [shape: f32[8,1], index: 13, kind: input, shape index: {}]   ;;  %s16684_s14 = inlined_call_operand.hbm [shape: f32[8,256], index: 14, kind: output, shape index: {}]  }
   0x1   :  { %16986 = sst [smem:[#allocation149_spill]] %s16674_s4 }
   0x2   :  { %16987 = sst [smem:[#allocation150_spill]] %s16681_s11 }
   0x3   :  { %16988 = sst [smem:[#allocation151_spill]] %s16684_s14 }
   0x4   :  { %19 = vsyncpa [#allocation3], 0 }
   0x5   :  { %20 = vsyncpa [#allocation6], 0 }
   0x6   :  { %21 = vsyncpa [#allocation9], 0 }
   0x7   :  { %22 = vsyncpa [#allocation4], 0 }
   0x8   :  { %24 = vsyncpa [#allocation4 + $0x1], 0  ;;  %s12040_s29 = smov 0   ;;  %s12042_s30 = smov 0  }
   0x9   :  { %s12044_s15 = smov 0   ;;  %s12046_s16 = smov 0  }
   0xa LB: > { %16989 = sst [smem:[#allocation16_spill]] %s11935_s29  ;;  %s12061_s17 = sadd.s32 4294967295, %s11947_s16   ;;  %s11947_s16 = sphi %s12046_s16, %s17671_s16   ;;  %s11943_s15 = sphi %s12044_s15, %s17674_s15   ;;  %s11939_s30 = sphi %s12042_s30, %s17673_s30   ;;  %s11935_s29 = sphi %s12040_s29, %s17672_s29  }
   0xb   : > { %16990 = sst [smem:[#allocation17_spill]] %s11939_s30  ;;  %s9974_s18 = sadd.s32 4294967294, %s11947_s16  }
   0xc   : > { %16991 = sst [smem:[#allocation18_spill]] %s11943_s15  ;;  %s12065_s19 = sadd.s32 1, %s11947_s16  }
   0xd   : > { %16992 = sst [smem:[#allocation19_spill]] %s11947_s16  ;;  %s336_s20 = sadd.s32 1, %s11943_s15 }
   0xe   : > { %16993 = sst [smem:[#allocation20_spill]] %s12065_s19  ;;  %s333_s21 = ssub.s32 %s11947_s16, %s12065_s19 }
   0xf   : > { %p346_p0 = scmp.ne.s32.totalorder %s11943_s15, %s11939_s30  ;;  %p334_p1 = scmp.eq.s32.totalorder %s333_s21, 0 }
  0x10   : > { %p347_p2 = scmp.eq.s32.totalorder %s12061_s17, 1  ;;  %p352_p3 = scmp.ne.s32.totalorder %s11939_s30, %s11935_s29 }
  0x11   : > { %p353_p4 = scmp.eq.s32.totalorder %s9974_s18, 1  ;;  %p9975_p7 = scmp.ge.s32.totalorder %s11947_s16, 1 }
  0x12   : > { %s12076_s22 = scalar_select %p334_p1, %s11943_s15, %s336_s20  }
  0x13   : > { %p12078_p5 = por %p347_p2, %p346_p0  ;;  %p12082_p6 = por %p353_p4, %p352_p3 }
  0x14   : > { %16994 = sst [smem:[#allocation21_spill]] %s12076_s22  ;;  %p360_p8 = scmp.lt.s32.totalorder %s11947_s16, 3 }
  0x15   : > { %s16995_s23 = scalar_select %p12078_p5, 1, 0 }
  0x16   : > { %s16997_s24 = scalar_select %p12082_p6, 1, 0 }
  0x17   : > { %16996 = sst [smem:[#allocation22_spill]] %s16995_s23  ;;  %p16691_p9 = scmp.eq.s32.totalorder %s12061_s17, 0 }
  0x18   : > { %16998 = sst [smem:[#allocation23_spill]] %s16997_s24  ;;  %p12089_p10 = pnand %p9975_p7, %p360_p8 }
  0x19   : > { %s11949_s26 = smov [#allocation5]   ;;  %s11950_s18 = smov [#allocation8]  }
  0x1a   : > { %s16999_s25 = scalar_select %p12089_p10, 1, 0 }
  0x1b   : > { %p10994_p11 = pneg %p12089_p10  ;;  %s391_s27 = sshll.u32 %s11949_s26, 4  ;;  %s12095_s27 = int_to_ptr.vmem [resolvable:$true] %s391_s27 }
  0x1c   : > { %s423_s20 = sshll.u32 %s11950_s18, 4  ;;  %s11951_s21 = smov [#allocation2]   ;;  %s12103_s20 = int_to_ptr.vmem [resolvable:$true] %s423_s20 }
  0x1d   : > { %p12099_p12 = pnand %p16691_p9, %p10994_p11  ;;  %s12105_s22 = sshll.u32 %s11951_s21, 4  ;;  %s379_s22 = int_to_ptr.vmem [resolvable:$true] %s12105_s22 }
  0x1e   : > { %s17001_s4 = sld [smem:[#allocation149_spill]] }
  0x1f   : > { %p12115_p0 = pneg %p12099_p12 }
  0x24   : > { %s11733_s24 = scalar_lea.hbm %s17001_s4, 6144 }
  0x25   : > { %p11734_p13 = scmp.ne.s32.totalorder %s17001_s4, %s11733_s24  ;;  %p11740_p3 = scmp.lt.u32.totalorder %s11733_s24, %s17001_s4 }
  0x27   : > { %p11736_p1 = pnand %p12115_p0, %p11734_p13 }
  0x29   : > { %p11737_p2 = pneg %p11736_p1 }
  0x2b   : > { %p11742_p4 = pnand %p11740_p3, %p11737_p2 }
  0x2d   : > { %11745 = shalt.err (!%p11742_p4)
}
  0x2e   : > { %s11746_s29 = scalar_lea.vmem %s12095_s27, 6144  ;;  %p11754_p9 = scmp.lt.s32.totalorder %s12095_s27, %s12095_s27 }
  0x2f   : > { %p11747_p7 = scmp.ne.s32.totalorder %s12095_s27, %s11746_s29  ;;  %p11755_p6 = scmp.lt.s32.totalorder %s11746_s29, %s11746_s29 }
  0x31   : > { %p11749_p8 = pnand %p11747_p7, %p12115_p0  ;;  %p11756_p13 = por %p11755_p6, %p11754_p9 }
  0x33   : > { %p11750_p11 = pneg %p11749_p8 }
  0x35   : > { %p11757_p1 = pnand %p11756_p13, %p11750_p11 }
  0x37   : > { %11760 = shalt.err (!%p11757_p1)
}
  0x38   : > { %s11952_s15 = smov 256   ;;  %s11953_s19 = smov 16  }
  0x39   : > { %11000 = dma.hbm_to_vmem [thread:$0]  (!%p12099_p12), %s17001_s4, 6144, %s12095_s27, [#allocation6], %s11952_s15, %s11952_s15, %s11953_s19  }
  0x3a   : > { %s11761_s29 = scalar_lea.hbm %s16678_s8, 8192 }
  0x3b   : > { %p11762_p6 = scmp.ne.s32.totalorder %s16678_s8, %s11761_s29  ;;  %p11768_p3 = scmp.lt.u32.totalorder %s11761_s29, %s16678_s8 }
  0x3d   : > { %p11764_p9 = pnand %p11762_p6, %p12115_p0 }
  0x3f   : > { %p11765_p2 = pneg %p11764_p9 }
  0x41   : > { %p11770_p4 = pnand %p11768_p3, %p11765_p2 }
  0x43   : > { %11773 = shalt.err (!%p11770_p4)
}
  0x44   : > { %s11774_s27 = scalar_lea.vmem %s12103_s20, 8192  ;;  %p11782_p13 = scmp.lt.s32.totalorder %s12103_s20, %s12103_s20 }
  0x45   : > { %p11775_p7 = scmp.ne.s32.totalorder %s12103_s20, %s11774_s27  ;;  %p11783_p1 = scmp.lt.s32.totalorder %s11774_s27, %s11774_s27 }
  0x47   : > { %p11777_p8 = pnand %p11775_p7, %p12115_p0  ;;  %p11784_p6 = por %p11783_p1, %p11782_p13 }
  0x49   : > { %p11778_p11 = pneg %p11777_p8 }
  0x4b   : > { %p11785_p9 = pnand %p11784_p6, %p11778_p11 }
  0x4d   : > { %11788 = shalt.err (!%p11785_p9)
}
  0x4e   : > { %11006 = dma.hbm_to_vmem [thread:$0]  (!%p12099_p12), %s16678_s8, 8192, %s12103_s20, [#allocation9], %s11952_s15, %s11952_s15, %s11953_s19  }
  0x4f   : > { %s11789_s24 = scalar_lea.hbm %s16673_s3, 6144 }
  0x50   : > { %p11790_p2 = scmp.ne.s32.totalorder %s16673_s3, %s11789_s24  ;;  %p11796_p7 = scmp.lt.u32.totalorder %s11789_s24, %s16673_s3 }
  0x52   : > { %p11792_p3 = pnand %p11790_p2, %p12115_p0 }
  0x54   : > { %p11793_p4 = pneg %p11792_p3 }
  0x56   : > { %p11798_p8 = pnand %p11796_p7, %p11793_p4 }
  0x58   : > { %11801 = shalt.err (!%p11798_p8)
}
  0x59   : > { %s11802_s27 = scalar_lea.vmem %s379_s22, 6144  ;;  %p11810_p6 = scmp.lt.s32.totalorder %s379_s22, %s379_s22 }
  0x5a   : > { %p11803_p11 = scmp.ne.s32.totalorder %s379_s22, %s11802_s27  ;;  %p11811_p9 = scmp.lt.s32.totalorder %s11802_s27, %s11802_s27 }
  0x5c   : > { %p11805_p13 = pnand %p11803_p11, %p12115_p0  ;;  %p11812_p5 = por %p11811_p9, %p11810_p6 }
  0x5e   : > { %p11806_p1 = pneg %p11805_p13 }
  0x60   : > { %p11813_p10 = pnand %p11812_p5, %p11806_p1 }
  0x62   : > { %11816 = shalt.err (!%p11813_p10)
}
  0x63   : > { %10997 = dma.hbm_to_vmem [thread:$0]  (!%p12099_p12), %s16673_s3, 6144, %s379_s22, [#allocation3], %s11952_s15, %s11952_s15, %s11953_s19  }
  0x64   : > { %s11954_s14 = smov [#allocation7]   ;;  %s11955_s23 = smov [#allocation10]  }
  0x65   : > { %s407_s30 = sshll.u32 %s11954_s14, 4  ;;  %s439_s24 = sshll.u32 %s11955_s23, 4  ;;  %s408_s30 = int_to_ptr.vmem [resolvable:$true] %s407_s30  ;;  %s440_s24 = int_to_ptr.vmem [resolvable:$true] %s439_s24 }
  0x66   : > { %s11817_s21 = scalar_lea.hbm %s16676_s6, 8192 }
  0x67   : > { %p11818_p5 = scmp.ne.s32.totalorder %s16676_s6, %s11817_s21  ;;  %p11824_p3 = scmp.lt.u32.totalorder %s11817_s21, %s16676_s6 }
  0x69   : > { %p11820_p10 = pnand %p11818_p5, %p12115_p0 }
  0x6b   : > { %p11821_p2 = pneg %p11820_p10 }
  0x6d   : > { %p11826_p4 = pnand %p11824_p3, %p11821_p2 }
  0x6f   : > { %11829 = shalt.err (!%p11826_p4)
}
  0x70   : > { %s11830_s22 = scalar_lea.vmem %s408_s30, 8192  ;;  %p11838_p13 = scmp.lt.s32.totalorder %s408_s30, %s408_s30 }
  0x71   : > { %p11831_p7 = scmp.ne.s32.totalorder %s408_s30, %s11830_s22  ;;  %p11839_p1 = scmp.lt.s32.totalorder %s11830_s22, %s11830_s22 }
  0x73   : > { %p11833_p8 = pnand %p11831_p7, %p12115_p0  ;;  %p11840_p6 = por %p11839_p1, %p11838_p13 }
  0x75   : > { %p11834_p11 = pneg %p11833_p8 }
  0x77   : > { %p11841_p9 = pnand %p11840_p6, %p11834_p11 }
  0x79   : > { %11844 = shalt.err (!%p11841_p9)
}
  0x7a   : > { %11003 = dma.hbm_to_vmem [thread:$0]  (!%p12099_p12), %s16676_s6, 8192, %s408_s30, [#allocation6], %s11952_s15, %s11952_s15, %s11953_s19  }
  0x7b   : > { %s11845_s26 = scalar_lea.hbm %s16680_s10, 8192 }
  0x7c   : > { %p11846_p5 = scmp.ne.s32.totalorder %s16680_s10, %s11845_s26  ;;  %p11852_p3 = scmp.lt.u32.totalorder %s11845_s26, %s16680_s10 }
  0x7e   : > { %p11848_p10 = pnand %p11846_p5, %p12115_p0 }
  0x80   : > { %p11849_p2 = pneg %p11848_p10 }
  0x82   : > { %p11854_p4 = pnand %p11852_p3, %p11849_p2 }
  0x84   : > { %11857 = shalt.err (!%p11854_p4)
}
  0x85   : > { %s11858_s20 = scalar_lea.vmem %s440_s24, 8192  ;;  %p11866_p13 = scmp.lt.s32.totalorder %s440_s24, %s440_s24 }
  0x86   : > { %p11859_p7 = scmp.ne.s32.totalorder %s440_s24, %s11858_s20  ;;  %p11867_p1 = scmp.lt.s32.totalorder %s11858_s20, %s11858_s20 }
  0x88   : > { %p11861_p8 = pnand %p11859_p7, %p12115_p0  ;;  %p11868_p6 = por %p11867_p1, %p11866_p13 }
  0x8a   : > { %p11862_p11 = pneg %p11861_p8 }
  0x8c   : > { %p11869_p9 = pnand %p11868_p6, %p11862_p11 }
  0x8e   : > { %11872 = shalt.err (!%p11869_p9)
}
  0x8f   : > { %11009 = dma.hbm_to_vmem [thread:$0]  (!%p12099_p12), %s16680_s10, 8192, %s440_s24, [#allocation9], %s11952_s15, %s11952_s15, %s11953_s19  }
  0x90   : > { %p17003_p5 = scmp.ne.s32.totalorder %s16999_s25, 0 }
  0x92   : > { %473 = sbr.rel (%p17003_p5) target bundleno = 2598 (0xa26), region = 76 }
  0x99   : > { %p17004_p0 = scmp.eq.s32.totalorder %s12061_s17, 0 }
  0x9b   : > { %11918 = dma.done.wait (%p17004_p0), [#allocation3], 6144   ;;  %p17005_p10 = pmov %p17004_p0 }
  0x9c   : > { %p17006_p2 = pmov %p17004_p0 }
  0x9d   : > { %11920 = vsyncadd (%p17005_p10), [#allocation3], 4294961152 }
  0x9e   : > { %11922 = dma.done.wait (%p17006_p2), [#allocation6], 14336   ;;  %p17007_p3 = pmov %p17004_p0 }
  0x9f   : > { %p17008_p4 = pmov %p17004_p0 }
  0xa0   : > { %11924 = vsyncadd (%p17007_p3), [#allocation6], 4294952960 }
  0xa1   : > { %11926 = dma.done.wait (%p17008_p4), [#allocation9], 16384   ;;  %p17009_p12 = pmov %p17004_p0 }
  0xa2   : > { %s9989_s16 = sshll.u32 %s12061_s17, 4  ;;  %v16698_v0 = vmov 0.0   ;;  %v558_v1 = vld [vmem:[%s16671_s1 + $0x8] sm:$0xff]  ;;  %v560_v2 = vld [vmem:[%s16671_s1 + $0x18] sm:$0xff]  ;;  %v557_v3 = vld [vmem:[%s16671_s1] sm:$0xff]  ;;  %vm16780_vm0 = vcmask 261120  }
  0xa3   : > { %11928 = vsyncadd (%p17009_p12), [#allocation9], 4294950912  ;;  %678 = vmatprep.mubr.f32.mxu0 %v16698_v0  ;;  %p536_p7 = scmp.lt.s32.totalorder %s9989_s16, 31  ;;  %v10444_v4 = vpack.c.bf16 %v560_v2, %v558_v1  ;;  %v559_v5 = vld [vmem:[%s16671_s1 + $0x10] sm:$0xff]  ;;  %v562_v6 = vld [vmem:[%s16671_s1 + $0x28] sm:$0xff]  ;;  %s17662_s29 = sld [smem:[#allocation150_spill]] }
  0xa4   : > { %v564_v7 = vld [vmem:[%s16671_s1 + $0x38] sm:$0xff]  ;;  %v10446_v8 = vpack.c.bf16 %v559_v5, %v557_v3  ;;  %v561_v10 = vld [vmem:[%s16671_s1 + $0x20] sm:$0xff]  ;;  %v563_v11 = vld [vmem:[%s16671_s1 + $0x30] sm:$0xff]  ;;  %v16717_v2 = vmov 683565275   ;;  %s17663_s27 = sld [smem:[#allocation17_spill]] }
  0xa5   : > { %s17676_s16 = smov (!%p536_p7, %s9989_s16), 31  ;;  %v10448_v9 = vpack.c.bf16 %v564_v7, %v562_v6  ;;  %10445 = vmatprep.subr.bf16.mxu0 %v10444_v4  ;;  %v10450_v12 = vpack.c.bf16 %v563_v11, %v561_v10  ;;  %v16706_v4 = vmov 2475754826   ;;  %v16715_v6 = vmov 2131351028   ;;  %s17665_s11 = sld [smem:[#allocation151_spill]] }
  0xa6   : > { %s9990_s22 = sshll.u32 %s17676_s16, 3  ;;  %10447 = vmatpush1.bf16.msra.mxu0 %v10446_v8  ;;  %v16712_v8 = vmov 2102212464  }
  0xa7   : > { %10449 = vmatprep.subr.bf16.mxu0 %v10448_v9  ;;  %s12272_s15 = scalar_lea.vmem %s16670_s0, %s9990_s22  ;;  %s17664_s22 = sld [smem:[#allocation22_spill]] }
  0xa8   : > { %v541_v13 = vld [vmem:[%s12272_s15] sm:$0xff]  ;;  %v542_v14 = vld [vmem:[%s12272_s15 + $0x8] sm:$0xff]  ;;  %v543_v15 = vld [vmem:[%s12272_s15 + $0x10] sm:$0xff] }
  0xa9   : > { %v544_v16 = vld [vmem:[%s12272_s15 + $0x18] sm:$0xff]  ;;  %v545_v17 = vld [vmem:[%s12272_s15 + $0x20] sm:$0xff]  ;;  %v546_v18 = vld [vmem:[%s12272_s15 + $0x28] sm:$0xff] }
  0xaa   : > { %10451 = vmatpush1.bf16.msra.mxu0 %v10450_v12  ;;  %v547_v19 = vld [vmem:[%s12272_s15 + $0x30] sm:$0xff]  ;;  %v548_v20 = vld [vmem:[%s12272_s15 + $0x38] sm:$0xff]  ;;  %v549_v21 = vld [vmem:[%s12272_s15 + $0x40] sm:$0xff]  ;;  %s532_s25 = sand.u32 1, %s17663_s27  }
  0xab   : > { %v550_v22 = vld [vmem:[%s12272_s15 + $0x48] sm:$0xff]  ;;  %v551_v23 = vld [vmem:[%s12272_s15 + $0x50] sm:$0xff]  ;;  %v552_v24 = vld [vmem:[%s12272_s15 + $0x58] sm:$0xff]  ;;  %s9988_s28 = sshll.u32 %s532_s25, 3  ;;  %s9852_s23 = scalar_lea.sflag [#allocation4], %s532_s25 }
  0xac   : > { %v553_v25 = vld [vmem:[%s12272_s15 + $0x60] sm:$0xff]  ;;  %v554_v26 = vld [vmem:[%s12272_s15 + $0x68] sm:$0xff]  ;;  %v555_v27 = vld [vmem:[%s12272_s15 + $0x70] sm:$0xff]  ;;  %s534_s16 = scalar_lea.vmem [#allocation11], %s9988_s28 }
  0xad   : > { %9991 = vmatmul.mubr.msk.f32.vlgmr.msra.gmra.mrb[0].mxu0 %vm16780_vm0, %v541_v13  ;;  %v556_v28 = vld [vmem:[%s12272_s15 + $0x78] sm:$0xff]  ;;  %v16710_v13 = vmov 920167782   ;;  %s9865_s19 = sshll.u32 %s534_s16, 4  ;;  %p17666_p11 = scmp.ne.s32.totalorder %s17664_s22, 0  ;;  %s16630_s19 = int_to_ptr.vmem [resolvable:$true] %s9865_s19 }
  0xae   : > { %684 = vmatprep.mubr.f32.mxu0 %v16698_v0  ;;  %s11873_s26 = scalar_lea.vmem %s16630_s19, 128 }
  0xaf   : > { %p11874_p8 = scmp.ne.s32.totalorder %s16630_s19, %s11873_s26 }
  0xb1   : > { %9992 = vmatmul.mubr.msk.f32.gmra.mrb[2].mxu0 %vm16780_vm0, %v542_v14  ;;  %p11875_p13 = pnand %p11874_p8, %p17666_p11 }
  0xb2   : > { %690 = vmatprep.mubr.f32.mxu0 %v16698_v0 }
  0xb3   : > { %p11876_p1 = pneg %p11875_p13 }
  0xb5   : > { %9993 = vmatmul.mubr.msk.f32.gmra.mrb[4].mxu0 %vm16780_vm0, %v543_v15 }
  0xb6   : > { %696 = vmatprep.mubr.f32.mxu0 %v16698_v0 }
  0xb9   : > { %9994 = vmatmul.mubr.msk.f32.gmra.mrb[6].mxu0 %vm16780_vm0, %v544_v16  ;;  %v16708_v16 = vmov 1326507024  }
  0xba   : > { %702 = vmatprep.mubr.f32.mxu0 %v16698_v0 }
  0xbd   : > { %9995 = vmatmul.mubr.msk.f32.gmra.mrb[8].mxu0 %vm16780_vm0, %v545_v17 }
  0xbe   : > { %708 = vmatprep.mubr.f32.mxu0 %v16698_v0 }
  0xc1   : > { %9996 = vmatmul.mubr.msk.f32.gmra.mrb[10].mxu0 %vm16780_vm0, %v546_v18 }
  0xc2   : > { %714 = vmatprep.mubr.f32.mxu0 %v16698_v0 }
  0xc5   : > { %9997 = vmatmul.mubr.msk.f32.gmra.mrb[12].mxu0 %vm16780_vm0, %v547_v19 }
  0xc6   : > { %720 = vmatprep.mubr.f32.mxu0 %v16698_v0 }
  0xc9   : > { %9998 = vmatmul.mubr.msk.f32.gmra.mrb[14].mxu0 %vm16780_vm0, %v548_v20 }
  0xca   : > { %726 = vmatprep.mubr.f32.mxu0 %v16698_v0 }
  0xcd   : > { %9999 = vmatmul.mubr.msk.f32.gmra.mrb[16].mxu0 %vm16780_vm0, %v549_v21 }
  0xce   : > { %732 = vmatprep.mubr.f32.mxu0 %v16698_v0 }
  0xd1   : > { %10000 = vmatmul.mubr.msk.f32.gmra.mrb[18].mxu0 %vm16780_vm0, %v550_v22 }
  0xd2   : > { %738 = vmatprep.mubr.f32.mxu0 %v16698_v0 }
  0xd5   : > { %10001 = vmatmul.mubr.msk.f32.gmra.mrb[20].mxu0 %vm16780_vm0, %v551_v23 }
  0xd6   : > { %744 = vmatprep.mubr.f32.mxu0 %v16698_v0 }
  0xd9   : > { %10002 = vmatmul.mubr.msk.f32.gmra.mrb[22].mxu0 %vm16780_vm0, %v552_v24 }
  0xda   : > { %750 = vmatprep.mubr.f32.mxu0 %v16698_v0 }
  0xdd   : > { %10003 = vmatmul.mubr.msk.f32.gmra.mrb[24].mxu0 %vm16780_vm0, %v553_v25 }
  0xde   : > { %756 = vmatprep.mubr.f32.mxu0 %v16698_v0 }
  0xe1   : > { %10004 = vmatmul.mubr.msk.f32.gmra.mrb[26].mxu0 %vm16780_vm0, %v554_v26 }
  0xe2   : > { %762 = vmatprep.mubr.f32.mxu0 %v16698_v0 }
  0xe5   : > { %10005 = vmatmul.mubr.msk.f32.gmra.mrb[28].mxu0 %vm16780_vm0, %v555_v27 }
  0xe6   : > { %768 = vmatprep.mubr.f32.mxu0 %v16698_v0 }
  0xe9   : > { %10006 = vmatmul.mubr.msk.f32.gmra.mrb[30].mxu0 %vm16780_vm0, %v556_v28 }
 0x180   : > { %v12321_v29 = vpop.f32.mrb[0].mxu0 }
 0x181   : > { %17010 = vst [vmem:[#allocation24_spill] sm:$0xff] %v12321_v29  ;;  %v775_v30 = vand.u32 2147483647, %v12321_v29  ;;  %v778_v31 = vand.u32 2139095040, %v12321_v29  ;;  %v12325_v32 = vpop.f32.mrb[1].mxu0 }
 0x182   : > { %17011 = vst [vmem:[#allocation25_spill] sm:$0xff] %v12325_v32  ;;  %v16703_v33 = vand.u32 2147483647, %v12325_v32  ;;  %v882_v34 = vand.u32 2139095040, %v12325_v32 }
 0x183   : > { %v779_v35 = vshrl.u32 %v778_v31, 23  ;;  %v782_v36 = vand.u32 8388607, %v775_v30 }
 0x184   : > { %v883_v37 = vshrl.u32 %v882_v34, 23  ;;  %v886_v38 = vand.u32 8388607, %v16703_v33  ;;  %v12333_v39 = vpop.f32.mrb[2].mxu0 }
 0x185   : > { %17012 = vst [vmem:[#allocation26_spill] sm:$0xff] %v12333_v39  ;;  %v10007_v40 = vadd.s32 4294967169, %v779_v35  ;;  %v12335_v41 = vpop.f32.mrb[3].mxu0  ;;  %v986_v43 = vand.u32 2139095040, %v12333_v39  ;;  %v783_v45 = vor.u32 8388608, %v782_v36 }
 0x186   : > { %17013 = vst [vmem:[#allocation27_spill] sm:$0xff] %v12335_v41  ;;  %v10011_v42 = vadd.s32 4294967169, %v883_v37  ;;  %v887_v46 = vor.u32 8388608, %v886_v38  ;;  %v16702_v48 = vand.u32 2147483647, %v12333_v39 }
 0x187   : > { %v785_v44 = vadd.s32 1, %v10007_v40  ;;  %v987_v50 = vshrl.u32 %v986_v43, 23  ;;  %v12343_v56 = vshll.u32 %v783_v45, 8 }
 0x188   : > { %v889_v47 = vadd.s32 1, %v10011_v42  ;;  %v12339_v49 = vpop.f32.mrb[4].mxu0  ;;  %v12345_v57 = vshll.u32 %v887_v46, 8  ;;  %v12349_v58 = vand.u32 8388607, %v16702_v48 }
 0x189   : > { %17014 = vst [vmem:[#allocation28_spill] sm:$0xff] %v12339_v49  ;;  %vm786_vm1 = vcmp.gt.s32.totalorder %v785_v44, 0  ;;  %v12341_v51 = vpop.f32.mrb[5].mxu0  ;;  %v10015_v63 = vadd.s32 4294967169, %v987_v50 }
 0x18a   : > { %17015 = vst [vmem:[#allocation29_spill] sm:$0xff] %v12341_v51  ;;  %v787_v52 = vsel %vm786_vm1, %v785_v44, 0  ;;  %vm890_vm2 = vcmp.gt.s32.totalorder %v889_v47, 0 }
 0x18b   : > { %v789_v53 = vand.u32 31, %v787_v52  ;;  %v891_v54 = vsel %vm890_vm2, %v889_v47, 0  ;;  %v788_v55 = vshrl.u32 %v787_v52, 5 }
 0x18c   : > { %v12351_v59 = vpop.f32.mrb[6].mxu0  ;;  %v12353_v61 = vshrl.u32 %v891_v54, 5  ;;  %v893_v62 = vand.u32 31, %v891_v54 }
 0x18d   : > { %17016 = vst [vmem:[#allocation30_spill] sm:$0xff] %v12351_v59  ;;  %v790_v60 = vsub.s32 32, %v789_v53  ;;  %v12355_v1 = vpop.f32.mrb[7].mxu0  ;;  %v792_v3 = vshll.u32 %v16717_v2, %v789_v53  ;;  %v795_v5 = vshll.u32 %v16706_v4, %v789_v53  ;;  %v798_v7 = vshll.u32 %v16715_v6, %v789_v53 }
 0x18e   : > { %17017 = vst [vmem:[#allocation31_spill] sm:$0xff] %v12355_v1  ;;  %v801_v9 = vshll.u32 %v16712_v8, %v789_v53  ;;  %v804_v14 = vshll.u32 %v16710_v13, %v789_v53  ;;  %vm807_vm3 = vcmp.lt.s32.totalorder %v788_v55, 1  ;;  %vm808_vm4 = vcmp.lt.s32.totalorder %v788_v55, 2 }
 0x18f   : > { %v793_v10 = vshrl.u32 %v16706_v4, %v790_v60  ;;  %v796_v11 = vshrl.u32 %v16715_v6, %v790_v60  ;;  %v799_v12 = vshrl.u32 %v16712_v8, %v790_v60  ;;  %v802_v15 = vshrl.u32 %v16710_v13, %v790_v60 }
 0x190   : > { %v805_v17 = vshrl.u32 %v16708_v16, %v790_v60  ;;  %v12367_v18 = vpop.f32.mrb[8].mxu0  ;;  %v894_v22 = vsub.s32 32, %v893_v62  ;;  %v791_v23 = vshrl.u32 %v16717_v2, %v790_v60  ;;  %vm810_vm5 = vcmp.lt.s32.totalorder %v788_v55, 4 }
 0x191   : > { %17018 = vst [vmem:[#allocation32_spill] sm:$0xff] %v12367_v18  ;;  %v794_v19 = vor.u32 %v793_v10, %v792_v3  ;;  %v797_v20 = vor.u32 %v796_v11, %v795_v5  ;;  %v800_v21 = vor.u32 %v799_v12, %v798_v7  ;;  %v803_v24 = vor.u32 %v802_v15, %v801_v9 }
 0x192   : > { %v806_v25 = vor.u32 %v805_v17, %v804_v14  ;;  %vm809_vm6 = vcmp.lt.s32.totalorder %v788_v55, 3  ;;  %v896_v35 = vshll.u32 %v16717_v2, %v893_v62  ;;  %v899_v36 = vshll.u32 %v16706_v4, %v893_v62 }
 0x193   : > { %v812_v26 = vsel %vm810_vm5, %v800_v21, 2102212464  ;;  %v815_v27 = vsel %vm807_vm3, %v794_v19, %v797_v20  ;;  %v819_v28 = vsel %vm807_vm3, %v797_v20, %v800_v21  ;;  %v816_v31 = vsel %vm810_vm5, %v803_v24, 920167782 }
 0x194   : > { %v820_v34 = vsel %vm810_vm5, %v806_v25, 1326507024  ;;  %v811_v37 = vsel %vm807_vm3, %v791_v23, %v794_v19  ;;  %v817_v38 = vsel %vm809_vm6, %v800_v21, %v816_v31  ;;  %v897_v42 = vshrl.u32 %v16706_v4, %v894_v22 }
 0x195   : > { %v821_v40 = vsel %vm809_vm6, %v803_v24, %v820_v34  ;;  %v813_v43 = vsel %vm809_vm6, %v797_v20, %v812_v26  ;;  %v818_v44 = vsel %vm808_vm4, %v815_v27, %v817_v38  ;;  %v900_v46 = vshrl.u32 %v16715_v6, %v894_v22 }
 0x196   : > { %v822_v45 = vsel %vm808_vm4, %v819_v28, %v821_v40  ;;  %v12384_v52 = vmul.u32.u64.low %v12343_v56, %v818_v44  ;;  %v12385_v53 = vmul.u32.u64.high %v12343_v56, %v818_v44, %v12384_v52  ;;  %v898_v54 = vor.u32 %v897_v42, %v896_v35 }
 0x197   : > { %v12380_v47 = vmul.u32.u64.low %v12343_v56, %v822_v45  ;;  %v12381_v50 = vmul.u32.u64.high %v12343_v56, %v822_v45, %v12380_v47  ;;  %v901_v60 = vor.u32 %v900_v46, %v899_v36  ;;  %v902_v3 = vshll.u32 %v16715_v6, %v893_v62  ;;  %v12429_v46 = vpop.f32.mrb[9].mxu0 }
 0x198   : > { %v903_v5 = vshrl.u32 %v16712_v8, %v894_v22  ;;  %v814_v7 = vsel %vm808_vm4, %v811_v37, %v813_v43  ;;  %v905_v9 = vshll.u32 %v16712_v8, %v893_v62  ;;  %v906_v10 = vshrl.u32 %v16710_v13, %v894_v22  ;;  %17019 = vst [vmem:[#allocation33_spill] sm:$0xff] %v12429_v46 }
 0x199   : > { %v909_v11 = vshrl.u32 %v16708_v16, %v894_v22  ;;  %v908_v14 = vshll.u32 %v16710_v13, %v893_v62  ;;  %v993_v15 = vadd.s32 1, %v10015_v63  ;;  %v1090_v17 = vand.u32 2139095040, %v12335_v41 }
 0x19a   : > { %v904_v12 = vor.u32 %v903_v5, %v902_v3  ;;  %vm832_vm7 = vc.u32 %v12381_v50, %v12384_v52  ;;  %v833_v19 = vadd.s32 1, %v12385_v53  ;;  %v907_v20 = vor.u32 %v906_v10, %v905_v9 }
 0x19b   : > { %vm911_vm8 = vcmp.lt.s32.totalorder %v12353_v61, 1  ;;  %v830_v55 = vmul.u32 %v12343_v56, %v814_v7  ;;  %v910_v21 = vor.u32 %v909_v11, %v908_v14  ;;  %vm914_vm9 = vcmp.lt.s32.totalorder %v12353_v61, 4 }
 0x19c   : > { %v919_v23 = vsel %vm911_vm8, %v898_v54, %v901_v60  ;;  %v834_v62 = vsel %vm832_vm7, %v833_v19, %v12385_v53  ;;  %vm913_vm10 = vcmp.lt.s32.totalorder %v12353_v61, 3  ;;  %v920_v63 = vsel %vm914_vm9, %v907_v20, 920167782 }
 0x19d   : > { %v923_v24 = vsel %vm911_vm8, %v901_v60, %v904_v12  ;;  %v835_v25 = vadd.s32 %v834_v62, %v830_v55  ;;  %vm912_vm11 = vcmp.lt.s32.totalorder %v12353_v61, 2  ;;  %v921_v56 = vsel %vm913_vm10, %v904_v12, %v920_v63 }
 0x19e   : > { %v924_v26 = vsel %vm914_vm9, %v910_v21, 1326507024  ;;  %v916_v27 = vsel %vm914_vm9, %v904_v12, 2102212464  ;;  %v922_v28 = vsel %vm912_vm11, %v919_v23, %v921_v56  ;;  %vm994_vm12 = vcmp.gt.s32.totalorder %v993_v15, 0 }
 0x19f   : > { %v925_v31 = vsel %vm913_vm10, %v907_v20, %v924_v26  ;;  %v836_v34 = vadd.s32 536870912, %v835_v25  ;;  %v12418_v36 = vmul.u32.u64.low %v12345_v57, %v922_v28  ;;  %v12419_v37 = vmul.u32.u64.high %v12345_v57, %v922_v28, %v12418_v36 }
 0x1a0   : > { %v926_v35 = vsel %vm912_vm11, %v923_v24, %v925_v31  ;;  %v895_v38 = vshrl.u32 %v16717_v2, %v894_v22  ;;  %v995_v43 = vsel %vm994_vm12, %v993_v15, 0  ;;  %v917_v53 = vsel %vm913_vm10, %v901_v60, %v916_v27 }
 0x1a1   : > { %v12424_v40 = vmul.u32.u64.low %v12345_v57, %v926_v35  ;;  %v12425_v42 = vmul.u32.u64.high %v12345_v57, %v926_v35, %v12424_v40  ;;  %v12427_v44 = vshrl.u32 %v836_v34, 30  ;;  %v997_v45 = vand.u32 31, %v995_v43 }
 0x1a2   : > { %v915_v47 = vsel %vm911_vm8, %v895_v38, %v898_v54  ;;  %v937_v22 = vadd.s32 1, %v12419_v37  ;;  %v991_v7 = vor.u32 8388608, %v12349_v58  ;;  %v1091_v9 = vshrl.u32 %v1090_v17, 23 }
 0x1a3   : > { %v838_v3 = vshll.u32 %v12427_v44, 30  ;;  %v998_v5 = vsub.s32 32, %v997_v45  ;;  %vm936_vm13 = vc.u32 %v12425_v42, %v12418_v36  ;;  %v918_v10 = vsel %vm912_vm11, %v915_v47, %v917_v53 }
 0x1a4   : > { %v996_v11 = vshrl.u32 %v995_v43, 5  ;;  %v1000_v54 = vshll.u32 %v16717_v2, %v997_v45  ;;  %v1003_v12 = vshll.u32 %v16706_v4, %v997_v45  ;;  %v938_v14 = vsel %vm936_vm13, %v937_v22, %v12419_v37 }
 0x1a5   : > { %v12444_v60 = vsub.s32 %v835_v25, %v838_v3  ;;  %v1001_v15 = vshrl.u32 %v16706_v4, %v998_v5  ;;  %v1004_v19 = vshrl.u32 %v16715_v6, %v998_v5  ;;  %v1006_v20 = vshll.u32 %v16715_v6, %v997_v45 }
 0x1a6   : > { %v1007_v58 = vshrl.u32 %v16712_v8, %v998_v5  ;;  %v1009_v61 = vshll.u32 %v16712_v8, %v997_v45  ;;  %v1010_v17 = vshrl.u32 %v16710_v13, %v998_v5  ;;  %v934_v55 = vmul.u32 %v12345_v57, %v918_v10 }
 0x1a7   : > { %v1002_v21 = vor.u32 %v1001_v15, %v1000_v54  ;;  %v1005_v23 = vor.u32 %v1004_v19, %v1003_v12  ;;  %v1012_v24 = vshll.u32 %v16710_v13, %v997_v45  ;;  %v1013_v25 = vshrl.u32 %v16708_v16, %v998_v5 }
 0x1a8   : > { %v1008_v62 = vor.u32 %v1007_v58, %v1006_v20  ;;  %v1011_v63 = vor.u32 %v1010_v17, %v1009_v61  ;;  %v841_v56 = vsub.s32 0, %v12444_v60  ;;  %v939_v26 = vadd.s32 %v938_v14, %v934_v55 }
 0x1a9   : > { %v1031_v27 = vshll.u32 %v991_v7, 8  ;;  %v1014_v28 = vor.u32 %v1013_v25, %v1012_v24  ;;  %vm1015_vm14 = vcmp.lt.s32.totalorder %v996_v11, 1  ;;  %vm1018_vm15 = vcmp.lt.s32.totalorder %v996_v11, 4 }
 0x1aa   : > { %v10019_v31 = vadd.s32 4294967169, %v1091_v9  ;;  %v999_v34 = vshrl.u32 %v16717_v2, %v998_v5  ;;  %vm1017_vm1 = vcmp.lt.s32.totalorder %v996_v11, 3  ;;  %v1023_v57 = vsel %vm1015_vm14, %v1002_v21, %v1005_v23 }
 0x1ab   : > { %v1024_v35 = vsel %vm1018_vm15, %v1011_v63, 920167782  ;;  %vm1016_vm2 = vcmp.lt.s32.totalorder %v996_v11, 2  ;;  %v1020_v37 = vsel %vm1018_vm15, %v1008_v62, 2102212464  ;;  %v1027_v40 = vsel %vm1015_vm14, %v1005_v23, %v1008_v62 }
 0x1ac   : > { %v1025_v38 = vsel %vm1017_vm1, %v1008_v62, %v1024_v35  ;;  %v10008_v43 = vmin.u32 %v841_v56, %v12444_v60  ;;  %v940_v45 = vadd.s32 536870912, %v939_v26  ;;  %v1028_v53 = vsel %vm1018_vm15, %v1014_v28, 1326507024 }
 0x1ad   : > { %v1026_v47 = vsel %vm1016_vm2, %v1023_v57, %v1025_v38  ;;  %v1029_v3 = vsel %vm1017_vm1, %v1011_v63, %v1028_v53  ;;  %v1019_v5 = vsel %vm1015_vm14, %v999_v34, %v1002_v21  ;;  %v1021_v9 = vsel %vm1017_vm1, %v1005_v23, %v1020_v37 }
 0x1ae   : > { %v12462_v22 = vmul.u32.u64.low %v1031_v27, %v1026_v47  ;;  %v12463_v7 = vmul.u32.u64.high %v1031_v27, %v1026_v47, %v12462_v22  ;;  %v1030_v10 = vsel %vm1016_vm2, %v1027_v40, %v1029_v3  ;;  %v1097_v54 = vadd.s32 1, %v10019_v31  ;;  %v12484_v31 = vpop.f32.mrb[10].mxu0 }
 0x1af   : > { %v843_v12 = vclz %v10008_v43  ;;  %v12468_v14 = vshrl.u32 %v940_v45, 30  ;;  %v12470_v15 = vmul.u32.u64.low %v1031_v27, %v1030_v10  ;;  %v12471_v19 = vmul.u32.u64.high %v1031_v27, %v1030_v10, %v12470_v15  ;;  %17021 = vst [vmem:[#allocation35_spill] sm:$0xff] %v12484_v31 }
 0x1b0   : > { %v1022_v20 = vsel %vm1016_vm2, %v1019_v5, %v1021_v9  ;;  %v1041_v58 = vadd.s32 1, %v12463_v7  ;;  %vm1098_vm3 = vcmp.gt.s32.totalorder %v1097_v54, 0  ;;  %v16701_v17 = vand.u32 2147483647, %v12335_v41 }
 0x1b1   : > { %17020 = vst [vmem:[#allocation34_spill] sm:$0xff] %v12468_v14  ;;  %v1099_v61 = vsel %vm1098_vm3, %v1097_v54, 0  ;;  %v10009_v21 = vadd.s32 4294967294, %v843_v12  ;;  %v942_v23 = vshll.u32 %v12468_v14, 30  ;;  %v1038_v62 = vmul.u32 %v1031_v27, %v1022_v20 }
 0x1b2   : > { %v1101_v55 = vand.u32 31, %v1099_v61  ;;  %vm1040_vm4 = vc.u32 %v12471_v19, %v12462_v22  ;;  %v1094_v28 = vand.u32 8388607, %v16701_v17  ;;  %v1194_v35 = vand.u32 2139095040, %v12339_v49 }
 0x1b3   : > { %v1042_v63 = vsel %vm1040_vm4, %v1041_v58, %v12463_v7  ;;  %vm10010_vm5 = vcmp.lt.s32.totalorder %v10009_v21, 0  ;;  %v12480_v11 = vsub.s32 %v939_v26, %v942_v23  ;;  %v1100_v3 = vshrl.u32 %v1099_v61, 5 }
 0x1b4   : > { %v1043_v24 = vadd.s32 %v1042_v63, %v1038_v62  ;;  %v1102_v25 = vsub.s32 32, %v1101_v55  ;;  %v12491_v37 = vsel %vm10010_vm5, 0, %v10009_v21  ;;  %v1095_v43 = vor.u32 8388608, %v1094_v28 }
 0x1b5   : > { %v945_v40 = vsub.s32 0, %v12480_v11  ;;  %v1104_v45 = vshll.u32 %v16717_v2, %v1101_v55  ;;  %v1107_v47 = vshll.u32 %v16706_v4, %v1101_v55  ;;  %v1110_v7 = vshll.u32 %v16715_v6, %v1101_v55 }
 0x1b6   : > { %v1044_v56 = vadd.s32 536870912, %v1043_v24  ;;  %v1105_v27 = vshrl.u32 %v16706_v4, %v1102_v25  ;;  %v1108_v57 = vshrl.u32 %v16715_v6, %v1102_v25  ;;  %v1111_v38 = vshrl.u32 %v16712_v8, %v1102_v25 }
 0x1b7   : > { %v1114_v26 = vshrl.u32 %v16710_v13, %v1102_v25  ;;  %v1113_v5 = vshll.u32 %v16712_v8, %v1101_v55  ;;  %v851_v9 = vsub.s32 4294967266, %v12491_v37  ;;  %v1195_v12 = vshrl.u32 %v1194_v35, 23 }
 0x1b8   : > { %v12486_v34 = vshrl.u32 %v1044_v56, 30  ;;  %v1106_v10 = vor.u32 %v1105_v27, %v1104_v45  ;;  %v1109_v54 = vor.u32 %v1108_v57, %v1107_v47  ;;  %v1112_v15 = vor.u32 %v1111_v38, %v1110_v7 }
 0x1b9   : > { %v1115_v20 = vor.u32 %v1114_v26, %v1113_v5  ;;  %v1116_v58 = vshll.u32 %v16710_v13, %v1101_v55  ;;  %v1117_v21 = vshrl.u32 %v16708_v16, %v1102_v25  ;;  %v847_v23 = vsub.s32 32, %v12491_v37 }
 0x1ba   : > { %v1046_v53 = vshll.u32 %v12486_v34, 30  ;;  %v10012_v62 = vmin.u32 %v945_v40, %v12480_v11  ;;  %vm1119_vm6 = vcmp.lt.s32.totalorder %v1100_v3, 1  ;;  %v1135_v56 = vshll.u32 %v1095_v43, 8 }
 0x1bb   : > { %v1118_v63 = vor.u32 %v1117_v21, %v1116_v58  ;;  %v852_v28 = vadd.s32 127, %v851_v9  ;;  %vm1122_vm7 = vcmp.lt.s32.totalorder %v1100_v3, 4  ;;  %v1127_v27 = vsel %vm1119_vm6, %v1106_v10, %v1109_v54 }
 0x1bc   : > { %v12506_v61 = vsub.s32 %v1043_v24, %v1046_v53  ;;  %v10023_v57 = vadd.s32 4294967169, %v1195_v12  ;;  %vm1121_vm8 = vcmp.lt.s32.totalorder %v1100_v3, 3  ;;  %v1128_v35 = vsel %vm1122_vm7, %v1115_v20, 920167782 }
 0x1bd   : > { %v1131_v55 = vsel %vm1119_vm6, %v1109_v54, %v1112_v15  ;;  %v1132_v38 = vsel %vm1122_vm7, %v1118_v63, 1326507024  ;;  %v947_v26 = vclz %v10012_v62  ;;  %vm1120_vm9 = vcmp.lt.s32.totalorder %v1100_v3, 2 }
 0x1be   : > { %v1124_v45 = vsel %vm1122_vm7, %v1112_v15, 2102212464  ;;  %v1129_v40 = vsel %vm1121_vm8, %v1112_v15, %v1128_v35  ;;  %v1049_v24 = vsub.s32 0, %v12506_v61  ;;  %v1103_v47 = vshrl.u32 %v16717_v2, %v1102_v25 }
 0x1bf   : > { %v1130_v43 = vsel %vm1120_vm9, %v1127_v27, %v1129_v40  ;;  %v1133_v53 = vsel %vm1121_vm8, %v1115_v20, %v1132_v38  ;;  %v831_v7 = vadd.s32 %v12384_v52, %v12381_v50  ;;  %v1201_v9 = vadd.s32 1, %v10023_v57  ;;  %v12532_v57 = vpop.f32.mrb[11].mxu0 }
 0x1c0   : > { %v1134_v5 = vsel %vm1120_vm9, %v1131_v55, %v1133_v53  ;;  %v1123_v12 = vsel %vm1119_vm6, %v1103_v47, %v1106_v10  ;;  %v1125_v58 = vsel %vm1121_vm8, %v1109_v54, %v1124_v45  ;;  %v853_v63 = vshll.u32 %v852_v28, 23  ;;  %17022 = vst [vmem:[#allocation36_spill] sm:$0xff] %v12532_v57 }
 0x1c1   : > { %v12520_v21 = vmul.u32.u64.low %v1135_v56, %v1134_v5  ;;  %v12521_v15 = vmul.u32.u64.high %v1135_v56, %v1134_v5, %v12520_v21  ;;  %v849_v62 = vshrl.u32 %v831_v7, %v847_v23  ;;  %v10013_v20 = vadd.s32 4294967294, %v947_v26 }
 0x1c2   : > { %v12523_v25 = vmul.u32.u64.low %v1135_v56, %v1130_v43  ;;  %v12524_v35 = vmul.u32.u64.high %v1135_v56, %v1130_v43, %v12523_v25  ;;  %v10016_v27 = vmin.u32 %v1049_v24, %v12506_v61  ;;  %vm1202_vm10 = vcmp.gt.s32.totalorder %v1201_v9, 0 }
 0x1c3   : > { %v848_v50 = vshll.u32 %v12444_v60, %v12491_v37  ;;  %v1126_v52 = vsel %vm1120_vm9, %v1123_v12, %v1125_v58  ;;  %v16700_v10 = vand.u32 2147483647, %v12339_v49  ;;  %v1203_v54 = vsel %vm1202_vm10, %v1201_v9, 0 }
 0x1c4   : > { %vm1144_vm11 = vc.u32 %v12521_v15, %v12523_v25  ;;  %v1205_v23 = vand.u32 31, %v1203_v54  ;;  %v854_v55 = vor.u32 4788187, %v853_v63  ;;  %v1145_v38 = vadd.s32 1, %v12524_v35 }
 0x1c5   : > { %v850_v28 = vor.u32 %v849_v62, %v848_v50  ;;  %vm10014_vm12 = vcmp.lt.s32.totalorder %v10013_v20, 0  ;;  %v1051_v26 = vclz %v10016_v27  ;;  %v1142_v45 = vmul.u32 %v1135_v56, %v1126_v52 }
 0x1c6   : > { %v1206_v40 = vsub.s32 32, %v1205_v23  ;;  %v1146_v60 = vsel %vm1144_vm11, %v1145_v38, %v12524_v35  ;;  %v1198_v37 = vand.u32 8388607, %v16700_v10  ;;  %v1204_v3 = vshrl.u32 %v1203_v54, 5 }
 0x1c7   : > { %v1208_v24 = vshll.u32 %v16717_v2, %v1205_v23  ;;  %v1147_v47 = vadd.s32 %v1146_v60, %v1142_v45  ;;  %v1211_v53 = vshll.u32 %v16706_v4, %v1205_v23  ;;  %v1214_v5 = vshll.u32 %v16715_v6, %v1205_v23 }
 0x1c8   : > { %v1209_v43 = vshrl.u32 %v16706_v4, %v1206_v40  ;;  %v1212_v7 = vshrl.u32 %v16715_v6, %v1206_v40  ;;  %v1215_v56 = vshrl.u32 %v16712_v8, %v1206_v40  ;;  %v1217_v9 = vshll.u32 %v16712_v8, %v1205_v23 }
 0x1c9   : > { %v1218_v12 = vshrl.u32 %v16710_v13, %v1206_v40  ;;  %v12549_v58 = vsel %vm10014_vm12, 0, %v10013_v20  ;;  %v1148_v21 = vadd.s32 536870912, %v1147_v47  ;;  %v1220_v50 = vshll.u32 %v16710_v13, %v1205_v23 }
 0x1ca   : > { %v1210_v62 = vor.u32 %v1209_v43, %v1208_v24  ;;  %v1213_v63 = vor.u32 %v1212_v7, %v1211_v53  ;;  %v1216_v35 = vor.u32 %v1215_v56, %v1214_v5  ;;  %v1221_v52 = vshrl.u32 %v16708_v16, %v1206_v40 }
 0x1cb   : > { %v1219_v27 = vor.u32 %v1218_v12, %v1217_v9  ;;  %v855_v54 = vand.u32 2147483647, %v854_v55  ;;  %v857_v38 = vcvt.s32.f32 %v850_v28  ;;  %v12553_v45 = vshrl.u32 %v1148_v21, 30 }
 0x1cc   : > { %v10017_v60 = vadd.s32 4294967294, %v1051_v26  ;;  %v1199_v0 = vor.u32 8388608, %v1198_v37  ;;  %v1222_v10 = vor.u32 %v1221_v52, %v1220_v50  ;;  %vm1223_vm13 = vcmp.lt.s32.totalorder %v1204_v3, 1 }
 0x1cd   : > { %v951_v20 = vsub.s32 32, %v12549_v58  ;;  %v1150_v17 = vshll.u32 %v12553_v45, 30  ;;  %vm1226_vm14 = vcmp.lt.s32.totalorder %v1204_v3, 4  ;;  %v1231_v24 = vsel %vm1223_vm13, %v1210_v62, %v1213_v63 }
 0x1ce   : > { %v955_v43 = vsub.s32 4294967266, %v12549_v58  ;;  %vm1225_vm15 = vcmp.lt.s32.totalorder %v1204_v3, 3  ;;  %v1228_v23 = vsel %vm1226_vm14, %v1216_v35, 2102212464  ;;  %v1232_v53 = vsel %vm1226_vm14, %v1219_v27, 920167782 }
 0x1cf   : > { %v1207_v28 = vshrl.u32 %v16717_v2, %v1206_v40  ;;  %vm1224_vm1 = vcmp.lt.s32.totalorder %v1204_v3, 2  ;;  %v1233_v55 = vsel %vm1225_vm15, %v1216_v35, %v1232_v53  ;;  %v1235_v26 = vsel %vm1223_vm13, %v1213_v63, %v1216_v35 }
 0x1d0   : > { %vm10018_vm2 = vcmp.lt.s32.totalorder %v10017_v60, 0  ;;  %v1234_v37 = vsel %vm1224_vm1, %v1231_v24, %v1233_v55  ;;  %v1236_v7 = vsel %vm1226_vm14, %v1222_v10, 1326507024  ;;  %v1239_v5 = vshll.u32 %v1199_v0, 8 }
 0x1d1   : > { %v12562_v56 = vsub.s32 %v1147_v47, %v1150_v17  ;;  %v1227_v9 = vsel %vm1223_vm13, %v1207_v28, %v1210_v62  ;;  %v1229_v12 = vsel %vm1225_vm15, %v1213_v63, %v1228_v23  ;;  %v1237_v21 = vsel %vm1225_vm15, %v1219_v27, %v1236_v7  ;;  %v12595_v7 = vpop.f32.mrb[12].mxu0 }
 0x1d2   : > { %v858_v50 = vmul.f32 %v857_v38, %v855_v54  ;;  %v1238_v52 = vsel %vm1224_vm1, %v1235_v26, %v1237_v21  ;;  %v12566_v48 = vmul.u32.u64.low %v1239_v5, %v1234_v37  ;;  %v12567_v40 = vmul.u32.u64.high %v1239_v5, %v1234_v37, %v12566_v48  ;;  %17026 = vst [vmem:[#allocation38_spill] sm:$0xff] %v12595_v7 }
 0x1d3   : > { %v956_v53 = vadd.s32 127, %v955_v43  ;;  %v12570_v35 = vmul.u32.u64.low %v1239_v5, %v1238_v52  ;;  %v12571_v33 = vmul.u32.u64.high %v1239_v5, %v1238_v52, %v12570_v35  ;;  %v935_v0 = vadd.s32 %v12418_v36, %v12425_v42 }
 0x1d4   : > { %v1054_v17 = vsel %vm10018_vm2, 0, %v10017_v60  ;;  %v1230_v10 = vsel %vm1224_vm1, %v1227_v9, %v1229_v12  ;;  %v1298_v47 = vand.u32 2139095040, %v12341_v51  ;;  %v952_v62 = vshll.u32 %v12480_v11, %v12549_v58 }
 0x1d5   : > { %v1153_v63 = vsub.s32 0, %v12562_v56  ;;  %v859_v27 = vxor.u32 2147483648, %v858_v50  ;;  %v953_v54 = vshrl.u32 %v935_v0, %v951_v20  ;;  %v1249_v38 = vadd.s32 1, %v12567_v40 }
 0x1d6   : > { %v1299_v24 = vshrl.u32 %v1298_v47, 23  ;;  %v957_v43 = vshll.u32 %v956_v53, 23  ;;  %v1055_v23 = vsub.s32 32, %v1054_v17  ;;  %v1246_v28 = vmul.u32 %v1239_v5, %v1230_v10 }
 0x1d7   : > { %vm1248_vm3 = vc.u32 %v12571_v33, %v12566_v48  ;;  %v1059_v36 = vsub.s32 4294967266, %v1054_v17  ;;  %v1402_v60 = vand.u32 2139095040, %v12351_v59  ;;  %v1039_v11 = vadd.s32 %v12462_v22, %v12471_v19 }
 0x1d8   : > { %v1250_v42 = vsel %vm1248_vm3, %v1249_v38, %v12567_v40  ;;  %v10027_v3 = vadd.s32 4294967169, %v1299_v24  ;;  %v10020_v58 = vmin.u32 %v1153_v63, %v12562_v56  ;;  %vm12590_vm4 = vcmp.le.f32.partialorder %v775_v30, 0.7853982 }
 0x1d9   : > { %v1251_v20 = vadd.s32 %v1250_v42, %v1246_v28  ;;  %v17023_v55 = vmov 0  ;;  %vm777_vm5 = vcmp.lt.s32.totalorder %v12321_v29, 0  ;;  %v954_v26 = vor.u32 %v953_v54, %v952_v62 }
 0x1da   : > { %v17024_v55 = vsel %vm12590_vm4, 4294967295, %v17023_v55  ;;  %v1305_v37 = vadd.s32 1, %v10027_v3  ;;  %v860_v5 = vsel %vm777_vm5, %v859_v27, %v858_v50  ;;  %v958_v9 = vor.u32 4788187, %v957_v43 }
 0x1db   : > { %17025 = vst [vmem:[#allocation37_spill] sm:$0xff] %v17024_v55  ;;  %v1057_v22 = vshrl.u32 %v1039_v11, %v1055_v23  ;;  %v1252_v19 = vadd.s32 536870912, %v1251_v20  ;;  %v1060_v12 = vadd.s32 127, %v1059_v36  ;;  %v16704_v21 = vand.u32 2147483647, %v12341_v51 }
 0x1dc   : > { %vm1306_vm6 = vcmp.gt.s32.totalorder %v1305_v37, 0  ;;  %v1403_v30 = vshrl.u32 %v1402_v60, 23  ;;  %v1056_v52 = vshll.u32 %v12506_v61, %v1054_v17  ;;  %v1155_v40 = vclz %v10020_v58 }
 0x1dd   : > { %v12601_v53 = vshrl.u32 %v1252_v19, 30  ;;  %v1307_v35 = vsel %vm1306_vm6, %v1305_v37, 0  ;;  %v12606_v0 = vsel %vm12590_vm4, %v12321_v29, %v860_v5  ;;  %v959_v10 = vand.u32 2147483647, %v958_v9 }
 0x1de   : > { %v1309_v50 = vand.u32 31, %v1307_v35  ;;  %v961_v47 = vcvt.s32.f32 %v954_v26  ;;  %v12608_v62 = vor.u32 %v1057_v22, %v1056_v52  ;;  %v1061_v27 = vshll.u32 %v1060_v12, 23 }
 0x1df   : > { %v1254_v63 = vshll.u32 %v12601_v53, 30  ;;  %v1302_v61 = vand.u32 8388607, %v16704_v21  ;;  %v10031_v54 = vadd.s32 4294967169, %v1403_v30  ;;  %v10021_v38 = vadd.s32 4294967294, %v1155_v40 }
 0x1e0   : > { %v1310_v17 = vsub.s32 32, %v1309_v50  ;;  %v1312_v43 = vshll.u32 %v16717_v2, %v1309_v50  ;;  %v1315_v23 = vshll.u32 %v16706_v4, %v1309_v50  ;;  %v1318_v42 = vshll.u32 %v16715_v6, %v1309_v50 }
 0x1e1   : > { %v12613_v24 = vsub.s32 %v1251_v20, %v1254_v63  ;;  %v1308_v11 = vshrl.u32 %v1307_v35, 5  ;;  %v1321_v58 = vshll.u32 %v16712_v8, %v1309_v50  ;;  %v1409_v9 = vadd.s32 1, %v10031_v54 }
 0x1e2   : > { %v1313_v28 = vshrl.u32 %v16706_v4, %v1310_v17  ;;  %v1316_v36 = vshrl.u32 %v16715_v6, %v1310_v17  ;;  %v1319_v3 = vshrl.u32 %v16712_v8, %v1310_v17  ;;  %v1322_v20 = vshrl.u32 %v16710_v13, %v1310_v17 }
 0x1e3   : > { %v1257_v60 = vsub.s32 0, %v12613_v24  ;;  %v1324_v12 = vshll.u32 %v16710_v13, %v1309_v50  ;;  %v1325_v30 = vshrl.u32 %v16708_v16, %v1310_v17  ;;  %v12627_v52 = vmul.f32 %v961_v47, %v959_v10 }
 0x1e4   : > { %v1314_v26 = vor.u32 %v1313_v28, %v1312_v43  ;;  %v1317_v37 = vor.u32 %v1316_v36, %v1315_v23  ;;  %v1320_v5 = vor.u32 %v1319_v3, %v1318_v42  ;;  %v1323_v19 = vor.u32 %v1322_v20, %v1321_v58 }
 0x1e5   : > { %v10024_v22 = vmin.u32 %v1257_v60, %v12613_v24  ;;  %v1062_v40 = vor.u32 4788187, %v1061_v27  ;;  %v1065_v35 = vcvt.s32.f32 %v12608_v62  ;;  %v1303_v63 = vor.u32 8388608, %v1302_v61 }
 0x1e6   : > { %vm10022_vm7 = vcmp.lt.s32.totalorder %v10021_v38, 0  ;;  %v1326_v21 = vor.u32 %v1325_v30, %v1324_v12  ;;  %vm1327_vm8 = vcmp.lt.s32.totalorder %v1308_v11, 1  ;;  %vm1330_vm9 = vcmp.lt.s32.totalorder %v1308_v11, 4 }
 0x1e7   : > { %v1259_v43 = vclz %v10024_v22  ;;  %vm1329_vm10 = vcmp.lt.s32.totalorder %v1308_v11, 3  ;;  %v1335_v54 = vsel %vm1327_vm8, %v1314_v26, %v1317_v37  ;;  %v1336_v23 = vsel %vm1330_vm9, %v1323_v19, 920167782 }
 0x1e8   : > { %v1337_v28 = vsel %vm1329_vm10, %v1320_v5, %v1336_v23  ;;  %v1339_v50 = vsel %vm1327_vm8, %v1317_v37, %v1320_v5  ;;  %v16705_v10 = vand.u32 2147483647, %v12351_v59  ;;  %vm1410_vm11 = vcmp.gt.s32.totalorder %v1409_v9, 0 }
 0x1e9   : > { %v12634_v47 = vsel %vm10022_vm7, 0, %v10021_v38  ;;  %vm1328_vm12 = vcmp.lt.s32.totalorder %v1308_v11, 2  ;;  %v1332_v62 = vsel %vm1330_vm9, %v1320_v5, 2102212464  ;;  %v1340_v27 = vsel %vm1330_vm9, %v1326_v21, 1326507024 }
 0x1ea   : > { %v1063_v61 = vand.u32 2147483647, %v1062_v40  ;;  %v1311_v36 = vshrl.u32 %v16717_v2, %v1310_v17  ;;  %v1338_v42 = vsel %vm1328_vm12, %v1335_v54, %v1337_v28  ;;  %v1341_v3 = vsel %vm1329_vm10, %v1323_v19, %v1340_v27 }
 0x1eb   : > { %v10025_v60 = vadd.s32 4294967294, %v1259_v43  ;;  %v1342_v58 = vsel %vm1328_vm12, %v1339_v50, %v1341_v3  ;;  %v1343_v20 = vshll.u32 %v1303_v63, 8  ;;  %v1411_v22 = vsel %vm1410_vm11, %v1409_v9, 0 }
 0x1ec   : > { %v1163_v12 = vsub.s32 4294967266, %v12634_v47  ;;  %v1331_v38 = vsel %vm1327_vm8, %v1311_v36, %v1314_v26  ;;  %v1333_v30 = vsel %vm1329_vm10, %v1317_v37, %v1332_v62  ;;  %v1406_v21 = vand.u32 8388607, %v16705_v10  ;;  %v12655_v26 = vpop.f32.mrb[13].mxu0 }
 0x1ed   : > { %v12645_v5 = vmul.u32.u64.low %v1343_v20, %v1342_v58  ;;  %v12646_v17 = vmul.u32.u64.high %v1343_v20, %v1342_v58, %v12645_v5  ;;  %v12648_v40 = vmul.u32.u64.low %v1343_v20, %v1338_v42  ;;  %v12649_v54 = vmul.u32.u64.high %v1343_v20, %v1338_v42, %v12648_v40  ;;  %17027 = vst [vmem:[#allocation39_spill] sm:$0xff] %v12655_v26 }
 0x1ee   : > { %11073 = vcosq.f32 %v12606_v0  ;;  %v963_v9 = vxor.u32 2147483648, %v12627_v52  ;;  %v1413_v63 = vand.u32 31, %v1411_v22  ;;  %v12657_v37 = vmul.f32 %v1065_v35, %v1063_v61 }
 0x1ef   : > { %v1143_v43 = vadd.s32 %v12523_v25, %v12521_v15  ;;  %vm10026_vm13 = vcmp.lt.s32.totalorder %v10025_v60, 0  ;;  %v1334_v23 = vsel %vm1328_vm12, %v1331_v38, %v1333_v30  ;;  %v1159_v28 = vsub.s32 32, %v12634_v47 }
 0x1f0   : > { %v1160_v50 = vshll.u32 %v12562_v56, %v12634_v47  ;;  %v1414_v62 = vsub.s32 32, %v1413_v63  ;;  %v1506_v27 = vand.u32 2139095040, %v12355_v1  ;;  %v1164_v36 = vadd.s32 127, %v1163_v12 }
 0x1f1   : > { %vm1352_vm14 = vc.u32 %v12646_v17, %v12648_v40  ;;  %v1353_v35 = vadd.s32 1, %v12649_v54  ;;  %v1407_v61 = vor.u32 8388608, %v1406_v21  ;;  %v12669_v42 = vsel %vm10026_vm13, 0, %v10025_v60 }
 0x1f2   : > { %v1350_v15 = vmul.u32 %v1343_v20, %v1334_v23  ;;  %v1416_v25 = vshll.u32 %v16717_v2, %v1413_v63  ;;  %v1417_v11 = vshrl.u32 %v16706_v4, %v1414_v62  ;;  %v1419_v56 = vshll.u32 %v16706_v4, %v1413_v63 }
 0x1f3   : > { %v1354_v3 = vsel %vm1352_vm14, %v1353_v35, %v12649_v54  ;;  %v1420_v47 = vshrl.u32 %v16715_v6, %v1414_v62  ;;  %v1423_v58 = vshrl.u32 %v16712_v8, %v1414_v62  ;;  %v1412_v38 = vshrl.u32 %v1411_v22, 5 }
 0x1f4   : > { %v1355_v12 = vadd.s32 %v1354_v3, %v1350_v15  ;;  %v1422_v30 = vshll.u32 %v16715_v6, %v1413_v63  ;;  %v1507_v21 = vshrl.u32 %v1506_v27, 23  ;;  %v1418_v60 = vor.u32 %v1417_v11, %v1416_v25 }
 0x1f5   : > { %v1421_v5 = vor.u32 %v1420_v47, %v1419_v56  ;;  %v1425_v20 = vshll.u32 %v16712_v8, %v1413_v63  ;;  %v1426_v23 = vshrl.u32 %v16710_v13, %v1414_v62  ;;  %v1428_v54 = vshll.u32 %v16710_v13, %v1413_v63 }
 0x1f6   : > { %v1356_v10 = vadd.s32 536870912, %v1355_v12  ;;  %v1424_v19 = vor.u32 %v1423_v58, %v1422_v30  ;;  %v1429_v35 = vshrl.u32 %v16708_v16, %v1414_v62  ;;  %vm16789_vm15 = vcmp.lt.s32.totalorder %v12325_v32, 0 }
 0x1f7   : > { %v1161_v4 = vshrl.u32 %v1143_v43, %v1159_v28  ;;  %v1165_v15 = vshll.u32 %v1164_v36, 23  ;;  %v1427_v22 = vor.u32 %v1426_v23, %v1425_v20  ;;  %v12683_v3 = vshll.u32 %v1407_v61, 8 }
 0x1f8   : > { %v12685_v27 = vpop.eup %11073  ;;  %v12687_v25 = vshrl.u32 %v1356_v10, 30  ;;  %v1430_v11 = vor.u32 %v1429_v35, %v1428_v54  ;;  %vm1431_vm1 = vcmp.lt.s32.totalorder %v1412_v38, 1  ;;  %vm1434_vm2 = vcmp.lt.s32.totalorder %v1412_v38, 4 }
 0x1f9   : > { %17028 = vst [vmem:[#allocation40_spill] sm:$0xff] %v12685_v27  ;;  %v1267_v56 = vsub.s32 4294967266, %v12669_v42  ;;  %vm1433_vm3 = vcmp.lt.s32.totalorder %v1412_v38, 3  ;;  %v1439_v63 = vsel %vm1431_vm1, %v1418_v60, %v1421_v5  ;;  %v1440_v47 = vsel %vm1434_vm2, %v1427_v22, 920167782 }
 0x1fa   : > { %v1358_v58 = vshll.u32 %v12687_v25, 30  ;;  %v1441_v43 = vsel %vm1433_vm3, %v1424_v19, %v1440_v47  ;;  %v1443_v28 = vsel %vm1431_vm1, %v1421_v5, %v1424_v19  ;;  %v10035_v36 = vadd.s32 4294967169, %v1507_v21 }
 0x1fb   : > { %v17029_v61 = vand.u32 2147483647, %v12325_v32  ;;  %v17030_v10 = vmov 0  ;;  %v1415_v30 = vshrl.u32 %v16717_v2, %v1414_v62  ;;  %vm1432_vm7 = vcmp.lt.s32.totalorder %v1412_v38, 2 }
 0x1fc   : > { %v1436_v20 = vsel %vm1434_vm2, %v1424_v19, 2102212464  ;;  %v1444_v23 = vsel %vm1434_vm2, %v1430_v11, 1326507024  ;;  %vm985_vm8 = vcmp.lt.s32.totalorder %v12333_v39, 0  ;;  %v12702_v35 = vsub.s32 %v1355_v12, %v1358_v58 }
 0x1fd   : > { %vm12696_vm6 = vcmp.le.f32.partialorder %v17029_v61, 0.7853982  ;;  %v1166_v54 = vor.u32 4788187, %v1165_v15  ;;  %v1442_v47 = vsel %vm1432_vm7, %v1439_v63, %v1441_v43  ;;  %v1445_v21 = vsel %vm1433_vm3, %v1427_v22, %v1444_v23 }
 0x1fe   : > { %v17031_v10 = vsel %vm12696_vm6, 4294967295, %v17030_v10  ;;  %v1263_v16 = vsub.s32 32, %v12669_v42  ;;  %v1268_v61 = vadd.s32 127, %v1267_v56  ;;  %v1435_v13 = vsel %vm1431_vm1, %v1415_v30, %v1418_v60  ;;  %v12744_v30 = vpop.f32.mrb[14].mxu0 }
 0x1ff   : > { %17032 = vst [vmem:[#allocation41_spill] sm:$0xff] %v17031_v10  ;;  %v1446_v8 = vsel %vm1432_vm7, %v1443_v28, %v1445_v21  ;;  %v1437_v62 = vsel %vm1433_vm3, %v1421_v5, %v1436_v20  ;;  %v1513_v15 = vadd.s32 1, %v10035_v36  ;;  %v1162_v12 = vor.u32 %v1161_v4, %v1160_v50  ;;  %17033 = vst [vmem:[#allocation42_spill] sm:$0xff] %v12744_v30 }
 0x200   : > { %v12711_v19 = vmul.u32.u64.low %v12683_v3, %v1446_v8  ;;  %v12712_v11 = vmul.u32.u64.high %v12683_v3, %v1446_v8, %v12711_v19  ;;  %v1361_v58 = vsub.s32 0, %v12702_v35  ;;  %11075 = vsinq.f32 %v12606_v0 }
 0x201   : > { %v12716_v63 = vmul.u32.u64.low %v12683_v3, %v1442_v47  ;;  %v12717_v22 = vmul.u32.u64.high %v12683_v3, %v1442_v47, %v12716_v63  ;;  %v964_v60 = vsel %vm16789_vm15, %v963_v9, %v12627_v52  ;;  %v1247_v8 = vadd.s32 %v12566_v48, %v12571_v33 }
 0x202   : > { %vm1514_vm9 = vcmp.gt.s32.totalorder %v1513_v15, 0  ;;  %v1067_v4 = vxor.u32 2147483648, %v12657_v37  ;;  %v1167_v50 = vand.u32 2147483647, %v1166_v54  ;;  %v1438_v5 = vsel %vm1432_vm7, %v1435_v13, %v1437_v62 }
 0x203   : > { %v1515_v56 = vsel %vm1514_vm9, %v1513_v15, 0  ;;  %v1265_v43 = vshrl.u32 %v1247_v8, %v1263_v16  ;;  %v1269_v28 = vshll.u32 %v1268_v61, 23  ;;  %vm1456_vm10 = vc.u32 %v12712_v11, %v12716_v63 }
 0x204   : > { %v16714_v0 = vand.u32 2147483647, %v12355_v1  ;;  %v1169_v36 = vcvt.s32.f32 %v1162_v12  ;;  %v10028_v52 = vmin.u32 %v1361_v58, %v12702_v35  ;;  %v1457_v9 = vadd.s32 1, %v12717_v22 }
 0x205   : > { %v1517_v33 = vand.u32 31, %v1515_v56  ;;  %v12738_v48 = vsel %vm12696_vm6, %v12325_v32, %v964_v60  ;;  %v1264_v16 = vshll.u32 %v12613_v24, %v12669_v42  ;;  %v1454_v38 = vmul.u32 %v12683_v3, %v1438_v5 }
 0x206   : > { %v12749_v20 = vsel %vm985_vm8, %v1067_v4, %v12657_v37  ;;  %v12751_v23 = vmul.f32 %v1169_v36, %v1167_v50  ;;  %v1458_v54 = vsel %vm1456_vm10, %v1457_v9, %v12717_v22  ;;  %v12756_v61 = vor.u32 4788187, %v1269_v28 }
 0x207   : > { %v1518_v47 = vsub.s32 32, %v1517_v33  ;;  %v12754_v21 = vor.u32 %v1265_v43, %v1264_v16  ;;  %v1459_v62 = vadd.s32 %v1458_v54, %v1454_v38  ;;  %v1510_v24 = vand.u32 8388607, %v16714_v0 }
 0x208   : > { %v1363_v42 = vclz %v10028_v52  ;;  %v17034_v3 = vmov 2475754826   ;;  %v1610_v37 = vand.u32 2139095040, %v12367_v18  ;;  %v1516_v58 = vshrl.u32 %v1515_v56, 5 }
 0x209   : > { %v1521_v19 = vshrl.u32 %v17034_v3, %v1518_v47  ;;  %v1524_v15 = vshrl.u32 %v16715_v6, %v1518_v47  ;;  %v1460_v12 = vadd.s32 536870912, %v1459_v62  ;;  %v1520_v22 = vshll.u32 %v16717_v2, %v1517_v33 }
 0x20a   : > { %v1523_v60 = vshll.u32 %v17034_v3, %v1517_v33  ;;  %v1526_v8 = vshll.u32 %v16715_v6, %v1517_v33  ;;  %v17035_v4 = vmov 2102212464   ;;  %v17036_v43 = vmov 920167782   ;;  %v12769_v36 = vpop.eup %11075 }
 0x20b   : > { %v1527_v50 = vshrl.u32 %v17035_v4, %v1518_v47  ;;  %v1529_v5 = vshll.u32 %v17035_v4, %v1517_v33  ;;  %v1530_v28 = vshrl.u32 %v17036_v43, %v1518_v47  ;;  %17037 = vst [vmem:[#allocation43_spill] sm:$0xff] %v12769_v36  ;;  %v1171_v52 = vxor.u32 2147483648, %v12751_v23 }
 0x20c   : > { %v12772_v9 = vshrl.u32 %v1460_v12, 30  ;;  %v1522_v16 = vor.u32 %v1521_v19, %v1520_v22  ;;  %v1525_v56 = vor.u32 %v1524_v15, %v1523_v60  ;;  %vm1089_vm11 = vcmp.lt.s32.totalorder %v12335_v41, 0 }
 0x20d   : > { %v1528_v38 = vor.u32 %v1527_v50, %v1526_v8  ;;  %v1531_v54 = vor.u32 %v1530_v28, %v1529_v5  ;;  %v1532_v0 = vshll.u32 %v17036_v43, %v1517_v33  ;;  %v17038_v6 = vmov 1326507024  }
 0x20e   : > { %v1533_v13 = vshrl.u32 %v17038_v6, %v1518_v47  ;;  %v1271_v2 = vand.u32 2147483647, %v12756_v61  ;;  %v1273_v27 = vcvt.s32.f32 %v12754_v21  ;;  %v1462_v36 = vshll.u32 %v12772_v9, 30 }
 0x20f   : > { %v1511_v55 = vor.u32 8388608, %v1510_v24  ;;  %v17039_v12 = vand.u32 2147483647, %v12333_v39  ;;  %v17040_v19 = vmov 0  ;;  %v10029_v15 = vadd.s32 4294967294, %v1363_v42 }
 0x210   : > { %v1534_v22 = vor.u32 %v1533_v13, %v1532_v0  ;;  %vm1535_vm13 = vcmp.lt.s32.totalorder %v1516_v58, 1  ;;  %v1611_v60 = vshrl.u32 %v1610_v37, 23  ;;  %v17043_v33 = vand.u32 2147483647, %v12335_v41 }
 0x211   : > { %vm12782_vm12 = vcmp.le.f32.partialorder %v17039_v12, 0.7853982  ;;  %v12792_v21 = vsub.s32 %v1459_v62, %v1462_v36  ;;  %vm1537_vm1 = vcmp.lt.s32.totalorder %v1516_v58, 3  ;;  %vm1538_vm2 = vcmp.lt.s32.totalorder %v1516_v58, 4 }
 0x212   : > { %v17041_v19 = vsel %vm12782_vm12, 4294967295, %v17040_v19  ;;  %vm12788_vm14 = vcmp.le.f32.partialorder %v17043_v33, 0.7853982  ;;  %v1543_v61 = vsel %vm1535_vm13, %v1522_v16, %v1525_v56  ;;  %v1540_v24 = vsel %vm1538_vm2, %v1528_v38, 2102212464 }
 0x213   : > { %17042 = vst [vmem:[#allocation44_spill] sm:$0xff] %v17041_v19  ;;  %v1544_v50 = vsel %vm1538_vm2, %v1531_v54, 920167782  ;;  %v1547_v5 = vsel %vm1535_vm13, %v1525_v56, %v1528_v38  ;;  %v1548_v42 = vsel %vm1538_vm2, %v1534_v22, 1326507024  ;;  %v1465_v0 = vsub.s32 0, %v12792_v21 }
 0x214   : > { %v17046_v13 = vmov 683565275   ;;  %vm1536_vm3 = vcmp.lt.s32.totalorder %v1516_v58, 2  ;;  %v1545_v28 = vsel %vm1537_vm1, %v1528_v38, %v1544_v50  ;;  %v1549_v62 = vsel %vm1537_vm1, %v1531_v54, %v1548_v42 }
 0x215   : > { %v1519_v37 = vshrl.u32 %v17046_v13, %v1518_v47  ;;  %v1546_v12 = vsel %vm1536_vm3, %v1543_v61, %v1545_v28  ;;  %v1551_v36 = vshll.u32 %v1511_v55, 8  ;;  %v10039_v33 = vadd.s32 4294967169, %v1611_v60 }
 0x216   : > { %vm10030_vm7 = vcmp.lt.s32.totalorder %v10029_v15, 0  ;;  %v1541_v32 = vsel %vm1537_vm1, %v1525_v56, %v1540_v24  ;;  %v1550_v22 = vsel %vm1536_vm3, %v1547_v5, %v1549_v62  ;;  %11077 = vcosq.f32 %v12738_v48 }
 0x217   : > { %v1539_v10 = vsel %vm1535_vm13, %v1519_v37, %v1522_v16  ;;  %v12804_v14 = vmul.u32.u64.low %v1551_v36, %v1550_v22  ;;  %v12805_v30 = vmul.u32.u64.high %v1551_v36, %v1550_v22, %v12804_v14  ;;  %v1172_v55 = vsel %vm1089_vm11, %v1171_v52, %v12751_v23 }
 0x218   : > { %v12807_v47 = vmul.u32.u64.low %v1551_v36, %v1546_v12  ;;  %v12808_v26 = vmul.u32.u64.high %v1551_v36, %v1546_v12, %v12807_v47  ;;  %vm1193_vm9 = vcmp.lt.s32.totalorder %v12339_v49, 0  ;;  %v10032_v16 = vmin.u32 %v1465_v0, %v12792_v21 }
 0x219   : > { %v1617_v56 = vadd.s32 1, %v10039_v33  ;;  %v1274_v38 = vmul.f32 %v1273_v27, %v1271_v2  ;;  %v12817_v54 = vsel %vm10030_vm7, 0, %v10029_v15  ;;  %v1542_v14 = vsel %vm1536_vm3, %v1539_v10, %v1541_v32  ;;  %v12840_v10 = vpop.f32.mrb[15].mxu0 }
 0x21a   : > { %v16729_v60 = vand.u32 2147483647, %v12367_v18  ;;  %11079 = vsinq.f32 %v12738_v48  ;;  %v1069_v61 = vsub.s32 4, %v12486_v34  ;;  %v1071_v23 = vsel %vm12782_vm12, %v12333_v39, %v12749_v20  ;;  %17048 = vst [vmem:[#allocation45_spill] sm:$0xff] %v12840_v10 }
 0x21b   : > { %vm1618_vm10 = vcmp.gt.s32.totalorder %v1617_v56, 0  ;;  %v17047_v52 = vsub.s32 4, %v12553_v45  ;;  %v12835_v32 = vsel %vm12788_vm14, %v12335_v41, %v1172_v55  ;;  %vm1560_vm13 = vc.u32 %v12805_v30, %v12807_v47 }
 0x21c   : > { %v1561_v27 = vadd.s32 1, %v12808_v26  ;;  %v1371_v48 = vsub.s32 4294967266, %v12817_v54  ;;  %v1467_v20 = vclz %v10032_v16  ;;  %v1558_v58 = vmul.u32 %v1551_v36, %v1542_v14 }
 0x21d   : > { %v1174_v2 = vsel %vm1089_vm11, %v17047_v52, %v12553_v45  ;;  %v1619_v15 = vsel %vm1618_vm10, %v1617_v56, 0  ;;  %11081 = vcosq.f32 %v1071_v23  ;;  %v1275_v24 = vxor.u32 2147483648, %v1274_v38 }
 0x21e   : > { %v1562_v45 = vsel %vm1560_vm13, %v1561_v27, %v12808_v26  ;;  %v1614_v50 = vand.u32 8388607, %v16729_v60  ;;  %v17049_v5 = vsub.s32 4, %v12427_v44  ;;  %v12856_v0 = vsel %vm985_vm8, %v1069_v61, %v12486_v34 }
 0x21f   : > { %17051 = vst [vmem:[#allocation47_spill] sm:$0xff] %v12856_v0  ;;  %11083 = vsinq.f32 %v1071_v23  ;;  %v1563_v37 = vadd.s32 %v1562_v45, %v1558_v58  ;;  %v12860_v26 = vsel %vm12788_vm14, 0, %v1174_v2  ;;  %v1621_v12 = vand.u32 31, %v1619_v15 }
 0x220   : > { %v12851_v42 = vsel %vm777_vm5, %v17049_v5, %v12427_v44  ;;  %17052 = vst [vmem:[#allocation48_spill] sm:$0xff] %v12860_v26  ;;  %11085 = vcosq.f32 %v12835_v32  ;;  %v1351_v44 = vadd.s32 %v12648_v40, %v12646_v17  ;;  %v1372_v62 = vadd.s32 127, %v1371_v48  ;;  %v12871_v16 = vpop.eup %11077 }
 0x221   : > { %17050 = vst [vmem:[#allocation46_spill] sm:$0xff] %v12851_v42  ;;  %v10033_v36 = vadd.s32 4294967294, %v1467_v20  ;;  %v1564_v33 = vadd.s32 536870912, %v1563_v37  ;;  %v12868_v34 = vsel %vm1193_vm9, %v1275_v24, %v1274_v38  ;;  %v1367_v22 = vsub.s32 32, %v12817_v54  ;;  %17053 = vst [vmem:[#allocation49_spill] sm:$0xff] %v12871_v16 }
 0x222   : > { %v1615_v8 = vor.u32 8388608, %v1614_v50  ;;  %v1622_v55 = vsub.s32 32, %v1621_v12  ;;  %v12875_v14 = vshrl.u32 %v1619_v15, 5  ;;  %v1624_v61 = vshll.u32 %v17046_v13, %v1621_v12 }
 0x223   : > { %v12873_v56 = vshrl.u32 %v1564_v33, 30  ;;  %v1714_v17 = vand.u32 2139095040, %v12429_v46  ;;  %v1627_v23 = vshll.u32 %v17034_v3, %v1621_v12  ;;  %v17054_v38 = vmov 2131351028  }
 0x224   : > { %v1625_v40 = vshrl.u32 %v17034_v3, %v1622_v55  ;;  %v1628_v52 = vshrl.u32 %v17054_v38, %v1622_v55  ;;  %v1631_v2 = vshrl.u32 %v17035_v4, %v1622_v55  ;;  %v12883_v27 = vpop.eup %11079  ;;  %v1373_v48 = vshll.u32 %v1372_v62, 23 }
 0x225   : > { %vm10034_vm5 = vcmp.lt.s32.totalorder %v10033_v36, 0  ;;  %v1566_v20 = vshll.u32 %v12873_v56, 30  ;;  %v1630_v58 = vshll.u32 %v17054_v38, %v1621_v12  ;;  %v1633_v45 = vshll.u32 %v17035_v4, %v1621_v12 }
 0x226   : > { %v1626_v15 = vor.u32 %v1625_v40, %v1624_v61  ;;  %v1629_v24 = vor.u32 %v1628_v52, %v1627_v23  ;;  %v1634_v50 = vshrl.u32 %v17036_v43, %v1622_v55  ;;  %v12891_v60 = vshll.u32 %v1615_v8, 8 }
 0x227   : > { %v12889_v5 = vsub.s32 %v1563_v37, %v1566_v20  ;;  %v1632_v33 = vor.u32 %v1631_v2, %v1630_v58  ;;  %v1715_v28 = vshrl.u32 %v1714_v17, 23  ;;  %v12893_v39 = vpop.eup %11081  ;;  %v1636_v19 = vshll.u32 %v17036_v43, %v1621_v12 }
 0x228   : > { %17055 = vst [vmem:[#allocation50_spill] sm:$0xff] %v12893_v39  ;;  %v1635_v62 = vor.u32 %v1634_v50, %v1633_v45  ;;  %v1637_v0 = vshrl.u32 %v17038_v6, %v1622_v55  ;;  %vm1639_vm8 = vcmp.lt.s32.totalorder %v12875_v14, 1  ;;  %v17057_v40 = vand.u32 2147483647, %v12339_v49 }
 0x229   : > { %v12898_v61 = vpop.eup %11083  ;;  %v17058_v37 = vmov 0  ;;  %v12907_v8 = vsel %vm10034_vm5, 0, %v10033_v36  ;;  %v1569_v17 = vsub.s32 0, %v12889_v5  ;;  %vm1642_vm14 = vcmp.lt.s32.totalorder %v12875_v14, 4 }
 0x22a   : > { %17056 = vst [vmem:[#allocation51_spill] sm:$0xff] %v12898_v61  ;;  %vm12902_vm11 = vcmp.le.f32.partialorder %v17057_v40, 0.7853982  ;;  %v1647_v12 = vsel %vm1639_vm8, %v1626_v15, %v1629_v24  ;;  %v12913_v23 = vpop.eup %11085  ;;  %v1638_v52 = vor.u32 %v1637_v0, %v1636_v19  ;;  %vm1640_vm1 = vcmp.lt.s32.totalorder %v12875_v14, 2 }
 0x22b   : > { %v17059_v37 = vsel %vm12902_vm11, 4294967295, %v17058_v37  ;;  %17061 = vst [vmem:[#allocation53_spill] sm:$0xff] %v12913_v23  ;;  %vm1641_vm2 = vcmp.lt.s32.totalorder %v12875_v14, 3  ;;  %v1648_v2 = vsel %vm1642_vm14, %v1635_v62, 920167782  ;;  %v1623_v20 = vshrl.u32 %v17046_v13, %v1622_v55 }
 0x22c   : > { %17060 = vst [vmem:[#allocation52_spill] sm:$0xff] %v17059_v37  ;;  %v1644_v58 = vsel %vm1642_vm14, %v1632_v33, 2102212464  ;;  %v1649_v36 = vsel %vm1641_vm2, %v1632_v33, %v1648_v2  ;;  %v1651_v45 = vsel %vm1639_vm8, %v1629_v24, %v1632_v33  ;;  %v1475_v50 = vsub.s32 4294967266, %v12907_v8 }
 0x22d   : > { %v1650_v40 = vsel %vm1640_vm1, %v1647_v12, %v1649_v36  ;;  %v1652_v39 = vsel %vm1642_vm14, %v1638_v52, 1326507024  ;;  %v10043_v61 = vadd.s32 4294967169, %v1715_v28  ;;  %vm1297_vm3 = vcmp.lt.s32.totalorder %v12341_v51, 0 }
 0x22e   : > { %v1369_v19 = vshrl.u32 %v1351_v44, %v1367_v22  ;;  %v10036_v0 = vmin.u32 %v1569_v17, %v12889_v5  ;;  %v1643_v55 = vsel %vm1639_vm8, %v1623_v20, %v1626_v15  ;;  %v1653_v41 = vsel %vm1641_vm2, %v1635_v62, %v1652_v39 }
 0x22f   : > { %v1645_v2 = vsel %vm1641_vm2, %v1629_v24, %v1644_v58  ;;  %v1654_v33 = vsel %vm1640_vm1, %v1651_v45, %v1653_v41  ;;  %v12930_v23 = vmul.u32.u64.low %v12891_v60, %v1650_v40  ;;  %v12931_v26 = vmul.u32.u64.high %v12891_v60, %v1650_v40, %v12930_v23  ;;  %v12966_v45 = vpop.f32.mrb[16].mxu0 }
 0x230   : > { %v1368_v28 = vshll.u32 %v12702_v35, %v12817_v54  ;;  %v1374_v12 = vor.u32 4788187, %v1373_v48  ;;  %v12937_v44 = vmul.u32.u64.low %v12891_v60, %v1654_v33  ;;  %v12938_v22 = vmul.u32.u64.high %v12891_v60, %v1654_v33, %v12937_v44  ;;  %17064 = vst [vmem:[#allocation55_spill] sm:$0xff] %v12966_v45 }
 0x231   : > { %11087 = vsinq.f32 %v12835_v32  ;;  %v17062_v39 = vsub.s32 4, %v12601_v53  ;;  %v1476_v15 = vadd.s32 127, %v1475_v50  ;;  %v1721_v24 = vadd.s32 1, %v10043_v61 }
 0x232   : > { %v1370_v62 = vor.u32 %v1369_v19, %v1368_v28  ;;  %v1571_v17 = vclz %v10036_v0  ;;  %v1646_v35 = vsel %vm1640_vm1, %v1643_v55, %v1645_v2  ;;  %v16739_v54 = vand.u32 2147483647, %v12429_v46 }
 0x233   : > { %v12946_v41 = vsel %vm1193_vm9, %v17062_v39, %v12601_v53  ;;  %v12955_v32 = vsel %vm12902_vm11, %v12339_v49, %v12868_v34  ;;  %v1381_v48 = vsub.s32 4, %v12687_v25  ;;  %v1665_v53 = vadd.s32 1, %v12931_v26 }
 0x234   : > { %17063 = vst [vmem:[#allocation54_spill] sm:$0xff] %v12946_v41  ;;  %vm1722_vm7 = vcmp.gt.s32.totalorder %v1721_v24, 0  ;;  %v1375_v52 = vand.u32 2147483647, %v1374_v12  ;;  %v1455_v61 = vadd.s32 %v12716_v63, %v12712_v11  ;;  %v1471_v14 = vsub.s32 32, %v12907_v8 }
 0x235   : > { %v1818_v20 = vand.u32 2139095040, %v12484_v31  ;;  %v1477_v58 = vshll.u32 %v1476_v15, 23  ;;  %v1662_v36 = vmul.u32 %v12891_v60, %v1646_v35  ;;  %vm1664_vm9 = vc.u32 %v12938_v22, %v12930_v23 }
 0x236   : > { %v1723_v34 = vsel %vm1722_vm7, %v1721_v24, 0  ;;  %v1377_v50 = vcvt.s32.f32 %v1370_v62  ;;  %v10037_v40 = vadd.s32 4294967294, %v1571_v17  ;;  %v1666_v19 = vsel %vm1664_vm9, %v1665_v53, %v12931_v26 }
 0x237   : > { %v1718_v11 = vand.u32 8388607, %v16739_v54  ;;  %11089 = vcosq.f32 %v12955_v32  ;;  %v12975_v63 = vsel %vm1297_vm3, %v1381_v48, %v12687_v25  ;;  %v1667_v60 = vadd.s32 %v1666_v19, %v1662_v36 }
 0x238   : > { %v1725_v0 = vand.u32 31, %v1723_v34  ;;  %v12977_v55 = vmul.f32 %v1377_v50, %v1375_v52  ;;  %v1472_v2 = vshll.u32 %v12792_v21, %v12907_v8  ;;  %v1473_v33 = vshrl.u32 %v1455_v61, %v1471_v14 }
 0x239   : > { %v12982_v28 = vor.u32 4788187, %v1477_v58  ;;  %v1668_v12 = vadd.s32 536870912, %v1667_v60  ;;  %v1819_v39 = vshrl.u32 %v1818_v20, 23  ;;  %vm10038_vm10 = vcmp.lt.s32.totalorder %v10037_v40, 0 }
 0x23a   : > { %v1726_v44 = vsub.s32 32, %v1725_v0  ;;  %v1719_v15 = vor.u32 8388608, %v1718_v11  ;;  %v1724_v24 = vshrl.u32 %v1723_v34, 5  ;;  %v1728_v25 = vshll.u32 %v17046_v13, %v1725_v0 }
 0x23b   : > { %v12985_v62 = vpop.eup %11087  ;;  %v12987_v17 = vshrl.u32 %v1668_v12, 30  ;;  %v1731_v21 = vshll.u32 %v17034_v3, %v1725_v0  ;;  %v1734_v48 = vshll.u32 %v17054_v38, %v1725_v0  ;;  %v1737_v52 = vshll.u32 %v17035_v4, %v1725_v0 }
 0x23c   : > { %17065 = vst [vmem:[#allocation56_spill] sm:$0xff] %v12985_v62  ;;  %v1729_v35 = vshrl.u32 %v17034_v3, %v1726_v44  ;;  %v1732_v8 = vshrl.u32 %v17054_v38, %v1726_v44  ;;  %v1735_v53 = vshrl.u32 %v17035_v4, %v1726_v44  ;;  %v1738_v61 = vshrl.u32 %v17036_v43, %v1726_v44 }
 0x23d   : > { %v1670_v14 = vshll.u32 %v12987_v17, 30  ;;  %v10047_v36 = vadd.s32 4294967169, %v1819_v39  ;;  %v1740_v19 = vshll.u32 %v17036_v43, %v1725_v0  ;;  %v1741_v11 = vshrl.u32 %v17038_v6, %v1726_v44 }
 0x23e   : > { %v1730_v20 = vor.u32 %v1729_v35, %v1728_v25  ;;  %v1733_v58 = vor.u32 %v1732_v8, %v1731_v21  ;;  %v1736_v34 = vor.u32 %v1735_v53, %v1734_v48  ;;  %v1739_v50 = vor.u32 %v1738_v61, %v1737_v52 }
 0x23f   : > { %v13000_v12 = vsel %vm10038_vm10, 0, %v10037_v40  ;;  %v13002_v54 = vsub.s32 %v1667_v60, %v1670_v14  ;;  %vm1743_vm13 = vcmp.lt.s32.totalorder %v1724_v24, 1  ;;  %v1759_v26 = vshll.u32 %v1719_v15, 8 }
 0x240   : > { %v17066_v49 = vand.u32 2147483647, %v12341_v51  ;;  %v1727_v39 = vshrl.u32 %v17046_v13, %v1726_v44  ;;  %v1742_v25 = vor.u32 %v1741_v11, %v1740_v19  ;;  %vm1745_vm8 = vcmp.lt.s32.totalorder %v1724_v24, 3 }
 0x241   : > { %vm1746_vm14 = vcmp.lt.s32.totalorder %v1724_v24, 4  ;;  %v13011_v0 = vpop.eup %11089  ;;  %vm1401_vm1 = vcmp.lt.s32.totalorder %v12351_v59, 0  ;;  %v1673_v40 = vsub.s32 0, %v13002_v54  ;;  %v1751_v15 = vsel %vm1743_vm13, %v1730_v20, %v1733_v58 }
 0x242   : > { %vm13006_vm5 = vcmp.le.f32.partialorder %v17066_v49, 0.7853982  ;;  %17069 = vst [vmem:[#allocation57_spill] sm:$0xff] %v13011_v0  ;;  %v1748_v60 = vsel %vm1746_vm14, %v1736_v34, 2102212464  ;;  %vm1744_vm2 = vcmp.lt.s32.totalorder %v1724_v24, 2  ;;  %v1755_v21 = vsel %vm1743_vm13, %v1733_v58, %v1736_v34 }
 0x243   : > { %v1752_v35 = vsel %vm1746_vm14, %v1739_v50, 920167782  ;;  %v1825_v8 = vadd.s32 1, %v10047_v36  ;;  %v10040_v44 = vmin.u32 %v1673_v40, %v13002_v54  ;;  %v1747_v48 = vsel %vm1743_vm13, %v1727_v39, %v1730_v20 }
 0x244   : > { %v1753_v49 = vsel %vm1745_vm8, %v1736_v34, %v1752_v35  ;;  %v1756_v52 = vsel %vm1746_vm14, %v1742_v25, 1326507024  ;;  %v1749_v61 = vsel %vm1745_vm8, %v1733_v58, %v1748_v60  ;;  %v1474_v0 = vor.u32 %v1473_v33, %v1472_v2 }
 0x245   : > { %v1754_v53 = vsel %vm1744_vm2, %v1751_v15, %v1753_v49  ;;  %v1757_v14 = vsel %vm1745_vm8, %v1739_v50, %v1756_v52  ;;  %v1579_v35 = vsub.s32 4294967266, %v13000_v12  ;;  %v1675_v34 = vclz %v10040_v44 }
 0x246   : > { %v13023_v19 = vmul.u32.u64.low %v1759_v26, %v1754_v53  ;;  %v13024_v11 = vmul.u32.u64.high %v1759_v26, %v1754_v53, %v13023_v19  ;;  %v1758_v36 = vsel %vm1744_vm2, %v1755_v21, %v1757_v14  ;;  %v1485_v40 = vsub.s32 4, %v12772_v9 }
 0x247   : > { %v13030_v20 = vmul.u32.u64.low %v1759_v26, %v1758_v36  ;;  %v13031_v39 = vmul.u32.u64.high %v1759_v26, %v1758_v36, %v13030_v20  ;;  %vm1826_vm7 = vcmp.gt.s32.totalorder %v1825_v8, 0  ;;  %v1379_v58 = vxor.u32 2147483648, %v12977_v55 }
 0x248   : > { %v1479_v50 = vand.u32 2147483647, %v12982_v28  ;;  %v1750_v25 = vsel %vm1744_vm2, %v1747_v48, %v1749_v61  ;;  %v1827_v60 = vsel %vm1826_vm7, %v1825_v8, 0  ;;  %11091 = vsinq.f32 %v12955_v32  ;;  %v13052_v8 = vpop.f32.mrb[17].mxu0 }
 0x249   : > { %v10041_v2 = vadd.s32 4294967294, %v1675_v34  ;;  %v1769_v33 = vadd.s32 1, %v13024_v11  ;;  %v1829_v15 = vand.u32 31, %v1827_v60  ;;  %v13041_v49 = vsel %vm13006_vm5, 0, %v12975_v63  ;;  %17073 = vst [vmem:[#allocation60_spill] sm:$0xff] %v13052_v8 }
 0x24a   : > { %17070 = vst [vmem:[#allocation58_spill] sm:$0xff] %v13041_v49  ;;  %v1481_v21 = vcvt.s32.f32 %v1474_v0  ;;  %v1580_v44 = vadd.s32 127, %v1579_v35  ;;  %v17071_v53 = vand.u32 2147483647, %v12484_v31  ;;  %v13048_v28 = vsel %vm1401_vm1, %v1485_v40, %v12772_v9 }
 0x24b   : > { %17072 = vst [vmem:[#allocation59_spill] sm:$0xff] %v13048_v28  ;;  %v1766_v32 = vmul.u32 %v1759_v26, %v1750_v25  ;;  %vm1768_vm9 = vc.u32 %v13031_v39, %v13023_v19  ;;  %v1830_v24 = vsub.s32 32, %v1829_v15  ;;  %v13057_v63 = vsel %vm1297_vm3, %v1379_v58, %v12977_v55 }
 0x24c   : > { %v1822_v52 = vand.u32 8388607, %v17071_v53  ;;  %v13059_v0 = vmul.f32 %v1481_v21, %v1479_v50  ;;  %v1559_v48 = vadd.s32 %v12807_v47, %v12805_v30  ;;  %v1770_v9 = vsel %vm1768_vm9, %v1769_v33, %v13024_v11 }
 0x24d   : > { %vm10042_vm10 = vcmp.lt.s32.totalorder %v10041_v2, 0  ;;  %v1771_v26 = vadd.s32 %v1770_v9, %v1766_v32  ;;  %v1833_v61 = vshrl.u32 %v17034_v3, %v1830_v24  ;;  %v1575_v35 = vsub.s32 32, %v13000_v12 }
 0x24e   : > { %v1581_v34 = vshll.u32 %v1580_v44, 23  ;;  %v1823_v36 = vor.u32 8388608, %v1822_v52  ;;  %v1836_v55 = vshrl.u32 %v17054_v38, %v1830_v24  ;;  %v1832_v20 = vshll.u32 %v17046_v13, %v1829_v15 }
 0x24f   : > { %v1772_v40 = vadd.s32 536870912, %v1771_v26  ;;  %v1839_v58 = vshrl.u32 %v17035_v4, %v1830_v24  ;;  %v1922_v30 = vand.u32 2139095040, %v12532_v57  ;;  %v13071_v47 = vsel %vm10042_vm10, 0, %v10041_v2 }
 0x250   : > { %v1828_v11 = vshrl.u32 %v1827_v60, 5  ;;  %v1835_v50 = vshll.u32 %v17034_v3, %v1829_v15  ;;  %v1838_v25 = vshll.u32 %v17054_v38, %v1829_v15  ;;  %v1834_v21 = vor.u32 %v1833_v61, %v1832_v20 }
 0x251   : > { %v13075_v33 = vshrl.u32 %v1772_v40, 30  ;;  %v1841_v44 = vshll.u32 %v17035_v4, %v1829_v15  ;;  %v1842_v53 = vshrl.u32 %v17036_v43, %v1830_v24  ;;  %v1844_v9 = vshll.u32 %v17036_v43, %v1829_v15 }
 0x252   : > { %v1837_v52 = vor.u32 %v1836_v55, %v1835_v50  ;;  %v1840_v32 = vor.u32 %v1839_v58, %v1838_v25  ;;  %v1845_v14 = vshrl.u32 %v17038_v6, %v1830_v24  ;;  %v13081_v2 = vpop.eup %11091  ;;  %v1576_v60 = vshll.u32 %v12889_v5, %v13000_v12 }
 0x253   : > { %17074 = vst [vmem:[#allocation61_spill] sm:$0xff] %v13081_v2  ;;  %v1577_v28 = vshrl.u32 %v1559_v48, %v1575_v35  ;;  %v1774_v40 = vshll.u32 %v13075_v33, 30  ;;  %v1843_v41 = vor.u32 %v1842_v53, %v1841_v44  ;;  %v1582_v61 = vor.u32 4788187, %v1581_v34 }
 0x254   : > { %v1846_v20 = vor.u32 %v1845_v14, %v1844_v9  ;;  %v1863_v49 = vshll.u32 %v1823_v36, 8  ;;  %v1923_v62 = vshrl.u32 %v1922_v30, 23  ;;  %v1679_v55 = vsub.s32 32, %v13071_v47 }
 0x255   : > { %v13087_v58 = vsub.s32 %v1771_v26, %v1774_v40  ;;  %vm1847_vm3 = vcmp.lt.s32.totalorder %v1828_v11, 1  ;;  %vm1850_vm13 = vcmp.lt.s32.totalorder %v1828_v11, 4  ;;  %v1683_v15 = vsub.s32 4294967266, %v13071_v47 }
 0x256   : > { %v1831_v50 = vshrl.u32 %v17046_v13, %v1830_v24  ;;  %v1852_v25 = vsel %vm1850_vm13, %v1840_v32, 2102212464  ;;  %v1855_v5 = vsel %vm1847_vm3, %v1834_v21, %v1837_v52  ;;  %vm1849_vm8 = vcmp.lt.s32.totalorder %v1828_v11, 3 }
 0x257   : > { %v1777_v12 = vsub.s32 0, %v13087_v58  ;;  %v1856_v48 = vsel %vm1850_vm13, %v1843_v41, 920167782  ;;  %v1859_v35 = vsel %vm1847_vm3, %v1837_v52, %v1840_v32  ;;  %vm1505_vm14 = vcmp.lt.s32.totalorder %v12355_v1, 0 }
 0x258   : > { %vm1848_vm2 = vcmp.lt.s32.totalorder %v1828_v11, 2  ;;  %v1851_v14 = vsel %vm1847_vm3, %v1831_v50, %v1834_v21  ;;  %v1857_v34 = vsel %vm1849_vm8, %v1840_v32, %v1856_v48  ;;  %v1860_v26 = vsel %vm1850_vm13, %v1846_v20, 1326507024 }
 0x259   : > { %v1853_v36 = vsel %vm1849_vm8, %v1837_v52, %v1852_v25  ;;  %v1858_v30 = vsel %vm1848_vm2, %v1855_v5, %v1857_v34  ;;  %v1861_v44 = vsel %vm1849_vm8, %v1843_v41, %v1860_v26  ;;  %v10051_v53 = vadd.s32 4294967169, %v1923_v62 }
 0x25a   : > { %v10044_v24 = vmin.u32 %v1777_v12, %v13087_v58  ;;  %v1862_v9 = vsel %vm1848_vm2, %v1859_v35, %v1861_v44  ;;  %v13096_v40 = vmul.u32.u64.low %v1863_v49, %v1858_v30  ;;  %v13097_v2 = vmul.u32.u64.high %v1863_v49, %v1858_v30, %v13096_v40 }
 0x25b   : > { %v1589_v29 = vsub.s32 4, %v12873_v56  ;;  %v1684_v16 = vadd.s32 127, %v1683_v15  ;;  %v13101_v42 = vmul.u32.u64.low %v1863_v49, %v1862_v9  ;;  %v13102_v21 = vmul.u32.u64.high %v1863_v49, %v1862_v9, %v13101_v42 }
 0x25c   : > { %v1578_v32 = vor.u32 %v1577_v28, %v1576_v60  ;;  %v1663_v52 = vadd.s32 %v12930_v23, %v12938_v22  ;;  %v1854_v41 = vsel %vm1848_vm2, %v1851_v14, %v1853_v36  ;;  %v1929_v62 = vadd.s32 1, %v10051_v53  ;;  %v13116_v42 = vpop.f32.mrb[18].mxu0 }
 0x25d   : > { %v13111_v20 = vsel %vm13006_vm5, %v12341_v51, %v13057_v63  ;;  %v1483_v50 = vxor.u32 2147483648, %v13059_v0  ;;  %v1583_v25 = vand.u32 2147483647, %v1582_v61  ;;  %v17075_v15 = vand.u32 2147483647, %v12532_v57  ;;  %17076 = vst [vmem:[#allocation62_spill] sm:$0xff] %v13116_v42 }
 0x25e   : > { %v1681_v28 = vshrl.u32 %v1663_v52, %v1679_v55  ;;  %v1779_v60 = vclz %v10044_v24  ;;  %v1873_v23 = vadd.s32 1, %v13097_v2  ;;  %vm1930_vm7 = vcmp.gt.s32.totalorder %v1929_v62, 0 }
 0x25f   : > { %v1926_v5 = vand.u32 8388607, %v17075_v15  ;;  %v1685_v22 = vshll.u32 %v1684_v16, 23  ;;  %v1870_v11 = vmul.u32 %v1863_v49, %v1854_v41  ;;  %vm1872_vm9 = vc.u32 %v13102_v21, %v13096_v40 }
 0x260   : > { %v1931_v37 = vsel %vm1930_vm7, %v1929_v62, 0  ;;  %v1585_v63 = vcvt.s32.f32 %v1578_v32  ;;  %v1680_v61 = vshll.u32 %v13002_v54, %v13071_v47  ;;  %v1874_v12 = vsel %vm1872_vm9, %v1873_v23, %v13097_v2 }
 0x261   : > { %v1933_v48 = vand.u32 31, %v1931_v37  ;;  %11093 = vcosq.f32 %v13111_v20  ;;  %v13128_v55 = vsel %vm1401_vm1, %v1483_v50, %v13059_v0  ;;  %v13133_v16 = vsel %vm1505_vm14, %v1589_v29, %v12873_v56 }
 0x262   : > { %v1875_v49 = vadd.s32 %v1874_v12, %v1870_v11  ;;  %v13135_v35 = vmul.f32 %v1585_v63, %v1583_v25  ;;  %v1682_v14 = vor.u32 %v1681_v28, %v1680_v61  ;;  %v10045_v54 = vadd.s32 4294967294, %v1779_v60 }
 0x263   : > { %v1934_v47 = vsub.s32 32, %v1933_v48  ;;  %v1686_v2 = vor.u32 4788187, %v1685_v22  ;;  %v1927_v26 = vor.u32 8388608, %v1926_v5  ;;  %v1936_v36 = vshll.u32 %v17046_v13, %v1933_v48 }
 0x264   : > { %v1876_v34 = vadd.s32 536870912, %v1875_v49  ;;  %v1939_v0 = vshll.u32 %v17034_v3, %v1933_v48  ;;  %v1932_v53 = vshrl.u32 %v1931_v37, 5  ;;  %v1942_v24 = vshll.u32 %v17054_v38, %v1933_v48 }
 0x265   : > { %v1937_v30 = vshrl.u32 %v17034_v3, %v1934_v47  ;;  %v1940_v44 = vshrl.u32 %v17054_v38, %v1934_v47  ;;  %v1943_v29 = vshrl.u32 %v17035_v4, %v1934_v47  ;;  %v1946_v9 = vshrl.u32 %v17036_v43, %v1934_v47 }
 0x266   : > { %v13142_v56 = vshrl.u32 %v1876_v34, 30  ;;  %vm10046_vm5 = vcmp.lt.s32.totalorder %v10045_v54, 0  ;;  %v1945_v41 = vshll.u32 %v17035_v4, %v1933_v48  ;;  %v17077_v62 = vand.u32 2147483647, %v12351_v59 }
 0x267   : > { %v1938_v32 = vor.u32 %v1937_v30, %v1936_v36  ;;  %v1941_v52 = vor.u32 %v1940_v44, %v1939_v0  ;;  %v17078_v50 = vmov 0  ;;  %v1687_v25 = vand.u32 2147483647, %v1686_v2 }
 0x268   : > { %vm13149_vm1 = vcmp.le.f32.partialorder %v17077_v62, 0.7853982  ;;  %v1689_v15 = vcvt.s32.f32 %v1682_v14  ;;  %v1878_v5 = vshll.u32 %v13142_v56, 30  ;;  %v1944_v28 = vor.u32 %v1943_v29, %v1942_v24 }
 0x269   : > { %v17079_v50 = vsel %vm13149_vm1, 4294967295, %v17078_v50  ;;  %v17081_v60 = vand.u32 2147483647, %v12355_v1  ;;  %v1947_v22 = vor.u32 %v1946_v9, %v1945_v41  ;;  %v1948_v11 = vshll.u32 %v17036_v43, %v1933_v48 }
 0x26a   : > { %17080 = vst [vmem:[#allocation63_spill] sm:$0xff] %v17079_v50  ;;  %v1949_v37 = vshrl.u32 %v17038_v6, %v1934_v47  ;;  %v2026_v63 = vand.u32 2139095040, %v12595_v7  ;;  %v13163_v61 = vsel %vm10046_vm5, 0, %v10045_v54  ;;  %v13165_v12 = vsub.s32 %v1875_v49, %v1878_v5 }
 0x26b   : > { %vm13156_vm10 = vcmp.le.f32.partialorder %v17081_v60, 0.7853982  ;;  %vm1951_vm3 = vcmp.lt.s32.totalorder %v1932_v53, 1  ;;  %v1967_v14 = vshll.u32 %v1927_v26, 8  ;;  %v1935_v2 = vshrl.u32 %v17046_v13, %v1934_v47  ;;  %v13169_v30 = vpop.eup %11093 }
 0x26c   : > { %v1950_v34 = vor.u32 %v1949_v37, %v1948_v11  ;;  %vm1954_vm13 = vcmp.lt.s32.totalorder %v1932_v53, 4  ;;  %v1959_v36 = vsel %vm1951_vm3, %v1938_v32, %v1941_v52  ;;  %v1881_v48 = vsub.s32 0, %v13165_v12 }
 0x26d   : > { %vm1953_vm8 = vcmp.lt.s32.totalorder %v1932_v53, 3  ;;  %v1956_v0 = vsel %vm1954_vm13, %v1944_v28, 2102212464  ;;  %v1960_v44 = vsel %vm1954_vm13, %v1947_v22, 920167782  ;;  %vm1609_vm2 = vcmp.lt.s32.totalorder %v12367_v18, 0 }
 0x26e   : > { %vm1952_vm7 = vcmp.lt.s32.totalorder %v1932_v53, 2  ;;  %v1961_v49 = vsel %vm1953_vm8, %v1944_v28, %v1960_v44  ;;  %v1963_v54 = vsel %vm1951_vm3, %v1941_v52, %v1944_v28  ;;  %v1964_v26 = vsel %vm1954_vm13, %v1950_v34, 1326507024 }
 0x26f   : > { %v1587_v47 = vxor.u32 2147483648, %v13135_v35  ;;  %v1690_v29 = vmul.f32 %v1689_v15, %v1687_v25  ;;  %v1955_v24 = vsel %vm1951_vm3, %v1935_v2, %v1938_v32  ;;  %v1962_v9 = vsel %vm1952_vm7, %v1959_v36, %v1961_v49 }
 0x270   : > { %v1957_v41 = vsel %vm1953_vm8, %v1941_v52, %v1956_v0  ;;  %v1965_v62 = vsel %vm1953_vm8, %v1947_v22, %v1964_v26  ;;  %v13177_v5 = vmul.u32.u64.low %v1967_v14, %v1962_v9  ;;  %v13178_v60 = vmul.u32.u64.high %v1967_v14, %v1962_v9, %v13177_v5 }
 0x271   : > { %v1787_v11 = vsub.s32 4294967266, %v13163_v61  ;;  %v10048_v37 = vmin.u32 %v1881_v48, %v13165_v12  ;;  %v1966_v28 = vsel %vm1952_vm7, %v1963_v54, %v1965_v62  ;;  %v2027_v34 = vshrl.u32 %v2026_v63, 23 }
 0x272   : > { %11095 = vsinq.f32 %v13111_v20  ;;  %v1487_v32 = vsel %vm13149_vm1, %v12351_v59, %v13128_v55  ;;  %v17084_v52 = vand.u32 2147483647, %v12367_v18  ;;  %v17085_v25 = vmov 0 }
 0x273   : > { %vm1713_vm5 = vcmp.lt.s32.totalorder %v12429_v46, 0  ;;  %v13196_v15 = vmul.u32.u64.low %v1967_v14, %v1966_v28  ;;  %v13197_v22 = vmul.u32.u64.high %v1967_v14, %v1966_v28, %v13196_v15  ;;  %v13202_v20 = vsel %vm13156_vm10, 0, %v13133_v16  ;;  %v17089_v28 = vld [vmem:[#allocation39_spill] sm:$0xff] }
 0x274   : > { %vm13191_vm9 = vcmp.le.f32.partialorder %v17084_v52, 0.7853982  ;;  %17088 = vst [vmem:[#allocation65_spill] sm:$0xff] %v13202_v20  ;;  %v1691_v63 = vxor.u32 2147483648, %v1690_v29  ;;  %v1958_v2 = vsel %vm1952_vm7, %v1955_v24, %v1957_v41  ;;  %v10055_v55 = vadd.s32 4294967169, %v2027_v34  ;;  %v13228_v34 = vpop.f32.mrb[19].mxu0 }
 0x275   : > { %v17086_v25 = vsel %vm13191_vm9, 4294967295, %v17085_v25  ;;  %v1588_v36 = vsel %vm1505_vm14, %v1587_v47, %v13135_v35  ;;  %v1783_v48 = vsub.s32 32, %v13163_v61  ;;  %v1977_v0 = vadd.s32 1, %v13178_v60  ;;  %17090 = vst [vmem:[#allocation66_spill] sm:$0xff] %v13228_v34 }
 0x276   : > { %17087 = vst [vmem:[#allocation64_spill] sm:$0xff] %v17086_v25  ;;  %v16750_v44 = vand.u32 2147483647, %v12595_v7  ;;  %11097 = vcosq.f32 %v1487_v32  ;;  %v1788_v49 = vadd.s32 127, %v1787_v11  ;;  %v1883_v54 = vclz %v10048_v37 }
 0x277   : > { %v2033_v26 = vadd.s32 1, %v10055_v55  ;;  %v1693_v16 = vsub.s32 4, %v12987_v17  ;;  %v1767_v53 = vadd.s32 %v13023_v19, %v13031_v39  ;;  %v1974_v24 = vmul.u32 %v1967_v14, %v1958_v2 }
 0x278   : > { %vm1976_vm3 = vc.u32 %v13197_v22, %v13177_v5  ;;  %v13219_v35 = vsel %vm13156_vm10, %v12355_v1, %v1588_v36  ;;  %v1692_v47 = vsel %vm1609_vm2, %v1691_v63, %v1690_v29  ;;  %v1797_v9 = vsub.s32 4, %v13075_v33 }
 0x279   : > { %v1978_v41 = vsel %vm1976_vm3, %v1977_v0, %v13178_v60  ;;  %v1785_v62 = vshrl.u32 %v1767_v53, %v1783_v48  ;;  %v2030_v19 = vand.u32 8388607, %v16750_v44  ;;  %vm2034_vm14 = vcmp.gt.s32.totalorder %v2033_v26, 0 }
 0x27a   : > { %v1979_v11 = vadd.s32 %v1978_v41, %v1974_v24  ;;  %v1789_v39 = vshll.u32 %v1788_v49, 23  ;;  %v10049_v14 = vadd.s32 4294967294, %v1883_v54  ;;  %v2035_v37 = vsel %vm2034_vm14, %v2033_v26, 0 }
 0x27b   : > { %v2130_v23 = vand.u32 2139095040, %v17089_v28  ;;  %11099 = vsinq.f32 %v1487_v32  ;;  %v1784_v29 = vshll.u32 %v13087_v58, %v13163_v61  ;;  %v2037_v15 = vand.u32 31, %v2035_v37 }
 0x27c   : > { %v1980_v52 = vadd.s32 536870912, %v1979_v11  ;;  %11101 = vcosq.f32 %v13219_v35  ;;  %v13236_v60 = vsel %vm1609_vm2, %v1693_v16, %v12987_v17  ;;  %v13241_v63 = vsel %vm13191_vm9, %v12367_v18, %v1692_v47  ;;  %v13248_v58 = vpop.eup %11095 }
 0x27d   : > { %17091 = vst [vmem:[#allocation67_spill] sm:$0xff] %v13236_v60  ;;  %v13246_v32 = vsel %vm1713_vm5, %v1797_v9, %v13075_v33  ;;  %v1786_v61 = vor.u32 %v1785_v62, %v1784_v29  ;;  %v2038_v55 = vsub.s32 32, %v2037_v15  ;;  %v1790_v17 = vor.u32 4788187, %v1789_v39 }
 0x27e   : > { %v13250_v2 = vshrl.u32 %v1980_v52, 30  ;;  %vm10050_vm10 = vcmp.lt.s32.totalorder %v10049_v14, 0  ;;  %v2031_v48 = vor.u32 8388608, %v2030_v19  ;;  %v2131_v0 = vshrl.u32 %v2130_v23, 23 }
 0x27f   : > { %v2040_v54 = vshll.u32 %v17046_v13, %v2037_v15  ;;  %v2041_v26 = vshrl.u32 %v17034_v3, %v2038_v55  ;;  %v2043_v33 = vshll.u32 %v17034_v3, %v2037_v15  ;;  %v2044_v53 = vshrl.u32 %v17054_v38, %v2038_v55 }
 0x280   : > { %v1982_v49 = vshll.u32 %v13250_v2, 30  ;;  %v13257_v16 = vpop.eup %11097  ;;  %v2046_v24 = vshll.u32 %v17054_v38, %v2037_v15  ;;  %v2047_v47 = vshrl.u32 %v17035_v4, %v2038_v55  ;;  %v2050_v9 = vshrl.u32 %v17036_v43, %v2038_v55 }
 0x281   : > { %17092 = vst [vmem:[#allocation68_spill] sm:$0xff] %v13257_v16  ;;  %v13263_v41 = vsel %vm10050_vm10, 0, %v10049_v14  ;;  %v2036_v19 = vshrl.u32 %v2035_v37, 5  ;;  %v2049_v39 = vshll.u32 %v17035_v4, %v2037_v15  ;;  %v1793_v23 = vcvt.s32.f32 %v1786_v61 }
 0x282   : > { %v13265_v62 = vsub.s32 %v1979_v11, %v1982_v49  ;;  %v2042_v29 = vor.u32 %v2041_v26, %v2040_v54  ;;  %v2045_v52 = vor.u32 %v2044_v53, %v2043_v33  ;;  %v2048_v44 = vor.u32 %v2047_v47, %v2046_v24 }
 0x283   : > { %v2051_v18 = vor.u32 %v2050_v9, %v2049_v39  ;;  %v2052_v25 = vshll.u32 %v17036_v43, %v2037_v15  ;;  %v2053_v60 = vshrl.u32 %v17038_v6, %v2038_v55  ;;  %v1791_v16 = vand.u32 2147483647, %v1790_v17 }
 0x284   : > { %v1985_v36 = vsub.s32 0, %v13265_v62  ;;  %v1891_v14 = vsub.s32 4294967266, %v13263_v41  ;;  %v2071_v59 = vshll.u32 %v2031_v48, 8  ;;  %v10059_v11 = vadd.s32 4294967169, %v2131_v0 }
 0x285   : > { %v13272_v49 = vpop.eup %11099  ;;  %v17094_v37 = vand.u32 2147483647, %v12429_v46  ;;  %v2054_v26 = vor.u32 %v2053_v60, %v2052_v25  ;;  %vm2055_vm8 = vcmp.lt.s32.totalorder %v2036_v19, 1  ;;  %vm2058_vm2 = vcmp.lt.s32.totalorder %v2036_v19, 4 }
 0x286   : > { %17093 = vst [vmem:[#allocation69_spill] sm:$0xff] %v13272_v49  ;;  %v10052_v54 = vmin.u32 %v1985_v36, %v13265_v62  ;;  %v13281_v15 = vpop.eup %11101  ;;  %vm2057_vm7 = vcmp.lt.s32.totalorder %v2036_v19, 3  ;;  %v2060_v17 = vsel %vm2058_vm2, %v2048_v44, 2102212464  ;;  %v2063_v48 = vsel %vm2055_vm8, %v2042_v29, %v2045_v52 }
 0x287   : > { %vm13276_vm13 = vcmp.le.f32.partialorder %v17094_v37, 0.7853982  ;;  %17097 = vst [vmem:[#allocation70_spill] sm:$0xff] %v13281_v15  ;;  %v2064_v0 = vsel %vm2058_vm2, %v2051_v18, 920167782  ;;  %v1887_v33 = vsub.s32 32, %v13263_v41  ;;  %v2039_v53 = vshrl.u32 %v17046_v13, %v2038_v55 }
 0x288   : > { %vm2056_vm3 = vcmp.lt.s32.totalorder %v2036_v19, 2  ;;  %v2065_v24 = vsel %vm2057_vm7, %v2048_v44, %v2064_v0  ;;  %v1987_v47 = vclz %v10052_v54  ;;  %v2067_v25 = vsel %vm2055_vm8, %v2045_v52, %v2048_v44 }
 0x289   : > { %v2066_v9 = vsel %vm2056_vm3, %v2063_v48, %v2065_v24  ;;  %v2068_v60 = vsel %vm2058_vm2, %v2054_v26, 1326507024  ;;  %v1892_v36 = vadd.s32 127, %v1891_v14  ;;  %v2059_v39 = vsel %vm2055_vm8, %v2039_v53, %v2042_v29 }
 0x28a   : > { %v2061_v37 = vsel %vm2057_vm7, %v2045_v52, %v2060_v17  ;;  %v2069_v49 = vsel %vm2057_vm7, %v2051_v18, %v2068_v60  ;;  %v13290_v15 = vmul.u32.u64.low %v2071_v59, %v2066_v9  ;;  %v13291_v20 = vmul.u32.u64.high %v2071_v59, %v2066_v9, %v13290_v15 }
 0x28b   : > { %v2070_v50 = vsel %vm2056_vm3, %v2067_v25, %v2069_v49  ;;  %v2137_v55 = vadd.s32 1, %v10059_v11  ;;  %v13294_v1 = vmul.f32 %v1793_v23, %v1791_v16  ;;  %v1871_v54 = vadd.s32 %v13096_v40, %v13102_v21  ;;  %v13312_v16 = vpop.f32.mrb[20].mxu0 }
 0x28c   : > { %v13298_v48 = vmul.u32.u64.low %v2071_v59, %v2070_v50  ;;  %v13299_v44 = vmul.u32.u64.high %v2071_v59, %v2070_v50, %v13298_v48  ;;  %v10053_v14 = vadd.s32 4294967294, %v1987_v47  ;;  %v2062_v29 = vsel %vm2056_vm3, %v2059_v39, %v2061_v37  ;;  %17100 = vst [vmem:[#allocation72_spill] sm:$0xff] %v13312_v16  ;;  %v17101_v47 = vld [vmem:[#allocation42_spill] sm:$0xff] }
 0x28d   : > { %v17098_v18 = vand.u32 2147483647, %v17089_v28  ;;  %vm2138_vm14 = vcmp.gt.s32.totalorder %v2137_v55, 0  ;;  %11103 = vsinq.f32 %v13219_v35  ;;  %v1889_v49 = vshrl.u32 %v1871_v54, %v1887_v33 }
 0x28e   : > { %v1893_v26 = vshll.u32 %v1892_v36, 23  ;;  %v2139_v11 = vsel %vm2138_vm14, %v2137_v55, 0  ;;  %11105 = vcosq.f32 %v13241_v63  ;;  %v13309_v40 = vsel %vm13276_vm13, 0, %v13246_v32 }
 0x28f   : > { %v2134_v52 = vand.u32 8388607, %v17098_v18  ;;  %17099 = vst [vmem:[#allocation71_spill] sm:$0xff] %v13309_v40  ;;  %v2081_v21 = vadd.s32 1, %v13291_v20  ;;  %v2141_v50 = vand.u32 31, %v2139_v11  ;;  %v1888_v35 = vshll.u32 %v13165_v12, %v13263_v41 }
 0x290   : > { %v2078_v23 = vmul.u32 %v2071_v59, %v2062_v29  ;;  %vm2080_vm10 = vc.u32 %v13299_v44, %v13290_v15  ;;  %vm10054_vm8 = vcmp.lt.s32.totalorder %v10053_v14, 0  ;;  %v1894_v53 = vor.u32 4788187, %v1893_v26 }
 0x291   : > { %v2082_v17 = vsel %vm2080_vm10, %v2081_v21, %v13291_v20  ;;  %v2135_v0 = vor.u32 8388608, %v2134_v52  ;;  %v2142_v32 = vsub.s32 32, %v2141_v50  ;;  %v1890_v33 = vor.u32 %v1889_v49, %v1888_v35 }
 0x292   : > { %v2083_v24 = vadd.s32 %v2082_v17, %v2078_v23  ;;  %v2234_v9 = vand.u32 2139095040, %v17101_v47  ;;  %v2144_v25 = vshll.u32 %v17046_v13, %v2141_v50  ;;  %v13325_v41 = vsel %vm10054_vm8, 0, %v10053_v14 }
 0x293   : > { %v2145_v60 = vshrl.u32 %v17034_v3, %v2142_v32  ;;  %v2148_v12 = vshrl.u32 %v17054_v38, %v2142_v32  ;;  %v2151_v59 = vshrl.u32 %v17035_v4, %v2142_v32  ;;  %v2140_v39 = vshrl.u32 %v2139_v11, 5 }
 0x294   : > { %v2084_v36 = vadd.s32 536870912, %v2083_v24  ;;  %v2147_v20 = vshll.u32 %v17034_v3, %v2141_v50  ;;  %v2150_v55 = vshll.u32 %v17054_v38, %v2141_v50  ;;  %v2153_v54 = vshll.u32 %v17035_v4, %v2141_v50 }
 0x295   : > { %v2146_v37 = vor.u32 %v2145_v60, %v2144_v25  ;;  %v2154_v48 = vshrl.u32 %v17036_v43, %v2142_v32  ;;  %v2156_v52 = vshll.u32 %v17036_v43, %v2141_v50  ;;  %v2157_v49 = vshrl.u32 %v17038_v6, %v2142_v32 }
 0x296   : > { %v13331_v29 = vshrl.u32 %v2084_v36, 30  ;;  %v2149_v18 = vor.u32 %v2148_v12, %v2147_v20  ;;  %v2152_v14 = vor.u32 %v2151_v59, %v2150_v55  ;;  %v2235_v21 = vshrl.u32 %v2234_v9, 23 }
 0x297   : > { %v2155_v26 = vor.u32 %v2154_v48, %v2153_v54  ;;  %v13336_v35 = vpop.eup %11103  ;;  %v1897_v23 = vcvt.s32.f32 %v1890_v33  ;;  %v2158_v25 = vor.u32 %v2157_v49, %v2156_v52  ;;  %v2175_v60 = vshll.u32 %v2135_v0, 8 }
 0x298   : > { %17102 = vst [vmem:[#allocation73_spill] sm:$0xff] %v13336_v35  ;;  %v2086_v17 = vshll.u32 %v13331_v29, 30  ;;  %v13339_v19 = vpop.eup %11105  ;;  %v1895_v36 = vand.u32 2147483647, %v1894_v53  ;;  %v1995_v12 = vsub.s32 4294967266, %v13325_v41  ;;  %v2143_v50 = vshrl.u32 %v17046_v13, %v2142_v32 }
 0x299   : > { %17103 = vst [vmem:[#allocation74_spill] sm:$0xff] %v13339_v19  ;;  %vm2159_vm2 = vcmp.lt.s32.totalorder %v2140_v39, 1  ;;  %vm2161_vm7 = vcmp.lt.s32.totalorder %v2140_v39, 3  ;;  %vm2162_vm3 = vcmp.lt.s32.totalorder %v2140_v39, 4  ;;  %v10063_v54 = vadd.s32 4294967169, %v2235_v21 }
 0x29a   : > { %v13343_v59 = vsub.s32 %v2083_v24, %v2086_v17  ;;  %v2167_v9 = vsel %vm2159_vm2, %v2146_v37, %v2149_v18  ;;  %v2168_v20 = vsel %vm2162_vm3, %v2155_v26, 920167782  ;;  %v2171_v33 = vsel %vm2159_vm2, %v2149_v18, %v2152_v14 }
 0x29b   : > { %v2172_v55 = vsel %vm2162_vm3, %v2158_v25, 1326507024  ;;  %vm1817_vm14 = vcmp.lt.s32.totalorder %v12484_v31, 0  ;;  %vm2160_vm10 = vcmp.lt.s32.totalorder %v2140_v39, 2  ;;  %v2164_v53 = vsel %vm2162_vm3, %v2152_v14, 2102212464 }
 0x29c   : > { %v2089_v0 = vsub.s32 0, %v13343_v59  ;;  %v2169_v32 = vsel %vm2161_vm7, %v2152_v14, %v2168_v20  ;;  %v1898_v48 = vmul.f32 %v1897_v23, %v1895_v36  ;;  %v1991_v24 = vsub.s32 32, %v13325_v41 }
 0x29d   : > { %v2170_v52 = vsel %vm2160_vm10, %v2167_v9, %v2169_v32  ;;  %v2173_v49 = vsel %vm2161_vm7, %v2155_v26, %v2172_v55  ;;  %v1996_v17 = vadd.s32 127, %v1995_v12  ;;  %v2163_v21 = vsel %vm2159_vm2, %v2143_v50, %v2146_v37 }
 0x29e   : > { %v10056_v11 = vmin.u32 %v2089_v0, %v13343_v59  ;;  %v2174_v25 = vsel %vm2160_vm10, %v2171_v33, %v2173_v49  ;;  %v2165_v19 = vsel %vm2161_vm7, %v2149_v18, %v2164_v53  ;;  %v2241_v14 = vadd.s32 1, %v10063_v54 }
 0x29f   : > { %v13357_v40 = vmul.u32.u64.low %v2175_v60, %v2174_v25  ;;  %v13358_v35 = vmul.u32.u64.high %v2175_v60, %v2174_v25, %v13357_v40  ;;  %v1975_v23 = vadd.s32 %v13177_v5, %v13197_v22  ;;  %11107 = vsinq.f32 %v13241_v63 }
 0x2a0   : > { %v2091_v36 = vclz %v10056_v11  ;;  %v13362_v9 = vmul.u32.u64.low %v2175_v60, %v2170_v52  ;;  %v13363_v20 = vmul.u32.u64.high %v2175_v60, %v2170_v52, %v13362_v9  ;;  %v17104_v37 = vxor.u32 2147483648, %v13294_v1 }
 0x2a1   : > { %v1899_v26 = vxor.u32 2147483648, %v1898_v48  ;;  %vm2242_vm8 = vcmp.gt.s32.totalorder %v2241_v14, 0  ;;  %v1993_v40 = vshrl.u32 %v1975_v23, %v1991_v24  ;;  %v1997_v12 = vshll.u32 %v1996_v17, 23  ;;  %v13391_v24 = vpop.f32.mrb[21].mxu0 }
 0x2a2   : > { %v1796_v18 = vsel %vm1713_vm5, %v17104_v37, %v13294_v1  ;;  %v2166_v50 = vsel %vm2160_vm10, %v2163_v21, %v2165_v19  ;;  %v2243_v5 = vsel %vm2242_vm8, %v2241_v14, 0  ;;  %vm2184_vm2 = vc.u32 %v13358_v35, %v13362_v9  ;;  %17106 = vst [vmem:[#allocation75_spill] sm:$0xff] %v13391_v24 }
 0x2a3   : > { %v17105_v63 = vand.u32 2147483647, %v17101_v47  ;;  %v2245_v33 = vand.u32 31, %v2243_v5  ;;  %v13381_v1 = vsel %vm13276_vm13, %v12429_v46, %v1796_v18  ;;  %v1992_v55 = vshll.u32 %v13265_v62, %v13325_v41 }
 0x2a4   : > { %v10057_v39 = vadd.s32 4294967294, %v2091_v36  ;;  %v2185_v19 = vadd.s32 1, %v13363_v20  ;;  %v13388_v54 = vsel %vm1817_vm14, %v1899_v26, %v1898_v48  ;;  %v2182_v53 = vmul.u32 %v2175_v60, %v2166_v50 }
 0x2a5   : > { %v2238_v11 = vand.u32 8388607, %v17105_v63  ;;  %v2246_v32 = vsub.s32 32, %v2245_v33  ;;  %v1994_v52 = vor.u32 %v1993_v40, %v1992_v55  ;;  %v1998_v61 = vor.u32 4788187, %v1997_v12 }
 0x2a6   : > { %v2079_v49 = vadd.s32 %v13290_v15, %v13299_v44  ;;  %v2186_v62 = vsel %vm2184_vm2, %v2185_v19, %v13363_v20  ;;  %vm10058_vm5 = vcmp.lt.s32.totalorder %v10057_v39, 0  ;;  %v2248_v25 = vshll.u32 %v17046_v13, %v2245_v33 }
 0x2a7   : > { %v2187_v41 = vadd.s32 %v2186_v62, %v2182_v53  ;;  %v2239_v17 = vor.u32 8388608, %v2238_v11  ;;  %v2249_v21 = vshrl.u32 %v17034_v3, %v2246_v32  ;;  %v2252_v48 = vshrl.u32 %v17054_v38, %v2246_v32 }
 0x2a8   : > { %v2251_v60 = vshll.u32 %v17034_v3, %v2245_v33  ;;  %v2255_v14 = vshrl.u32 %v17035_v4, %v2246_v32  ;;  %v2244_v36 = vshrl.u32 %v2243_v5, 5  ;;  %v2254_v37 = vshll.u32 %v17054_v38, %v2245_v33 }
 0x2a9   : > { %v2188_v23 = vadd.s32 536870912, %v2187_v41  ;;  %v2338_v15 = vand.u32 2139095040, %v12840_v10  ;;  %v2250_v44 = vor.u32 %v2249_v21, %v2248_v25  ;;  %v2257_v18 = vshll.u32 %v17035_v4, %v2245_v33  ;;  %v13405_v40 = vpop.eup %11107 }
 0x2aa   : > { %v2253_v20 = vor.u32 %v2252_v48, %v2251_v60  ;;  %v2258_v26 = vshrl.u32 %v17036_v43, %v2246_v32  ;;  %17107 = vst [vmem:[#allocation76_spill] sm:$0xff] %v13405_v40  ;;  %v2001_v12 = vcvt.s32.f32 %v1994_v52  ;;  %v2094_v50 = vsel %vm10058_vm5, 0, %v10057_v39 }
 0x2ab   : > { %v13407_v63 = vshrl.u32 %v2188_v23, 30  ;;  %v2261_v11 = vshrl.u32 %v17038_v6, %v2246_v32  ;;  %v1999_v55 = vand.u32 2147483647, %v1998_v61  ;;  %v2256_v5 = vor.u32 %v2255_v14, %v2254_v37 }
 0x2ac   : > { %v2259_v19 = vor.u32 %v2258_v26, %v2257_v18  ;;  %v2260_v53 = vshll.u32 %v17036_v43, %v2245_v33  ;;  %vm2263_vm13 = vcmp.lt.s32.totalorder %v2244_v36, 1  ;;  %v2279_v21 = vshll.u32 %v2239_v17, 8 }
 0x2ad   : > { %v2190_v62 = vshll.u32 %v13407_v63, 30  ;;  %v2339_v48 = vshrl.u32 %v2338_v15, 23  ;;  %v17108_v25 = vand.u32 2147483647, %v12484_v31  ;;  %v17109_v60 = vmov 0 }
 0x2ae   : > { %vm1921_vm3 = vcmp.lt.s32.totalorder %v12532_v57, 0  ;;  %v2095_v39 = vsub.s32 32, %v2094_v50  ;;  %v2262_v52 = vor.u32 %v2261_v11, %v2260_v53  ;;  %vm2266_vm10 = vcmp.lt.s32.totalorder %v2244_v36, 4 }
 0x2af   : > { %vm13414_vm7 = vcmp.le.f32.partialorder %v17108_v25, 0.7853982  ;;  %v2271_v61 = vsel %vm2263_vm13, %v2250_v44, %v2253_v20  ;;  %v2099_v14 = vsub.s32 4294967266, %v2094_v50  ;;  %v13420_v33 = vsub.s32 %v2187_v41, %v2190_v62 }
 0x2b0   : > { %v17110_v60 = vsel %vm13414_vm7, 4294967295, %v17109_v60  ;;  %vm2265_vm8 = vcmp.lt.s32.totalorder %v2244_v36, 3  ;;  %v2272_v17 = vsel %vm2266_vm10, %v2259_v19, 920167782  ;;  %v2247_v23 = vshrl.u32 %v17046_v13, %v2246_v32 }
 0x2b1   : > { %17111 = vst [vmem:[#allocation77_spill] sm:$0xff] %v17110_v60  ;;  %vm2264_vm2 = vcmp.lt.s32.totalorder %v2244_v36, 2  ;;  %v2268_v37 = vsel %vm2266_vm10, %v2256_v5, 2102212464  ;;  %v2273_v15 = vsel %vm2265_vm8, %v2256_v5, %v2272_v17  ;;  %v2002_v18 = vmul.f32 %v2001_v12, %v1999_v55 }
 0x2b2   : > { %v2193_v26 = vsub.s32 0, %v13420_v33  ;;  %v2274_v11 = vsel %vm2264_vm2, %v2271_v61, %v2273_v15  ;;  %v2275_v53 = vsel %vm2263_vm13, %v2253_v20, %v2256_v5  ;;  %v17112_v41 = vand.u32 2147483647, %v12532_v57 }
 0x2b3   : > { %v2267_v32 = vsel %vm2263_vm13, %v2247_v23, %v2250_v44  ;;  %v2276_v25 = vsel %vm2266_vm10, %v2262_v52, 1326507024  ;;  %v13437_v22 = vmul.u32.u64.low %v2279_v21, %v2274_v11  ;;  %v13438_v0 = vmul.u32.u64.high %v2279_v21, %v2274_v11, %v13437_v22 }
 0x2b4   : > { %vm13431_vm5 = vcmp.le.f32.partialorder %v17112_v41, 0.7853982  ;;  %v10060_v12 = vmin.u32 %v2193_v26, %v13420_v33  ;;  %v2269_v55 = vsel %vm2265_vm8, %v2253_v20, %v2268_v37  ;;  %v2277_v5 = vsel %vm2265_vm8, %v2259_v19, %v2276_v25 }
 0x2b5   : > { %v10067_v61 = vadd.s32 4294967169, %v2339_v48  ;;  %v2097_v17 = vshrl.u32 %v2079_v49, %v2095_v39  ;;  %v2100_v15 = vadd.s32 127, %v2099_v14  ;;  %v2278_v41 = vsel %vm2264_vm2, %v2275_v53, %v2277_v5 }
 0x2b6   : > { %v16767_v40 = vand.u32 2147483647, %v12840_v10  ;;  %11109 = vcosq.f32 %v13381_v1  ;;  %v2195_v44 = vclz %v10060_v12  ;;  %v2096_v11 = vshll.u32 %v13343_v59, %v2094_v50  ;;  %v13477_v12 = vpop.f32.mrb[22].mxu0 }
 0x2b7   : > { %v13447_v52 = vmul.u32.u64.low %v2279_v21, %v2278_v41  ;;  %v13448_v23 = vmul.u32.u64.high %v2279_v21, %v2278_v41, %v13447_v52  ;;  %v2270_v26 = vsel %vm2264_vm2, %v2267_v32, %v2269_v55  ;;  %v2289_v20 = vadd.s32 1, %v13438_v0  ;;  %17118 = vst [vmem:[#allocation79_spill] sm:$0xff] %v13477_v12 }
 0x2b8   : > { %v2345_v19 = vadd.s32 1, %v10067_v61  ;;  %11111 = vsinq.f32 %v13381_v1  ;;  %v1903_v49 = vsel %vm13414_vm7, %v12484_v31, %v13388_v54  ;;  %v2003_v48 = vxor.u32 2147483648, %v2002_v18 }
 0x2b9   : > { %v17115_v39 = vsub.s32 4, %v13250_v2  ;;  %v13463_v59 = vor.u32 %v2097_v17, %v2096_v11  ;;  %v2101_v36 = vshll.u32 %v2100_v15, 23  ;;  %v2342_v50 = vand.u32 8388607, %v16767_v40 }
 0x2ba   : > { %vm2346_vm13 = vcmp.gt.s32.totalorder %v2345_v19, 0  ;;  %v10061_v1 = vadd.s32 4294967294, %v2195_v44  ;;  %v2286_v37 = vmul.u32 %v2279_v21, %v2270_v26  ;;  %vm2288_vm10 = vc.u32 %v13448_v23, %v13437_v22 }
 0x2bb   : > { %v2006_v14 = vsel %vm1921_vm3, %v17115_v39, %v13250_v2  ;;  %v2347_v54 = vsel %vm2346_vm13, %v2345_v19, 0  ;;  %v17116_v53 = vsub.s32 4, %v13142_v56  ;;  %11113 = vcosq.f32 %v1903_v49 }
 0x2bc   : > { %v2290_v2 = vsel %vm2288_vm10, %v2289_v20, %v13438_v0  ;;  %v2349_v25 = vand.u32 31, %v2347_v54  ;;  %11115 = vsinq.f32 %v1903_v49  ;;  %v13481_v21 = vsel %vm1921_vm3, %v2003_v48, %v2002_v18 }
 0x2bd   : > { %v13474_v32 = vsel %vm1817_vm14, %v17116_v53, %v13142_v56  ;;  %v13485_v55 = vsel %vm13431_vm5, 0, %v2006_v14  ;;  %v2291_v5 = vadd.s32 %v2290_v2, %v2286_v37  ;;  %v2102_v61 = vor.u32 4788187, %v2101_v36 }
 0x2be   : > { %17117 = vst [vmem:[#allocation78_spill] sm:$0xff] %v13474_v32  ;;  %17119 = vst [vmem:[#allocation80_spill] sm:$0xff] %v13485_v55  ;;  %v13489_v56 = vadd.s32 %v13362_v9, %v13358_v35  ;;  %v2343_v17 = vor.u32 8388608, %v2342_v50  ;;  %v2350_v0 = vsub.s32 32, %v2349_v25  ;;  %v2105_v15 = vcvt.s32.f32 %v13463_v59 }
 0x2bf   : > { %vm10062_vm14 = vcmp.lt.s32.totalorder %v10061_v1, 0  ;;  %v2292_v41 = vadd.s32 536870912, %v2291_v5  ;;  %v2352_v44 = vshll.u32 %v17046_v13, %v2349_v25  ;;  %v2355_v52 = vshll.u32 %v17034_v3, %v2349_v25 }
 0x2c0   : > { %v2353_v18 = vshrl.u32 %v17034_v3, %v2350_v0  ;;  %v2356_v11 = vshrl.u32 %v17054_v38, %v2350_v0  ;;  %v2359_v26 = vshrl.u32 %v17035_v4, %v2350_v0  ;;  %v13497_v20 = vpop.eup %11109  ;;  %v2348_v9 = vshrl.u32 %v2347_v54, 5 }
 0x2c1   : > { %17120 = vst [vmem:[#allocation81_spill] sm:$0xff] %v13497_v20  ;;  %v13499_v35 = vshrl.u32 %v2292_v41, 30  ;;  %v2358_v19 = vshll.u32 %v17054_v38, %v2349_v25  ;;  %v2362_v49 = vshrl.u32 %v17036_v43, %v2350_v0  ;;  %v13503_v48 = vsel %vm10062_vm14, 0, %v10061_v1 }
 0x2c2   : > { %v2354_v39 = vor.u32 %v2353_v18, %v2352_v44  ;;  %v2357_v14 = vor.u32 %v2356_v11, %v2355_v52  ;;  %v2361_v59 = vshll.u32 %v17035_v4, %v2349_v25  ;;  %v13506_v36 = vpop.eup %11111  ;;  %v2103_v50 = vand.u32 2147483647, %v2102_v61 }
 0x2c3   : > { %17121 = vst [vmem:[#allocation82_spill] sm:$0xff] %v13506_v36  ;;  %v2294_v37 = vshll.u32 %v13499_v35, 30  ;;  %v2360_v53 = vor.u32 %v2359_v26, %v2358_v19  ;;  %v13509_v2 = vshll.u32 %v2343_v17, 8  ;;  %v2364_v54 = vshll.u32 %v17036_v43, %v2349_v25 }
 0x2c4   : > { %v2363_v41 = vor.u32 %v2362_v49, %v2361_v59  ;;  %v2365_v40 = vshrl.u32 %v17038_v6, %v2350_v0  ;;  %v2442_v1 = vand.u32 2139095040, %v12966_v45  ;;  %v2199_v44 = vsub.s32 32, %v13503_v48 }
 0x2c5   : > { %v2203_v18 = vsub.s32 4294967266, %v13503_v48  ;;  %v13516_v52 = vsub.s32 %v2291_v5, %v2294_v37  ;;  %vm2367_vm3 = vcmp.lt.s32.totalorder %v2348_v9, 1  ;;  %v13518_v61 = vpop.eup %11113  ;;  %v2351_v11 = vshrl.u32 %v17046_v13, %v2350_v0 }
 0x2c6   : > { %17122 = vst [vmem:[#allocation83_spill] sm:$0xff] %v13518_v61  ;;  %v2366_v17 = vor.u32 %v2365_v40, %v2364_v54  ;;  %vm2370_vm8 = vcmp.lt.s32.totalorder %v2348_v9, 4  ;;  %v2375_v26 = vsel %vm2367_vm3, %v2354_v39, %v2357_v14  ;;  %v13522_v25 = vpop.eup %11115  ;;  %vm2369_vm2 = vcmp.lt.s32.totalorder %v2348_v9, 3 }
 0x2c7   : > { %17123 = vst [vmem:[#allocation84_spill] sm:$0xff] %v13522_v25  ;;  %v2297_v19 = vsub.s32 0, %v13516_v52  ;;  %v2372_v49 = vsel %vm2370_vm8, %v2360_v53, 2102212464  ;;  %v2376_v59 = vsel %vm2370_vm8, %v2363_v41, 920167782  ;;  %v2379_v5 = vsel %vm2367_vm3, %v2357_v14, %v2360_v53 }
 0x2c8   : > { %vm2368_vm13 = vcmp.lt.s32.totalorder %v2348_v9, 2  ;;  %v2377_v31 = vsel %vm2369_vm2, %v2360_v53, %v2376_v59  ;;  %v2380_v37 = vsel %vm2370_vm8, %v2366_v17, 1326507024  ;;  %v2204_v60 = vadd.s32 127, %v2203_v18 }
 0x2c9   : > { %v10064_v61 = vmin.u32 %v2297_v19, %v13516_v52  ;;  %v2371_v40 = vsel %vm2367_vm3, %v2351_v11, %v2354_v39  ;;  %v2378_v0 = vsel %vm2368_vm13, %v2375_v26, %v2377_v31  ;;  %v2373_v54 = vsel %vm2369_vm2, %v2357_v14, %v2372_v49  ;;  %v7408_v14 = vld [vmem:[#allocation2 + $0x8] sm:$0xff] }
 0x2ca   : > { %v2381_v32 = vsel %vm2369_vm2, %v2363_v41, %v2380_v37  ;;  %v13530_v25 = vmul.u32.u64.low %v13509_v2, %v2378_v0  ;;  %v13531_v55 = vmul.u32.u64.high %v13509_v2, %v2378_v0, %v13530_v25  ;;  %vm2025_vm10 = vcmp.lt.s32.totalorder %v12595_v7, 0  ;;  %v7410_v41 = vld [vmem:[#allocation2 + $0x18] sm:$0xff] }
 0x2cb   : > { %v2299_v59 = vclz %v10064_v61  ;;  %v2382_v53 = vsel %vm2368_vm13, %v2379_v5, %v2381_v32  ;;  %v2443_v17 = vshrl.u32 %v2442_v1, 23  ;;  %v2546_v18 = vand.u32 2139095040, %v13052_v8 }
 0x2cc   : > { %v2106_v19 = vmul.f32 %v2105_v15, %v2103_v50  ;;  %v13538_v39 = vmul.u32.u64.low %v13509_v2, %v2382_v53  ;;  %v13539_v11 = vmul.u32.u64.high %v13509_v2, %v2382_v53, %v13538_v39  ;;  %v16774_v31 = vand.u32 2147483647, %v12966_v45 }
 0x2cd   : > { %v2201_v26 = vshrl.u32 %v13489_v56, %v2199_v44  ;;  %v10065_v49 = vadd.s32 4294967294, %v2299_v59  ;;  %v2374_v37 = vsel %vm2368_vm13, %v2371_v40, %v2373_v54  ;;  %v10071_v61 = vadd.s32 4294967169, %v2443_v17 }
 0x2ce   : > { %v2109_v32 = vsub.s32 4, %v13331_v29  ;;  %v2200_v1 = vshll.u32 %v13420_v33, %v13503_v48  ;;  %v2205_v15 = vshll.u32 %v2204_v60, 23  ;;  %v2393_v50 = vadd.s32 1, %v13531_v55 }
 0x2cf   : > { %vm10066_vm14 = vcmp.lt.s32.totalorder %v10065_v49, 0  ;;  %v2449_v5 = vadd.s32 1, %v10071_v61  ;;  %v2547_v0 = vshrl.u32 %v2546_v18, 23  ;;  %v10452_v53 = vpack.c.bf16 %v7410_v41, %v7408_v14 }
 0x2d0   : > { %v2007_v56 = vsel %vm13431_vm5, %v12532_v57, %v13481_v21  ;;  %v2302_v9 = vsel %vm10066_vm14, 0, %v10065_v49  ;;  %v2390_v44 = vmul.u32 %v13509_v2, %v2374_v37  ;;  %vm2392_vm3 = vc.u32 %v13539_v11, %v13530_v25  ;;  %v13563_v21 = vpop.f32.mrb[23].mxu0 }
 0x2d1   : > { %v2107_v40 = vxor.u32 2147483648, %v2106_v19  ;;  %v13555_v33 = vor.u32 %v2201_v26, %v2200_v1  ;;  %v2394_v60 = vsel %vm2392_vm3, %v2393_v50, %v13531_v55  ;;  %v2446_v48 = vand.u32 8388607, %v16774_v31  ;;  %10453 = vmatprep.subr.bf16.mxu1 %v10452_v53  ;;  %17124 = vst [vmem:[#allocation85_spill] sm:$0xff] %v13563_v21 }
 0x2d2   : > { %v13560_v54 = vor.u32 4788187, %v2205_v15  ;;  %v2395_v59 = vadd.s32 %v2394_v60, %v2390_v44  ;;  %vm2450_vm8 = vcmp.gt.s32.totalorder %v2449_v5, 0  ;;  %v16775_v62 = vand.u32 2147483647, %v13052_v8 }
 0x2d3   : > { %v2303_v2 = vsub.s32 32, %v2302_v9  ;;  %v2307_v17 = vsub.s32 4294967266, %v2302_v9  ;;  %v2451_v18 = vsel %vm2450_vm8, %v2449_v5, 0  ;;  %v10075_v39 = vadd.s32 4294967169, %v2547_v0 }
 0x2d4   : > { %11117 = vcosq.f32 %v2007_v56  ;;  %v13568_v55 = vsel %vm2025_vm10, %v2109_v32, %v13331_v29  ;;  %v2396_v14 = vadd.s32 536870912, %v2395_v59  ;;  %v2453_v41 = vand.u32 31, %v2451_v18 }
 0x2d5   : > { %17125 = vst [vmem:[#allocation86_spill] sm:$0xff] %v13568_v55  ;;  %11119 = vsinq.f32 %v2007_v56  ;;  %v13572_v26 = vsel %vm2025_vm10, %v2107_v40, %v2106_v19  ;;  %v2287_v37 = vadd.s32 %v13437_v22, %v13448_v23  ;;  %v2447_v15 = vor.u32 8388608, %v2446_v48 }
 0x2d6   : > { %v13578_v1 = vshrl.u32 %v2396_v14, 30  ;;  %v2454_v50 = vsub.s32 32, %v2453_v41  ;;  %v2308_v32 = vadd.s32 127, %v2307_v17  ;;  %v13582_v5 = vand.u32 8388607, %v16775_v62 }
 0x2d7   : > { %v2305_v29 = vshrl.u32 %v2287_v37, %v2303_v2  ;;  %v2553_v0 = vadd.s32 1, %v10075_v39  ;;  %v2456_v53 = vshll.u32 %v17046_v13, %v2453_v41  ;;  %v2459_v22 = vshll.u32 %v17034_v3, %v2453_v41 }
 0x2d8   : > { %v2398_v19 = vshll.u32 %v13578_v1, 30  ;;  %v2457_v56 = vshrl.u32 %v17034_v3, %v2454_v50  ;;  %v2460_v23 = vshrl.u32 %v17054_v38, %v2454_v50  ;;  %v2462_v44 = vshll.u32 %v17054_v38, %v2453_v41 }
 0x2d9   : > { %v2463_v40 = vshrl.u32 %v17035_v4, %v2454_v50  ;;  %v2466_v60 = vshrl.u32 %v17036_v43, %v2454_v50  ;;  %v2452_v2 = vshrl.u32 %v2451_v18, 5  ;;  %v2465_v17 = vshll.u32 %v17035_v4, %v2453_v41 }
 0x2da   : > { %v13592_v48 = vsub.s32 %v2395_v59, %v2398_v19  ;;  %v13595_v39 = vshll.u32 %v2447_v15, 8  ;;  %v2304_v14 = vshll.u32 %v13516_v52, %v2302_v9  ;;  %v2458_v37 = vor.u32 %v2457_v56, %v2456_v53 }
 0x2db   : > { %v2461_v31 = vor.u32 %v2460_v23, %v2459_v22  ;;  %v2464_v62 = vor.u32 %v2463_v40, %v2462_v44  ;;  %v17126_v49 = vand.u32 2147483647, %v12595_v7  ;;  %v17127_v61 = vmov 0 }
 0x2dc   : > { %v2401_v55 = vsub.s32 0, %v13592_v48  ;;  %v2467_v59 = vor.u32 %v2466_v60, %v2465_v17  ;;  %v2468_v18 = vshll.u32 %v17036_v43, %v2453_v41  ;;  %v2469_v19 = vshrl.u32 %v17038_v6, %v2454_v50 }
 0x2dd   : > { %vm13600_vm5 = vcmp.le.f32.partialorder %v17126_v49, 0.7853982  ;;  %v13607_v15 = vor.u32 %v2305_v29, %v2304_v14  ;;  %v2309_v57 = vshll.u32 %v2308_v32, 23  ;;  %v2551_v52 = vor.u32 8388608, %v13582_v5 }
 0x2de   : > { %v17128_v61 = vsel %vm13600_vm5, 4294967295, %v17127_v61  ;;  %vm2554_vm2 = vcmp.gt.s32.totalorder %v2553_v0, 0  ;;  %v13610_v9 = vpop.eup %11117  ;;  %v10068_v49 = vmin.u32 %v2401_v55, %v13592_v48  ;;  %v2470_v53 = vor.u32 %v2469_v19, %v2468_v18 }
 0x2df   : > { %17129 = vst [vmem:[#allocation87_spill] sm:$0xff] %v17128_v61  ;;  %17130 = vst [vmem:[#allocation88_spill] sm:$0xff] %v13610_v9  ;;  %vm2471_vm13 = vcmp.lt.s32.totalorder %v2452_v2, 1  ;;  %vm2474_vm10 = vcmp.lt.s32.totalorder %v2452_v2, 4  ;;  %v13613_v56 = vpop.eup %11119  ;;  %vm2473_vm14 = vcmp.lt.s32.totalorder %v2452_v2, 3  ;;  %v2455_v32 = vshrl.u32 %v17046_v13, %v2454_v50 }
 0x2e0   : > { %17131 = vst [vmem:[#allocation89_spill] sm:$0xff] %v13613_v56  ;;  %v2476_v22 = vsel %vm2474_vm10, %v2464_v62, 2102212464  ;;  %v2479_v41 = vsel %vm2471_vm13, %v2458_v37, %v2461_v31  ;;  %v2480_v23 = vsel %vm2474_vm10, %v2467_v59, 920167782  ;;  %v2403_v29 = vclz %v10068_v49 }
 0x2e1   : > { %vm2472_vm3 = vcmp.lt.s32.totalorder %v2452_v2, 2  ;;  %v2481_v5 = vsel %vm2473_vm14, %v2464_v62, %v2480_v23  ;;  %v2483_v40 = vsel %vm2471_vm13, %v2461_v31, %v2464_v62  ;;  %v2484_v55 = vsel %vm2474_vm10, %v2470_v53, 1326507024 }
 0x2e2   : > { %v2482_v44 = vsel %vm2472_vm3, %v2479_v41, %v2481_v5  ;;  %v2555_v60 = vsel %vm2554_vm2, %v2553_v0, 0  ;;  %v10069_v17 = vadd.s32 4294967294, %v2403_v29  ;;  %v2475_v14 = vsel %vm2471_vm13, %v2455_v32, %v2458_v37 }
 0x2e3   : > { %v2477_v18 = vsel %vm2473_vm14, %v2461_v31, %v2476_v22  ;;  %v2485_v19 = vsel %vm2473_vm14, %v2467_v59, %v2484_v55  ;;  %v2310_v9 = vor.u32 4788187, %v2309_v57  ;;  %v2557_v53 = vand.u32 31, %v2555_v60 }
 0x2e4   : > { %v2486_v56 = vsel %vm2472_vm3, %v2483_v40, %v2485_v19  ;;  %v13623_v49 = vmul.u32.u64.low %v13595_v39, %v2482_v44  ;;  %v13624_v50 = vmul.u32.u64.high %v13595_v39, %v2482_v44, %v13623_v49  ;;  %vm10070_vm8 = vcmp.lt.s32.totalorder %v10069_v17, 0 }
 0x2e5   : > { %v13628_v41 = vmul.u32.u64.low %v13595_v39, %v2486_v56  ;;  %v13629_v62 = vmul.u32.u64.high %v13595_v39, %v2486_v56, %v13628_v41  ;;  %v13635_v31 = vsel %vm13600_vm5, %v12595_v7, %v13572_v26  ;;  %v2213_v57 = vsub.s32 4, %v13407_v63  ;;  %v13650_v26 = vpop.f32.mrb[24].mxu0 }
 0x2e6   : > { %v13638_v0 = vsel %vm10070_vm8, 0, %v10069_v17  ;;  %v2478_v37 = vsel %vm2472_vm3, %v2475_v14, %v2477_v18  ;;  %v17132_v59 = vand.u32 2147483647, %v13560_v54  ;;  %v17133_v22 = vcvt.s32.f32 %v13555_v33  ;;  %17134 = vst [vmem:[#allocation90_spill] sm:$0xff] %v13650_v26 }
 0x2e7   : > { %v2391_v56 = vadd.s32 %v13530_v25, %v13539_v11  ;;  %v2411_v29 = vsub.s32 4294967266, %v13638_v0  ;;  %v2558_v32 = vsub.s32 32, %v2557_v53  ;;  %v2311_v5 = vand.u32 2147483647, %v2310_v9 }
 0x2e8   : > { %v13645_v23 = vmul.f32 %v17133_v22, %v17132_v59  ;;  %v2313_v44 = vcvt.s32.f32 %v13607_v15  ;;  %v2497_v2 = vadd.s32 1, %v13624_v50  ;;  %v13654_v40 = vshll.u32 %v2551_v52, 8 }
 0x2e9   : > { %v2494_v54 = vmul.u32 %v13595_v39, %v2478_v37  ;;  %vm2496_vm2 = vc.u32 %v13629_v62, %v13623_v49  ;;  %v13659_v33 = vshrl.u32 %v2555_v60, 5  ;;  %v2560_v25 = vshll.u32 %v17046_v13, %v2557_v53 }
 0x2ea   : > { %v2498_v11 = vsel %vm2496_vm2, %v2497_v2, %v13624_v50  ;;  %v2561_v55 = vshrl.u32 %v17034_v3, %v2558_v32  ;;  %v2563_v9 = vshll.u32 %v17034_v3, %v2557_v53  ;;  %v2564_v15 = vshrl.u32 %v17054_v38, %v2558_v32 }
 0x2eb   : > { %v2412_v17 = vadd.s32 127, %v2411_v29  ;;  %v2499_v52 = vadd.s32 %v2498_v11, %v2494_v54  ;;  %v2566_v14 = vshll.u32 %v17054_v38, %v2557_v53  ;;  %v2567_v39 = vshrl.u32 %v17035_v4, %v2558_v32 }
 0x2ec   : > { %v2562_v18 = vor.u32 %v2561_v55, %v2560_v25  ;;  %v2565_v19 = vor.u32 %v2564_v15, %v2563_v9  ;;  %v2569_v60 = vshll.u32 %v17035_v4, %v2557_v53  ;;  %v2570_v41 = vshrl.u32 %v17036_v43, %v2558_v32 }
 0x2ed   : > { %v13670_v37 = vmul.f32 %v2313_v44, %v2311_v5  ;;  %v2407_v50 = vsub.s32 32, %v13638_v0  ;;  %v2500_v59 = vadd.s32 536870912, %v2499_v52  ;;  %v2568_v22 = vor.u32 %v2567_v39, %v2566_v14 }
 0x2ee   : > { %v2571_v2 = vor.u32 %v2570_v41, %v2569_v60  ;;  %v2572_v29 = vshll.u32 %v17036_v43, %v2557_v53  ;;  %v2573_v54 = vshrl.u32 %v17038_v6, %v2558_v32  ;;  %vm2575_vm13 = vcmp.lt.s32.totalorder %v13659_v33, 1 }
 0x2ef   : > { %vm2129_vm10 = vcmp.lt.s32.totalorder %v17089_v28, 0  ;;  %v2413_v25 = vshll.u32 %v2412_v17, 23  ;;  %v13677_v11 = vshrl.u32 %v2500_v59, 30  ;;  %vm2576_vm14 = vcmp.lt.s32.totalorder %v13659_v33, 2 }
 0x2f0   : > { %vm2578_vm3 = vcmp.lt.s32.totalorder %v13659_v33, 4  ;;  %v2574_v5 = vor.u32 %v2573_v54, %v2572_v29  ;;  %vm2577_vm8 = vcmp.lt.s32.totalorder %v13659_v33, 3  ;;  %v2583_v44 = vsel %vm2575_vm13, %v2562_v18, %v2565_v19 }
 0x2f1   : > { %v2584_v53 = vsel %vm2578_vm3, %v2571_v2, 920167782  ;;  %v2409_v55 = vshrl.u32 %v2391_v56, %v2407_v50  ;;  %v2502_v9 = vshll.u32 %v13677_v11, 30  ;;  %v2559_v15 = vshrl.u32 %v17046_v13, %v2558_v32 }
 0x2f2   : > { %v2580_v14 = vsel %vm2578_vm3, %v2568_v22, 2102212464  ;;  %vm2233_vm2 = vcmp.lt.s32.totalorder %v17101_v47, 0  ;;  %v2408_v17 = vshll.u32 %v13592_v48, %v13638_v0  ;;  %v2585_v39 = vsel %vm2577_vm8, %v2568_v22, %v2584_v53 }
 0x2f3   : > { %v2587_v60 = vsel %vm2575_vm13, %v2565_v19, %v2568_v22  ;;  %v2588_v41 = vsel %vm2578_vm3, %v2574_v5, 1326507024  ;;  %v2414_v59 = vor.u32 4788187, %v2413_v25  ;;  %v13693_v29 = vsub.s32 %v2499_v52, %v2502_v9  ;;  %v7409_v25 = vld [vmem:[#allocation2 + $0x10] sm:$0xff] }
 0x2f4   : > { %v2579_v56 = vsel %vm2575_vm13, %v2559_v15, %v2562_v18  ;;  %v2586_v32 = vsel %vm2576_vm14, %v2583_v44, %v2585_v39  ;;  %v17135_v50 = vand.u32 2147483647, %v17089_v28  ;;  %v2581_v0 = vsel %vm2577_vm8, %v2565_v19, %v2580_v14  ;;  %v7407_v18 = vld [vmem:[#allocation2] sm:$0xff] }
 0x2f5   : > { %v2589_v22 = vsel %vm2577_vm8, %v2571_v2, %v2588_v41  ;;  %v13710_v52 = vmul.u32.u64.low %v13654_v40, %v2586_v32  ;;  %v13711_v54 = vmul.u32.u64.high %v13654_v40, %v2586_v32, %v13710_v52  ;;  %v2211_v5 = vxor.u32 2147483648, %v13645_v23 }
 0x2f6   : > { %vm13701_vm0 = vcmp.le.f32.partialorder %v17135_v50, 0.7853982  ;;  %v17138_v44 = vand.u32 2147483647, %v17101_v47  ;;  %v17139_v53 = vmov 0  ;;  %vm2337_vm3 = vcmp.lt.s32.totalorder %v12840_v10, 0 }
 0x2f7   : > { %v2410_v19 = vor.u32 %v2409_v55, %v2408_v17  ;;  %v2505_v2 = vsub.s32 0, %v13693_v29  ;;  %v2590_v9 = vsel %vm2576_vm14, %v2587_v60, %v2589_v22  ;;  %v2315_v15 = vxor.u32 2147483648, %v13670_v37 }
 0x2f8   : > { %vm13717_vm13 = vcmp.le.f32.partialorder %v17138_v44, 0.7853982  ;;  %v13727_v14 = vmul.u32.u64.low %v13654_v40, %v2590_v9  ;;  %v13728_v39 = vmul.u32.u64.high %v13654_v40, %v2590_v9, %v13727_v14  ;;  %v2650_v41 = vand.u32 2139095040, %v13116_v42 }
 0x2f9   : > { %v17140_v53 = vsel %vm13717_vm13, 4294967295, %v17139_v53  ;;  %v2415_v32 = vand.u32 2147483647, %v2414_v59  ;;  %v10072_v50 = vmin.u32 %v2505_v2, %v13693_v29  ;;  %v2582_v44 = vsel %vm2576_vm14, %v2579_v56, %v2581_v0 }
 0x2fa   : > { %17141 = vst [vmem:[#allocation91_spill] sm:$0xff] %v17140_v53  ;;  %v10454_v55 = vpack.c.bf16 %v7409_v25, %v7407_v18  ;;  %11121 = vcosq.f32 %v13635_v31  ;;  %v2214_v17 = vsel %vm2129_vm10, %v2213_v57, %v13407_v63  ;;  %v17142_v60 = vand.u32 2147483647, %v12840_v10  ;;  %v7412_v25 = vld [vmem:[#allocation2 + $0x28] sm:$0xff]  ;;  %v7414_v63 = vld [vmem:[#allocation2 + $0x38] sm:$0xff] }
 0x2fb   : > { %v2601_v59 = vadd.s32 1, %v13711_v54  ;;  %v2651_v2 = vshrl.u32 %v2650_v41, 23  ;;  %v2212_v33 = vsel %vm2129_vm10, %v2211_v5, %v13645_v23  ;;  %v2417_v56 = vcvt.s32.f32 %v2410_v19 }
 0x2fc   : > { %vm13742_vm8 = vcmp.le.f32.partialorder %v17142_v60, 0.7853982  ;;  %v2507_v0 = vclz %v10072_v50  ;;  %10455 = vmatpush1.bf16.msra.mxu1 %v10454_v55  ;;  %v2421_v57 = vsub.s32 4, %v13578_v1  ;;  %v2598_v9 = vmul.u32 %v13654_v40, %v2582_v44 }
 0x2fd   : > { %vm2600_vm14 = vc.u32 %v13728_v39, %v13710_v52  ;;  %v10079_v14 = vadd.s32 4294967169, %v2651_v2  ;;  %v2316_v41 = vsel %vm2233_vm2, %v2315_v15, %v13670_v37  ;;  %v2418_v23 = vmul.f32 %v2417_v56, %v2415_v32 }
 0x2fe   : > { %v10073_v5 = vadd.s32 4294967294, %v2507_v0  ;;  %v2602_v19 = vsel %vm2600_vm14, %v2601_v59, %v13711_v54  ;;  %v2754_v60 = vand.u32 2139095040, %v13228_v34  ;;  %v10456_v18 = vpack.c.bf16 %v7414_v63, %v7412_v25  ;;  %v13779_v63 = vpop.f32.mrb[25].mxu0 }
 0x2ff   : > { %v2603_v50 = vadd.s32 %v2602_v19, %v2598_v9  ;;  %v2657_v55 = vadd.s32 1, %v10079_v14  ;;  %11123 = vsinq.f32 %v13635_v31  ;;  %v2215_v40 = vsel %vm13701_vm0, %v17089_v28, %v2212_v33  ;;  %17146 = vst [vmem:[#allocation92_spill] sm:$0xff] %v13779_v63 }
 0x300   : > { %v2317_v44 = vsub.s32 4, %v13499_v35  ;;  %vm10074_vm10 = vcmp.lt.s32.totalorder %v10073_v5, 0  ;;  %v13768_v37 = vsel %vm13717_vm13, %v17101_v47, %v2316_v41  ;;  %v2422_v54 = vsel %vm2337_vm3, %v2421_v57, %v13578_v1  ;;  %10457 = vmatprep.subr.bf16.mxu1 %v10456_v18 }
 0x301   : > { %v2604_v15 = vadd.s32 536870912, %v2603_v50  ;;  %vm2658_vm14 = vcmp.gt.s32.totalorder %v2657_v55, 0  ;;  %v2419_v31 = vxor.u32 2147483648, %v2418_v23  ;;  %v13773_v32 = vsel %vm10074_vm10, 0, %v10073_v5 }
 0x302   : > { %v17145_v59 = vand.u32 2147483647, %v13116_v42  ;;  %v2659_v33 = vsel %vm2658_vm14, %v2657_v55, 0  ;;  %11125 = vcosq.f32 %v2215_v40  ;;  %v2755_v25 = vshrl.u32 %v2754_v60, 23 }
 0x303   : > { %v13777_v56 = vshrl.u32 %v2604_v15, 30  ;;  %v2661_v0 = vand.u32 31, %v2659_v33  ;;  %v13783_v1 = vsel %vm13701_vm0, 0, %v2214_v17  ;;  %11127 = vsinq.f32 %v2215_v40 }
 0x304   : > { %v2654_v2 = vand.u32 8388607, %v17145_v59  ;;  %17147 = vst [vmem:[#allocation93_spill] sm:$0xff] %v13783_v1  ;;  %v13788_v18 = vsel %vm2233_vm2, %v2317_v44, %v13499_v35  ;;  %v13792_v57 = vsel %vm13742_vm8, 0, %v2422_v54  ;;  %v13794_v9 = vpop.eup %11121  ;;  %11129 = vcosq.f32 %v13768_v37 }
 0x305   : > { %17148 = vst [vmem:[#allocation94_spill] sm:$0xff] %v13788_v18  ;;  %17149 = vst [vmem:[#allocation95_spill] sm:$0xff] %v13792_v57  ;;  %v2515_v14 = vsub.s32 4294967266, %v13773_v32  ;;  %v2606_v48 = vshll.u32 %v13777_v56, 30  ;;  %v2662_v17 = vsub.s32 32, %v2661_v0  ;;  %v13801_v41 = vsel %vm2337_vm3, %v2419_v31, %v2418_v23 }
 0x306   : > { %17150 = vst [vmem:[#allocation96_spill] sm:$0xff] %v13794_v9  ;;  %v2495_v35 = vadd.s32 %v13623_v49, %v13629_v62  ;;  %v2655_v19 = vor.u32 8388608, %v2654_v2  ;;  %v2511_v55 = vsub.s32 32, %v13773_v32  ;;  %v10083_v44 = vadd.s32 4294967169, %v2755_v25 }
 0x307   : > { %v13807_v60 = vsub.s32 %v2603_v50, %v2606_v48  ;;  %v2665_v40 = vshrl.u32 %v17034_v3, %v2662_v17  ;;  %v13810_v54 = vshrl.u32 %v2659_v33, 5  ;;  %v2664_v15 = vshll.u32 %v17046_v13, %v2661_v0 }
 0x308   : > { %v2667_v23 = vshll.u32 %v17034_v3, %v2661_v0  ;;  %v2668_v31 = vshrl.u32 %v17054_v38, %v2662_v17  ;;  %v2516_v59 = vadd.s32 127, %v2515_v14  ;;  %v2670_v62 = vshll.u32 %v17054_v38, %v2661_v0 }
 0x309   : > { %v2609_v49 = vsub.s32 0, %v13807_v60  ;;  %v2671_v2 = vshrl.u32 %v17035_v4, %v2662_v17  ;;  %v13818_v50 = vpop.eup %11123  ;;  %v2666_v48 = vor.u32 %v2665_v40, %v2664_v15  ;;  %v2673_v33 = vshll.u32 %v17035_v4, %v2661_v0 }
 0x30a   : > { %17151 = vst [vmem:[#allocation97_spill] sm:$0xff] %v13818_v50  ;;  %v2669_v5 = vor.u32 %v2668_v31, %v2667_v23  ;;  %v2674_v25 = vshrl.u32 %v17036_v43, %v2662_v17  ;;  %v2676_v18 = vshll.u32 %v17036_v43, %v2661_v0  ;;  %v2677_v14 = vshrl.u32 %v17038_v6, %v2662_v17 }
 0x30b   : > { %v10076_v47 = vmin.u32 %v2609_v49, %v13807_v60  ;;  %v2672_v53 = vor.u32 %v2671_v2, %v2670_v62  ;;  %v13825_v9 = vshll.u32 %v2655_v19, 8  ;;  %v16790_v7 = vand.u32 2147483647, %v13228_v34 }
 0x30c   : > { %v2675_v57 = vor.u32 %v2674_v25, %v2673_v33  ;;  %v2761_v61 = vadd.s32 1, %v10083_v44  ;;  %v13828_v50 = vpop.eup %11125  ;;  %v2678_v15 = vor.u32 %v2677_v14, %v2676_v18  ;;  %vm2679_vm2 = vcmp.lt.s32.totalorder %v13810_v54, 1 }
 0x30d   : > { %17152 = vst [vmem:[#allocation98_spill] sm:$0xff] %v13828_v50  ;;  %v2611_v40 = vclz %v10076_v47  ;;  %vm2682_vm3 = vcmp.lt.s32.totalorder %v13810_v54, 4  ;;  %v13833_v23 = vpop.eup %11127  ;;  %v2513_v0 = vshrl.u32 %v2495_v35, %v2511_v55  ;;  %vm2681_vm10 = vcmp.lt.s32.totalorder %v13810_v54, 3 }
 0x30e   : > { %17153 = vst [vmem:[#allocation99_spill] sm:$0xff] %v13833_v23  ;;  %v2687_v19 = vsel %vm2679_vm2, %v2666_v48, %v2669_v5  ;;  %v2688_v31 = vsel %vm2682_vm3, %v2675_v57, 920167782  ;;  %v13838_v44 = vpop.eup %11129  ;;  %v2517_v49 = vshll.u32 %v2516_v59, 23  ;;  %v2691_v18 = vsel %vm2679_vm2, %v2669_v5, %v2672_v53 }
 0x30f   : > { %17154 = vst [vmem:[#allocation100_spill] sm:$0xff] %v13838_v44  ;;  %v10077_v62 = vadd.s32 4294967294, %v2611_v40  ;;  %v2689_v47 = vsel %vm2681_vm10, %v2672_v53, %v2688_v31  ;;  %v2512_v2 = vshll.u32 %v13693_v29, %v13773_v32  ;;  %vm2680_vm14 = vcmp.lt.s32.totalorder %v13810_v54, 2  ;;  %v7413_v31 = vld [vmem:[#allocation2 + $0x30] sm:$0xff] }
 0x310   : > { %v2684_v35 = vsel %vm2682_vm3, %v2672_v53, 2102212464  ;;  %v2692_v55 = vsel %vm2682_vm3, %v2678_v15, 1326507024  ;;  %v2663_v33 = vshrl.u32 %v17046_v13, %v2662_v17  ;;  %v2690_v59 = vsel %vm2680_vm14, %v2687_v19, %v2689_v47  ;;  %v7411_v19 = vld [vmem:[#allocation2 + $0x20] sm:$0xff] }
 0x311   : > { %vm10078_vm15 = vcmp.lt.s32.totalorder %v10077_v62, 0  ;;  %v2693_v25 = vsel %vm2681_vm10, %v2675_v57, %v2692_v55  ;;  %v2758_v29 = vand.u32 8388607, %v16790_v7  ;;  %vm2762_vm0 = vcmp.gt.s32.totalorder %v2761_v61, 0 }
 0x312   : > { %v13852_v14 = vsel %vm10078_vm15, 0, %v10077_v62  ;;  %v2694_v40 = vsel %vm2680_vm14, %v2691_v18, %v2693_v25  ;;  %v2514_v53 = vor.u32 %v2513_v0, %v2512_v2  ;;  %v2518_v32 = vor.u32 4788187, %v2517_v49 }
 0x313   : > { %v2683_v17 = vsel %vm2679_vm2, %v2663_v33, %v2666_v48  ;;  %v2685_v15 = vsel %vm2681_vm10, %v2669_v5, %v2684_v35  ;;  %v13863_v57 = vmul.u32.u64.low %v13825_v9, %v2694_v40  ;;  %v13864_v62 = vmul.u32.u64.high %v13825_v9, %v2694_v40, %v13863_v57  ;;  %v13891_v40 = vpop.f32.mrb[26].mxu0 }
 0x314   : > { %v13867_v47 = vmul.u32.u64.low %v13825_v9, %v2690_v59  ;;  %v13868_v18 = vmul.u32.u64.high %v13825_v9, %v2690_v59, %v13867_v47  ;;  %11131 = vsinq.f32 %v13768_v37  ;;  %v2615_v0 = vsub.s32 32, %v13852_v14  ;;  %17158 = vst [vmem:[#allocation102_spill] sm:$0xff] %v13891_v40 }
 0x315   : > { %v2619_v48 = vsub.s32 4294967266, %v13852_v14  ;;  %v2763_v49 = vsel %vm2762_vm0, %v2761_v61, 0  ;;  %v17155_v5 = vsub.s32 4, %v13677_v11  ;;  %vm17156_vm15 = vcmp.lt.s32.totalorder %v12966_v45, 0 }
 0x316   : > { %v2686_v35 = vsel %vm2680_vm14, %v2683_v17, %v2685_v15  ;;  %v2765_v55 = vand.u32 31, %v2763_v49  ;;  %v10458_v33 = vpack.c.bf16 %v7413_v31, %v7411_v19  ;;  %v13887_v37 = vsel %vm13742_vm8, %v12840_v10, %v13801_v41 }
 0x317   : > { %v13879_v2 = vsel %vm17156_vm15, %v17155_v5, %v13677_v11  ;;  %v2521_v59 = vcvt.s32.f32 %v2514_v53  ;;  %v2599_v61 = vadd.s32 %v13710_v52, %v13728_v39  ;;  %v2759_v25 = vor.u32 8388608, %v2758_v29 }
 0x318   : > { %17157 = vst [vmem:[#allocation101_spill] sm:$0xff] %v13879_v2  ;;  %v2519_v11 = vand.u32 2147483647, %v2518_v32  ;;  %vm2704_vm0 = vc.u32 %v13864_v62, %v13867_v47  ;;  %v2705_v54 = vadd.s32 1, %v13868_v18  ;;  %v2766_v17 = vsub.s32 32, %v2765_v55  ;;  %10459 = vmatpush1.bf16.msra.mxu1 %v10458_v33 }
 0x319   : > { %v2616_v22 = vshll.u32 %v13807_v60, %v13852_v14  ;;  %v2617_v41 = vshrl.u32 %v2599_v61, %v2615_v0  ;;  %v2620_v15 = vadd.s32 127, %v2619_v48  ;;  %v2702_v53 = vmul.u32 %v13825_v9, %v2686_v35 }
 0x31a   : > { %v2706_v52 = vsel %vm2704_vm0, %v2705_v54, %v13868_v18  ;;  %v2768_v39 = vshll.u32 %v17046_v13, %v2765_v55  ;;  %v2769_v29 = vshrl.u32 %v17034_v3, %v2766_v17  ;;  %v2772_v32 = vshrl.u32 %v17054_v38, %v2766_v17 }
 0x31b   : > { %v2707_v19 = vadd.s32 %v2706_v52, %v2702_v53  ;;  %v2771_v31 = vshll.u32 %v17034_v3, %v2765_v55  ;;  %v2774_v57 = vshll.u32 %v17054_v38, %v2765_v55  ;;  %v2775_v5 = vshrl.u32 %v17035_v4, %v2766_v17 }
 0x31c   : > { %v2764_v60 = vshrl.u32 %v2763_v49, 5  ;;  %v2777_v14 = vshll.u32 %v17035_v4, %v2765_v55  ;;  %v2778_v9 = vshrl.u32 %v17036_v43, %v2766_v17  ;;  %v2858_v18 = vand.u32 2139095040, %v13312_v16 }
 0x31d   : > { %v2708_v0 = vadd.s32 536870912, %v2707_v19  ;;  %v2770_v48 = vor.u32 %v2769_v29, %v2768_v39  ;;  %v2773_v35 = vor.u32 %v2772_v32, %v2771_v31  ;;  %v2776_v33 = vor.u32 %v2775_v5, %v2774_v57 }
 0x31e   : > { %v2621_v61 = vshll.u32 %v2620_v15, 23  ;;  %v2779_v54 = vor.u32 %v2778_v9, %v2777_v14  ;;  %v2780_v53 = vshll.u32 %v17036_v43, %v2765_v55  ;;  %v2781_v52 = vshrl.u32 %v17038_v6, %v2766_v17  ;;  %v13911_v7 = vpop.eup %11131 }
 0x31f   : > { %17159 = vst [vmem:[#allocation103_spill] sm:$0xff] %v13911_v7  ;;  %v13913_v2 = vmul.f32 %v2521_v59, %v2519_v11  ;;  %vm2545_vm8 = vcmp.lt.s32.totalorder %v13052_v8, 0  ;;  %v2629_v49 = vsub.s32 4, %v13777_v56  ;;  %v13917_v44 = vshrl.u32 %v2708_v0, 30 }
 0x320   : > { %v2799_v10 = vshll.u32 %v2759_v25, 8  ;;  %v2618_v39 = vor.u32 %v2617_v41, %v2616_v22  ;;  %v2782_v29 = vor.u32 %v2781_v52, %v2780_v53  ;;  %vm2783_vm2 = vcmp.lt.s32.totalorder %v2764_v60, 1 }
 0x321   : > { %vm2786_vm3 = vcmp.lt.s32.totalorder %v2764_v60, 4  ;;  %v2710_v15 = vshll.u32 %v13917_v44, 30  ;;  %v2791_v32 = vsel %vm2783_vm2, %v2770_v48, %v2773_v35  ;;  %v2859_v31 = vshrl.u32 %v2858_v18, 23 }
 0x322   : > { %v2788_v55 = vsel %vm2786_vm3, %v2776_v33, 2102212464  ;;  %v2622_v57 = vor.u32 4788187, %v2621_v61  ;;  %v2767_v59 = vshrl.u32 %v17046_v13, %v2766_v17  ;;  %vm2785_vm10 = vcmp.lt.s32.totalorder %v2764_v60, 3 }
 0x323   : > { %v2792_v11 = vsel %vm2786_vm3, %v2779_v54, 920167782  ;;  %v17160_v5 = vand.u32 2147483647, %v13052_v8  ;;  %v13929_v22 = vsub.s32 %v2707_v19, %v2710_v15  ;;  %vm2784_vm15 = vcmp.lt.s32.totalorder %v2764_v60, 2 }
 0x324   : > { %v2793_v41 = vsel %vm2785_vm10, %v2776_v33, %v2792_v11  ;;  %v2795_v14 = vsel %vm2783_vm2, %v2773_v35, %v2776_v33  ;;  %v2787_v9 = vsel %vm2783_vm2, %v2767_v59, %v2770_v48  ;;  %v2789_v0 = vsel %vm2785_vm10, %v2773_v35, %v2788_v55  ;;  %v7418_v48 = vld [vmem:[#allocation2 + $0x58] sm:$0xff] }
 0x325   : > { %vm13925_vm14 = vcmp.le.f32.partialorder %v17160_v5, 0.7853982  ;;  %v2794_v18 = vsel %vm2784_vm15, %v2791_v32, %v2793_v41  ;;  %v2796_v17 = vsel %vm2786_vm3, %v2782_v29, 1326507024  ;;  %v2713_v61 = vsub.s32 0, %v13929_v22  ;;  %v7416_v5 = vld [vmem:[#allocation2 + $0x48] sm:$0xff] }
 0x326   : > { %v2797_v53 = vsel %vm2785_vm10, %v2779_v54, %v2796_v17  ;;  %v13934_v52 = vmul.u32.u64.low %v2799_v10, %v2794_v18  ;;  %v13935_v7 = vmul.u32.u64.high %v2799_v10, %v2794_v18, %v13934_v52  ;;  %v2623_v28 = vand.u32 2147483647, %v2622_v57 }
 0x327   : > { %v2798_v19 = vsel %vm2784_vm15, %v2795_v14, %v2797_v53  ;;  %v16796_v15 = vand.u32 2147483647, %v13312_v16  ;;  %v10087_v33 = vadd.s32 4294967169, %v2859_v31  ;;  %v10080_v35 = vmin.u32 %v2713_v61, %v13929_v22 }
 0x328   : > { %v2790_v55 = vsel %vm2784_vm15, %v2787_v9, %v2789_v0  ;;  %v13942_v29 = vmul.u32.u64.low %v2799_v10, %v2798_v19  ;;  %v13943_v32 = vmul.u32.u64.high %v2799_v10, %v2798_v19, %v13942_v29  ;;  %11133 = vcosq.f32 %v13887_v37  ;;  %v13955_v0 = vpop.f32.mrb[27].mxu0 }
 0x329   : > { %v2625_v54 = vcvt.s32.f32 %v2618_v39  ;;  %v2630_v57 = vsel %vm2545_vm8, %v2629_v49, %v13777_v56  ;;  %v2865_v59 = vadd.s32 1, %v10087_v33  ;;  %v2523_v11 = vxor.u32 2147483648, %v13913_v2 }
 0x32a   : > { %v2715_v41 = vclz %v10080_v35  ;;  %v2809_v31 = vadd.s32 1, %v13935_v7  ;;  %v10460_v14 = vpack.c.bf16 %v7418_v48, %v7416_v5  ;;  %v2806_v60 = vmul.u32 %v2799_v10, %v2790_v55 }
 0x32b   : > { %v13951_v18 = vmul.f32 %v2625_v54, %v2623_v28  ;;  %v2862_v9 = vand.u32 8388607, %v16796_v15  ;;  %vm2866_vm0 = vcmp.gt.s32.totalorder %v2865_v59, 0  ;;  %vm2808_vm2 = vc.u32 %v13943_v32, %v13934_v52 }
 0x32c   : > { %v10081_v39 = vadd.s32 4294967294, %v2715_v41  ;;  %v2867_v56 = vsel %vm2866_vm0, %v2865_v59, 0  ;;  %v2962_v49 = vand.u32 2139095040, %v13391_v24  ;;  %10461 = vmatprep.subr.bf16.mxu1 %v10460_v14  ;;  %11135 = vsinq.f32 %v13887_v37 }
 0x32d   : > { %v13963_v28 = vsel %vm13925_vm14, 0, %v2630_v57  ;;  %v2810_v10 = vsel %vm2808_vm2, %v2809_v31, %v13935_v7  ;;  %v2869_v17 = vand.u32 31, %v2867_v56  ;;  %vm17164_vm3 = vcmp.lt.s32.totalorder %v12966_v45, 0 }
 0x32e   : > { %17163 = vst [vmem:[#allocation104_spill] sm:$0xff] %v13963_v28  ;;  %v13969_v61 = vsel %vm17164_vm3, %v2523_v11, %v13913_v2  ;;  %vm10082_vm10 = vcmp.lt.s32.totalorder %v10081_v39, 0  ;;  %v2811_v53 = vadd.s32 %v2810_v10, %v2806_v60  ;;  %v2703_v37 = vadd.s32 %v13867_v47, %v13864_v62 }
 0x32f   : > { %v2718_v33 = vsel %vm10082_vm10, 0, %v10081_v39  ;;  %v2870_v48 = vsub.s32 32, %v2869_v17  ;;  %v2863_v7 = vor.u32 8388608, %v2862_v9  ;;  %v2963_v29 = vshrl.u32 %v2962_v49, 23 }
 0x330   : > { %v2723_v35 = vsub.s32 4294967266, %v2718_v33  ;;  %v2812_v55 = vadd.s32 536870912, %v2811_v53  ;;  %v2872_v54 = vshll.u32 %v17046_v13, %v2869_v17  ;;  %v2875_v57 = vshll.u32 %v17034_v3, %v2869_v17 }
 0x331   : > { %v2873_v2 = vshrl.u32 %v17034_v3, %v2870_v48  ;;  %v2876_v59 = vshrl.u32 %v17054_v38, %v2870_v48  ;;  %v2719_v11 = vsub.s32 32, %v2718_v33  ;;  %v2879_v62 = vshrl.u32 %v17035_v4, %v2870_v48 }
 0x332   : > { %v2724_v41 = vadd.s32 127, %v2723_v35  ;;  %v13979_v31 = vshrl.u32 %v2812_v55, 30  ;;  %v13982_v47 = vpop.eup %11133  ;;  %v2868_v14 = vshrl.u32 %v2867_v56, 5  ;;  %v2878_v60 = vshll.u32 %v17054_v38, %v2869_v17 }
 0x333   : > { %17165 = vst [vmem:[#allocation105_spill] sm:$0xff] %v13982_v47  ;;  %v2881_v9 = vshll.u32 %v17035_v4, %v2869_v17  ;;  %v2882_v39 = vshrl.u32 %v17036_v43, %v2870_v48  ;;  %v2874_v15 = vor.u32 %v2873_v2, %v2872_v54  ;;  %v2877_v19 = vor.u32 %v2876_v59, %v2875_v57 }
 0x334   : > { %v2725_v49 = vshll.u32 %v2724_v41, 23  ;;  %v2814_v10 = vshll.u32 %v13979_v31, 30  ;;  %v17166_v35 = vand.u32 2147483647, %v12966_v45  ;;  %v17167_v55 = vmov 0 }
 0x335   : > { %v2880_v5 = vor.u32 %v2879_v62, %v2878_v60  ;;  %v2883_v28 = vor.u32 %v2882_v39, %v2881_v9  ;;  %v2884_v56 = vshll.u32 %v17036_v43, %v2869_v17  ;;  %v2885_v47 = vshrl.u32 %v17038_v6, %v2870_v48 }
 0x336   : > { %vm13990_vm15 = vcmp.le.f32.partialorder %v17166_v35, 0.7853982  ;;  %v2721_v50 = vshrl.u32 %v2703_v37, %v2719_v11  ;;  %v13996_v23 = vsub.s32 %v2811_v53, %v2814_v10  ;;  %v13998_v41 = vshll.u32 %v2863_v7, 8  ;;  %v14002_v57 = vpop.eup %11135 }
 0x337   : > { %v17168_v55 = vsel %vm13990_vm15, 4294967295, %v17167_v55  ;;  %v17169_v54 = vand.u32 2147483647, %v13391_v24  ;;  %17170 = vst [vmem:[#allocation106_spill] sm:$0xff] %v14002_v57  ;;  %v2720_v59 = vshll.u32 %v13929_v22, %v2718_v33  ;;  %v2726_v35 = vor.u32 4788187, %v2725_v49 }
 0x338   : > { %v2886_v1 = vor.u32 %v2885_v47, %v2884_v56  ;;  %v10091_v62 = vadd.s32 4294967169, %v2963_v29  ;;  %v2817_v60 = vsub.s32 0, %v13996_v23  ;;  %v2871_v17 = vshrl.u32 %v17046_v13, %v2870_v48 }
 0x339   : > { %v2966_v2 = vand.u32 8388607, %v17169_v54  ;;  %vm2887_vm0 = vcmp.lt.s32.totalorder %v2868_v14, 1  ;;  %vm2890_vm2 = vcmp.lt.s32.totalorder %v2868_v14, 4  ;;  %vm2889_vm3 = vcmp.lt.s32.totalorder %v2868_v14, 3 }
 0x33a   : > { %v2892_v53 = vsel %vm2890_vm2, %v2880_v5, 2102212464  ;;  %v2895_v37 = vsel %vm2887_vm0, %v2874_v15, %v2877_v19  ;;  %v2896_v7 = vsel %vm2890_vm2, %v2883_v28, 920167782  ;;  %v2722_v11 = vor.u32 %v2721_v50, %v2720_v59  ;;  %v7415_v59 = vld [vmem:[#allocation2 + $0x40] sm:$0xff] }
 0x33b   : > { %v10084_v9 = vmin.u32 %v2817_v60, %v13996_v23  ;;  %vm2888_vm10 = vcmp.lt.s32.totalorder %v2868_v14, 2  ;;  %v2897_v39 = vsel %vm2889_vm3, %v2880_v5, %v2896_v7  ;;  %v2727_v10 = vand.u32 2147483647, %v2726_v35  ;;  %v7417_v60 = vld [vmem:[#allocation2 + $0x50] sm:$0xff] }
 0x33c   : > { %v2898_v22 = vsel %vm2888_vm10, %v2895_v37, %v2897_v39  ;;  %v2899_v33 = vsel %vm2887_vm0, %v2877_v19, %v2880_v5  ;;  %v2900_v29 = vsel %vm2890_vm2, %v2886_v1, 1326507024  ;;  %v2891_v49 = vsel %vm2887_vm0, %v2871_v17, %v2874_v15 }
 0x33d   : > { %v2819_v47 = vclz %v10084_v9  ;;  %v2893_v56 = vsel %vm2889_vm3, %v2877_v19, %v2892_v53  ;;  %v2901_v48 = vsel %vm2889_vm3, %v2883_v28, %v2900_v29  ;;  %v2969_v50 = vadd.s32 1, %v10091_v62 }
 0x33e   : > { %v2902_v54 = vsel %vm2888_vm10, %v2899_v33, %v2901_v48  ;;  %v14011_v57 = vmul.u32.u64.low %v13998_v41, %v2898_v22  ;;  %v14012_v20 = vmul.u32.u64.high %v13998_v41, %v2898_v22, %v14011_v57  ;;  %v2527_v5 = vsel %vm13990_vm15, %v12966_v45, %v13969_v61 }
 0x33f   : > { %v10085_v1 = vadd.s32 4294967294, %v2819_v47  ;;  %v14020_v15 = vmul.u32.u64.low %v13998_v41, %v2902_v54  ;;  %v14021_v19 = vmul.u32.u64.high %v13998_v41, %v2902_v54, %v14020_v15  ;;  %v17171_v28 = vxor.u32 2147483648, %v13951_v18  ;;  %v14052_v54 = vpop.f32.mrb[28].mxu0 }
 0x340   : > { %v2729_v17 = vcvt.s32.f32 %v2722_v11  ;;  %v2967_v62 = vor.u32 8388608, %v2966_v2  ;;  %vm2970_vm0 = vcmp.gt.s32.totalorder %v2969_v50, 0  ;;  %v2894_v53 = vsel %vm2888_vm10, %v2891_v49, %v2893_v56  ;;  %17172 = vst [vmem:[#allocation107_spill] sm:$0xff] %v14052_v54 }
 0x341   : > { %v2628_v35 = vsel %vm2545_vm8, %v17171_v28, %v13951_v18  ;;  %vm10086_vm2 = vcmp.lt.s32.totalorder %v10085_v1, 0  ;;  %v2971_v37 = vsel %vm2970_vm0, %v2969_v50, 0  ;;  %v10462_v7 = vpack.c.bf16 %v7417_v60, %v7415_v59 }
 0x342   : > { %11137 = vcosq.f32 %v2527_v5  ;;  %v14029_v61 = vmul.f32 %v2729_v17, %v2727_v10  ;;  %v14031_v9 = vsel %vm10086_vm2, 0, %v10085_v1  ;;  %v2913_v39 = vadd.s32 1, %v14012_v20 }
 0x343   : > { %11139 = vsinq.f32 %v2527_v5  ;;  %v14037_v18 = vsel %vm13925_vm14, %v13052_v8, %v2628_v35  ;;  %v2827_v14 = vsub.s32 4294967266, %v14031_v9  ;;  %10463 = vmatpush1.bf16.msra.mxu1 %v10462_v7  ;;  %v2910_v11 = vmul.u32 %v13998_v41, %v2894_v53 }
 0x344   : > { %vm2912_vm8 = vc.u32 %v14021_v19, %v14011_v57  ;;  %v2973_v10 = vand.u32 31, %v2971_v37  ;;  %v2807_v33 = vadd.s32 %v13934_v52, %v13943_v32  ;;  %v14049_v47 = vshll.u32 %v2967_v62, 8 }
 0x345   : > { %v2914_v29 = vsel %vm2912_vm8, %v2913_v39, %v14012_v20  ;;  %v2731_v49 = vxor.u32 2147483648, %v14029_v61  ;;  %v2828_v56 = vadd.s32 127, %v2827_v14  ;;  %v2823_v50 = vsub.s32 32, %v14031_v9 }
 0x346   : > { %v2915_v48 = vadd.s32 %v2914_v29, %v2910_v11  ;;  %v2974_v41 = vsub.s32 32, %v2973_v10  ;;  %v2972_v59 = vshrl.u32 %v2971_v37, 5  ;;  %v2976_v60 = vshll.u32 %v17046_v13, %v2973_v10 }
 0x347   : > { %v3066_v52 = vand.u32 2139095040, %v13477_v12  ;;  %v2979_v20 = vshll.u32 %v17034_v3, %v2973_v10  ;;  %v2982_v15 = vshll.u32 %v17054_v38, %v2973_v10  ;;  %v2985_v35 = vshll.u32 %v17035_v4, %v2973_v10 }
 0x348   : > { %v2916_v32 = vadd.s32 536870912, %v2915_v48  ;;  %v2977_v5 = vshrl.u32 %v17034_v3, %v2974_v41  ;;  %v2980_v1 = vshrl.u32 %v17054_v38, %v2974_v41  ;;  %v2983_v28 = vshrl.u32 %v17035_v4, %v2974_v41 }
 0x349   : > { %v2986_v17 = vshrl.u32 %v17036_v43, %v2974_v41  ;;  %v2829_v62 = vshll.u32 %v2828_v56, 23  ;;  %v2988_v11 = vshll.u32 %v17036_v43, %v2973_v10  ;;  %v2989_v29 = vshrl.u32 %v17038_v6, %v2974_v41 }
 0x34a   : > { %v14065_v53 = vshrl.u32 %v2916_v32, 30  ;;  %v2978_v37 = vor.u32 %v2977_v5, %v2976_v60  ;;  %v2981_v7 = vor.u32 %v2980_v1, %v2979_v20  ;;  %v2984_v39 = vor.u32 %v2983_v28, %v2982_v15 }
 0x34b   : > { %v2987_v14 = vor.u32 %v2986_v17, %v2985_v35  ;;  %v2824_v22 = vshll.u32 %v13996_v23, %v14031_v9  ;;  %v2825_v25 = vshrl.u32 %v2807_v33, %v2823_v50  ;;  %vm2991_vm10 = vcmp.lt.s32.totalorder %v2972_v59, 1 }
 0x34c   : > { %v14069_v2 = vpop.eup %11137  ;;  %v2918_v56 = vshll.u32 %v14065_v53, 30  ;;  %v17175_v60 = vand.u32 2147483647, %v13116_v42  ;;  %v17176_v5 = vmov 0  ;;  %v2990_v10 = vor.u32 %v2989_v29, %v2988_v11 }
 0x34d   : > { %17173 = vst [vmem:[#allocation108_spill] sm:$0xff] %v14069_v2  ;;  %v14075_v32 = vpop.eup %11139  ;;  %vm2993_vm2 = vcmp.lt.s32.totalorder %v2972_v59, 3  ;;  %vm2994_vm8 = vcmp.lt.s32.totalorder %v2972_v59, 4  ;;  %v2999_v20 = vsel %vm2991_vm10, %v2978_v37, %v2981_v7  ;;  %v2975_v23 = vshrl.u32 %v17046_v13, %v2974_v41 }
 0x34e   : > { %17174 = vst [vmem:[#allocation109_spill] sm:$0xff] %v14075_v32  ;;  %vm14079_vm0 = vcmp.le.f32.partialorder %v17175_v60, 0.7853982  ;;  %v14084_v1 = vsub.s32 %v2915_v48, %v2918_v56  ;;  %v2996_v9 = vsel %vm2994_vm8, %v2984_v39, 2102212464  ;;  %vm2992_vm3 = vcmp.lt.s32.totalorder %v2972_v59, 2 }
 0x34f   : > { %v17177_v5 = vsel %vm14079_vm0, 4294967295, %v17176_v5  ;;  %v3000_v33 = vsel %vm2994_vm8, %v2987_v14, 920167782  ;;  %v2830_v50 = vor.u32 4788187, %v2829_v62  ;;  %v3003_v28 = vsel %vm2991_vm10, %v2981_v7, %v2984_v39 }
 0x350   : > { %17178 = vst [vmem:[#allocation110_spill] sm:$0xff] %v17177_v5  ;;  %v3001_v15 = vsel %vm2993_vm2, %v2984_v39, %v3000_v33  ;;  %v2921_v35 = vsub.s32 0, %v14084_v1  ;;  %v2995_v17 = vsel %vm2991_vm10, %v2975_v23, %v2978_v37  ;;  %v3004_v29 = vsel %vm2994_vm8, %v2990_v10, 1326507024 }
 0x351   : > { %v3002_v11 = vsel %vm2992_vm3, %v2999_v20, %v3001_v15  ;;  %v17179_v48 = vand.u32 2147483647, %v13228_v34  ;;  %v2997_v41 = vsel %vm2993_vm2, %v2981_v7, %v2996_v9  ;;  %v3005_v62 = vsel %vm2993_vm2, %v2987_v14, %v3004_v29 }
 0x352   : > { %v14101_v60 = vmul.u32.u64.low %v14049_v47, %v3002_v11  ;;  %v14102_v39 = vmul.u32.u64.high %v14049_v47, %v3002_v11, %v14101_v60  ;;  %v2826_v33 = vor.u32 %v2825_v25, %v2824_v22  ;;  %v10088_v37 = vmin.u32 %v2921_v35, %v14084_v1  ;;  %v7420_v25 = vld [vmem:[#allocation2 + $0x68] sm:$0xff]  ;;  %v7422_v35 = vld [vmem:[#allocation2 + $0x78] sm:$0xff] }
 0x353   : > { %vm14094_vm14 = vcmp.le.f32.partialorder %v17179_v48, 0.7853982  ;;  %v3006_v10 = vsel %vm2992_vm3, %v3003_v28, %v3005_v62  ;;  %v3067_v20 = vshrl.u32 %v3066_v52, 23  ;;  %11141 = vcosq.f32 %v14037_v18 }
 0x354   : > { %vm17182_vm10 = vcmp.lt.s32.totalorder %v13116_v42, 0  ;;  %v14112_v7 = vmul.u32.u64.low %v14049_v47, %v3006_v10  ;;  %v14113_v14 = vmul.u32.u64.high %v14049_v47, %v3006_v10, %v14112_v7  ;;  %v2831_v9 = vand.u32 2147483647, %v2830_v50 }
 0x355   : > { %v2732_v23 = vsel %vm17182_vm10, %v2731_v49, %v14029_v61  ;;  %v2923_v15 = vclz %v10088_v37  ;;  %v2998_v11 = vsel %vm2992_vm3, %v2995_v17, %v2997_v41  ;;  %v10095_v22 = vadd.s32 4294967169, %v3067_v20 }
 0x356   : > { %v17183_v52 = vsub.s32 4, %v13979_v31  ;;  %vm17184_vm2 = vcmp.lt.s32.totalorder %v13228_v34, 0  ;;  %v3017_v29 = vadd.s32 1, %v14102_v39  ;;  %v17185_v61 = vand.u32 2147483647, %v13477_v12 }
 0x357   : > { %v3170_v48 = vand.u32 2139095040, %v13563_v21  ;;  %v2735_v59 = vsel %vm14079_vm0, %v13116_v42, %v2732_v23  ;;  %v2833_v50 = vcvt.s32.f32 %v2826_v33  ;;  %v10089_v17 = vadd.s32 4294967294, %v2923_v15  ;;  %v14136_v15 = vpop.f32.mrb[29].mxu0 }
 0x358   : > { %v2838_v28 = vsel %vm17184_vm2, %v17183_v52, %v13979_v31  ;;  %v3070_v49 = vand.u32 8388607, %v17185_v61  ;;  %v3073_v41 = vadd.s32 1, %v10095_v22  ;;  %v3014_v62 = vmul.u32 %v14049_v47, %v2998_v11 }
 0x359   : > { %vm3016_vm3 = vc.u32 %v14113_v14, %v14101_v60  ;;  %v3171_v31 = vshrl.u32 %v3170_v48, 23  ;;  %v10464_v37 = vpack.c.bf16 %v7422_v35, %v7420_v25  ;;  %v14131_v10 = vmul.f32 %v2833_v50, %v2831_v9 }
 0x35a   : > { %vm10090_vm8 = vcmp.lt.s32.totalorder %v10089_v17, 0  ;;  %v3018_v20 = vsel %vm3016_vm3, %v3017_v29, %v14102_v39  ;;  %vm3074_vm10 = vcmp.gt.s32.totalorder %v3073_v41, 0  ;;  %v3071_v23 = vor.u32 8388608, %v3070_v49 }
 0x35b   : > { %v14134_v7 = vsel %vm10090_vm8, 0, %v10089_v17  ;;  %v3019_v52 = vadd.s32 %v3018_v20, %v3014_v62  ;;  %v3075_v33 = vsel %vm3074_vm10, %v3073_v41, 0  ;;  %10465 = vmatprep.subr.bf16.mxu1 %v10464_v37  ;;  %11143 = vsinq.f32 %v14037_v18 }
 0x35c   : > { %v17186_v47 = vsub.s32 4, %v13917_v44  ;;  %vm17187_vm2 = vcmp.lt.s32.totalorder %v13116_v42, 0  ;;  %v14148_v39 = vsel %vm14094_vm14, 0, %v2838_v28  ;;  %v2931_v11 = vsub.s32 4294967266, %v14134_v7 }
 0x35d   : > { %17189 = vst [vmem:[#allocation112_spill] sm:$0xff] %v14148_v39  ;;  %11145 = vcosq.f32 %v2735_v59  ;;  %v3020_v22 = vadd.s32 536870912, %v3019_v52  ;;  %v3077_v25 = vand.u32 31, %v3075_v33  ;;  %v10099_v35 = vadd.s32 4294967169, %v3171_v31 }
 0x35e   : > { %v14144_v9 = vsel %vm17187_vm2, %v17186_v47, %v13917_v44  ;;  %11147 = vsinq.f32 %v2735_v59  ;;  %v2911_v29 = vadd.s32 %v14011_v57, %v14021_v19  ;;  %v14155_v44 = vpop.eup %11141  ;;  %v14159_v48 = vshll.u32 %v3071_v23, 8 }
 0x35f   : > { %17188 = vst [vmem:[#allocation111_spill] sm:$0xff] %v14144_v9  ;;  %v14157_v49 = vshrl.u32 %v3020_v22, 30  ;;  %v3078_v28 = vsub.s32 32, %v3077_v25  ;;  %v2927_v17 = vsub.s32 32, %v14134_v7  ;;  %v2928_v59 = vshll.u32 %v14084_v1, %v14134_v7 }
 0x360   : > { %v2932_v41 = vadd.s32 127, %v2931_v11  ;;  %v3076_v62 = vshrl.u32 %v3075_v33, 5  ;;  %v3080_v19 = vshll.u32 %v17046_v13, %v3077_v25  ;;  %v3177_v37 = vadd.s32 1, %v10099_v35 }
 0x361   : > { %v3022_v57 = vshll.u32 %v14157_v49, 30  ;;  %v3081_v31 = vshrl.u32 %v17034_v3, %v3078_v28  ;;  %v3083_v20 = vshll.u32 %v17034_v3, %v3077_v25  ;;  %v3084_v23 = vshrl.u32 %v17054_v38, %v3078_v28 }
 0x362   : > { %v3086_v47 = vshll.u32 %v17054_v38, %v3077_v25  ;;  %v3087_v22 = vshrl.u32 %v17035_v4, %v3078_v28  ;;  %v3089_v7 = vshll.u32 %v17035_v4, %v3077_v25  ;;  %v3090_v33 = vshrl.u32 %v17036_v43, %v3078_v28 }
 0x363   : > { %v14172_v61 = vsub.s32 %v3019_v52, %v3022_v57  ;;  %v3082_v1 = vor.u32 %v3081_v31, %v3080_v19  ;;  %v2929_v11 = vshrl.u32 %v2911_v29, %v2927_v17  ;;  %v2933_v18 = vshll.u32 %v2932_v41, 23 }
 0x364   : > { %v3085_v50 = vor.u32 %v3084_v23, %v3083_v20  ;;  %v3088_v42 = vor.u32 %v3087_v22, %v3086_v47  ;;  %v3091_v5 = vor.u32 %v3090_v33, %v3089_v7  ;;  %v3092_v9 = vshll.u32 %v17036_v43, %v3077_v25 }
 0x365   : > { %v3025_v35 = vsub.s32 0, %v14172_v61  ;;  %v3093_v39 = vshrl.u32 %v17038_v6, %v3078_v28  ;;  %v14179_v45 = vpop.eup %11143  ;;  %v3079_v52 = vshrl.u32 %v17046_v13, %v3078_v28  ;;  %vm3095_vm3 = vcmp.lt.s32.totalorder %v3076_v62, 1 }
 0x366   : > { %vm3096_vm8 = vcmp.lt.s32.totalorder %v3076_v62, 2  ;;  %vm3098_vm10 = vcmp.lt.s32.totalorder %v3076_v62, 4  ;;  %v3103_v19 = vsel %vm3095_vm3, %v3082_v1, %v3085_v50  ;;  %v2934_v25 = vor.u32 4788187, %v2933_v18 }
 0x367   : > { %v14182_v57 = vpop.eup %11145  ;;  %v10092_v29 = vmin.u32 %v3025_v35, %v14172_v61  ;;  %v3094_v17 = vor.u32 %v3093_v39, %v3092_v9  ;;  %v3100_v41 = vsel %vm3098_vm10, %v3088_v42, 2102212464  ;;  %vm3097_vm2 = vcmp.lt.s32.totalorder %v3076_v62, 3 }
 0x368   : > { %17190 = vst [vmem:[#allocation113_spill] sm:$0xff] %v14182_v57  ;;  %v14186_v31 = vpop.eup %11147  ;;  %v3104_v20 = vsel %vm3098_vm10, %v3091_v5, 920167782  ;;  %v3107_v23 = vsel %vm3095_vm3, %v3085_v50, %v3088_v42  ;;  %v2930_v47 = vor.u32 %v2929_v11, %v2928_v59  ;;  %v3099_v33 = vsel %vm3095_vm3, %v3079_v52, %v3082_v1 }
 0x369   : > { %17191 = vst [vmem:[#allocation114_spill] sm:$0xff] %v14186_v31  ;;  %v3027_v28 = vclz %v10092_v29  ;;  %v3105_v22 = vsel %vm3097_vm2, %v3088_v42, %v3104_v20  ;;  %v3108_v7 = vsel %vm3098_vm10, %v3094_v17, 1326507024  ;;  %v3101_v57 = vsel %vm3097_vm2, %v3085_v50, %v3100_v41 }
 0x36a   : > { %v3106_v35 = vsel %vm3096_vm8, %v3103_v19, %v3105_v22  ;;  %v3109_v9 = vsel %vm3097_vm2, %v3091_v5, %v3108_v7  ;;  %v17192_v31 = vand.u32 2147483647, %v13563_v21  ;;  %vm3178_vm0 = vcmp.gt.s32.totalorder %v3177_v37, 0  ;;  %v14224_v22 = vpop.f32.mrb[30].mxu0 }
 0x36b   : > { %v10093_v39 = vadd.s32 4294967294, %v3027_v28  ;;  %v3110_v2 = vsel %vm3096_vm8, %v3107_v23, %v3109_v9  ;;  %v2935_v32 = vand.u32 2147483647, %v2934_v25  ;;  %v3179_v42 = vsel %vm3178_vm0, %v3177_v37, 0  ;;  %17195 = vst [vmem:[#allocation115_spill] sm:$0xff] %v14224_v22 }
 0x36c   : > { %v14194_v18 = vand.u32 8388607, %v17192_v31  ;;  %v14197_v59 = vmul.u32.u64.low %v14159_v48, %v3110_v2  ;;  %v14198_v11 = vmul.u32.u64.high %v14159_v48, %v3110_v2, %v14197_v59  ;;  %v3102_v50 = vsel %vm3096_vm8, %v3099_v33, %v3101_v57 }
 0x36d   : > { %vm10094_vm10 = vcmp.lt.s32.totalorder %v10093_v39, 0  ;;  %v14202_v1 = vmul.u32.u64.low %v14159_v48, %v3106_v35  ;;  %v14203_v5 = vmul.u32.u64.high %v14159_v48, %v3106_v35, %v14202_v1  ;;  %v17193_v52 = vxor.u32 2147483648, %v14131_v10 }
 0x36e   : > { %vm17194_vm3 = vcmp.lt.s32.totalorder %v13228_v34, 0  ;;  %v2937_v17 = vcvt.s32.f32 %v2930_v47  ;;  %v3030_v41 = vsel %vm10094_vm10, 0, %v10093_v39  ;;  %v3181_v2 = vand.u32 31, %v3179_v42 }
 0x36f   : > { %v14211_v29 = vsel %vm17194_vm3, %v17193_v52, %v14131_v10  ;;  %v3015_v37 = vadd.s32 %v14101_v60, %v14113_v14  ;;  %v3031_v62 = vsub.s32 32, %v3030_v41  ;;  %v3035_v57 = vsub.s32 4294967266, %v3030_v41 }
 0x370   : > { %v3175_v19 = vor.u32 8388608, %v14194_v18  ;;  %v14216_v31 = vmul.f32 %v2937_v17, %v2935_v32  ;;  %v3118_v25 = vmul.u32 %v14159_v48, %v3102_v50  ;;  %vm3120_vm0 = vc.u32 %v14198_v11, %v14202_v1 }
 0x371   : > { %v3182_v20 = vsub.s32 32, %v3181_v2  ;;  %v3033_v10 = vshrl.u32 %v3015_v37, %v3031_v62  ;;  %v3036_v23 = vadd.s32 127, %v3035_v57  ;;  %v3121_v47 = vadd.s32 1, %v14203_v5 }
 0x372   : > { %v14222_v28 = vshrl.u32 %v3179_v42, 5  ;;  %v3032_v60 = vshll.u32 %v14172_v61, %v3030_v41  ;;  %v3184_v14 = vshll.u32 %v17046_v13, %v3181_v2  ;;  %v3187_v35 = vshll.u32 %v17034_v3, %v3181_v2 }
 0x373   : > { %v3185_v32 = vshrl.u32 %v17034_v3, %v3182_v20  ;;  %v3188_v48 = vshrl.u32 %v17054_v38, %v3182_v20  ;;  %v3037_v7 = vshll.u32 %v3036_v23, 23  ;;  %v3122_v33 = vsel %vm3120_vm0, %v3121_v47, %v14203_v5 }
 0x374   : > { %v3191_v9 = vshrl.u32 %v17035_v4, %v3182_v20  ;;  %v3034_v39 = vor.u32 %v3033_v10, %v3032_v60  ;;  %v3123_v18 = vadd.s32 %v3122_v33, %v3118_v25  ;;  %v3190_v42 = vshll.u32 %v17054_v38, %v3181_v2 }
 0x375   : > { %v3186_v59 = vor.u32 %v3185_v32, %v3184_v14  ;;  %v3038_v61 = vor.u32 4788187, %v3037_v7  ;;  %v3189_v50 = vor.u32 %v3188_v48, %v3187_v35  ;;  %v3193_v52 = vshll.u32 %v17035_v4, %v3181_v2 }
 0x376   : > { %v3194_v17 = vshrl.u32 %v17036_v43, %v3182_v20  ;;  %v3124_v41 = vadd.s32 536870912, %v3123_v18  ;;  %v3192_v37 = vor.u32 %v3191_v9, %v3190_v42  ;;  %v3196_v5 = vshll.u32 %v17036_v43, %v3181_v2 }
 0x377   : > { %v3197_v62 = vshrl.u32 %v17038_v6, %v3182_v20  ;;  %v2939_v57 = vxor.u32 2147483648, %v14216_v31  ;;  %v3039_v25 = vand.u32 2147483647, %v3038_v61  ;;  %v3183_v10 = vshrl.u32 %v17046_v13, %v3182_v20 }
 0x378   : > { %v3195_v23 = vor.u32 %v3194_v17, %v3193_v52  ;;  %v17196_v47 = vand.u32 2147483647, %v13312_v16  ;;  %v17197_v60 = vmov 0  ;;  %v14247_v14 = vshrl.u32 %v3124_v41, 30 }
 0x379   : > { %v3198_v32 = vor.u32 %v3197_v62, %v3196_v5  ;;  %vm3199_vm10 = vcmp.lt.s32.totalorder %v14222_v28, 1  ;;  %vm3202_vm3 = vcmp.lt.s32.totalorder %v14222_v28, 4  ;;  %v3041_v2 = vcvt.s32.f32 %v3034_v39 }
 0x37a   : > { %vm14243_vm2 = vcmp.le.f32.partialorder %v17196_v47, 0.7853982  ;;  %vm3201_vm0 = vcmp.lt.s32.totalorder %v14222_v28, 3  ;;  %v3207_v20 = vsel %vm3199_vm10, %v3186_v59, %v3189_v50  ;;  %v3208_v48 = vsel %vm3202_vm3, %v3195_v23, 920167782 }
 0x37b   : > { %v17198_v60 = vsel %vm14243_vm2, 4294967295, %v17197_v60  ;;  %v3126_v7 = vshll.u32 %v14247_v14, 30  ;;  %vm3200_vm15 = vcmp.lt.s32.totalorder %v14222_v28, 2  ;;  %v3204_v33 = vsel %vm3202_vm3, %v3192_v37, 2102212464 }
 0x37c   : > { %17199 = vst [vmem:[#allocation116_spill] sm:$0xff] %v17198_v60  ;;  %v3209_v35 = vsel %vm3201_vm0, %v3192_v37, %v3208_v48  ;;  %v3042_v9 = vmul.f32 %v3041_v2, %v3039_v25  ;;  %v3211_v42 = vsel %vm3199_vm10, %v3189_v50, %v3192_v37  ;;  %v3215_v61 = vshll.u32 %v3175_v19, 8  ;;  %v7421_v37 = vld [vmem:[#allocation2 + $0x70] sm:$0xff] }
 0x37d   : > { %v3210_v39 = vsel %vm3200_vm15, %v3207_v20, %v3209_v35  ;;  %v2839_v52 = vsel %vm14094_vm14, %v13228_v34, %v14211_v29  ;;  %v14271_v17 = vsub.s32 %v3123_v18, %v3126_v7  ;;  %v3203_v41 = vsel %vm3199_vm10, %v3183_v10, %v3186_v59  ;;  %v7419_v59 = vld [vmem:[#allocation2 + $0x60] sm:$0xff] }
 0x37e   : > { %v3212_v5 = vsel %vm3202_vm3, %v3198_v32, 1326507024  ;;  %v17200_v62 = vand.u32 2147483647, %v13391_v24  ;;  %v3205_v19 = vsel %vm3201_vm0, %v3189_v50, %v3204_v33  ;;  %vm17203_vm14 = vcmp.lt.s32.totalorder %v13312_v16, 0  ;;  %v7424_v33 = vld [vmem:[#allocation2 + $0x88] sm:$0xff] }
 0x37f   : > { %v3213_v56 = vsel %vm3201_vm0, %v3195_v23, %v3212_v5  ;;  %v14287_v29 = vmul.u32.u64.low %v3215_v61, %v3210_v39  ;;  %v14288_v18 = vmul.u32.u64.high %v3215_v61, %v3210_v39, %v14287_v29  ;;  %v2940_v10 = vsel %vm17203_vm14, %v2939_v57, %v14216_v31  ;;  %vm17205_vm10 = vmmov %vm17203_vm14  ;;  %v7426_v31 = vld [vmem:[#allocation2 + $0x98] sm:$0xff] }
 0x380   : > { %vm14279_vm8 = vcmp.le.f32.partialorder %v17200_v62, 0.7853982  ;;  %v17204_v47 = vsub.s32 4, %v14065_v53  ;;  %v3129_v50 = vsub.s32 0, %v14271_v17  ;;  %v3214_v23 = vsel %vm3200_vm15, %v3211_v42, %v3213_v56 }
 0x381   : > { %v3043_v2 = vxor.u32 2147483648, %v3042_v9  ;;  %v14304_v20 = vmul.u32.u64.low %v3215_v61, %v3214_v23  ;;  %v14305_v48 = vmul.u32.u64.high %v3215_v61, %v3214_v23, %v14304_v20  ;;  %v3274_v7 = vand.u32 2139095040, %v13650_v26 }
 0x382   : > { %v14299_v32 = vsel %vm17205_vm10, %v17204_v47, %v14065_v53  ;;  %11149 = vcosq.f32 %v2839_v52  ;;  %v10096_v57 = vmin.u32 %v3129_v50, %v14271_v17  ;;  %v3206_v53 = vsel %vm3200_vm15, %v3203_v41, %v3205_v19 }
 0x383   : > { %17206 = vst [vmem:[#allocation117_spill] sm:$0xff] %v14299_v32  ;;  %v10466_v35 = vpack.c.bf16 %v7421_v37, %v7419_v59  ;;  %v2943_v39 = vsel %vm14243_vm2, %v13312_v16, %v2940_v10  ;;  %v3045_v42 = vsub.s32 4, %v14157_v49  ;;  %vm16818_vm3 = vcmp.lt.s32.totalorder %v13477_v12, 0 }
 0x384   : > { %v3225_v5 = vadd.s32 1, %v14288_v18  ;;  %v3275_v62 = vshrl.u32 %v3274_v7, 23  ;;  %11151 = vsinq.f32 %v2839_v52  ;;  %v3131_v56 = vclz %v10096_v57 }
 0x385   : > { %v16816_v47 = vand.u32 2147483647, %v13650_v26  ;;  %10467 = vmatpush1.bf16.msra.mxu1 %v10466_v35  ;;  %v10468_v50 = vpack.c.bf16 %v7426_v31, %v7424_v33  ;;  %vm17207_vm15 = vcmp.lt.s32.totalorder %v13391_v24, 0  ;;  %v3222_v41 = vmul.u32 %v3215_v61, %v3206_v53 }
 0x386   : > { %v3044_v28 = vsel %vm17207_vm15, %v3043_v2, %v3042_v9  ;;  %vm3224_vm0 = vc.u32 %v14305_v48, %v14287_v29  ;;  %v10103_v19 = vadd.s32 4294967169, %v3275_v62  ;;  %11153 = vcosq.f32 %v2943_v39  ;;  %vm17208_vm14 = vmmov %vm17207_vm15  ;;  %v14333_v2 = vpop.f32.mrb[31].mxu0 }
 0x387   : > { %v10097_v59 = vadd.s32 4294967294, %v3131_v56  ;;  %v3226_v37 = vsel %vm3224_vm0, %v3225_v5, %v14288_v18  ;;  %v3378_v10 = vand.u32 2139095040, %v13779_v63  ;;  %10469 = vmatprep.subr.bf16.mxu1 %v10468_v50  ;;  %11155 = vsinq.f32 %v2943_v39  ;;  %17209 = vst [vmem:[#allocation118_spill] sm:$0xff] %v14333_v2 }
 0x388   : > { %v3046_v52 = vsel %vm17208_vm14, %v3045_v42, %v14157_v49  ;;  %v3227_v23 = vadd.s32 %v3226_v37, %v3222_v41  ;;  %v3281_v20 = vadd.s32 1, %v10103_v19  ;;  %v3047_v9 = vsel %vm14279_vm8, %v13391_v24, %v3044_v28 }
 0x389   : > { %v3119_v61 = vadd.s32 %v14202_v1, %v14198_v11  ;;  %vm10098_vm10 = vcmp.lt.s32.totalorder %v10097_v59, 0  ;;  %v3149_v18 = vsub.s32 4, %v14247_v14  ;;  %v3278_v31 = vand.u32 8388607, %v16816_v47 }
 0x38a   : > { %v3134_v7 = vsel %vm10098_vm10, 0, %v10097_v59  ;;  %v3228_v33 = vadd.s32 536870912, %v3227_v23  ;;  %vm3282_vm15 = vcmp.gt.s32.totalorder %v3281_v20, 0  ;;  %v3379_v35 = vshrl.u32 %v3378_v10, 23 }
 0x38b   : > { %v3135_v49 = vsub.s32 32, %v3134_v7  ;;  %v3139_v57 = vsub.s32 4294967266, %v3134_v7  ;;  %v3283_v53 = vsel %vm3282_vm15, %v3281_v20, 0  ;;  %v14339_v39 = vsel %vm14279_vm8, 0, %v3046_v52 }
 0x38c   : > { %17210 = vst [vmem:[#allocation119_spill] sm:$0xff] %v14339_v39  ;;  %11157 = vcosq.f32 %v3047_v9  ;;  %v14341_v11 = vshrl.u32 %v3228_v33, 30  ;;  %v3285_v1 = vand.u32 31, %v3283_v53  ;;  %v14343_v42 = vpop.eup %11149  ;;  %v14348_v56 = vsel %vm16818_vm3, %v3149_v18, %v14247_v14 }
 0x38d   : > { %17211 = vst [vmem:[#allocation120_spill] sm:$0xff] %v14343_v42  ;;  %11159 = vsinq.f32 %v3047_v9  ;;  %v3137_v5 = vshrl.u32 %v3119_v61, %v3135_v49  ;;  %v3140_v62 = vadd.s32 127, %v3139_v57  ;;  %17212 = vst [vmem:[#allocation121_spill] sm:$0xff] %v14348_v56  ;;  %v3279_v28 = vor.u32 8388608, %v3278_v31 }
 0x38e   : > { %v3230_v50 = vshll.u32 %v14341_v11, 30  ;;  %v3286_v25 = vsub.s32 32, %v3285_v1  ;;  %v14352_v19 = vpop.eup %11151  ;;  %v3136_v59 = vshll.u32 %v14271_v17, %v3134_v7  ;;  %v3223_v10 = vadd.s32 %v14287_v29, %v14305_v48 }
 0x38f   : > { %v3141_v37 = vshll.u32 %v3140_v62, 23  ;;  %v10107_v52 = vadd.s32 4294967169, %v3379_v35  ;;  %v14359_v9 = vshrl.u32 %v3283_v53, 5  ;;  %v3288_v14 = vshll.u32 %v17046_v13, %v3285_v1 }
 0x390   : > { %v14357_v20 = vsub.s32 %v3227_v23, %v3230_v50  ;;  %v3289_v61 = vshrl.u32 %v17034_v3, %v3286_v25  ;;  %v14363_v18 = vpop.eup %11153  ;;  %v3138_v33 = vor.u32 %v3137_v5, %v3136_v59  ;;  %v3291_v49 = vshll.u32 %v17034_v3, %v3285_v1 }
 0x391   : > { %17213 = vst [vmem:[#allocation122_spill] sm:$0xff] %v14363_v18  ;;  %v3142_v31 = vor.u32 4788187, %v3141_v37  ;;  %v3292_v17 = vshrl.u32 %v17054_v38, %v3286_v25  ;;  %v14367_v7 = vpop.eup %11155  ;;  %v3294_v23 = vshll.u32 %v17054_v38, %v3285_v1  ;;  %v3295_v57 = vshrl.u32 %v17035_v4, %v3286_v25 }
 0x392   : > { %17214 = vst [vmem:[#allocation123_spill] sm:$0xff] %v14367_v7  ;;  %v3233_v29 = vsub.s32 0, %v14357_v20  ;;  %v3290_v48 = vor.u32 %v3289_v61, %v3288_v14  ;;  %v3297_v62 = vshll.u32 %v17035_v4, %v3285_v1  ;;  %v3298_v5 = vshrl.u32 %v17036_v43, %v3286_v25 }
 0x393   : > { %v3143_v53 = vand.u32 2147483647, %v3142_v31  ;;  %v3293_v35 = vor.u32 %v3292_v17, %v3291_v49  ;;  %v3296_v59 = vor.u32 %v3295_v57, %v3294_v23  ;;  %v3300_v37 = vshll.u32 %v17036_v43, %v3285_v1 }
 0x394   : > { %v10100_v50 = vmin.u32 %v3233_v29, %v14357_v20  ;;  %v3301_v47 = vshrl.u32 %v17038_v6, %v3286_v25  ;;  %v3145_v41 = vcvt.s32.f32 %v3138_v33  ;;  %v3299_v56 = vor.u32 %v3298_v5, %v3297_v62 }
 0x395   : > { %v14377_v14 = vshll.u32 %v3279_v28, 8  ;;  %v17215_v61 = vand.u32 2147483647, %v13779_v63  ;;  %vm3303_vm8 = vcmp.lt.s32.totalorder %v14359_v9, 1  ;;  %vm3306_vm0 = vcmp.lt.s32.totalorder %v14359_v9, 4 }
 0x396   : > { %v14383_v31 = vpop.eup %11157  ;;  %v3235_v49 = vclz %v10100_v50  ;;  %v3302_v17 = vor.u32 %v3301_v47, %v3300_v37  ;;  %vm3305_vm14 = vcmp.lt.s32.totalorder %v14359_v9, 3  ;;  %v3311_v1 = vsel %vm3303_vm8, %v3290_v48, %v3293_v35 }
 0x397   : > { %v14381_v18 = vand.u32 8388607, %v17215_v61  ;;  %17216 = vst [vmem:[#allocation124_spill] sm:$0xff] %v14383_v31  ;;  %v14387_v29 = vpop.eup %11159  ;;  %v3312_v28 = vsel %vm3306_vm0, %v3299_v56, 920167782  ;;  %v3385_v33 = vadd.s32 1, %v10107_v52  ;;  %v3146_v23 = vmul.f32 %v3145_v41, %v3143_v53 }
 0x398   : > { %17217 = vst [vmem:[#allocation125_spill] sm:$0xff] %v14387_v29  ;;  %v10101_v57 = vadd.s32 4294967294, %v3235_v49  ;;  %v3313_v62 = vsel %vm3305_vm14, %v3296_v59, %v3312_v28  ;;  %v3315_v47 = vsel %vm3303_vm8, %v3293_v35, %v3296_v59  ;;  %v3287_v5 = vshrl.u32 %v17046_v13, %v3286_v25 }
 0x399   : > { %vm3304_vm10 = vcmp.lt.s32.totalorder %v14359_v9, 2  ;;  %v3308_v50 = vsel %vm3306_vm0, %v3296_v59, 2102212464  ;;  %v3316_v37 = vsel %vm3306_vm0, %v3302_v17, 1326507024  ;;  %vm3386_vm3 = vcmp.gt.s32.totalorder %v3385_v33, 0 }
 0x39a   : > { %vm10102_vm15 = vcmp.lt.s32.totalorder %v10101_v57, 0  ;;  %v3314_v61 = vsel %vm3304_vm10, %v3311_v1, %v3313_v62  ;;  %v3317_v41 = vsel %vm3305_vm14, %v3299_v56, %v3316_v37  ;;  %v3307_v49 = vsel %vm3303_vm8, %v3287_v5, %v3290_v48  ;;  %v7423_v1 = vld [vmem:[#allocation2 + $0x80] sm:$0xff]  ;;  %v7425_v62 = vld [vmem:[#allocation2 + $0x90] sm:$0xff] }
 0x39b   : > { %v3238_v53 = vsel %vm10102_vm15, 0, %v10101_v57  ;;  %v3318_v25 = vsel %vm3304_vm10, %v3315_v47, %v3317_v41  ;;  %v3147_v28 = vxor.u32 2147483648, %v3146_v23  ;;  %v3309_v7 = vsel %vm3305_vm14, %v3293_v35, %v3308_v50 }
 0x39c   : > { %v3239_v59 = vsub.s32 32, %v3238_v53  ;;  %v3243_v17 = vsub.s32 4294967266, %v3238_v53  ;;  %v14410_v56 = vmul.u32.u64.low %v14377_v14, %v3318_v25  ;;  %v14411_v37 = vmul.u32.u64.high %v14377_v14, %v3318_v25, %v14410_v56 }
 0x39d   : > { %v14414_v57 = vmul.u32.u64.low %v14377_v14, %v3314_v61  ;;  %v14415_v52 = vmul.u32.u64.high %v14377_v14, %v3314_v61, %v14414_v57  ;;  %v3387_v5 = vsel %vm3386_vm3, %v3385_v33, 0  ;;  %v3482_v41 = vand.u32 2139095040, %v13891_v40 }
 0x39e   : > { %v3241_v48 = vshrl.u32 %v3223_v10, %v3239_v59  ;;  %v3244_v47 = vadd.s32 127, %v3243_v17  ;;  %v17218_v16 = vand.u32 2147483647, %v13477_v12  ;;  %v17219_v35 = vmov 0 }
 0x39f   : > { %vm16827_vm0 = vcmp.lt.s32.totalorder %v13563_v21, 0  ;;  %v3240_v50 = vshll.u32 %v14357_v20, %v3238_v53  ;;  %v3310_v61 = vsel %vm3304_vm10, %v3307_v49, %v3309_v7  ;;  %v3389_v25 = vand.u32 31, %v3387_v5 }
 0x3a0   : > { %vm14421_vm8 = vcmp.le.f32.partialorder %v17218_v16, 0.7853982  ;;  %v10470_v56 = vpack.c.bf16 %v7425_v62, %v7423_v1  ;;  %vm17222_vm14 = vcmp.lt.s32.totalorder %v13477_v12, 0  ;;  %v3245_v33 = vshll.u32 %v3244_v47, 23 }
 0x3a1   : > { %v17220_v35 = vsel %vm14421_vm8, 4294967295, %v17219_v35  ;;  %v3148_v10 = vsel %vm17222_vm14, %v3147_v28, %v3146_v23  ;;  %v3253_v59 = vsub.s32 4, %v14341_v11  ;;  %v3383_v16 = vor.u32 8388608, %v14381_v18 }
 0x3a2   : > { %17221 = vst [vmem:[#allocation126_spill] sm:$0xff] %v17220_v35  ;;  %v3242_v17 = vor.u32 %v3241_v48, %v3240_v50  ;;  %vm3328_vm3 = vc.u32 %v14411_v37, %v14414_v57  ;;  %v3329_v31 = vadd.s32 1, %v14415_v52  ;;  %v3390_v20 = vsub.s32 32, %v3389_v25  ;;  %10471 = vmatpush1.bf16.msra.mxu1 %v10470_v56 }
 0x3a3   : > { %v3246_v9 = vor.u32 4788187, %v3245_v33  ;;  %v3326_v7 = vmul.u32 %v14377_v14, %v3310_v61  ;;  %v3392_v53 = vshll.u32 %v17046_v13, %v3389_v25  ;;  %v3483_v49 = vshrl.u32 %v3482_v41, 23 }
 0x3a4   : > { %v3330_v23 = vsel %vm3328_vm3, %v3329_v31, %v14415_v52  ;;  %v3393_v28 = vshrl.u32 %v17034_v3, %v3390_v20  ;;  %v3395_v18 = vshll.u32 %v17034_v3, %v3389_v25  ;;  %v3396_v1 = vshrl.u32 %v17054_v38, %v3390_v20 }
 0x3a5   : > { %v3247_v62 = vand.u32 2147483647, %v3246_v9  ;;  %v3331_v48 = vadd.s32 %v3330_v23, %v3326_v7  ;;  %v3398_v47 = vshll.u32 %v17054_v38, %v3389_v25  ;;  %v3399_v50 = vshrl.u32 %v17035_v4, %v3390_v20 }
 0x3a6   : > { %v3249_v56 = vcvt.s32.f32 %v3242_v17  ;;  %v3388_v33 = vshrl.u32 %v3387_v5, 5  ;;  %v3401_v14 = vshll.u32 %v17035_v4, %v3389_v25  ;;  %v3402_v41 = vshrl.u32 %v17036_v43, %v3390_v20 }
 0x3a7   : > { %v17223_v31 = vand.u32 2147483647, %v13563_v21  ;;  %v3332_v61 = vadd.s32 536870912, %v3331_v48  ;;  %v3394_v60 = vor.u32 %v3393_v28, %v3392_v53  ;;  %v3397_v9 = vor.u32 %v3396_v1, %v3395_v18 }
 0x3a8   : > { %v3400_v7 = vor.u32 %v3399_v50, %v3398_v47  ;;  %v3250_v23 = vmul.f32 %v3249_v56, %v3247_v62  ;;  %v3403_v32 = vor.u32 %v3402_v41, %v3401_v14  ;;  %v3404_v29 = vshll.u32 %v17036_v43, %v3389_v25 }
 0x3a9   : > { %vm14448_vm10 = vcmp.le.f32.partialorder %v17223_v31, 0.7853982  ;;  %v3405_v5 = vshrl.u32 %v17038_v6, %v3390_v20  ;;  %v14457_v17 = vsel %vm14421_vm8, %v13477_v12, %v3148_v10  ;;  %v3254_v31 = vsel %vm16827_vm0, %v3253_v59, %v14341_v11 }
 0x3aa   : > { %v14462_v24 = vshrl.u32 %v3332_v61, 30  ;;  %v3423_v53 = vshll.u32 %v3383_v16, 8  ;;  %vm3407_vm15 = vcmp.lt.s32.totalorder %v3388_v33, 1  ;;  %vm3410_vm14 = vcmp.lt.s32.totalorder %v3388_v33, 4 }
 0x3ab   : > { %v3406_v28 = vor.u32 %v3405_v5, %v3404_v29  ;;  %v17226_v18 = vand.u32 2147483647, %v13891_v40  ;;  %v3412_v62 = vsel %vm3410_vm14, %v3400_v7, 2102212464  ;;  %v3415_v47 = vsel %vm3407_vm15, %v3394_v60, %v3397_v9 }
 0x3ac   : > { %v3334_v1 = vshll.u32 %v14462_v24, 30  ;;  %v10111_v10 = vadd.s32 4294967169, %v3483_v49  ;;  %v3251_v50 = vxor.u32 2147483648, %v3250_v23  ;;  %v3391_v56 = vshrl.u32 %v17046_v13, %v3390_v20 }
 0x3ad   : > { %v3486_v25 = vand.u32 8388607, %v17226_v18  ;;  %vm3409_vm3 = vcmp.lt.s32.totalorder %v3388_v33, 3  ;;  %v3416_v11 = vsel %vm3410_vm14, %v3403_v32, 920167782  ;;  %vm3408_vm0 = vcmp.lt.s32.totalorder %v3388_v33, 2 }
 0x3ae   : > { %v14470_v59 = vsub.s32 %v3331_v48, %v3334_v1  ;;  %v3417_v29 = vsel %vm3409_vm3, %v3400_v7, %v3416_v11  ;;  %v3419_v16 = vsel %vm3407_vm15, %v3397_v9, %v3400_v7  ;;  %v3411_v14 = vsel %vm3407_vm15, %v3391_v56, %v3394_v60  ;;  %v7428_v7 = vld [vmem:[#allocation2 + $0xa8] sm:$0xff]  ;;  %v7430_v1 = vld [vmem:[#allocation2 + $0xb8] sm:$0xff] }
 0x3af   : > { %v3413_v41 = vsel %vm3409_vm3, %v3397_v9, %v3412_v62  ;;  %v3418_v61 = vsel %vm3408_vm0, %v3415_v47, %v3417_v29  ;;  %v3420_v5 = vsel %vm3410_vm14, %v3406_v28, 1326507024  ;;  %vm17227_vm8 = vcmp.lt.s32.totalorder %v13563_v21, 0 }
 0x3b0   : > { %v3337_v18 = vsub.s32 0, %v14470_v59  ;;  %v3421_v49 = vsel %vm3409_vm3, %v3403_v32, %v3420_v5  ;;  %v14475_v12 = vmul.u32.u64.low %v3423_v53, %v3418_v61  ;;  %v14476_v35 = vmul.u32.u64.high %v3423_v53, %v3418_v61, %v14475_v12 }
 0x3b1   : > { %v3252_v20 = vsel %vm17227_vm8, %v3251_v50, %v3250_v23  ;;  %v14483_v48 = vsel %vm14448_vm10, 0, %v3254_v31  ;;  %v3422_v60 = vsel %vm3408_vm0, %v3419_v16, %v3421_v49  ;;  %v3489_v9 = vadd.s32 1, %v10111_v10 }
 0x3b2   : > { %17228 = vst [vmem:[#allocation127_spill] sm:$0xff] %v14483_v48  ;;  %v10104_v28 = vmin.u32 %v3337_v18, %v14470_v59  ;;  %v14487_v62 = vmul.u32.u64.low %v3423_v53, %v3422_v60  ;;  %v14488_v32 = vmul.u32.u64.high %v3423_v53, %v3422_v60, %v14487_v62  ;;  %v3487_v47 = vor.u32 8388608, %v3486_v25 }
 0x3b3   : > { %11161 = vcosq.f32 %v14457_v17  ;;  %v3414_v56 = vsel %vm3408_vm0, %v3411_v14, %v3413_v41  ;;  %vm3490_vm8 = vcmp.gt.s32.totalorder %v3489_v9, 0  ;;  %v16832_v23 = vand.u32 2147483647, %v13955_v0 }
 0x3b4   : > { %v3339_v31 = vclz %v10104_v28  ;;  %v3433_v50 = vadd.s32 1, %v14476_v35  ;;  %v3491_v11 = vsel %vm3490_vm8, %v3489_v9, 0  ;;  %v10472_v10 = vpack.c.bf16 %v7430_v1, %v7428_v7 }
 0x3b5   : > { %v14497_v29 = vsel %vm14448_vm10, %v13563_v21, %v3252_v20  ;;  %v3327_v25 = vadd.s32 %v14414_v57, %v14411_v37  ;;  %v3493_v33 = vand.u32 31, %v3491_v11  ;;  %v3430_v41 = vmul.u32 %v3423_v53, %v3414_v56 }
 0x3b6   : > { %v10105_v14 = vadd.s32 4294967294, %v3339_v31  ;;  %vm3432_vm0 = vc.u32 %v14488_v32, %v14475_v12  ;;  %v14504_v61 = vshll.u32 %v3487_v47, 8  ;;  %10473 = vmatprep.subr.bf16.mxu1 %v10472_v10  ;;  %v3586_v52 = vand.u32 2139095040, %v13955_v0 }
 0x3b7   : > { %v3434_v5 = vsel %vm3432_vm0, %v3433_v50, %v14476_v35  ;;  %v3494_v18 = vsub.s32 32, %v3493_v33  ;;  %v14510_v49 = vand.u32 8388607, %v16832_v23  ;;  %v14512_v57 = vshrl.u32 %v3491_v11, 5 }
 0x3b8   : > { %vm10106_vm10 = vcmp.lt.s32.totalorder %v10105_v14, 0  ;;  %v3435_v37 = vadd.s32 %v3434_v5, %v3430_v41  ;;  %v3496_v53 = vshll.u32 %v17046_v13, %v3493_v33  ;;  %v3499_v9 = vshll.u32 %v17034_v3, %v3493_v33 }
 0x3b9   : > { %v3342_v20 = vsel %vm10106_vm10, 0, %v10105_v14  ;;  %v3497_v60 = vshrl.u32 %v17034_v3, %v3494_v18  ;;  %v3500_v35 = vshrl.u32 %v17054_v38, %v3494_v18  ;;  %v3502_v62 = vshll.u32 %v17054_v38, %v3493_v33 }
 0x3ba   : > { %v3343_v7 = vsub.s32 32, %v3342_v20  ;;  %v3347_v1 = vsub.s32 4294967266, %v3342_v20  ;;  %v3436_v28 = vadd.s32 536870912, %v3435_v37  ;;  %v3344_v47 = vshll.u32 %v14470_v59, %v3342_v20 }
 0x3bb   : > { %v3503_v56 = vshrl.u32 %v17035_v4, %v3494_v18  ;;  %v3505_v31 = vshll.u32 %v17035_v4, %v3493_v33  ;;  %v3506_v50 = vshrl.u32 %v17036_v43, %v3494_v18  ;;  %v3498_v41 = vor.u32 %v3497_v60, %v3496_v53 }
 0x3bc   : > { %v3345_v11 = vshrl.u32 %v3327_v25, %v3343_v7  ;;  %v3348_v10 = vadd.s32 127, %v3347_v1  ;;  %v14523_v14 = vshrl.u32 %v3436_v28, 30  ;;  %v3501_v23 = vor.u32 %v3500_v35, %v3499_v9 }
 0x3bd   : > { %v14525_v5 = vpop.eup %11161  ;;  %v3504_v16 = vor.u32 %v3503_v56, %v3502_v62  ;;  %v3508_v21 = vshll.u32 %v17036_v43, %v3493_v33  ;;  %v3509_v48 = vshrl.u32 %v17038_v6, %v3494_v18  ;;  %v3507_v42 = vor.u32 %v3506_v50, %v3505_v31 }
 0x3be   : > { %17229 = vst [vmem:[#allocation128_spill] sm:$0xff] %v14525_v5  ;;  %v3346_v59 = vor.u32 %v3345_v11, %v3344_v47  ;;  %v3349_v20 = vshll.u32 %v3348_v10, 23  ;;  %v3438_v39 = vshll.u32 %v14523_v14, 30  ;;  %v3495_v25 = vshrl.u32 %v17046_v13, %v3494_v18 }
 0x3bf   : > { %v3510_v7 = vor.u32 %v3509_v48, %v3508_v21  ;;  %vm3511_vm14 = vcmp.lt.s32.totalorder %v14512_v57, 1  ;;  %v3587_v53 = vshrl.u32 %v3586_v52, 23  ;;  %vm3512_vm3 = vcmp.lt.s32.totalorder %v14512_v57, 2 }
 0x3c0   : > { %v3350_v60 = vor.u32 4788187, %v3349_v20  ;;  %v14533_v9 = vsub.s32 %v3435_v37, %v3438_v39  ;;  %vm3514_vm8 = vcmp.lt.s32.totalorder %v14512_v57, 4  ;;  %v3353_v33 = vcvt.s32.f32 %v3346_v59 }
 0x3c1   : > { %vm3513_vm0 = vcmp.lt.s32.totalorder %v14512_v57, 3  ;;  %v3516_v35 = vsel %vm3514_vm8, %v3504_v16, 2102212464  ;;  %v3519_v1 = vsel %vm3511_vm14, %v3498_v41, %v3501_v23  ;;  %v3515_v48 = vsel %vm3511_vm14, %v3495_v25, %v3498_v41 }
 0x3c2   : > { %v3351_v28 = vand.u32 2147483647, %v3350_v60  ;;  %v3441_v21 = vsub.s32 0, %v14533_v9  ;;  %v3520_v18 = vsel %vm3514_vm8, %v3507_v42, 920167782  ;;  %v3517_v39 = vsel %vm3513_vm0, %v3501_v23, %v3516_v35 }
 0x3c3   : > { %v3521_v52 = vsel %vm3513_vm0, %v3504_v16, %v3520_v18  ;;  %v3523_v37 = vsel %vm3511_vm14, %v3501_v23, %v3504_v16  ;;  %v3524_v62 = vsel %vm3514_vm8, %v3510_v7, 1326507024  ;;  %v17230_v47 = vand.u32 2147483647, %v13650_v26 }
 0x3c4   : > { %v17231_v56 = vmov 0  ;;  %v3354_v31 = vmul.f32 %v3353_v33, %v3351_v28  ;;  %v10108_v50 = vmin.u32 %v3441_v21, %v14533_v9  ;;  %v3522_v11 = vsel %vm3512_vm3, %v3519_v1, %v3521_v52  ;;  %v7429_v33 = vld [vmem:[#allocation2 + $0xb0] sm:$0xff] }
 0x3c5   : > { %vm14552_vm15 = vcmp.le.f32.partialorder %v17230_v47, 0.7853982  ;;  %v3525_v10 = vsel %vm3513_vm0, %v3507_v42, %v3524_v62  ;;  %11163 = vsinq.f32 %v14457_v17  ;;  %v17234_v20 = vand.u32 2147483647, %v13779_v63  ;;  %v7427_v17 = vld [vmem:[#allocation2 + $0xa0] sm:$0xff] }
 0x3c6   : > { %v17232_v56 = vsel %vm14552_vm15, 4294967295, %v17231_v56  ;;  %v3526_v23 = vsel %vm3512_vm3, %v3523_v37, %v3525_v10  ;;  %v14565_v16 = vmul.u32.u64.low %v14504_v61, %v3522_v11  ;;  %v14566_v41 = vmul.u32.u64.high %v14504_v61, %v3522_v11, %v14565_v16 }
 0x3c7   : > { %17233 = vst [vmem:[#allocation129_spill] sm:$0xff] %v17232_v56  ;;  %v3355_v59 = vxor.u32 2147483648, %v3354_v31  ;;  %vm14570_vm14 = vcmp.le.f32.partialorder %v17234_v20, 0.7853982  ;;  %v3443_v7 = vclz %v10108_v50  ;;  %11165 = vcosq.f32 %v14497_v29 }
 0x3c8   : > { %v14575_v60 = vmul.u32.u64.low %v14504_v61, %v3526_v23  ;;  %v14576_v42 = vmul.u32.u64.high %v14504_v61, %v3526_v23, %v14575_v60  ;;  %v17237_v35 = vsub.s32 4, %v14462_v24  ;;  %vm17238_vm8 = vcmp.lt.s32.totalorder %v13650_v26, 0 }
 0x3c9   : > { %v3518_v28 = vsel %vm3512_vm3, %v3515_v48, %v3517_v39  ;;  %v10115_v21 = vadd.s32 4294967169, %v3587_v53  ;;  %v3431_v18 = vadd.s32 %v14475_v12, %v14488_v32  ;;  %v10109_v52 = vadd.s32 4294967294, %v3443_v7  ;;  %vm17240_vm0 = vmmov %vm17238_vm8 }
 0x3ca   : > { %v14584_v1 = vsel %vm17238_vm8, %v17237_v35, %v14462_v24  ;;  %v3461_v37 = vsub.s32 4, %v14523_v14  ;;  %v3591_v62 = vor.u32 8388608, %v14510_v49  ;;  %v3537_v47 = vadd.s32 1, %v14566_v41 }
 0x3cb   : > { %17239 = vst [vmem:[#allocation130_spill] sm:$0xff] %v14584_v1  ;;  %v3593_v50 = vadd.s32 1, %v10115_v21  ;;  %v3690_v11 = vand.u32 2139095040, %v14052_v54  ;;  %v10474_v10 = vpack.c.bf16 %v7429_v33, %v7427_v17  ;;  %v3356_v24 = vsel %vm17240_vm0, %v3355_v59, %v3354_v31 }
 0x3cc   : > { %vm10110_vm8 = vcmp.lt.s32.totalorder %v10109_v52, 0  ;;  %v3534_v57 = vmul.u32 %v14504_v61, %v3518_v28  ;;  %vm3536_vm3 = vc.u32 %v14576_v42, %v14565_v16  ;;  %v16839_v49 = vand.u32 2147483647, %v14052_v54 }
 0x3cd   : > { %v3446_v12 = vsel %vm10110_vm8, 0, %v10109_v52  ;;  %v3538_v32 = vsel %vm3536_vm3, %v3537_v47, %v14566_v41  ;;  %vm3594_vm10 = vcmp.gt.s32.totalorder %v3593_v50, 0  ;;  %10475 = vmatpush1.bf16.msra.mxu1 %v10474_v10  ;;  %vm17241_vm2 = vcmp.lt.s32.totalorder %v13779_v63, 0 }
 0x3ce   : > { %v3447_v53 = vsub.s32 32, %v3446_v12  ;;  %v3451_v48 = vsub.s32 4294967266, %v3446_v12  ;;  %v3462_v39 = vsel %vm17241_vm2, %v3461_v37, %v14523_v14  ;;  %v3539_v23 = vadd.s32 %v3538_v32, %v3534_v57 }
 0x3cf   : > { %11167 = vsinq.f32 %v14497_v29  ;;  %v14607_v61 = vsel %vm14552_vm15, %v13650_v26, %v3356_v24  ;;  %v3595_v31 = vsel %vm3594_vm10, %v3593_v50, 0  ;;  %v3691_v41 = vshrl.u32 %v3690_v11, 23  ;;  %v14610_v17 = vpop.eup %11163 }
 0x3d0   : > { %v3448_v59 = vshll.u32 %v14533_v9, %v3446_v12  ;;  %v3449_v20 = vshrl.u32 %v3431_v18, %v3447_v53  ;;  %v3452_v7 = vadd.s32 127, %v3451_v48  ;;  %v3540_v60 = vadd.s32 536870912, %v3539_v23  ;;  %17242 = vst [vmem:[#allocation131_spill] sm:$0xff] %v14610_v17 }
 0x3d1   : > { %v14614_v14 = vsel %vm14570_vm14, 0, %v3462_v39  ;;  %v3597_v33 = vand.u32 31, %v3595_v31  ;;  %v14616_v29 = vshll.u32 %v3591_v62, 8  ;;  %v14620_v35 = vand.u32 8388607, %v16839_v49  ;;  %v14625_v18 = vpop.eup %11165 }
 0x3d2   : > { %17243 = vst [vmem:[#allocation132_spill] sm:$0xff] %v14614_v14  ;;  %11169 = vcosq.f32 %v14607_v61  ;;  %v3450_v28 = vor.u32 %v3449_v20, %v3448_v59  ;;  %v3453_v9 = vshll.u32 %v3452_v7, 23  ;;  %v14623_v21 = vshrl.u32 %v3540_v60, 30  ;;  %17244 = vst [vmem:[#allocation133_spill] sm:$0xff] %v14625_v18 }
 0x3d3   : > { %v14628_v52 = vadd.s32 %v14565_v16, %v14576_v42  ;;  %v3596_v37 = vshrl.u32 %v3595_v31, 5  ;;  %v3598_v47 = vsub.s32 32, %v3597_v33  ;;  %v10119_v50 = vadd.s32 4294967169, %v3691_v41 }
 0x3d4   : > { %v3454_v62 = vor.u32 4788187, %v3453_v9  ;;  %v3542_v11 = vshll.u32 %v14623_v21, 30  ;;  %v3600_v10 = vshll.u32 %v17046_v13, %v3597_v33  ;;  %v3603_v24 = vshll.u32 %v17034_v3, %v3597_v33 }
 0x3d5   : > { %v3601_v57 = vshrl.u32 %v17034_v3, %v3598_v47  ;;  %v3604_v12 = vshrl.u32 %v17054_v38, %v3598_v47  ;;  %v3606_v32 = vshll.u32 %v17054_v38, %v3597_v33  ;;  %v3607_v53 = vshrl.u32 %v17035_v4, %v3598_v47 }
 0x3d6   : > { %v3455_v16 = vand.u32 2147483647, %v3454_v62  ;;  %v3457_v42 = vcvt.s32.f32 %v3450_v28  ;;  %v14637_v48 = vsub.s32 %v3539_v23, %v3542_v11  ;;  %v3609_v39 = vshll.u32 %v17035_v4, %v3597_v33 }
 0x3d7   : > { %v3602_v31 = vor.u32 %v3601_v57, %v3600_v10  ;;  %v3605_v41 = vor.u32 %v3604_v12, %v3603_v24  ;;  %v3608_v59 = vor.u32 %v3607_v53, %v3606_v32  ;;  %v3610_v20 = vshrl.u32 %v17036_v43, %v3598_v47 }
 0x3d8   : > { %v3545_v7 = vsub.s32 0, %v14637_v48  ;;  %v3612_v60 = vshll.u32 %v17036_v43, %v3597_v33  ;;  %v3613_v9 = vshrl.u32 %v17038_v6, %v3598_v47  ;;  %vm3615_vm2 = vcmp.lt.s32.totalorder %v3596_v37, 1 }
 0x3d9   : > { %v14644_v49 = vpop.eup %11167  ;;  %v3458_v62 = vmul.f32 %v3457_v42, %v3455_v16  ;;  %v3599_v23 = vshrl.u32 %v17046_v13, %v3598_v47  ;;  %v3611_v28 = vor.u32 %v3610_v20, %v3609_v39  ;;  %vm3616_vm10 = vcmp.lt.s32.totalorder %v3596_v37, 2 }
 0x3da   : > { %17245 = vst [vmem:[#allocation134_spill] sm:$0xff] %v14644_v49  ;;  %vm3481_vm0 = vcmp.lt.s32.totalorder %v13891_v40, 0  ;;  %v10112_v11 = vmin.u32 %v3545_v7, %v14637_v48  ;;  %v3614_v10 = vor.u32 %v3613_v9, %v3612_v60  ;;  %vm3617_vm8 = vcmp.lt.s32.totalorder %v3596_v37, 3 }
 0x3db   : > { %vm3618_vm3 = vcmp.lt.s32.totalorder %v3596_v37, 4  ;;  %v3619_v24 = vsel %vm3615_vm2, %v3599_v23, %v3602_v31  ;;  %v3623_v57 = vsel %vm3615_vm2, %v3602_v31, %v3605_v41  ;;  %v3627_v42 = vsel %vm3615_vm2, %v3605_v41, %v3608_v59 }
 0x3dc   : > { %v3620_v33 = vsel %vm3618_vm3, %v3608_v59, 2102212464  ;;  %v3624_v12 = vsel %vm3618_vm3, %v3611_v28, 920167782  ;;  %v14651_v32 = vpop.eup %11169  ;;  %v3547_v53 = vclz %v10112_v11  ;;  %v3459_v39 = vxor.u32 2147483648, %v3458_v62 }
 0x3dd   : > { %17246 = vst [vmem:[#allocation135_spill] sm:$0xff] %v14651_v32  ;;  %v3621_v47 = vsel %vm3617_vm8, %v3605_v41, %v3620_v33  ;;  %v3625_v16 = vsel %vm3617_vm8, %v3608_v59, %v3624_v12  ;;  %v3628_v7 = vsel %vm3618_vm3, %v3614_v10, 1326507024  ;;  %v3695_v60 = vor.u32 8388608, %v14620_v35 }
 0x3de   : > { %v3626_v20 = vsel %vm3616_vm10, %v3623_v57, %v3625_v16  ;;  %11171 = vsinq.f32 %v14607_v61  ;;  %v10113_v9 = vadd.s32 4294967294, %v3547_v53  ;;  %v3565_v31 = vsub.s32 4, %v14623_v21 }
 0x3df   : > { %v3629_v23 = vsel %vm3617_vm8, %v3611_v28, %v3628_v7  ;;  %v3622_v11 = vsel %vm3616_vm10, %v3619_v24, %v3621_v47  ;;  %v14664_v12 = vmul.u32.u64.low %v14616_v29, %v3626_v20  ;;  %v14665_v41 = vmul.u32.u64.high %v14616_v29, %v3626_v20, %v14664_v12 }
 0x3e0   : > { %v3630_v33 = vsel %vm3616_vm10, %v3627_v42, %v3629_v23  ;;  %vm10114_vm2 = vcmp.lt.s32.totalorder %v10113_v9, 0  ;;  %v3697_v61 = vadd.s32 1, %v10119_v50  ;;  %vm17247_vm3 = vcmp.lt.s32.totalorder %v13779_v63, 0 }
 0x3e1   : > { %v14669_v59 = vmul.u32.u64.low %v14616_v29, %v3630_v33  ;;  %v14670_v35 = vmul.u32.u64.high %v14616_v29, %v3630_v33, %v14669_v59  ;;  %v3460_v10 = vsel %vm17247_vm3, %v3459_v39, %v3458_v62  ;;  %v3550_v57 = vsel %vm10114_vm2, 0, %v10113_v9 }
 0x3e2   : > { %v14674_v28 = vshll.u32 %v3695_v60, 8  ;;  %v16840_v37 = vand.u32 2147483647, %v14136_v15  ;;  %v3551_v24 = vsub.s32 32, %v3550_v57  ;;  %v3555_v53 = vsub.s32 4294967266, %v3550_v57 }
 0x3e3   : > { %vm3698_vm10 = vcmp.gt.s32.totalorder %v3697_v61, 0  ;;  %v3794_v47 = vand.u32 2139095040, %v14136_v15  ;;  %v14681_v16 = vsel %vm3481_vm0, %v3565_v31, %v14623_v21  ;;  %v3638_v50 = vmul.u32 %v14616_v29, %v3622_v11 }
 0x3e4   : > { %17248 = vst [vmem:[#allocation136_spill] sm:$0xff] %v14681_v16  ;;  %v3641_v42 = vadd.s32 1, %v14665_v41  ;;  %v3699_v62 = vsel %vm3698_vm10, %v3697_v61, 0  ;;  %v3552_v39 = vshll.u32 %v14637_v48, %v3550_v57  ;;  %v3553_v20 = vshrl.u32 %v14628_v52, %v3551_v24 }
 0x3e5   : > { %v3556_v7 = vadd.s32 127, %v3555_v53  ;;  %vm3640_vm8 = vc.u32 %v14670_v35, %v14664_v12  ;;  %v3463_v60 = vsel %vm14570_vm14, %v13779_v63, %v3460_v10  ;;  %v3701_v9 = vand.u32 31, %v3699_v62 }
 0x3e6   : > { %v3642_v21 = vsel %vm3640_vm8, %v3641_v42, %v14665_v41  ;;  %v14695_v29 = vand.u32 8388607, %v16840_v37  ;;  %v3554_v31 = vor.u32 %v3553_v20, %v3552_v39  ;;  %v3795_v11 = vshrl.u32 %v3794_v47, 23 }
 0x3e7   : > { %v3557_v23 = vshll.u32 %v3556_v7, 23  ;;  %v3643_v48 = vadd.s32 %v3642_v21, %v3638_v50  ;;  %v3700_v52 = vshrl.u32 %v3699_v62, 5  ;;  %v3702_v33 = vsub.s32 32, %v3701_v9 }
 0x3e8   : > { %v3704_v59 = vshll.u32 %v17046_v13, %v3701_v9  ;;  %v3707_v61 = vshll.u32 %v17034_v3, %v3701_v9  ;;  %v14699_v57 = vpop.eup %11171  ;;  %v3561_v10 = vcvt.s32.f32 %v3554_v31  ;;  %v3710_v24 = vshll.u32 %v17054_v38, %v3701_v9 }
 0x3e9   : > { %17249 = vst [vmem:[#allocation137_spill] sm:$0xff] %v14699_v57  ;;  %v3558_v25 = vor.u32 4788187, %v3557_v23  ;;  %v3644_v41 = vadd.s32 536870912, %v3643_v48  ;;  %v3705_v53 = vshrl.u32 %v17034_v3, %v3702_v33  ;;  %v3708_v42 = vshrl.u32 %v17054_v38, %v3702_v33 }
 0x3ea   : > { %v3711_v50 = vshrl.u32 %v17035_v4, %v3702_v33  ;;  %v3713_v47 = vshll.u32 %v17035_v4, %v3701_v9  ;;  %v17250_v62 = vand.u32 2147483647, %v13891_v40  ;;  %v17251_v39 = vmov 0 }
 0x3eb   : > { %v3559_v20 = vand.u32 2147483647, %v3558_v25  ;;  %v3645_v7 = vshrl.u32 %v3644_v41, 30  ;;  %v3714_v21 = vshrl.u32 %v17036_v43, %v3702_v33  ;;  %v3716_v31 = vshll.u32 %v17036_v43, %v3701_v9 }
 0x3ec   : > { %vm14708_vm14 = vcmp.le.f32.partialorder %v17250_v62, 0.7853982  ;;  %v3706_v23 = vor.u32 %v3705_v53, %v3704_v59  ;;  %v3709_v37 = vor.u32 %v3708_v42, %v3707_v61  ;;  %v3712_v16 = vor.u32 %v3711_v50, %v3710_v24  ;;  %v7432_v50 = vld [vmem:[#allocation2 + $0xc8] sm:$0xff] }
 0x3ed   : > { %v17252_v39 = vsel %vm14708_vm14, 4294967295, %v17251_v39  ;;  %v3717_v32 = vshrl.u32 %v17038_v6, %v3702_v33  ;;  %11173 = vcosq.f32 %v3463_v60  ;;  %v3562_v57 = vmul.f32 %v3561_v10, %v3559_v20 }
 0x3ee   : > { %17253 = vst [vmem:[#allocation138_spill] sm:$0xff] %v17252_v39  ;;  %v3646_v26 = vshll.u32 %v3645_v7, 30  ;;  %v3715_v56 = vor.u32 %v3714_v21, %v3713_v47  ;;  %11175 = vsinq.f32 %v3463_v60  ;;  %v10123_v1 = vadd.s32 4294967169, %v3795_v11  ;;  %v7434_v47 = vld [vmem:[#allocation2 + $0xd8] sm:$0xff] }
 0x3ef   : > { %v3718_v62 = vor.u32 %v3717_v32, %v3716_v31  ;;  %v3799_v63 = vor.u32 8388608, %v14695_v29  ;;  %v3563_v25 = vxor.u32 2147483648, %v3562_v57  ;;  %vm16855_vm2 = vcmp.lt.s32.totalorder %v13955_v0, 0 }
 0x3f0   : > { %v14717_v41 = vsub.s32 %v3643_v48, %v3646_v26  ;;  %vm3719_vm3 = vcmp.lt.s32.totalorder %v3700_v52, 1  ;;  %vm3722_vm10 = vcmp.lt.s32.totalorder %v3700_v52, 4  ;;  %v3703_v9 = vshrl.u32 %v17046_v13, %v3702_v33 }
 0x3f1   : > { %vm3720_vm8 = vcmp.lt.s32.totalorder %v3700_v52, 2  ;;  %v3724_v59 = vsel %vm3722_vm10, %v3712_v16, 2102212464  ;;  %v3727_v61 = vsel %vm3719_vm3, %v3706_v23, %v3709_v37  ;;  %v3564_v60 = vsel %vm3481_vm0, %v3563_v25, %v3562_v57 }
 0x3f2   : > { %v3649_v32 = vsub.s32 0, %v14717_v41  ;;  %vm3721_vm15 = vcmp.lt.s32.totalorder %v3700_v52, 3  ;;  %v3728_v29 = vsel %vm3722_vm10, %v3715_v56, 920167782  ;;  %v3723_v11 = vsel %vm3719_vm3, %v3703_v9, %v3706_v23 }
 0x3f3   : > { %v3725_v10 = vsel %vm3721_vm15, %v3709_v37, %v3724_v59  ;;  %v3729_v26 = vsel %vm3721_vm15, %v3712_v16, %v3728_v29  ;;  %v3731_v48 = vsel %vm3719_vm3, %v3709_v37, %v3712_v16  ;;  %v3669_v53 = vsub.s32 4, %v3645_v7 }
 0x3f4   : > { %v10116_v24 = vmin.u32 %v3649_v32, %v14717_v41  ;;  %v3730_v33 = vsel %vm3720_vm8, %v3727_v61, %v3729_v26  ;;  %v3732_v42 = vsel %vm3722_vm10, %v3718_v62, 1326507024  ;;  %v14731_v57 = vsel %vm14708_vm14, %v13891_v40, %v3564_v60 }
 0x3f5   : > { %v3733_v20 = vsel %vm3721_vm15, %v3715_v56, %v3732_v42  ;;  %v14734_v21 = vmul.u32.u64.low %v14674_v28, %v3730_v33  ;;  %v14735_v31 = vmul.u32.u64.high %v14674_v28, %v3730_v33, %v14734_v21  ;;  %v3726_v16 = vsel %vm3720_vm8, %v3723_v11, %v3725_v10 }
 0x3f6   : > { %v3651_v37 = vclz %v10116_v24  ;;  %v3734_v23 = vsel %vm3720_vm8, %v3731_v48, %v3733_v20  ;;  %v3801_v25 = vadd.s32 1, %v10123_v1  ;;  %v10476_v59 = vpack.c.bf16 %v7434_v47, %v7432_v50 }
 0x3f7   : > { %v14741_v62 = vmul.u32.u64.low %v14674_v28, %v3734_v23  ;;  %v14742_v9 = vmul.u32.u64.high %v14674_v28, %v3734_v23, %v14741_v62  ;;  %v16849_v61 = vand.u32 2147483647, %v14224_v22  ;;  %v14745_v60 = vpop.eup %11173  ;;  %v3639_v56 = vadd.s32 %v14664_v12, %v14670_v35 }
 0x3f8   : > { %17254 = vst [vmem:[#allocation139_spill] sm:$0xff] %v14745_v60  ;;  %v10117_v32 = vadd.s32 4294967294, %v3651_v37  ;;  %vm3802_vm15 = vcmp.gt.s32.totalorder %v3801_v25, 0  ;;  %v3898_v29 = vand.u32 2139095040, %v14224_v22  ;;  %v14750_v11 = vpop.eup %11175  ;;  %v14754_v1 = vsel %vm16855_vm2, %v3669_v53, %v3645_v7  ;;  %10477 = vmatprep.subr.bf16.mxu1 %v10476_v59 }
 0x3f9   : > { %17255 = vst [vmem:[#allocation140_spill] sm:$0xff] %v14750_v11  ;;  %v3745_v52 = vadd.s32 1, %v14735_v31  ;;  %v3803_v10 = vsel %vm3802_vm15, %v3801_v25, 0  ;;  %v14757_v26 = vshll.u32 %v3799_v63, 8  ;;  %11177 = vcosq.f32 %v14731_v57 }
 0x3fa   : > { %vm10118_vm0 = vcmp.lt.s32.totalorder %v10117_v32, 0  ;;  %v3742_v12 = vmul.u32 %v14674_v28, %v3726_v16  ;;  %v3805_v35 = vand.u32 31, %v3803_v10  ;;  %vm3744_vm3 = vc.u32 %v14742_v9, %v14734_v21 }
 0x3fb   : > { %v3654_v48 = vsel %vm10118_vm0, 0, %v10117_v32  ;;  %v14763_v24 = vshrl.u32 %v3803_v10, 5  ;;  %v14767_v7 = vand.u32 8388607, %v16849_v61  ;;  %v3746_v33 = vsel %vm3744_vm3, %v3745_v52, %v14735_v31 }
 0x3fc   : > { %v3655_v53 = vsub.s32 32, %v3654_v48  ;;  %v3659_v63 = vsub.s32 4294967266, %v3654_v48  ;;  %v3899_v42 = vshrl.u32 %v3898_v29, 23  ;;  %v3656_v50 = vshll.u32 %v14717_v41, %v3654_v48 }
 0x3fd   : > { %v3747_v47 = vadd.s32 %v3746_v33, %v3742_v12  ;;  %v3806_v28 = vsub.s32 32, %v3805_v35  ;;  %v3808_v20 = vshll.u32 %v17046_v13, %v3805_v35  ;;  %v3811_v23 = vshll.u32 %v17034_v3, %v3805_v35 }
 0x3fe   : > { %v3657_v37 = vshrl.u32 %v3639_v56, %v3655_v53  ;;  %v3660_v16 = vadd.s32 127, %v3659_v63  ;;  %v3814_v25 = vshll.u32 %v17054_v38, %v3805_v35  ;;  %v3817_v31 = vshll.u32 %v17035_v4, %v3805_v35 }
 0x3ff   : > { %v3748_v62 = vadd.s32 536870912, %v3747_v47  ;;  %v3809_v59 = vshrl.u32 %v17034_v3, %v3806_v28  ;;  %v3812_v32 = vshrl.u32 %v17054_v38, %v3806_v28  ;;  %v3815_v41 = vshrl.u32 %v17035_v4, %v3806_v28 }
 0x400   : > { %v3658_v29 = vor.u32 %v3657_v37, %v3656_v50  ;;  %v3661_v52 = vshll.u32 %v3660_v16, 23  ;;  %v3818_v10 = vshrl.u32 %v17036_v43, %v3806_v28  ;;  %v3807_v56 = vshrl.u32 %v17046_v13, %v3806_v28 }
 0x401   : > { %v3749_v12 = vshrl.u32 %v3748_v62, 30  ;;  %v3810_v48 = vor.u32 %v3809_v59, %v3808_v20  ;;  %v3903_v53 = vor.u32 8388608, %v14767_v7  ;;  %v17256_v63 = vand.u32 2147483647, %v13955_v0 }
 0x402   : > { %v3662_v61 = vor.u32 4788187, %v3661_v52  ;;  %v3813_v40 = vor.u32 %v3812_v32, %v3811_v23  ;;  %v3816_v50 = vor.u32 %v3815_v41, %v3814_v25  ;;  %v3819_v37 = vor.u32 %v3818_v10, %v3817_v31 }
 0x403   : > { %vm14783_vm10 = vcmp.le.f32.partialorder %v17256_v63, 0.7853982  ;;  %v3665_v16 = vcvt.s32.f32 %v3658_v29  ;;  %v3750_v39 = vshll.u32 %v3749_v12, 30  ;;  %v3820_v60 = vshll.u32 %v17036_v43, %v3805_v35  ;;  %v14789_v11 = vpop.eup %11177 }
 0x404   : > { %v3821_v62 = vshrl.u32 %v17038_v6, %v3806_v28  ;;  %17259 = vst [vmem:[#allocation141_spill] sm:$0xff] %v14789_v11  ;;  %v3663_v20 = vand.u32 2147483647, %v3662_v61  ;;  %vm16856_vm8 = vcmp.lt.s32.totalorder %v14052_v54, 0  ;;  %vm3823_vm15 = vcmp.lt.s32.totalorder %v14763_v24, 1 }
 0x405   : > { %vm3824_vm0 = vcmp.lt.s32.totalorder %v14763_v24, 2  ;;  %vm3825_vm3 = vcmp.lt.s32.totalorder %v14763_v24, 3  ;;  %v14795_v23 = vsub.s32 %v3747_v47, %v3750_v39  ;;  %vm3826_vm2 = vcmp.lt.s32.totalorder %v14763_v24, 4 }
 0x406   : > { %v3822_v25 = vor.u32 %v3821_v62, %v3820_v60  ;;  %v3827_v59 = vsel %vm3823_vm15, %v3807_v56, %v3810_v48  ;;  %v3666_v35 = vmul.f32 %v3665_v16, %v3663_v20  ;;  %v3828_v32 = vsel %vm3826_vm2, %v3816_v50, 2102212464  ;;  %v7431_v62 = vld [vmem:[#allocation2 + $0xc0] sm:$0xff]  ;;  %v7433_v20 = vld [vmem:[#allocation2 + $0xd0] sm:$0xff] }
 0x407   : > { %v3831_v28 = vsel %vm3823_vm15, %v3810_v48, %v3813_v40  ;;  %v3832_v31 = vsel %vm3826_vm2, %v3819_v37, 920167782  ;;  %v3753_v61 = vsub.s32 0, %v14795_v23  ;;  %v3829_v29 = vsel %vm3825_vm3, %v3813_v40, %v3828_v32 }
 0x408   : > { %v3833_v52 = vsel %vm3825_vm3, %v3816_v50, %v3832_v31  ;;  %v3835_v41 = vsel %vm3823_vm15, %v3813_v40, %v3816_v50  ;;  %v3667_v10 = vxor.u32 2147483648, %v3666_v35  ;;  %v3773_v39 = vsub.s32 4, %v3749_v12 }
 0x409   : > { %v3834_v60 = vsel %vm3824_vm0, %v3831_v28, %v3833_v52  ;;  %v3836_v47 = vsel %vm3826_vm2, %v3822_v25, 1326507024  ;;  %v10120_v56 = vmin.u32 %v3753_v61, %v14795_v23  ;;  %vm17260_vm15 = vcmp.lt.s32.totalorder %v13955_v0, 0  ;;  %v7436_v52 = vld [vmem:[#allocation2 + $0xe8] sm:$0xff] }
 0x40a   : > { %v3837_v48 = vsel %vm3825_vm3, %v3819_v37, %v3836_v47  ;;  %v14809_v63 = vmul.u32.u64.low %v14757_v26, %v3834_v60  ;;  %v14810_v16 = vmul.u32.u64.high %v14757_v26, %v3834_v60, %v14809_v63  ;;  %v3668_v40 = vsel %vm17260_vm15, %v3667_v10, %v3666_v35  ;;  %v7438_v60 = vld [vmem:[#allocation2 + $0xf8] sm:$0xff] }
 0x40b   : > { %v3830_v50 = vsel %vm3824_vm0, %v3827_v59, %v3829_v29  ;;  %v3838_v25 = vsel %vm3824_vm0, %v3835_v41, %v3837_v48  ;;  %v10127_v32 = vadd.s32 4294967169, %v3899_v42  ;;  %v3671_v37 = vsel %vm14783_vm10, %v13955_v0, %v3668_v40 }
 0x40c   : > { %v3755_v28 = vclz %v10120_v56  ;;  %v14823_v31 = vmul.u32.u64.low %v14757_v26, %v3838_v25  ;;  %v14824_v61 = vmul.u32.u64.high %v14757_v26, %v3838_v25, %v14823_v31  ;;  %11179 = vsinq.f32 %v14731_v57 }
 0x40d   : > { %v14830_v59 = vsel %vm14783_vm10, 0, %v14754_v1  ;;  %v3905_v24 = vadd.s32 1, %v10127_v32  ;;  %v10478_v42 = vpack.c.bf16 %v7433_v20, %v7431_v62  ;;  %v3743_v35 = vadd.s32 %v14734_v21, %v14742_v9 }
 0x40e   : > { %17261 = vst [vmem:[#allocation142_spill] sm:$0xff] %v14830_v59  ;;  %v10121_v29 = vadd.s32 4294967294, %v3755_v28  ;;  %v14836_v41 = vsel %vm16856_vm8, %v3773_v39, %v3749_v12  ;;  %v3849_v10 = vadd.s32 1, %v14810_v16  ;;  %11181 = vcosq.f32 %v3671_v37 }
 0x40f   : > { %17262 = vst [vmem:[#allocation143_spill] sm:$0xff] %v14836_v41  ;;  %v3846_v57 = vmul.u32 %v14757_v26, %v3830_v50  ;;  %vm3906_vm2 = vcmp.gt.s32.totalorder %v3905_v24, 0  ;;  %10479 = vmatpush1.bf16.msra.mxu1 %v10478_v42  ;;  %v10480_v33 = vpack.c.bf16 %v7438_v60, %v7436_v52  ;;  %vm3848_vm0 = vc.u32 %v14824_v61, %v14809_v63 }
 0x410   : > { %vm10122_vm10 = vcmp.lt.s32.totalorder %v10121_v29, 0  ;;  %v3907_v1 = vsel %vm3906_vm2, %v3905_v24, 0  ;;  %v14844_v21 = vshll.u32 %v3903_v53, 8  ;;  %11183 = vsinq.f32 %v3671_v37 }
 0x411   : > { %v3758_v9 = vsel %vm10122_vm10, 0, %v10121_v29  ;;  %v3850_v12 = vsel %vm3848_vm0, %v3849_v10, %v14810_v16  ;;  %v3909_v39 = vand.u32 31, %v3907_v1  ;;  %10481 = vmatprep.subr.bf16.mxu1 %v10480_v33  ;;  %v14849_v20 = vshrl.u32 %v3907_v1, 5 }
 0x412   : > { %v3759_v47 = vsub.s32 32, %v3758_v9  ;;  %v3763_v26 = vsub.s32 4294967266, %v3758_v9  ;;  %v3851_v56 = vadd.s32 %v3850_v12, %v3846_v57  ;;  %v3760_v62 = vshll.u32 %v14795_v23, %v3758_v9 }
 0x413   : > { %v3910_v40 = vsub.s32 32, %v3909_v39  ;;  %v3912_v7 = vshll.u32 %v17046_v13, %v3909_v39  ;;  %v3915_v32 = vshll.u32 %v17034_v3, %v3909_v39  ;;  %v3918_v28 = vshll.u32 %v17054_v38, %v3909_v39 }
 0x414   : > { %v3761_v53 = vshrl.u32 %v3743_v35, %v3759_v47  ;;  %v3764_v50 = vadd.s32 127, %v3763_v26  ;;  %v3852_v25 = vadd.s32 536870912, %v3851_v56  ;;  %v3921_v10 = vshll.u32 %v17035_v4, %v3909_v39 }
 0x415   : > { %v3913_v16 = vshrl.u32 %v17034_v3, %v3910_v40  ;;  %v3916_v37 = vshrl.u32 %v17054_v38, %v3910_v40  ;;  %v3919_v31 = vshrl.u32 %v17035_v4, %v3910_v40  ;;  %v3922_v24 = vshrl.u32 %v17036_v43, %v3910_v40 }
 0x416   : > { %v3762_v52 = vor.u32 %v3761_v53, %v3760_v62  ;;  %v3765_v23 = vshll.u32 %v3764_v50, 23  ;;  %v3853_v60 = vshrl.u32 %v3852_v25, 30  ;;  %v14859_v42 = vpop.eup %11179  ;;  %v3911_v35 = vshrl.u32 %v17046_v13, %v3910_v40 }
 0x417   : > { %17263 = vst [vmem:[#allocation144_spill] sm:$0xff] %v14859_v42  ;;  %v3914_v29 = vor.u32 %v3913_v16, %v3912_v7  ;;  %v4002_v57 = vand.u32 2139095040, %v14333_v2  ;;  %v17264_v33 = vand.u32 2147483647, %v14052_v54  ;;  %v17265_v1 = vmov 0 }
 0x418   : > { %v3766_v9 = vor.u32 4788187, %v3765_v23  ;;  %v3854_v12 = vshll.u32 %v3853_v60, 30  ;;  %v3917_v47 = vor.u32 %v3916_v37, %v3915_v32  ;;  %v3920_v26 = vor.u32 %v3919_v31, %v3918_v28  ;;  %v14870_v62 = vpop.eup %11181 }
 0x419   : > { %vm14866_vm15 = vcmp.le.f32.partialorder %v17264_v33, 0.7853982  ;;  %17268 = vst [vmem:[#allocation146_spill] sm:$0xff] %v14870_v62  ;;  %v3769_v53 = vcvt.s32.f32 %v3762_v52  ;;  %v17269_v50 = vand.u32 2147483647, %v14136_v15  ;;  %v3923_v25 = vor.u32 %v3922_v24, %v3921_v10 }
 0x41a   : > { %v17266_v1 = vsel %vm14866_vm15, 4294967295, %v17265_v1  ;;  %v3924_v16 = vshll.u32 %v17036_v43, %v3909_v39  ;;  %v3925_v33 = vshrl.u32 %v17038_v6, %v3910_v40  ;;  %v3767_v48 = vand.u32 2147483647, %v3766_v9  ;;  %v14883_v32 = vpop.eup %11183 }
 0x41b   : > { %17267 = vst [vmem:[#allocation145_spill] sm:$0xff] %v17266_v1  ;;  %vm14874_vm2 = vcmp.le.f32.partialorder %v17269_v50, 0.7853982  ;;  %v14880_v41 = vsub.s32 %v3851_v56, %v3854_v12  ;;  %v3877_v23 = vsub.s32 4, %v3853_v60  ;;  %vm3927_vm10 = vcmp.lt.s32.totalorder %v14849_v20, 1  ;;  %17272 = vst [vmem:[#allocation147_spill] sm:$0xff] %v14883_v32 }
 0x41c   : > { %v3926_v37 = vor.u32 %v3925_v33, %v3924_v16  ;;  %vm3929_vm8 = vcmp.lt.s32.totalorder %v14849_v20, 3  ;;  %vm3930_vm3 = vcmp.lt.s32.totalorder %v14849_v20, 4  ;;  %v3770_v28 = vmul.f32 %v3769_v53, %v3767_v48  ;;  %v7448_v1 = vld [vmem:[#allocation2 + $0x148] sm:$0xff] }
 0x41d   : > { %v3857_v39 = vsub.s32 0, %v14880_v41  ;;  %v3932_v31 = vsel %vm3930_vm3, %v3920_v26, 2102212464  ;;  %v3935_v40 = vsel %vm3927_vm10, %v3914_v29, %v3917_v47  ;;  %v3931_v52 = vsel %vm3927_vm10, %v3911_v35, %v3914_v29 }
 0x41e   : > { %v3936_v56 = vsel %vm3930_vm3, %v3923_v25, 920167782  ;;  %v3939_v24 = vsel %vm3927_vm10, %v3917_v47, %v3920_v26  ;;  %v3940_v10 = vsel %vm3930_vm3, %v3926_v37, 1326507024  ;;  %v3771_v9 = vxor.u32 2147483648, %v3770_v28 }
 0x41f   : > { %v10124_v12 = vmin.u32 %v3857_v39, %v14880_v41  ;;  %v3933_v50 = vsel %vm3929_vm8, %v3917_v47, %v3932_v31  ;;  %v3937_v16 = vsel %vm3929_vm8, %v3920_v26, %v3936_v56  ;;  %v3847_v48 = vadd.s32 %v14809_v63, %v14824_v61  ;;  %v7435_v39 = vld [vmem:[#allocation2 + $0xe0] sm:$0xff]  ;;  %v7437_v31 = vld [vmem:[#allocation2 + $0xf0] sm:$0xff] }
 0x420   : > { %vm17273_vm0 = vcmp.lt.s32.totalorder %v14136_v15, 0  ;;  %vm17274_vm14 = vcmp.lt.s32.totalorder %v14849_v20, 2  ;;  %v3941_v29 = vsel %vm3929_vm8, %v3923_v25, %v3940_v10  ;;  %vm17275_vm3 = vcmp.lt.s32.totalorder %v14052_v54, 0  ;;  %v7439_v10 = vld [vmem:[#allocation2 + $0x100] sm:$0xff] }
 0x421   : > { %v3878_v53 = vsel %vm17273_vm0, %v3877_v23, %v3853_v60  ;;  %v3938_v35 = vsel %vm17274_vm14, %v3935_v40, %v3937_v16  ;;  %v3772_v33 = vsel %vm17275_vm3, %v3771_v9, %v3770_v28  ;;  %v3859_v37 = vclz %v10124_v12  ;;  %vm17276_vm10 = vmmov %vm17274_vm14  ;;  %v7440_v23 = vld [vmem:[#allocation2 + $0x108] sm:$0xff]  ;;  %v7442_v28 = vld [vmem:[#allocation2 + $0x118] sm:$0xff] }
 0x422   : > { %v3942_v47 = vsel %vm17276_vm10, %v3939_v24, %v3941_v29  ;;  %v4003_v26 = vshrl.u32 %v4002_v57, 23  ;;  %v3775_v63 = vsel %vm14866_vm15, %v14052_v54, %v3772_v33  ;;  %vm17277_vm0 = vmmov %vm17276_vm10  ;;  %v14917_v56 = vsel %vm14874_vm2, 0, %v3878_v53  ;;  %v7441_v9 = vld [vmem:[#allocation2 + $0x110] sm:$0xff]  ;;  %v7444_v16 = vld [vmem:[#allocation2 + $0x128] sm:$0xff] }
 0x423   : > { %v3934_v61 = vsel %vm17277_vm0, %v3931_v52, %v3933_v50  ;;  %v14912_v60 = vmul.u32.u64.low %v14844_v21, %v3942_v47  ;;  %v14913_v25 = vmul.u32.u64.high %v14844_v21, %v3942_v47, %v14912_v60  ;;  %v10125_v40 = vadd.s32 4294967294, %v3859_v37  ;;  %17278 = vst [vmem:[#allocation148_spill] sm:$0xff] %v14917_v56  ;;  %v7446_v29 = vld [vmem:[#allocation2 + $0x138] sm:$0xff] }
 0x424   : > { %v14920_v57 = vmul.u32.u64.low %v14844_v21, %v3938_v35  ;;  %v14921_v24 = vmul.u32.u64.high %v14844_v21, %v3938_v35, %v14920_v57  ;;  %11185 = vcosq.f32 %v3775_v63  ;;  %v10131_v20 = vadd.s32 4294967169, %v4003_v26  ;;  %v7443_v60 = vld [vmem:[#allocation2 + $0x120] sm:$0xff] }
 0x425   : > { %v17279_v52 = vand.u32 2147483647, %v14333_v2  ;;  %v10482_v50 = vpack.c.bf16 %v7437_v31, %v7435_v39  ;;  %11187 = vsinq.f32 %v3775_v63  ;;  %vm10126_vm14 = vcmp.lt.s32.totalorder %v10125_v40, 0  ;;  %v7445_v31 = vld [vmem:[#allocation2 + $0x130] sm:$0xff]  ;;  %v7450_v63 = vld [vmem:[#allocation2 + $0x158] sm:$0xff] }
 0x426   : > { %v3950_v53 = vmul.u32 %v14844_v21, %v3934_v61  ;;  %v10484_v33 = vpack.c.bf16 %v7442_v28, %v7440_v23  ;;  %v3862_v37 = vsel %vm10126_vm14, 0, %v10125_v40  ;;  %vm3952_vm8 = vc.u32 %v14913_v25, %v14920_v57  ;;  %v7447_v23 = vld [vmem:[#allocation2 + $0x140] sm:$0xff]  ;;  %v7449_v28 = vld [vmem:[#allocation2 + $0x150] sm:$0xff]  ;;  %v7452_v40 = vld [vmem:[#allocation2 + $0x168] sm:$0xff] }
 0x427   : > { %v14925_v12 = vand.u32 8388607, %v17279_v52  ;;  %v4009_v35 = vadd.s32 1, %v10131_v20  ;;  %10483 = vmatpush1.bf16.msra.mxu1 %v10482_v50  ;;  %v10486_v47 = vpack.c.bf16 %v7441_v9, %v7439_v10  ;;  %v3863_v26 = vsub.s32 32, %v3862_v37 }
 0x428   : > { %v3867_v54 = vsub.s32 4294967266, %v3862_v37  ;;  %v3953_v52 = vadd.s32 1, %v14921_v24  ;;  %10485 = vmatprep.subr.bf16.mxu1 %v10484_v33  ;;  %v10488_v39 = vpack.c.bf16 %v7446_v29, %v7444_v16  ;;  %v3864_v56 = vshll.u32 %v14880_v41, %v3862_v37  ;;  %v7454_v16 = vld [vmem:[#allocation2 + $0x178] sm:$0xff]  ;;  %v14938_v29 = vld [vmem:[#allocation2 + $0x160] sm:$0xff]  ;;  %v14940_v41 = vld [vmem:[#allocation2 + $0x170] sm:$0xff] }
 0x429   : > { %v14932_v21 = vadd.s32 %v14920_v57, %v14913_v25  ;;  %vm4010_vm3 = vcmp.gt.s32.totalorder %v4009_v35, 0  ;;  %v3865_v10 = vshrl.u32 %v3847_v48, %v3863_v26  ;;  %v10490_v61 = vpack.c.bf16 %v7445_v31, %v7443_v60 }
 0x42a   : > { %v3868_v9 = vadd.s32 127, %v3867_v54  ;;  %v3954_v20 = vsel %vm3952_vm8, %v3953_v52, %v14921_v24  ;;  %v4011_v50 = vsel %vm4010_vm3, %v4009_v35, 0  ;;  %v10492_v11 = vpack.c.bf16 %v7450_v63, %v7448_v1 }
 0x42b   : > { %v3955_v33 = vadd.s32 %v3954_v20, %v3950_v53  ;;  %v4013_v37 = vand.u32 31, %v4011_v50  ;;  %10487 = vmatpush1.bf16.msra.mxu1 %v10486_v47  ;;  %v3866_v42 = vor.u32 %v3865_v10, %v3864_v56  ;;  %v14942_v32 = vshrl.u32 %v4011_v50, 5 }
 0x42c   : > { %v3869_v62 = vshll.u32 %v3868_v9, 23  ;;  %10489 = vmatprep.subr.bf16.mxu1 %v10488_v39  ;;  %v10494_v54 = vpack.c.bf16 %v7449_v28, %v7447_v23  ;;  %v10496_v57 = vpack.c.bf16 %v7454_v16, %v7452_v40  ;;  %v10498_v24 = vpack.c.bf16 %v14940_v41, %v14938_v29 }
 0x42d   : > { %v3956_v48 = vadd.s32 536870912, %v3955_v33  ;;  %v4014_v25 = vsub.s32 32, %v4013_v37  ;;  %v3873_v26 = vcvt.s32.f32 %v3866_v42  ;;  %v4016_v53 = vshll.u32 %v17046_v13, %v4013_v37 }
 0x42e   : > { %v3870_v35 = vor.u32 4788187, %v3869_v62  ;;  %v4019_v47 = vshll.u32 %v17034_v3, %v4013_v37  ;;  %v14948_v60 = vpop.eup %11185  ;;  %v4022_v39 = vshll.u32 %v17054_v38, %v4013_v37  ;;  %v4025_v63 = vshll.u32 %v17035_v4, %v4013_v37 }
 0x42f   : > { %v3957_v1 = vshrl.u32 %v3956_v48, 30  ;;  %v4017_v56 = vshrl.u32 %v17034_v3, %v4014_v25  ;;  %v4020_v52 = vshrl.u32 %v17054_v38, %v4014_v25  ;;  %10491 = vmatpush1.bf16.msra.mxu1 %v10490_v61  ;;  %v14954_v31 = vpop.eup %11187  ;;  %v4023_v42 = vshrl.u32 %v17035_v4, %v4014_v25 }
 0x430   : > { %v3871_v62 = vand.u32 2147483647, %v3870_v35  ;;  %v4026_v23 = vshrl.u32 %v17036_v43, %v4014_v25  ;;  %10493 = vmatprep.subr.bf16.mxu1 %v10492_v11  ;;  %v4028_v3 = vshll.u32 %v17036_v43, %v4013_v37  ;;  %v4029_v38 = vshrl.u32 %v17038_v6, %v4014_v25 }
 0x431   : > { %v3958_v28 = vshll.u32 %v3957_v1, 30  ;;  %v4018_v40 = vor.u32 %v4017_v56, %v4016_v53  ;;  %v4021_v10 = vor.u32 %v4020_v52, %v4019_v47  ;;  %v4024_v20 = vor.u32 %v4023_v42, %v4022_v39 }
 0x432   : > { %v3874_v9 = vmul.f32 %v3873_v26, %v3871_v62  ;;  %v4027_v50 = vor.u32 %v4026_v23, %v4025_v63  ;;  %v3981_v16 = vsub.s32 4, %v3957_v1  ;;  %v4015_v29 = vshrl.u32 %v17046_v13, %v4014_v25  ;;  %v17283_v62 = vld [vmem:[#allocation34_spill] sm:$0xff] }
 0x433   : > { %v14961_v61 = vsub.s32 %v3955_v33, %v3958_v28  ;;  %vm4031_vm0 = vcmp.lt.s32.totalorder %v14942_v32, 1  ;;  %10495 = vmatpush1.bf16.msra.mxu1 %v10494_v54  ;;  %v4030_v11 = vor.u32 %v4029_v38, %v4028_v3  ;;  %vm4032_vm14 = vcmp.lt.s32.totalorder %v14942_v32, 2 }
 0x434   : > { %v3875_v4 = vxor.u32 2147483648, %v3874_v9  ;;  %vm4034_vm8 = vcmp.lt.s32.totalorder %v14942_v32, 4  ;;  %10497 = vmatprep.subr.bf16.mxu1 %v10496_v57  ;;  %vm4033_vm3 = vcmp.lt.s32.totalorder %v14942_v32, 3  ;;  %v4039_v13 = vsel %vm4031_vm0, %v4018_v40, %v4021_v10 }
 0x435   : > { %v3961_v43 = vsub.s32 0, %v14961_v61  ;;  %v4036_v6 = vsel %vm4034_vm8, %v4024_v20, 2102212464  ;;  %vm17280_vm10 = vcmp.lt.s32.totalorder %v14136_v15, 0  ;;  %v4035_v33 = vsel %vm4031_vm0, %v4015_v29, %v4018_v40  ;;  %v17287_v29 = vld [vmem:[#allocation46_spill] sm:$0xff] }
 0x436   : > { %v3876_v41 = vsel %vm17280_vm10, %v3875_v4, %v3874_v9  ;;  %v4037_v37 = vsel %vm4033_vm3, %v4021_v10, %v4036_v6  ;;  %v4040_v54 = vsel %vm4034_vm8, %v4027_v50, 920167782  ;;  %v4043_v35 = vsel %vm4031_vm0, %v4021_v10, %v4024_v20  ;;  %v17284_v10 = vld [vmem:[#allocation25_spill] sm:$0xff]  ;;  %v7400_v4 = vld [vmem:[%s16672_s2 + $0x8] sm:$0xff] }
 0x437   : > { %v3879_v48 = vsel %vm14874_vm2, %v14136_v15, %v3876_v41  ;;  %v10128_v25 = vmin.u32 %v3961_v43, %v14961_v61  ;;  %v4041_v57 = vsel %vm4033_vm3, %v4024_v20, %v4040_v54  ;;  %10499 = vmatpush1.bf16.msra.mxu1 %v10498_v24  ;;  %vm17281_vm10 = vcmp.lt.s32.totalorder %v14224_v22, 0 }
 0x438   : > { %v14991_v26 = vsel %vm17281_vm10, %v3981_v16, %v3957_v1  ;;  %v4042_v53 = vsel %vm4032_vm14, %v4039_v13, %v4041_v57  ;;  %v4044_v7 = vsel %vm4034_vm8, %v4030_v11, 1326507024  ;;  %v17282_v47 = vor.u32 8388608, %v14925_v12  ;;  %v17289_v13 = vld [vmem:[#allocation49_spill] sm:$0xff] }
 0x439   : > { %v3963_v52 = vclz %v10128_v25  ;;  %v4038_v39 = vsel %vm4032_vm14, %v4035_v33, %v4037_v37  ;;  %v4045_v24 = vsel %vm4033_vm3, %v4027_v50, %v4044_v7  ;;  %v965_v42 = vsub.s32 4, %v17283_v62 }
 0x43a   : > { %v4047_v56 = vshll.u32 %v17282_v47, 8  ;;  %11189 = vcosq.f32 %v3879_v48  ;;  %v4046_v1 = vsel %vm4032_vm14, %v4043_v35, %v4045_v24  ;;  %vm17285_vm2 = vcmp.lt.s32.totalorder %v17284_v10, 0  ;;  %v17290_v24 = vld [vmem:[#allocation24_spill] sm:$0xff] }
 0x43b   : > { %v10129_v28 = vadd.s32 4294967294, %v3963_v52  ;;  %v966_v3 = vsel %vm17285_vm2, %v965_v42, %v17283_v62  ;;  %11191 = vsinq.f32 %v3879_v48  ;;  %v976_v38 = vxor.u32 2147483648, %v12883_v27 }
 0x43c   : > { %v15006_v63 = vmul.u32.u64.low %v4047_v56, %v4042_v53  ;;  %v15007_v23 = vmul.u32.u64.high %v4047_v56, %v4042_v53, %v15006_v63  ;;  %v15009_v40 = vmul.u32.u64.low %v4047_v56, %v4046_v1  ;;  %v15010_v12 = vmul.u32.u64.high %v4047_v56, %v4046_v1, %v15009_v40 }
 0x43d   : > { %v4054_v9 = vmul.u32 %v4047_v56, %v4038_v39  ;;  %v968_v50 = vsel %vm12696_vm6, 0, %v966_v3  ;;  %vm10130_vm0 = vcmp.lt.s32.totalorder %v10129_v28, 0  ;;  %v864_v11 = vsel %vm12590_vm4, 0, %v17287_v29 }
 0x43e   : > { %v972_v32 = vadd.s32 3, %v968_v50  ;;  %v4299_v16 = vand.u32 3, %v968_v50  ;;  %v3966_v43 = vsel %vm10130_vm0, 0, %v10129_v28  ;;  %v4057_v6 = vadd.s32 1, %v15007_v23 }
 0x43f   : > { %vm971_vm14 = vweird.f32 %v17284_v10  ;;  %v979_v41 = vxor.u32 2147483648, %v17289_v13  ;;  %v3967_v33 = vsub.s32 32, %v3966_v43  ;;  %v3971_v37 = vsub.s32 4294967266, %v3966_v43 }
 0x440   : > { %v868_v54 = vadd.s32 3, %v864_v11  ;;  %v3968_v48 = vshll.u32 %v14961_v61, %v3966_v43  ;;  %vm4056_vm6 = vc.u32 %v15010_v12, %v15006_v63  ;;  %v973_v25 = vand.u32 3, %v972_v32 }
 0x441   : > { %vm4301_vm3 = vcmp.eq.s32.totalorder %v4299_v16, 0  ;;  %v3969_v57 = vshrl.u32 %v14932_v21, %v3967_v33  ;;  %v3972_v35 = vadd.s32 127, %v3971_v37  ;;  %v4058_v53 = vsel %vm4056_vm6, %v4057_v6, %v15007_v23  ;;  %v17297_v37 = vld [vmem:[#allocation40_spill] sm:$0xff] }
 0x442   : > { %v4303_v7 = vsel %vm4301_vm3, %v17289_v13, %v976_v38  ;;  %vm16866_vm4 = vcmp.lt.s32.totalorder %v14333_v2, 0  ;;  %v4059_v47 = vadd.s32 %v4058_v53, %v4054_v9  ;;  %vm974_vm10 = vcmp.lt.s32.totalorder %v973_v25, 2 }
 0x443   : > { %vm975_vm2 = vcmp.eq.s32.totalorder %v973_v25, 0  ;;  %vm978_vm0 = vcmp.eq.s32.totalorder %v973_v25, 2  ;;  %v3970_v56 = vor.u32 %v3969_v57, %v3968_v48  ;;  %v3973_v52 = vshll.u32 %v3972_v35, 23 }
 0x444   : > { %v977_v61 = vsel %vm975_vm2, %v17289_v13, %v976_v38  ;;  %v980_v39 = vsel %vm978_vm0, %v979_v41, %v12883_v27  ;;  %vm867_vm8 = vweird.f32 %v17290_v24  ;;  %v15033_v21 = vpop.eup %11189  ;;  %v4060_v62 = vadd.s32 536870912, %v4059_v47  ;;  %v7401_v13 = vld [vmem:[%s16672_s2 + $0x10] sm:$0xff] }
 0x445   : > { %v981_v42 = vsel %vm974_vm10, %v977_v61, %v980_v39  ;;  %vm4304_vm6 = vcmp.eq.s32.totalorder %v4299_v16, 2  ;;  %v869_v1 = vand.u32 3, %v868_v54  ;;  %v17291_v23 = vand.u32 2147483647, %v14224_v22  ;;  %v15044_v20 = vpop.eup %11191 }
 0x446   : > { %v3974_v40 = vor.u32 4788187, %v3973_v52  ;;  %v982_v3 = vsel %vm971_vm14, nan, %v981_v42  ;;  %vm4300_vm2 = vcmp.lt.s32.totalorder %v4299_v16, 2  ;;  %v4306_v9 = vsel %vm4304_vm6, %v979_v41, %v12883_v27  ;;  %v7402_v16 = vld [vmem:[%s16672_s2 + $0x18] sm:$0xff]  ;;  %v7399_v27 = vld [vmem:[%s16672_s2] sm:$0xff] }
 0x447   : > { %vm15037_vm3 = vcmp.le.f32.partialorder %v17291_v23, 0.7853982  ;;  %v3977_v50 = vcvt.s32.f32 %v3970_v56  ;;  %v15047_v38 = vadd.s32 %v15006_v63, %v15010_v12  ;;  %v4061_v32 = vshrl.u32 %v4060_v62, 30  ;;  %v17296_v12 = vld [vmem:[#allocation43_spill] sm:$0xff] }
 0x448   : > { %v4307_v29 = vsel %vm4300_vm2, %v4303_v7, %v4306_v9  ;;  %vm17294_vm10 = vcmask 523264   ;;  %v3975_v43 = vand.u32 2147483647, %v3974_v40  ;;  %vm871_vm0 = vcmp.eq.s32.totalorder %v869_v1, 0 }
 0x449   : > { %10263 = vmatprep.mubr.msk.f32.mxu1 %vm17294_vm10, %v982_v3  ;;  %v15061_v63 = vsel %vm971_vm14, nan, %v4307_v29  ;;  %v872_v6 = vxor.u32 2147483648, %v17296_v12  ;;  %v4062_v41 = vshll.u32 %v4061_v32, 30  ;;  %v4085_v33 = vsub.s32 4, %v4061_v32 }
 0x44a   : > { %17295 = vst [vmem:[#allocation34_spill] sm:$0xff] %v15061_v63  ;;  %v875_v54 = vxor.u32 2147483648, %v17297_v37  ;;  %v4196_v48 = vand.u32 3, %v864_v11  ;;  %v3978_v25 = vmul.f32 %v3977_v50, %v3975_v43  ;;  %vm874_vm6 = vcmp.eq.s32.totalorder %v869_v1, 2  ;;  %v17300_v50 = vld [vmem:[#allocation56_spill] sm:$0xff] }
 0x44b   : > { %v873_v57 = vsel %vm871_vm0, %v17297_v37, %v872_v6  ;;  %v10500_v35 = vpack.c.bf16 %v7402_v16, %v7400_v4  ;;  %v15069_v10 = vsub.s32 %v4059_v47, %v4062_v41  ;;  %vm870_vm14 = vcmp.lt.s32.totalorder %v869_v1, 2  ;;  %v17299_v1 = vld [vmem:[#allocation48_spill] sm:$0xff]  ;;  %v17302_v16 = vld [vmem:[#allocation53_spill] sm:$0xff] }
 0x44c   : > { %v876_v53 = vsel %vm874_vm6, %v875_v54, %v17296_v12  ;;  %v10502_v7 = vpack.c.bf16 %v7401_v13, %v7399_v27  ;;  %v3979_v56 = vxor.u32 2147483648, %v3978_v25  ;;  %v15074_v52 = vsel %vm16866_vm4, %v4085_v33, %v4061_v32 }
 0x44d   : > { %v877_v61 = vsel %vm870_vm14, %v873_v57, %v876_v53  ;;  %vm4198_vm2 = vcmp.eq.s32.totalorder %v4196_v48, 0  ;;  %10501 = vmatprep.subr.bf16.mxu1 %v10500_v35  ;;  %v4065_v11 = vsub.s32 0, %v15069_v10  ;;  %vm4201_vm10 = vcmp.eq.s32.totalorder %v4196_v48, 2  ;;  %v17307_v35 = vld [vmem:[#allocation26_spill] sm:$0xff] }
 0x44e   : > { %v878_v39 = vsel %vm867_vm8, nan, %v877_v61  ;;  %v4200_v47 = vsel %vm4198_vm2, %v17297_v37, %v872_v6  ;;  %vm17298_vm0 = vcmp.lt.s32.totalorder %v14224_v22, 0  ;;  %vm4197_vm6 = vcmp.lt.s32.totalorder %v4196_v48, 2  ;;  %v17304_v6 = vld [vmem:[#allocation47_spill] sm:$0xff] }
 0x44f   : > { %v3980_v62 = vsel %vm17298_vm0, %v3979_v56, %v3978_v25  ;;  %v4203_v42 = vsel %vm4201_vm10, %v875_v54, %v17296_v12  ;;  %7569 = vmatmul.mubr.f32.vlgmr.msra.gmra.mrb[0].mxu1 %v878_v39  ;;  %v1180_v23 = vadd.s32 3, %v17299_v1  ;;  %v10132_v3 = vmin.u32 %v4065_v11, %v15069_v10  ;;  %v17303_v12 = vld [vmem:[#allocation27_spill] sm:$0xff]  ;;  %v17309_v11 = vld [vmem:[#allocation58_spill] sm:$0xff] }
 0x450   : > { %v3983_v40 = vsel %vm15037_vm3, %v14224_v22, %v3980_v62  ;;  %v4204_v9 = vsel %vm4197_vm6, %v4200_v47, %v4203_v42  ;;  %10503 = vmatpush1.bf16.msra.mxu1 %v10502_v7  ;;  %v16872_v32 = vxor.u32 2147483648, %v17300_v50  ;;  %v16871_v27 = vxor.u32 2147483648, %v17302_v16  ;;  %v17306_v48 = vld [vmem:[#allocation51_spill] sm:$0xff]  ;;  %v17308_v7 = vld [vmem:[#allocation50_spill] sm:$0xff] }
 0x451   : > { %11193 = vcosq.f32 %v3983_v40  ;;  %v15091_v29 = vsel %vm867_vm8, nan, %v4204_v9  ;;  %v1181_v4 = vand.u32 3, %v1180_v23  ;;  %v4067_v43 = vclz %v10132_v3 }
 0x452   : > { %17301 = vst [vmem:[#allocation25_spill] sm:$0xff] %v15091_v29  ;;  %11195 = vsinq.f32 %v3983_v40  ;;  %vm1179_vm14 = vweird.f32 %v17303_v12  ;;  %v15098_v41 = vsel %vm12782_vm12, 0, %v17304_v6  ;;  %v16870_v25 = vxor.u32 2147483648, %v17306_v48 }
 0x453   : > { %vm1182_vm2 = vcmp.lt.s32.totalorder %v1181_v4, 2  ;;  %vm1183_vm10 = vcmp.eq.s32.totalorder %v1181_v4, 0  ;;  %vm1186_vm0 = vcmp.eq.s32.totalorder %v1181_v4, 2  ;;  %v1076_v33 = vadd.s32 3, %v15098_v41 }
 0x454   : > { %v10133_v24 = vadd.s32 4294967294, %v4067_v43  ;;  %v1185_v37 = vsel %vm1183_vm10, %v17302_v16, %v16872_v32  ;;  %v1188_v54 = vsel %vm1186_vm0, %v16871_v27, %v17300_v50  ;;  %vm16875_vm12 = vweird.f32 %v17307_v35  ;;  %v17325_v27 = vld [vmem:[#allocation70_spill] sm:$0xff] }
 0x455   : > { %v1189_v57 = vsel %vm1182_vm2, %v1185_v37, %v1188_v54  ;;  %v1077_v53 = vand.u32 3, %v1076_v33  ;;  %v16869_v56 = vxor.u32 2147483648, %v17308_v7  ;;  %vm16874_vm6 = vweird.f32 %v12341_v51  ;;  %v17320_v37 = vld [vmem:[#allocation57_spill] sm:$0xff]  ;;  %v17333_v51 = vld [vmem:[#allocation30_spill] sm:$0xff] }
 0x456   : > { %vm10134_vm8 = vcmp.lt.s32.totalorder %v10133_v24, 0  ;;  %v1190_v61 = vsel %vm1179_vm14, nan, %v1189_v57  ;;  %v1388_v39 = vadd.s32 3, %v17309_v11  ;;  %vm17310_vm10 = vcmask 523264  }
 0x457   : > { %v4070_v47 = vsel %vm10134_vm8, 0, %v10133_v24  ;;  %10264 = vmatprep.mubr.msk.f32.mxu1 %vm17310_vm10, %v1190_v61  ;;  %vm1078_vm0 = vcmp.lt.s32.totalorder %v1077_v53, 2  ;;  %vm1079_vm4 = vcmp.eq.s32.totalorder %v1077_v53, 0  ;;  %v16868_v62 = vxor.u32 2147483648, %v13248_v58  ;;  %v17311_v24 = vld [vmem:[#allocation54_spill] sm:$0xff] }
 0x458   : > { %v4071_v42 = vsub.s32 32, %v4070_v47  ;;  %v4075_v23 = vsub.s32 4294967266, %v4070_v47  ;;  %v1081_v40 = vsel %vm1079_vm4, %v17308_v7, %v16870_v25  ;;  %vm1082_vm2 = vcmp.eq.s32.totalorder %v1077_v53, 2 }
 0x459   : > { %v4072_v3 = vshll.u32 %v15069_v10, %v4070_v47  ;;  %v1084_v9 = vsel %vm1082_vm2, %v16869_v56, %v17306_v48  ;;  %v1389_v4 = vand.u32 3, %v1388_v39  ;;  %v16867_v43 = vxor.u32 2147483648, %v13169_v30  ;;  %v17324_v56 = vld [vmem:[#allocation73_spill] sm:$0xff] }
 0x45a   : > { %v4073_v6 = vshrl.u32 %v15047_v38, %v4071_v42  ;;  %v4076_v13 = vadd.s32 127, %v4075_v23  ;;  %v1085_v33 = vsel %vm1078_vm0, %v1081_v40, %v1084_v9  ;;  %v15128_v54 = vsel %vm12902_vm11, 0, %v17311_v24  ;;  %v17315_v23 = vld [vmem:[#allocation28_spill] sm:$0xff]  ;;  %v17316_v9 = vld [vmem:[#allocation61_spill] sm:$0xff] }
 0x45b   : > { %v15130_v57 = vpop.eup %11193  ;;  %v1086_v10 = vsel %vm16875_vm12, nan, %v1085_v33  ;;  %vm1390_vm4 = vcmp.lt.s32.totalorder %v1389_v4, 2  ;;  %vm1391_vm8 = vcmp.eq.s32.totalorder %v1389_v4, 0  ;;  %vm1394_vm10 = vcmp.eq.s32.totalorder %v1389_v4, 2  ;;  %v17326_v4 = vld [vmem:[#allocation59_spill] sm:$0xff] }
 0x45c   : > { %17313 = vst [vmem:[#allocation41_spill] sm:$0xff] %v15130_v57  ;;  %v15134_v53 = vpop.eup %11195  ;;  %v4074_v61 = vor.u32 %v4073_v6, %v4072_v3  ;;  %v4077_v39 = vshll.u32 %v4076_v13, 23  ;;  %7575 = vmatmul.mubr.f32.gmra.mrb[2].mxu1 %v1086_v10  ;;  %v1393_v38 = vsel %vm1391_vm8, %v13169_v30, %v16868_v62  ;;  %v1396_v47 = vsel %vm1394_vm10, %v16867_v43, %v13248_v58  ;;  %v17323_v43 = vld [vmem:[#allocation65_spill] sm:$0xff] }
 0x45d   : > { %17314 = vst [vmem:[#allocation46_spill] sm:$0xff] %v15134_v53  ;;  %v1397_v42 = vsel %vm1390_vm4, %v1393_v38, %v1396_v47  ;;  %vm16877_vm11 = vweird.f32 %v17315_v23  ;;  %v1284_v40 = vadd.s32 3, %v15128_v54  ;;  %v17317_v33 = vand.u32 2147483647, %v14333_v2  ;;  %v17322_v47 = vld [vmem:[#allocation31_spill] sm:$0xff] }
 0x45e   : > { %v4078_v6 = vor.u32 4788187, %v4077_v39  ;;  %v4081_v13 = vcvt.s32.f32 %v4074_v61  ;;  %v1398_v24 = vsel %vm16874_vm6, nan, %v1397_v42  ;;  %vm17321_vm2 = vcmask 523264   ;;  %v17328_v42 = vld [vmem:[#allocation69_spill] sm:$0xff] }
 0x45f   : > { %vm15147_vm0 = vcmp.le.f32.partialorder %v17317_v33, 0.7853982  ;;  %10265 = vmatprep.mubr.msk.f32.mxu1 %vm17321_vm2, %v1398_v24  ;;  %v1285_v38 = vand.u32 3, %v1284_v40  ;;  %vm1595_vm4 = vweird.f32 %v17322_v47  ;;  %v1596_v62 = vadd.s32 3, %v17323_v43  ;;  %v17340_v47 = vld [vmem:[#allocation67_spill] sm:$0xff] }
 0x460   : > { %v4079_v33 = vand.u32 2147483647, %v4078_v6  ;;  %v15162_v61 = vsel %vm13149_vm1, 0, %v17326_v4  ;;  %v17329_v10 = vxor.u32 2147483648, %v17316_v9  ;;  %v17330_v6 = vxor.u32 2147483648, %v17320_v37 }
 0x461   : > { %vm1286_vm8 = vcmp.lt.s32.totalorder %v1285_v38, 2  ;;  %vm1287_vm10 = vcmp.eq.s32.totalorder %v1285_v38, 0  ;;  %vm1290_vm2 = vcmp.eq.s32.totalorder %v1285_v38, 2  ;;  %v1597_v40 = vand.u32 3, %v1596_v62 }
 0x462   : > { %v4082_v24 = vmul.f32 %v4081_v13, %v4079_v33  ;;  %v1289_v29 = vsel %vm1287_vm10, %v17320_v37, %v17329_v10  ;;  %v1292_v32 = vsel %vm1290_vm2, %v17330_v6, %v17316_v9  ;;  %v1492_v25 = vadd.s32 3, %v15162_v61 }
 0x463   : > { %v1293_v39 = vsel %vm1286_vm8, %v1289_v29, %v1292_v32  ;;  %vm1598_vm1 = vcmp.lt.s32.totalorder %v1597_v40, 2  ;;  %vm1599_vm6 = vcmp.eq.s32.totalorder %v1597_v40, 0  ;;  %vm1602_vm12 = vcmp.eq.s32.totalorder %v1597_v40, 2  ;;  %v17334_v29 = vld [vmem:[#allocation68_spill] sm:$0xff] }
 0x464   : > { %v4083_v4 = vxor.u32 2147483648, %v4082_v24  ;;  %v1294_v38 = vsel %vm16877_vm11, nan, %v1293_v39  ;;  %v17331_v62 = vxor.u32 2147483648, %v17324_v56  ;;  %v17332_v10 = vxor.u32 2147483648, %v17325_v27 }
 0x465   : > { %7581 = vmatmul.mubr.f32.gmra.mrb[4].mxu1 %v1294_v38  ;;  %vm1491_vm10 = vweird.f32 %v17333_v51  ;;  %v1493_v32 = vand.u32 3, %v1492_v25  ;;  %v16880_v63 = vxor.u32 2147483648, %v17334_v29  ;;  %vm17335_vm8 = vcmp.lt.s32.totalorder %v14333_v2, 0  ;;  %v17346_v51 = vld [vmem:[#allocation36_spill] sm:$0xff] }
 0x466   : > { %v1601_v13 = vsel %vm1599_vm6, %v17325_v27, %v17331_v62  ;;  %v1604_v33 = vsel %vm1602_vm12, %v17332_v10, %v17324_v56  ;;  %v4084_v40 = vsel %vm17335_vm8, %v4083_v4, %v4082_v24  ;;  %vm16891_vm2 = vweird.f32 %v12429_v46  ;;  %v17336_v62 = vld [vmem:[#allocation71_spill] sm:$0xff] }
 0x467   : > { %v1605_v6 = vsel %vm1598_vm1, %v1601_v13, %v1604_v33  ;;  %v1804_v23 = vadd.s32 3, %v17336_v62  ;;  %v4087_v38 = vsel %vm15147_vm0, %v14333_v2, %v4084_v40  ;;  %vm17337_vm12 = vcmask 523264   ;;  %v17376_v56 = vld [vmem:[#allocation95_spill] sm:$0xff] }
 0x468   : > { %v1606_v39 = vsel %vm1595_vm4, nan, %v1605_v6  ;;  %vm1495_vm6 = vcmp.eq.s32.totalorder %v1493_v32, 0  ;;  %vm1498_vm1 = vcmp.eq.s32.totalorder %v1493_v32, 2  ;;  %v16882_v25 = vxor.u32 2147483648, %v13506_v36  ;;  %v17339_v6 = vld [vmem:[#allocation81_spill] sm:$0xff] }
 0x469   : > { %10266 = vmatprep.mubr.msk.f32.mxu1 %vm17337_vm12, %v1606_v39  ;;  %vm1494_vm11 = vcmp.lt.s32.totalorder %v1493_v32, 2  ;;  %v17338_v24 = vxor.u32 2147483648, %v17328_v42  ;;  %v1500_v13 = vsel %vm1498_vm1, %v16880_v63, %v17328_v42  ;;  %v1805_v10 = vand.u32 3, %v1804_v23  ;;  %v17354_v63 = vld [vmem:[#allocation84_spill] sm:$0xff] }
 0x46a   : > { %11197 = vcosq.f32 %v4087_v38  ;;  %v16884_v40 = vxor.u32 2147483648, %v17339_v6  ;;  %v15203_v27 = vsel %vm13191_vm9, 0, %v17340_v47  ;;  %vm17348_vm1 = vcmask 523264  }
 0x46b   : > { %v1497_v4 = vsel %vm1495_vm6, %v17334_v29, %v17338_v24  ;;  %17342 = vst [vmem:[#allocation37_spill] sm:$0xff] %v15203_v27  ;;  %11199 = vsinq.f32 %v4087_v38  ;;  %vm1807_vm8 = vcmp.eq.s32.totalorder %v1805_v10, 0  ;;  %vm1810_vm12 = vcmp.eq.s32.totalorder %v1805_v10, 2  ;;  %v17344_v38 = vld [vmem:[#allocation76_spill] sm:$0xff] }
 0x46c   : > { %v1501_v33 = vsel %vm1494_vm11, %v1497_v4, %v1500_v13  ;;  %vm1806_vm6 = vcmp.lt.s32.totalorder %v1805_v10, 2  ;;  %v1809_v23 = vsel %vm1807_vm8, %v17339_v6, %v16882_v25  ;;  %v1812_v24 = vsel %vm1810_vm12, %v16884_v40, %v13506_v36  ;;  %v17343_v13 = vld [vmem:[#allocation32_spill] sm:$0xff]  ;;  %v17349_v40 = vld [vmem:[#allocation89_spill] sm:$0xff] }
 0x46d   : > { %v1502_v32 = vsel %vm1491_vm10, nan, %v1501_v33  ;;  %v1700_v4 = vadd.s32 3, %v15203_v27  ;;  %v1813_v47 = vsel %vm1806_vm6, %v1809_v23, %v1812_v24  ;;  %vm1699_vm9 = vweird.f32 %v17343_v13  ;;  %v17345_v33 = vld [vmem:[#allocation74_spill] sm:$0xff]  ;;  %v17347_v25 = vld [vmem:[#allocation80_spill] sm:$0xff] }
 0x46e   : > { %7587 = vmatmul.mubr.f32.gmra.mrb[6].mxu1 %v1502_v32  ;;  %v1814_v10 = vsel %vm16891_vm2, nan, %v1813_v47  ;;  %vm16899_vm11 = vweird.f32 %v17346_v51  ;;  %v2012_v29 = vadd.s32 3, %v17347_v25  ;;  %v17350_v36 = vld [vmem:[#allocation88_spill] sm:$0xff]  ;;  %v17351_v24 = vld [vmem:[#allocation78_spill] sm:$0xff]  ;;  %v17355_v47 = vxor.u32 2147483648, %v17344_v38  ;;  %v17357_v25 = vld [vmem:[#allocation83_spill] sm:$0xff] }
 0x46f   : > { %v1701_v32 = vand.u32 3, %v1700_v4  ;;  %10267 = vmatprep.mubr.msk.f32.mxu1 %vm17348_vm1, %v1814_v10  ;;  %v15227_v39 = vsel %vm13414_vm7, 0, %v17351_v24  ;;  %v17356_v10 = vxor.u32 2147483648, %v17345_v33  ;;  %v17366_v13 = vld [vmem:[#allocation98_spill] sm:$0xff]  ;;  %v2428_v35 = vadd.s32 3, %v17376_v56 }
 0x470   : > { %17353 = vst [vmem:[#allocation49_spill] sm:$0xff] %v15227_v39  ;;  %v2013_v4 = vand.u32 3, %v2012_v29  ;;  %v1908_v23 = vadd.s32 3, %v15227_v39  ;;  %v17358_v29 = vxor.u32 2147483648, %v17349_v40  ;;  %v17362_v39 = vld [vmem:[#allocation99_spill] sm:$0xff]  ;;  %v16976_v3 = vxor.u32 2147483648, %v14954_v31 }
 0x471   : > { %vm1702_vm8 = vcmp.lt.s32.totalorder %v1701_v32, 2  ;;  %vm1703_vm12 = vcmp.eq.s32.totalorder %v1701_v32, 0  ;;  %vm1706_vm6 = vcmp.eq.s32.totalorder %v1701_v32, 2  ;;  %v17494_v12 = vxor.u32 2147483648, %v13248_v58 }
 0x472   : > { %v1705_v46 = vsel %vm1703_vm12, %v17345_v33, %v17355_v47  ;;  %v1708_v6 = vsel %vm1706_vm6, %v17356_v10, %v17344_v38  ;;  %vm2014_vm7 = vcmp.lt.s32.totalorder %v2013_v4, 2  ;;  %vm2015_vm1 = vcmp.eq.s32.totalorder %v2013_v4, 0 }
 0x473   : > { %v1709_v24 = vsel %vm1702_vm8, %v1705_v46, %v1708_v6  ;;  %vm2018_vm2 = vcmp.eq.s32.totalorder %v2013_v4, 2  ;;  %v2017_v27 = vsel %vm2015_vm1, %v17350_v36, %v17358_v29  ;;  %v17359_v47 = vxor.u32 2147483648, %v17350_v36  ;;  %v17360_v46 = vld [vmem:[#allocation35_spill] sm:$0xff]  ;;  %v17361_v6 = vld [vmem:[#allocation93_spill] sm:$0xff] }
 0x474   : > { %v1710_v32 = vsel %vm1699_vm9, nan, %v1709_v24  ;;  %v1909_v10 = vand.u32 3, %v1908_v23  ;;  %v15246_v38 = vpop.eup %11197  ;;  %vm16912_vm8 = vweird.f32 %v17360_v46  ;;  %v2220_v4 = vadd.s32 3, %v17361_v6  ;;  %v17383_v46 = vld [vmem:[#allocation42_spill] sm:$0xff] }
 0x475   : > { %v2020_v33 = vsel %vm2018_vm2, %v17359_v47, %v17349_v40  ;;  %7593 = vmatmul.mubr.f32.gmra.mrb[8].mxu1 %v1710_v32  ;;  %v15251_v24 = vpop.eup %11199  ;;  %vm17363_vm2 = vcmask 523264   ;;  %v17364_v23 = vxor.u32 2147483648, %v17354_v63  ;;  %v16907_v6 = vxor.u32 2147483648, %v17366_v13  ;;  %v17367_v40 = vld [vmem:[#allocation39_spill] sm:$0xff] }
 0x476   : > { %v2021_v42 = vsel %vm2014_vm7, %v2017_v27, %v2020_v33  ;;  %vm1910_vm12 = vcmp.lt.s32.totalorder %v1909_v10, 2  ;;  %vm1911_vm6 = vcmp.eq.s32.totalorder %v1909_v10, 0  ;;  %vm1914_vm1 = vcmp.eq.s32.totalorder %v1909_v10, 2 }
 0x477   : > { %v2022_v29 = vsel %vm16899_vm11, nan, %v2021_v42  ;;  %v1913_v27 = vsel %vm1911_vm6, %v17357_v25, %v17364_v23  ;;  %v17365_v33 = vxor.u32 2147483648, %v17357_v25  ;;  %v2221_v47 = vand.u32 3, %v2220_v4  ;;  %v17368_v42 = vld [vmem:[#allocation86_spill] sm:$0xff]  ;;  %v17372_v25 = vld [vmem:[#allocation97_spill] sm:$0xff] }
 0x478   : > { %10268 = vmatprep.mubr.msk.f32.mxu1 %vm17363_vm2, %v2022_v29  ;;  %vm16909_vm7 = vweird.f32 %v17367_v40  ;;  %v15267_v10 = vsel %vm13600_vm5, 0, %v17368_v42  ;;  %v17371_v29 = vld [vmem:[#allocation38_spill] sm:$0xff]  ;;  %v17373_v4 = vxor.u32 2147483648, %v17362_v39  ;;  %v17385_v62 = vxor.u32 2147483648, %v17372_v25 }
 0x479   : > { %v1916_v32 = vsel %vm1914_vm1, %v17365_v33, %v17354_v63  ;;  %17370 = vst [vmem:[#allocation24_spill] sm:$0xff] %v15267_v10  ;;  %vm16934_vm2 = vweird.f32 %v17371_v29  ;;  %vm2223_vm6 = vcmp.eq.s32.totalorder %v2221_v47, 0  ;;  %vm2226_vm11 = vcmp.eq.s32.totalorder %v2221_v47, 2  ;;  %v17374_v63 = vld [vmem:[#allocation96_spill] sm:$0xff]  ;;  %v17377_v33 = vld [vmem:[#allocation106_spill] sm:$0xff] }
 0x47a   : > { %v1917_v36 = vsel %vm1910_vm12, %v1913_v27, %v1916_v32  ;;  %vm2222_vm1 = vcmp.lt.s32.totalorder %v2221_v47, 2  ;;  %v2225_v27 = vsel %vm2223_vm6, %v17366_v13, %v17373_v4  ;;  %v2228_v51 = vsel %vm2226_vm11, %v16907_v6, %v17362_v39  ;;  %v17378_v4 = vld [vmem:[#allocation94_spill] sm:$0xff] }
 0x47b   : > { %v1918_v23 = vsel %vm16912_vm8, nan, %v1917_v36  ;;  %v2116_v32 = vadd.s32 3, %v15267_v10  ;;  %v2229_v42 = vsel %vm2222_vm1, %v2225_v27, %v2228_v51  ;;  %v17375_v36 = vld [vmem:[#allocation45_spill] sm:$0xff]  ;;  %v15289_v13 = vsel %vm13717_vm13, 0, %v17378_v4 }
 0x47c   : > { %7599 = vmatmul.mubr.f32.gmra.mrb[10].mxu1 %v1918_v23  ;;  %vm16927_vm5 = vweird.f32 %v17375_v36  ;;  %v2230_v47 = vsel %vm16909_vm7, nan, %v2229_v42  ;;  %17380 = vst [vmem:[#allocation43_spill] sm:$0xff] %v15289_v13  ;;  %vm17381_vm11 = vcmask 523264   ;;  %v2429_v27 = vand.u32 3, %v2428_v35  ;;  %v17382_v51 = vld [vmem:[#allocation105_spill] sm:$0xff]  ;;  %v17387_v35 = vld [vmem:[#allocation100_spill] sm:$0xff] }
 0x47d   : > { %v2117_v23 = vand.u32 3, %v2116_v32  ;;  %10269 = vmatprep.mubr.msk.f32.mxu1 %vm17381_vm11, %v2230_v47  ;;  %vm16925_vm12 = vweird.f32 %v17383_v46  ;;  %v2324_v39 = vadd.s32 3, %v15289_v13  ;;  %v17384_v32 = vld [vmem:[#allocation103_spill] sm:$0xff]  ;;  %v17386_v4 = vxor.u32 2147483648, %v17374_v63  ;;  %v17396_v46 = vld [vmem:[#allocation108_spill] sm:$0xff] }
 0x47e   : > { %vm2431_vm13 = vcmp.eq.s32.totalorder %v2429_v27, 0  ;;  %v16916_v6 = vxor.u32 2147483648, %v17387_v35  ;;  %v17388_v56 = vxor.u32 2147483648, %v17377_v33  ;;  %vm2434_vm11 = vcmp.eq.s32.totalorder %v2429_v27, 2 }
 0x47f   : > { %vm2118_vm6 = vcmp.lt.s32.totalorder %v2117_v23, 2  ;;  %vm2119_vm1 = vcmp.eq.s32.totalorder %v2117_v23, 0  ;;  %vm2122_vm7 = vcmp.eq.s32.totalorder %v2117_v23, 2  ;;  %v2325_v23 = vand.u32 3, %v2324_v39 }
 0x480   : > { %v2121_v37 = vsel %vm2119_vm1, %v17374_v63, %v17385_v62  ;;  %v2124_v47 = vsel %vm2122_vm7, %v17386_v4, %v17372_v25  ;;  %v2433_v13 = vsel %vm2431_vm13, %v17382_v51, %v17388_v56  ;;  %vm2430_vm8 = vcmp.lt.s32.totalorder %v2429_v27, 2  ;;  %v17390_v63 = vld [vmem:[#allocation104_spill] sm:$0xff] }
 0x481   : > { %v2125_v40 = vsel %vm2118_vm6, %v2121_v37, %v2124_v47  ;;  %v17389_v62 = vxor.u32 2147483648, %v17382_v51  ;;  %v2636_v4 = vadd.s32 3, %v17390_v63  ;;  %vm2326_vm7 = vcmp.lt.s32.totalorder %v2325_v23, 2 }
 0x482   : > { %v2126_v42 = vsel %vm16934_vm2, nan, %v2125_v40  ;;  %vm2327_vm6 = vcmp.eq.s32.totalorder %v2325_v23, 0  ;;  %vm2330_vm1 = vcmp.eq.s32.totalorder %v2325_v23, 2  ;;  %v17391_v39 = vxor.u32 2147483648, %v17384_v32  ;;  %v7404_v23 = vld [vmem:[%s16672_s2 + $0x28] sm:$0xff] }
 0x483   : > { %v2436_v10 = vsel %vm2434_vm11, %v17389_v62, %v17377_v33  ;;  %7605 = vmatmul.mubr.f32.gmra.mrb[12].mxu1 %v2126_v42  ;;  %v2332_v40 = vsel %vm2330_vm1, %v16916_v6, %v17384_v32  ;;  %v2637_v27 = vand.u32 3, %v2636_v4  ;;  %vm17392_vm13 = vcmask 523264   ;;  %v17393_v42 = vld [vmem:[#allocation101_spill] sm:$0xff]  ;;  %v17401_v6 = vld [vmem:[#allocation110_spill] sm:$0xff] }
 0x484   : > { %v2437_v25 = vsel %vm2430_vm8, %v2433_v13, %v2436_v10  ;;  %v2329_v37 = vsel %vm2327_vm6, %v17387_v35, %v17391_v39  ;;  %v16923_v13 = vxor.u32 2147483648, %v14179_v45  ;;  %v16922_v10 = vxor.u32 2147483648, %v14155_v44  ;;  %v7406_v62 = vld [vmem:[%s16672_s2 + $0x38] sm:$0xff] }
 0x485   : > { %v2438_v56 = vsel %vm16927_vm5, nan, %v2437_v25  ;;  %v2333_v47 = vsel %vm2326_vm7, %v2329_v37, %v2332_v40  ;;  %vm17394_vm8 = vnez %v17168_v55  ;;  %vm16924_vm11 = vweird.f32 %v13052_v8  ;;  %v7403_v55 = vld [vmem:[%s16672_s2 + $0x20] sm:$0xff] }
 0x486   : > { %10270 = vmatprep.mubr.msk.f32.mxu1 %vm17392_vm13, %v2438_v56  ;;  %v15326_v25 = vsel %vm17394_vm8, 0, %v17393_v42  ;;  %v2334_v4 = vsel %vm16925_vm12, nan, %v2333_v47  ;;  %vm2639_vm7 = vcmp.eq.s32.totalorder %v2637_v27, 0  ;;  %vm2642_vm6 = vcmp.eq.s32.totalorder %v2637_v27, 2  ;;  %v7405_v56 = vld [vmem:[%s16672_s2 + $0x30] sm:$0xff]  ;;  %v17395_v42 = vld [vmem:[#allocation109_spill] sm:$0xff] }
 0x487   : > { %7611 = vmatmul.mubr.f32.gmra.mrb[14].mxu1 %v2334_v4  ;;  %vm2638_vm1 = vcmp.lt.s32.totalorder %v2637_v27, 2  ;;  %v2641_v39 = vsel %vm2639_vm7, %v14155_v44, %v16923_v13  ;;  %v2644_v37 = vsel %vm2642_vm6, %v16922_v10, %v14179_v45  ;;  %v2532_v40 = vadd.s32 3, %v15326_v25  ;;  %v17397_v27 = vld [vmem:[#allocation55_spill] sm:$0xff]  ;;  %v17399_v10 = vld [vmem:[#allocation112_spill] sm:$0xff] }
 0x488   : > { %v2645_v47 = vsel %vm2638_vm1, %v2641_v39, %v2644_v37  ;;  %v16928_v36 = vxor.u32 2147483648, %v17396_v46  ;;  %v10504_v29 = vpack.c.bf16 %v7406_v62, %v7404_v23  ;;  %vm16933_vm13 = vweird.f32 %v17397_v27  ;;  %v17400_v37 = vld [vmem:[#allocation111_spill] sm:$0xff]  ;;  %v17404_v62 = vld [vmem:[#allocation120_spill] sm:$0xff]  ;;  %v17407_v39 = vld [vmem:[#allocation114_spill] sm:$0xff] }
 0x489   : > { %v2646_v4 = vsel %vm16924_vm11, nan, %v2645_v47  ;;  %v2533_v35 = vand.u32 3, %v2532_v40  ;;  %v10506_v32 = vpack.c.bf16 %v7405_v56, %v7403_v55  ;;  %vm17398_vm8 = vcmask 523264   ;;  %v17413_v27 = vld [vmem:[#allocation125_spill] sm:$0xff] }
 0x48a   : > { %10271 = vmatprep.mubr.msk.f32.mxu1 %vm17398_vm8, %v2646_v4  ;;  %10505 = vmatprep.subr.bf16.mxu1 %v10504_v29  ;;  %vm16941_vm7 = vweird.f32 %v13228_v34  ;;  %v2844_v13 = vadd.s32 3, %v17399_v10  ;;  %vm17402_vm6 = vnez %v17401_v6  ;;  %v17405_v56 = vxor.u32 2147483648, %v17395_v42  ;;  %v17415_v10 = vld [vmem:[#allocation116_spill] sm:$0xff]  ;;  %v17423_v34 = vld [vmem:[#allocation123_spill] sm:$0xff] }
 0x48b   : > { %v15362_v23 = vsel %vm17402_vm6, 0, %v17400_v37  ;;  %vm2534_vm1 = vcmp.lt.s32.totalorder %v2533_v35, 2  ;;  %vm2535_vm11 = vcmp.eq.s32.totalorder %v2533_v35, 0  ;;  %vm2538_vm12 = vcmp.eq.s32.totalorder %v2533_v35, 2  ;;  %10507 = vmatpush1.bf16.msra.mxu1 %v10506_v32  ;;  %v17406_v37 = vld [vmem:[#allocation62_spill] sm:$0xff]  ;;  %v17408_v35 = vld [vmem:[#allocation113_spill] sm:$0xff] }
 0x48c   : > { %17403 = vst [vmem:[#allocation40_spill] sm:$0xff] %v15362_v23  ;;  %v2537_v29 = vsel %vm2535_vm11, %v17396_v46, %v17405_v56  ;;  %v2540_v40 = vsel %vm2538_vm12, %v16928_v36, %v17395_v42  ;;  %v2845_v47 = vand.u32 3, %v2844_v13  ;;  %v2740_v4 = vadd.s32 3, %v15362_v23  ;;  %v17411_v46 = vld [vmem:[#allocation119_spill] sm:$0xff]  ;;  %v17414_v23 = vld [vmem:[#allocation117_spill] sm:$0xff] }
 0x48d   : > { %v2541_v6 = vsel %vm2534_vm1, %v2537_v29, %v2540_v40  ;;  %vm16940_vm8 = vweird.f32 %v17406_v37  ;;  %v17409_v56 = vxor.u32 2147483648, %v14352_v19  ;;  %v17410_v29 = vxor.u32 2147483648, %v17404_v62  ;;  %v17412_v32 = vld [vmem:[#allocation75_spill] sm:$0xff] }
 0x48e   : > { %v2542_v55 = vsel %vm16933_vm13, nan, %v2541_v6  ;;  %vm2846_vm6 = vcmp.lt.s32.totalorder %v2845_v47, 2  ;;  %vm2847_vm5 = vcmp.eq.s32.totalorder %v2845_v47, 0  ;;  %vm2850_vm11 = vcmp.eq.s32.totalorder %v2845_v47, 2 }
 0x48f   : > { %7617 = vmatmul.mubr.f32.gmra.mrb[16].mxu1 %v2542_v55  ;;  %v2849_v13 = vsel %vm2847_vm5, %v17404_v62, %v17409_v56  ;;  %v2852_v40 = vsel %vm2850_vm11, %v17410_v29, %v14352_v19  ;;  %v2741_v36 = vand.u32 3, %v2740_v4  ;;  %v3052_v8 = vadd.s32 3, %v17411_v46  ;;  %v17418_v56 = vld [vmem:[#allocation124_spill] sm:$0xff]  ;;  %v17427_v62 = vld [vmem:[#allocation127_spill] sm:$0xff] }
 0x490   : > { %v2853_v42 = vsel %vm2846_vm6, %v2849_v13, %v2852_v40  ;;  %vm16968_vm12 = vweird.f32 %v17412_v32  ;;  %vm17416_vm1 = vnez %v17415_v10  ;;  %vm17419_vm11 = vcmask 523264   ;;  %v17422_v46 = vld [vmem:[#allocation72_spill] sm:$0xff] }
 0x491   : > { %v15389_v55 = vsel %vm17416_vm1, 0, %v17414_v23  ;;  %v2854_v47 = vsel %vm16941_vm7, nan, %v2853_v42  ;;  %vm2743_vm5 = vcmp.eq.s32.totalorder %v2741_v36, 0  ;;  %vm2746_vm13 = vcmp.eq.s32.totalorder %v2741_v36, 2 }
 0x492   : > { %17417 = vst [vmem:[#allocation48_spill] sm:$0xff] %v15389_v55  ;;  %10272 = vmatprep.mubr.msk.f32.mxu1 %vm17419_vm11, %v2854_v47  ;;  %vm2742_vm2 = vcmp.lt.s32.totalorder %v2741_v36, 2  ;;  %v17420_v4 = vxor.u32 2147483648, %v17407_v39  ;;  %v17421_v40 = vxor.u32 2147483648, %v17408_v35  ;;  %v3053_v23 = vand.u32 3, %v3052_v8  ;;  %v17424_v36 = vld [vmem:[#allocation122_spill] sm:$0xff] }
 0x493   : > { %vm16946_vm6 = vweird.f32 %v17422_v46  ;;  %v2948_v42 = vadd.s32 3, %v15389_v55  ;;  %v16942_v29 = vxor.u32 2147483648, %v17424_v36  ;;  %vm17428_vm7 = vcmask 523264   ;;  %v17437_v46 = vld [vmem:[#allocation140_spill] sm:$0xff] }
 0x494   : > { %v2745_v13 = vsel %vm2743_vm5, %v17408_v35, %v17420_v4  ;;  %v2748_v10 = vsel %vm2746_vm13, %v17421_v40, %v17407_v39  ;;  %vm3055_vm1 = vcmp.eq.s32.totalorder %v3053_v23, 0  ;;  %vm3058_vm11 = vcmp.eq.s32.totalorder %v3053_v23, 2 }
 0x495   : > { %v2749_v6 = vsel %vm2742_vm2, %v2745_v13, %v2748_v10  ;;  %vm3054_vm5 = vcmp.lt.s32.totalorder %v3053_v23, 2  ;;  %v17425_v4 = vxor.u32 2147483648, %v17413_v27  ;;  %v17426_v13 = vxor.u32 2147483648, %v17418_v56 }
 0x496   : > { %v2750_v47 = vsel %vm16940_vm8, nan, %v2749_v6  ;;  %v2949_v10 = vand.u32 3, %v2948_v42  ;;  %v3260_v35 = vadd.s32 3, %v17427_v62  ;;  %v17429_v23 = vxor.u32 2147483648, %v17423_v34  ;;  %v17433_v6 = vld [vmem:[#allocation85_spill] sm:$0xff] }
 0x497   : > { %7623 = vmatmul.mubr.f32.gmra.mrb[18].mxu1 %v2750_v47  ;;  %v3057_v8 = vsel %vm3055_vm1, %v17418_v56, %v17425_v4  ;;  %v3060_v40 = vsel %vm3058_vm11, %v17426_v13, %v17413_v27  ;;  %v17430_v13 = vld [vmem:[#allocation121_spill] sm:$0xff]  ;;  %vm16949_vm11 = vweird.f32 %v17433_v6 }
 0x498   : > { %v3061_v55 = vsel %vm3054_vm5, %v3057_v8, %v3060_v40  ;;  %vm2950_vm2 = vcmp.lt.s32.totalorder %v2949_v10, 2  ;;  %vm2951_vm13 = vcmp.eq.s32.totalorder %v2949_v10, 0  ;;  %vm2954_vm8 = vcmp.eq.s32.totalorder %v2949_v10, 2  ;;  %v17431_v40 = vld [vmem:[#allocation126_spill] sm:$0xff]  ;;  %v17443_v6 = vld [vmem:[#allocation129_spill] sm:$0xff] }
 0x499   : > { %v3062_v47 = vsel %vm16968_vm12, nan, %v3061_v55  ;;  %v2953_v4 = vsel %vm2951_vm13, %v17424_v36, %v17429_v23  ;;  %v2956_v42 = vsel %vm2954_vm8, %v16942_v29, %v17423_v34  ;;  %v3261_v8 = vand.u32 3, %v3260_v35 }
 0x49a   : > { %10273 = vmatprep.mubr.msk.f32.mxu1 %vm17428_vm7, %v3062_v47  ;;  %vm17432_vm1 = vnez %v17431_v40  ;;  %v2957_v55 = vsel %vm2950_vm2, %v2953_v4, %v2956_v42  ;;  %v17434_v35 = vxor.u32 2147483648, %v14644_v49  ;;  %v17435_v4 = vxor.u32 2147483648, %v14625_v18  ;;  %v17436_v47 = vld [vmem:[#allocation79_spill] sm:$0xff] }
 0x49b   : > { %v15428_v37 = vsel %vm17432_vm1, 0, %v17430_v13  ;;  %v2958_v23 = vsel %vm16946_vm6, nan, %v2957_v55  ;;  %vm3262_vm7 = vcmp.lt.s32.totalorder %v3261_v8, 2  ;;  %vm3263_vm5 = vcmp.eq.s32.totalorder %v3261_v8, 0 }
 0x49c   : > { %v3156_v10 = vadd.s32 3, %v15428_v37  ;;  %vm3266_vm13 = vcmp.eq.s32.totalorder %v3261_v8, 2  ;;  %7629 = vmatmul.mubr.f32.gmra.mrb[20].mxu1 %v2958_v23  ;;  %v3265_v40 = vsel %vm3263_vm5, %v14625_v18, %v17434_v35  ;;  %v16952_v29 = vxor.u32 2147483648, %v14525_v5 }
 0x49d   : > { %v3268_v42 = vsel %vm3266_vm13, %v17435_v4, %v14644_v49  ;;  %vm16963_vm8 = vweird.f32 %v17436_v47  ;;  %v3468_v55 = vadd.s32 3, %v14614_v14  ;;  %vm17438_vm6 = vcmask 523264   ;;  %v17440_v4 = vld [vmem:[#allocation139_spill] sm:$0xff]  ;;  %v17441_v14 = vld [vmem:[#allocation92_spill] sm:$0xff]  ;;  %v17452_v49 = vld [vmem:[#allocation138_spill] sm:$0xff] }
 0x49e   : > { %v3157_v13 = vand.u32 3, %v3156_v10  ;;  %v3269_v32 = vsel %vm3262_vm7, %v3265_v40, %v3268_v42  ;;  %v17439_v23 = vxor.u32 2147483648, %v14610_v17  ;;  %v16961_v42 = vxor.u32 2147483648, %v17440_v4  ;;  %v17457_v47 = vld [vmem:[#allocation102_spill] sm:$0xff] }
 0x49f   : > { %v3270_v8 = vsel %vm16949_vm11, nan, %v3269_v32  ;;  %v3469_v40 = vand.u32 3, %v3468_v55  ;;  %vm16964_vm7 = vweird.f32 %v17441_v14  ;;  %v17442_v32 = vld [vmem:[#allocation130_spill] sm:$0xff]  ;;  %vm17444_vm13 = vnez %v17443_v6 }
 0x4a0   : > { %vm3158_vm2 = vcmp.lt.s32.totalorder %v3157_v13, 2  ;;  %vm3159_vm1 = vcmp.eq.s32.totalorder %v3157_v13, 0  ;;  %vm3162_vm5 = vcmp.eq.s32.totalorder %v3157_v13, 2  ;;  %10274 = vmatprep.mubr.msk.f32.mxu1 %vm17438_vm6, %v3270_v8  ;;  %v15459_v13 = vsel %vm17444_vm13, 0, %v17442_v32  ;;  %v17446_v8 = vld [vmem:[#allocation90_spill] sm:$0xff] }
 0x4a1   : > { %v3161_v10 = vsel %vm3159_vm1, %v14525_v5, %v17439_v23  ;;  %v3164_v35 = vsel %vm3162_vm5, %v16952_v29, %v14610_v17  ;;  %17445 = vst [vmem:[#allocation56_spill] sm:$0xff] %v15459_v13  ;;  %vm3363_vm6 = vweird.f32 %v17446_v8  ;;  %vm3471_vm1 = vcmp.eq.s32.totalorder %v3469_v40, 0  ;;  %v17447_v5 = vld [vmem:[#allocation137_spill] sm:$0xff]  ;;  %v17449_v17 = vld [vmem:[#allocation135_spill] sm:$0xff] }
 0x4a2   : > { %v3165_v36 = vsel %vm3158_vm2, %v3161_v10, %v3164_v35  ;;  %vm3474_vm11 = vcmp.eq.s32.totalorder %v3469_v40, 2  ;;  %vm3470_vm5 = vcmp.lt.s32.totalorder %v3469_v40, 2  ;;  %v17448_v55 = vxor.u32 2147483648, %v17437_v46  ;;  %v17450_v29 = vld [vmem:[#allocation147_spill] sm:$0xff] }
 0x4a3   : > { %v3166_v23 = vsel %vm16963_vm8, nan, %v3165_v36  ;;  %v3476_v6 = vsel %vm3474_vm11, %v16961_v42, %v17437_v46  ;;  %v3364_v35 = vadd.s32 3, %v15459_v13  ;;  %vm3675_vm2 = vweird.f32 %v13955_v0 }
 0x4a4   : > { %7635 = vmatmul.mubr.f32.gmra.mrb[22].mxu1 %v3166_v23  ;;  %v3473_v10 = vsel %vm3471_vm1, %v17440_v4, %v17448_v55  ;;  %v3676_v36 = vadd.s32 3, %v14830_v59  ;;  %v17451_v55 = vld [vmem:[#allocation136_spill] sm:$0xff]  ;;  %vm17453_vm13 = vnez %v17452_v49  ;;  %vm17455_vm11 = vcmask 523264  }
 0x4a5   : > { %v3477_v32 = vsel %vm3470_vm5, %v3473_v10, %v3476_v6  ;;  %v3365_v23 = vand.u32 3, %v3364_v35  ;;  %v15481_v4 = vsel %vm17453_vm13, 0, %v17451_v55  ;;  %v17456_v6 = vld [vmem:[#allocation146_spill] sm:$0xff]  ;;  %vm3571_vm1 = vweird.f32 %v17457_v47  ;;  %v17458_v35 = vld [vmem:[#allocation144_spill] sm:$0xff] }
 0x4a6   : > { %v3478_v40 = vsel %vm16964_vm7, nan, %v3477_v32  ;;  %17454 = vst [vmem:[#allocation53_spill] sm:$0xff] %v15481_v4  ;;  %v3677_v10 = vand.u32 3, %v3676_v36  ;;  %v3572_v59 = vadd.s32 3, %v15481_v4  ;;  %v17459_v18 = vxor.u32 2147483648, %v17447_v5  ;;  %v17461_v36 = vld [vmem:[#allocation141_spill] sm:$0xff] }
 0x4a7   : > { %10275 = vmatprep.mubr.msk.f32.mxu1 %vm17455_vm11, %v3478_v40  ;;  %vm3366_vm5 = vcmp.lt.s32.totalorder %v3365_v23, 2  ;;  %vm3367_vm8 = vcmp.eq.s32.totalorder %v3365_v23, 0  ;;  %vm3370_vm7 = vcmp.eq.s32.totalorder %v3365_v23, 2  ;;  %v17460_v55 = vxor.u32 2147483648, %v17449_v17 }
 0x4a8   : > { %v3369_v49 = vsel %vm3367_vm8, %v17449_v17, %v17459_v18  ;;  %vm3679_vm13 = vcmp.eq.s32.totalorder %v3677_v10, 0  ;;  %v16974_v42 = vxor.u32 2147483648, %v17461_v36  ;;  %v17462_v46 = vxor.u32 2147483648, %v17450_v29  ;;  %v17464_v17 = vld [vmem:[#allocation148_spill] sm:$0xff] }
 0x4a9   : > { %v3372_v40 = vsel %vm3370_vm7, %v17460_v55, %v17447_v5  ;;  %vm3682_vm11 = vcmp.eq.s32.totalorder %v3677_v10, 2  ;;  %v3573_v23 = vand.u32 3, %v3572_v59  ;;  %vm3678_vm12 = vcmp.lt.s32.totalorder %v3677_v10, 2 }
 0x4aa   : > { %v3373_v14 = vsel %vm3366_vm5, %v3369_v49, %v3372_v40  ;;  %v3681_v4 = vsel %vm3679_vm13, %v17456_v6, %v17462_v46  ;;  %v17463_v18 = vxor.u32 2147483648, %v17456_v6  ;;  %v3884_v55 = vadd.s32 3, %v17464_v17 }
 0x4ab   : > { %v3374_v32 = vsel %vm3363_vm6, nan, %v3373_v14  ;;  %vm3574_vm8 = vcmp.lt.s32.totalorder %v3573_v23, 2  ;;  %vm3575_vm7 = vcmp.eq.s32.totalorder %v3573_v23, 0  ;;  %vm3578_vm5 = vcmp.eq.s32.totalorder %v3573_v23, 2 }
 0x4ac   : > { %v3684_v13 = vsel %vm3682_vm11, %v17463_v18, %v17450_v29  ;;  %7641 = vmatmul.mubr.f32.gmra.mrb[24].mxu1 %v3374_v32  ;;  %v17465_v59 = vxor.u32 2147483648, %v17458_v35  ;;  %v3580_v14 = vsel %vm3578_vm5, %v16974_v42, %v17458_v35  ;;  %v3885_v10 = vand.u32 3, %v3884_v55  ;;  %v17467_v32 = vld [vmem:[#allocation143_spill] sm:$0xff]  ;;  %v7829_v42 = vld [vmem:[#allocation5 + $0x18] sm:$0xff] }
 0x4ad   : > { %v3685_v5 = vsel %vm3678_vm12, %v3681_v4, %v3684_v13  ;;  %vm17466_vm13 = vcmask 523264   ;;  %v16973_v4 = vxor.u32 2147483648, %v15044_v20  ;;  %v16972_v13 = vxor.u32 2147483648, %v15033_v21 }
 0x4ae   : > { %v3686_v46 = vsel %vm3675_vm2, nan, %v3685_v5  ;;  %v3577_v49 = vsel %vm3575_vm7, %v17461_v36, %v17465_v59  ;;  %v15518_v5 = vsel %vm14866_vm15, 0, %v17467_v32  ;;  %v15523_v18 = vsel %vm15147_vm0, 0, %v15074_v52  ;;  %vm17470_vm7 = vmmov %vm17466_vm13 }
 0x4af   : > { %10276 = vmatprep.mubr.msk.f32.mxu1 %vm17466_vm13, %v3686_v46  ;;  %v3581_v40 = vsel %vm3574_vm8, %v3577_v49, %v3580_v14  ;;  %vm3887_vm12 = vcmp.eq.s32.totalorder %v3885_v10, 0  ;;  %vm3890_vm11 = vcmp.eq.s32.totalorder %v3885_v10, 2  ;;  %vm3886_vm8 = vcmp.lt.s32.totalorder %v3885_v10, 2 }
 0x4b0   : > { %v3582_v55 = vsel %vm3571_vm1, nan, %v3581_v40  ;;  %v3889_v46 = vsel %vm3887_vm12, %v15033_v21, %v16973_v4  ;;  %v3892_v59 = vsel %vm3890_vm11, %v16972_v13, %v15044_v20  ;;  %v3780_v49 = vadd.s32 3, %v15518_v5  ;;  %v17469_v40 = vld [vmem:[#allocation107_spill] sm:$0xff] }
 0x4b1   : > { %7647 = vmatmul.mubr.f32.gmra.mrb[26].mxu1 %v3582_v55  ;;  %vm3883_vm15 = vweird.f32 %v14136_v15  ;;  %v3893_v52 = vsel %vm3886_vm8, %v3889_v46, %v3892_v59  ;;  %v16975_v14 = vxor.u32 2147483648, %v14948_v60  ;;  %vm16977_vm0 = vweird.f32 %v17469_v40  ;;  %v11717_v40 = vld [vmem:[%s12272_s15] sm:$0xff] }
 0x4b2   : > { %v3894_v10 = vsel %vm3883_vm15, nan, %v3893_v52  ;;  %v3781_v32 = vand.u32 3, %v3780_v49  ;;  %v4092_v23 = vadd.s32 3, %v15523_v18  ;;  %v16978_v55 = vxor.u32 2147483648, %v15251_v24 }
 0x4b3   : > { %10277 = vmatprep.mubr.msk.f32.mxu1 %vm17470_vm7, %v3894_v10  ;;  %v15547_v46 = vsel %vm15037_vm3, 0, %v14991_v26  ;;  %v7827_v26 = vld [vmem:[#allocation5 + $0x8] sm:$0xff]  ;;  %vm4091_vm7 = vweird.f32 %v14333_v2  ;;  %v7837_v2 = vld [vmem:[#allocation5 + $0x58] sm:$0xff]  ;;  %v17650_v8 = vxor.u32 2147483648, %v14948_v60  ;;  %v17651_v0 = vxor.u32 2147483648, %v15251_v24 }
 0x4b4   : > { %vm3782_vm5 = vcmp.lt.s32.totalorder %v3781_v32, 2  ;;  %vm3783_vm13 = vcmp.eq.s32.totalorder %v3781_v32, 0  ;;  %vm3786_vm12 = vcmp.eq.s32.totalorder %v3781_v32, 2  ;;  %v4093_v52 = vand.u32 3, %v4092_v23 }
 0x4b5   : > { %v3785_v49 = vsel %vm3783_vm13, %v14948_v60, %v16976_v3  ;;  %v3788_v10 = vsel %vm3786_vm12, %v16975_v14, %v14954_v31  ;;  %v3988_v4 = vadd.s32 3, %v15547_v46  ;;  %v17471_v14 = vxor.u32 2147483648, %v15246_v38 }
 0x4b6   : > { %v3789_v13 = vsel %vm3782_vm5, %v3785_v49, %v3788_v10  ;;  %vm4094_vm3 = vcmp.lt.s32.totalorder %v4093_v52, 2  ;;  %vm4095_vm11 = vcmp.eq.s32.totalorder %v4093_v52, 0  ;;  %vm4098_vm8 = vcmp.eq.s32.totalorder %v4093_v52, 2 }
 0x4b7   : > { %v3790_v32 = vsel %vm16977_vm0, nan, %v3789_v13  ;;  %v4097_v23 = vsel %vm4095_vm11, %v15246_v38, %v16978_v55  ;;  %v4100_v3 = vsel %vm4098_vm8, %v17471_v14, %v15251_v24  ;;  %v3989_v59 = vand.u32 3, %v3988_v4  ;;  %v7830_v55 = vld [vmem:[#allocation5 + $0x20] sm:$0xff] }
 0x4b8   : > { %7653 = vmatmul.mubr.f32.gmra.mrb[28].mxu1 %v3790_v32  ;;  %v4101_v28 = vsel %vm4094_vm3, %v4097_v23, %v4100_v3  ;;  %v10508_v49 = vpack.c.bf16 %v7829_v42, %v7827_v26  ;;  %vm17472_vm12 = vcmask 523264   ;;  %v17473_v13 = vxor.u32 2147483648, %v15134_v53  ;;  %v7826_v3 = vld [vmem:[#allocation5] sm:$0xff]  ;;  %v7831_v32 = vld [vmem:[#allocation5 + $0x28] sm:$0xff] }
 0x4b9   : > { %v4102_v52 = vsel %vm4091_vm7, nan, %v4101_v28  ;;  %vm3991_vm5 = vcmp.eq.s32.totalorder %v3989_v59, 0  ;;  %vm3994_vm13 = vcmp.eq.s32.totalorder %v3989_v59, 2  ;;  %vm3990_vm0 = vcmp.lt.s32.totalorder %v3989_v59, 2  ;;  %v7828_v28 = vld [vmem:[#allocation5 + $0x10] sm:$0xff]  ;;  %v7833_v59 = vld [vmem:[#allocation5 + $0x38] sm:$0xff] }
 0x4ba   : > { %10278 = vmatprep.mubr.msk.f32.mxu1 %vm17472_vm12, %v4102_v52  ;;  %v3993_v10 = vsel %vm3991_vm5, %v15130_v57, %v17473_v13  ;;  %v17474_v4 = vxor.u32 2147483648, %v15130_v57  ;;  %10509 = vmatprep.subr.bf16.mxu1 %v10508_v49  ;;  %vm3987_vm3 = vweird.f32 %v14224_v22  ;;  %v17475_v23 = vmov 0.0   ;;  %v7835_v49 = vld [vmem:[#allocation5 + $0x48] sm:$0xff]  ;;  %v17503_v57 = vld [vmem:[#allocation73_spill] sm:$0xff] }
 0x4bb   : > { %v10510_v52 = vpack.c.bf16 %v7828_v28, %v7826_v3  ;;  %v10512_v13 = vpack.c.bf16 %v7833_v59, %v7831_v32  ;;  %vm17476_vm11 = vcmask 261120   ;;  %v7839_v22 = vld [vmem:[#allocation5 + $0x68] sm:$0xff]  ;;  %v7841_v3 = vld [vmem:[#allocation5 + $0x78] sm:$0xff]  ;;  %v7838_v59 = vld [vmem:[#allocation5 + $0x60] sm:$0xff] }
 0x4bc   : > { %v3996_v14 = vsel %vm3994_vm13, %v17474_v4, %v15134_v53  ;;  %v7832_v4 = vld [vmem:[#allocation5 + $0x30] sm:$0xff]  ;;  %v11718_v28 = vld [vmem:[%s12272_s15 + $0x8] sm:$0xff]  ;;  %v17507_v53 = vld [vmem:[#allocation37_spill] sm:$0xff] }
 0x4bd   : > { %v3997_v42 = vsel %vm3990_vm0, %v3993_v10, %v3996_v14  ;;  %v10514_v10 = vpack.c.bf16 %v7832_v4, %v7830_v55  ;;  %v10516_v14 = vpack.c.bf16 %v7837_v2, %v7835_v49  ;;  %vm17477_vm0 = vmmov %vm17476_vm11  ;;  %v7843_v55 = vld [vmem:[#allocation5 + $0x88] sm:$0xff]  ;;  %v11719_v2 = vld [vmem:[%s12272_s15 + $0x10] sm:$0xff] }
 0x4be   : > { %v3998_v26 = vsel %vm3987_vm3, nan, %v3997_v42  ;;  %v7834_v42 = vld [vmem:[#allocation5 + $0x40] sm:$0xff]  ;;  %vm17478_vm8 = vmmov %vm17477_vm0 }
 0x4bf   : > { %7659 = vmatmul.mubr.f32.gmra.mrb[30].mxu1 %v3998_v26  ;;  %v7836_v26 = vld [vmem:[#allocation5 + $0x50] sm:$0xff]  ;;  %vm17479_vm5 = vmmov %vm17477_vm0 }
 0x4c0   : > { %7729 = vmatprep.mubr.f32.mxu1 %v17475_v23  ;;  %v10518_v32 = vpack.c.bf16 %v7836_v26, %v7834_v42  ;;  %v7847_v42 = vld [vmem:[#allocation5 + $0xa8] sm:$0xff]  ;;  %vm17480_vm13 = vmmov %vm17477_vm0 }
 0x4c1   : > { %vm17481_vm12 = vmmov %vm17477_vm0 }
 0x4c3   : > { %10279 = vmatmul.mubr.msk.f32.vlgmr.msra.gmra.mrb[0].mxu1 %vm17476_vm11, %v11717_v40  ;;  %v10520_v40 = vpack.c.bf16 %v7841_v3, %v7839_v22  ;;  %v11720_v22 = vld [vmem:[%s12272_s15 + $0x18] sm:$0xff]  ;;  %vm17482_vm11 = vmmov %vm17477_vm0 }
 0x4c4   : > { %10511 = vmatpush1.bf16.msra.mxu1 %v10510_v52  ;;  %7735 = vmatprep.mubr.f32.mxu1 %v17475_v23  ;;  %v7840_v52 = vld [vmem:[#allocation5 + $0x70] sm:$0xff] }
 0x4c5   : > { %10513 = vmatprep.subr.bf16.mxu1 %v10512_v13  ;;  %v7845_v13 = vld [vmem:[#allocation5 + $0x98] sm:$0xff]  ;;  %v10522_v4 = vpack.c.bf16 %v7840_v52, %v7838_v59  ;;  %v7851_v59 = vld [vmem:[#allocation5 + $0xc8] sm:$0xff]  ;;  %v11721_v52 = vld [vmem:[%s12272_s15 + $0x20] sm:$0xff] }
 0x4c6   : > { %v10524_v49 = vpack.c.bf16 %v7845_v13, %v7843_v55 }
 0x4c7   : > { %10280 = vmatmul.mubr.msk.f32.gmra.mrb[2].mxu1 %vm17477_vm0, %v11718_v28  ;;  %v7842_v28 = vld [vmem:[#allocation5 + $0x80] sm:$0xff] }
 0x4c8   : > { %7741 = vmatprep.mubr.f32.mxu1 %v17475_v23  ;;  %10515 = vmatpush1.bf16.msra.mxu1 %v10514_v10  ;;  %v7844_v10 = vld [vmem:[#allocation5 + $0x90] sm:$0xff] }
 0x4c9   : > { %10517 = vmatprep.subr.bf16.mxu1 %v10516_v14  ;;  %v7849_v14 = vld [vmem:[#allocation5 + $0xb8] sm:$0xff]  ;;  %v10526_v26 = vpack.c.bf16 %v7844_v10, %v7842_v28  ;;  %v7855_v28 = vld [vmem:[#allocation5 + $0xe8] sm:$0xff] }
 0x4ca   : > { %v10528_v3 = vpack.c.bf16 %v7849_v14, %v7847_v42  ;;  %v11722_v10 = vld [vmem:[%s12272_s15 + $0x28] sm:$0xff] }
 0x4cb   : > { %10281 = vmatmul.mubr.msk.f32.gmra.mrb[4].mxu1 %vm17478_vm8, %v11719_v2  ;;  %v7846_v2 = vld [vmem:[#allocation5 + $0xa0] sm:$0xff]  ;;  %vm17483_vm8 = vmmov %vm17477_vm0 }
 0x4cc   : > { %7747 = vmatprep.mubr.f32.mxu1 %v17475_v23  ;;  %10519 = vmatpush1.bf16.msra.mxu1 %v10518_v32  ;;  %v7848_v32 = vld [vmem:[#allocation5 + $0xb0] sm:$0xff] }
 0x4cd   : > { %10521 = vmatprep.subr.bf16.mxu1 %v10520_v40  ;;  %v7853_v40 = vld [vmem:[#allocation5 + $0xd8] sm:$0xff]  ;;  %v10530_v55 = vpack.c.bf16 %v7848_v32, %v7846_v2  ;;  %v7859_v2 = vld [vmem:[#allocation5 + $0x108] sm:$0xff]  ;;  %v11723_v32 = vld [vmem:[%s12272_s15 + $0x30] sm:$0xff] }
 0x4ce   : > { %v10532_v13 = vpack.c.bf16 %v7853_v40, %v7851_v59 }
 0x4cf   : > { %10282 = vmatmul.mubr.msk.f32.gmra.mrb[6].mxu1 %vm17479_vm5, %v11720_v22  ;;  %v7850_v22 = vld [vmem:[#allocation5 + $0xc0] sm:$0xff]  ;;  %vm17484_vm5 = vmmov %vm17477_vm0 }
 0x4d0   : > { %7753 = vmatprep.mubr.f32.mxu1 %v17475_v23  ;;  %10523 = vmatpush1.bf16.msra.mxu1 %v10522_v4  ;;  %v7852_v4 = vld [vmem:[#allocation5 + $0xd0] sm:$0xff] }
 0x4d1   : > { %10525 = vmatprep.subr.bf16.mxu1 %v10524_v49  ;;  %v7857_v49 = vld [vmem:[#allocation5 + $0xf8] sm:$0xff]  ;;  %v10534_v42 = vpack.c.bf16 %v7852_v4, %v7850_v22  ;;  %v7863_v22 = vld [vmem:[#allocation5 + $0x128] sm:$0xff] }
 0x4d2   : > { %v10536_v14 = vpack.c.bf16 %v7857_v49, %v7855_v28  ;;  %v11724_v4 = vld [vmem:[%s12272_s15 + $0x38] sm:$0xff] }
 0x4d3   : > { %10283 = vmatmul.mubr.msk.f32.gmra.mrb[8].mxu1 %vm17480_vm13, %v11721_v52  ;;  %v7854_v52 = vld [vmem:[#allocation5 + $0xe0] sm:$0xff]  ;;  %vm17485_vm13 = vmmov %vm17477_vm0 }
 0x4d4   : > { %7759 = vmatprep.mubr.f32.mxu1 %v17475_v23  ;;  %10527 = vmatpush1.bf16.msra.mxu1 %v10526_v26  ;;  %v7856_v26 = vld [vmem:[#allocation5 + $0xf0] sm:$0xff] }
 0x4d5   : > { %10529 = vmatprep.subr.bf16.mxu1 %v10528_v3  ;;  %v7861_v3 = vld [vmem:[#allocation5 + $0x118] sm:$0xff]  ;;  %v10538_v59 = vpack.c.bf16 %v7856_v26, %v7854_v52  ;;  %v7867_v52 = vld [vmem:[#allocation5 + $0x148] sm:$0xff]  ;;  %v11725_v26 = vld [vmem:[%s12272_s15 + $0x40] sm:$0xff] }
 0x4d6   : > { %v10540_v40 = vpack.c.bf16 %v7861_v3, %v7859_v2 }
 0x4d7   : > { %10284 = vmatmul.mubr.msk.f32.gmra.mrb[10].mxu1 %vm17481_vm12, %v11722_v10  ;;  %v7858_v10 = vld [vmem:[#allocation5 + $0x100] sm:$0xff]  ;;  %vm17486_vm12 = vmmov %vm17477_vm0 }
 0x4d8   : > { %7765 = vmatprep.mubr.f32.mxu1 %v17475_v23  ;;  %10531 = vmatpush1.bf16.msra.mxu1 %v10530_v55  ;;  %v7860_v55 = vld [vmem:[#allocation5 + $0x110] sm:$0xff] }
 0x4d9   : > { %10533 = vmatprep.subr.bf16.mxu1 %v10532_v13  ;;  %v7865_v13 = vld [vmem:[#allocation5 + $0x138] sm:$0xff]  ;;  %v10542_v28 = vpack.c.bf16 %v7860_v55, %v7858_v10  ;;  %v7871_v10 = vld [vmem:[#allocation5 + $0x168] sm:$0xff] }
 0x4da   : > { %v10544_v49 = vpack.c.bf16 %v7865_v13, %v7863_v22  ;;  %v11726_v55 = vld [vmem:[%s12272_s15 + $0x48] sm:$0xff] }
 0x4db   : > { %10285 = vmatmul.mubr.msk.f32.gmra.mrb[12].mxu1 %vm17482_vm11, %v11723_v32  ;;  %v7862_v32 = vld [vmem:[#allocation5 + $0x120] sm:$0xff]  ;;  %vm17487_vm11 = vmmov %vm17477_vm0 }
 0x4dc   : > { %7771 = vmatprep.mubr.f32.mxu1 %v17475_v23  ;;  %10535 = vmatpush1.bf16.msra.mxu1 %v10534_v42  ;;  %v7864_v42 = vld [vmem:[#allocation5 + $0x130] sm:$0xff] }
 0x4dd   : > { %10537 = vmatprep.subr.bf16.mxu1 %v10536_v14  ;;  %v7869_v14 = vld [vmem:[#allocation5 + $0x158] sm:$0xff]  ;;  %v10546_v2 = vpack.c.bf16 %v7864_v42, %v7862_v32  ;;  %v7872_v32 = vld [vmem:[#allocation5 + $0x170] sm:$0xff] }
 0x4de   : > { %v10548_v3 = vpack.c.bf16 %v7869_v14, %v7867_v52  ;;  %v11727_v42 = vld [vmem:[%s12272_s15 + $0x50] sm:$0xff]  ;;  %v11728_v52 = vld [vmem:[%s12272_s15 + $0x58] sm:$0xff]  ;;  %v4505_v14 = vand.u32 3, %v17299_v1 }
 0x4df   : > { %10286 = vmatmul.mubr.msk.f32.gmra.mrb[14].mxu1 %vm17477_vm0, %v11724_v4  ;;  %v7866_v4 = vld [vmem:[#allocation5 + $0x140] sm:$0xff] }
 0x4e0   : > { %7777 = vmatprep.mubr.f32.mxu1 %v17475_v23  ;;  %10539 = vmatpush1.bf16.msra.mxu1 %v10538_v59  ;;  %v7868_v59 = vld [vmem:[#allocation5 + $0x150] sm:$0xff]  ;;  %vm4507_vm0 = vcmp.eq.s32.totalorder %v4505_v14, 0 }
 0x4e1   : > { %10541 = vmatprep.subr.bf16.mxu1 %v10540_v40  ;;  %v7873_v40 = vld [vmem:[#allocation5 + $0x178] sm:$0xff]  ;;  %v10550_v22 = vpack.c.bf16 %v7868_v59, %v7866_v4  ;;  %v17489_v59 = vxor.u32 2147483648, %v17302_v16 }
 0x4e2   : > { %v10552_v13 = vpack.c.bf16 %v7873_v40, %v7871_v10  ;;  %v4711_v10 = vand.u32 3, %v17309_v11  ;;  %v11730_v40 = vld [vmem:[%s12272_s15 + $0x68] sm:$0xff]  ;;  %v4917_v11 = vand.u32 3, %v17323_v43  ;;  %v8390_v43 = vld [vmem:[#allocation7 + $0x38] sm:$0xff] }
 0x4e3   : > { %10287 = vmatmul.mubr.msk.f32.gmra.mrb[16].mxu1 %vm17483_vm8, %v11725_v26  ;;  %v11729_v26 = vld [vmem:[%s12272_s15 + $0x60] sm:$0xff]  ;;  %vm4510_vm8 = vcmp.eq.s32.totalorder %v4505_v14, 2 }
 0x4e4   : > { %7783 = vmatprep.mubr.f32.mxu1 %v17475_v23  ;;  %10543 = vmatpush1.bf16.msra.mxu1 %v10542_v28  ;;  %v7870_v28 = vld [vmem:[#allocation5 + $0x160] sm:$0xff]  ;;  %v4512_v1 = vsel %vm4510_vm8, %v17489_v59, %v17300_v50  ;;  %vm4712_vm8 = vcmp.lt.s32.totalorder %v4711_v10, 2 }
 0x4e5   : > { %10545 = vmatprep.subr.bf16.mxu1 %v10544_v49  ;;  %v10554_v49 = vpack.c.bf16 %v7872_v32, %v7870_v28  ;;  %v8384_v28 = vld [vmem:[#allocation7 + $0x8] sm:$0xff] }
 0x4e7   : > { %10288 = vmatmul.mubr.msk.f32.gmra.mrb[18].mxu1 %vm17484_vm5, %v11726_v55  ;;  %vm4506_vm5 = vcmp.lt.s32.totalorder %v4505_v14, 2 }
 0x4e8   : > { %7789 = vmatprep.mubr.f32.mxu1 %v17475_v23  ;;  %10547 = vmatpush1.bf16.msra.mxu1 %v10546_v2  ;;  %v4402_v2 = vand.u32 3, %v15098_v41  ;;  %v4608_v41 = vand.u32 3, %v15128_v54  ;;  %v15644_v54 = vand.u32 3, %v15162_v61  ;;  %v17495_v61 = vxor.u32 2147483648, %v13169_v30 }
 0x4e9   : > { %10549 = vmatprep.subr.bf16.mxu1 %v10548_v3  ;;  %v17488_v3 = vxor.u32 2147483648, %v17300_v50  ;;  %v17492_v50 = vxor.u32 2147483648, %v17308_v7 }
 0x4eb   : > { %10289 = vmatmul.mubr.msk.f32.gmra.mrb[20].mxu1 %vm17485_vm13, %v11727_v42  ;;  %v4509_v4 = vsel %vm4507_vm0, %v17302_v16, %v17488_v3  ;;  %vm17490_vm13 = vmmov %vm17487_vm11  ;;  %vm4403_vm0 = vcmp.lt.s32.totalorder %v4402_v2, 2  ;;  %v8386_v42 = vld [vmem:[#allocation7 + $0x18] sm:$0xff]  ;;  %v17496_v3 = vxor.u32 2147483648, %v17316_v9 }
 0x4ec   : > { %7795 = vmatprep.mubr.f32.mxu1 %v17475_v23  ;;  %10551 = vmatpush1.bf16.msra.mxu1 %v10550_v22  ;;  %v4513_v55 = vsel %vm4506_vm5, %v4509_v4, %v4512_v1  ;;  %v17491_v22 = vxor.u32 2147483648, %v17306_v48  ;;  %vm17493_vm5 = vmmov %vm17490_vm13  ;;  %v17497_v4 = vld [vmem:[#allocation57_spill] sm:$0xff] }
 0x4ed   : > { %10553 = vmatprep.subr.bf16.mxu1 %v10552_v13  ;;  %v15641_v32 = vsel %vm1179_vm14, nan, %v4513_v55  ;;  %vm4610_vm14 = vcmp.eq.s32.totalorder %v4608_v41, 0  ;;  %v17498_v1 = vxor.u32 2147483648, %v17497_v4  ;;  %v8387_v55 = vld [vmem:[#allocation7 + $0x20] sm:$0xff] }
 0x4ee   : > { %v4612_v59 = vsel %vm4610_vm14, %v17497_v4, %v17496_v3  ;;  %v17504_v4 = vxor.u32 2147483648, %v17503_v57 }
 0x4ef   : > { %10290 = vmatmul.mubr.msk.f32.gmra.mrb[22].mxu1 %vm17486_vm12, %v11728_v52  ;;  %vm4404_vm12 = vcmp.eq.s32.totalorder %v4402_v2, 0  ;;  %v11731_v52 = vld [vmem:[%s12272_s15 + $0x70] sm:$0xff] }
 0x4f0   : > { %7801 = vmatprep.mubr.f32.mxu1 %v17475_v23  ;;  %10555 = vmatpush1.bf16.msra.mxu1 %v10554_v49  ;;  %v4406_v13 = vsel %vm4404_vm12, %v17308_v7, %v17491_v22  ;;  %v8383_v49 = vld [vmem:[#allocation7] sm:$0xff]  ;;  %vm4716_vm12 = vcmp.eq.s32.totalorder %v4711_v10, 2  ;;  %v8388_v7 = vld [vmem:[#allocation7 + $0x28] sm:$0xff]  ;;  %v8389_v22 = vld [vmem:[#allocation7 + $0x30] sm:$0xff] }
 0x4f3   : > { %10291 = vmatmul.mubr.msk.f32.gmra.mrb[24].mxu1 %vm17487_vm11, %v11729_v26  ;;  %vm4407_vm11 = vcmp.eq.s32.totalorder %v4402_v2, 2  ;;  %v4718_v2 = vsel %vm4716_vm12, %v17495_v61, %v13248_v58  ;;  %v8392_v58 = vld [vmem:[#allocation7 + $0x48] sm:$0xff]  ;;  %vm17500_vm12 = vcmask 261120   ;;  %v17501_v61 = vld [vmem:[#allocation26_spill] sm:$0xff] }
 0x4f4   : > { %7807 = vmatprep.mubr.f32.mxu1 %v17475_v23  ;;  %v4409_v16 = vsel %vm4407_vm11, %v17492_v50, %v17306_v48  ;;  %vm4609_vm11 = vcmp.lt.s32.totalorder %v4608_v41, 2  ;;  %v8385_v48 = vld [vmem:[#allocation7 + $0x10] sm:$0xff]  ;;  %vm17502_vm14 = vweird.f32 %v17501_v61 }
 0x4f5   : > { %v4410_v14 = vsel %vm4403_vm0, %v4406_v13, %v4409_v16  ;;  %vm4919_vm0 = vcmp.eq.s32.totalorder %v4917_v11, 0  ;;  %v17499_v13 = vld [vmem:[#allocation71_spill] sm:$0xff]  ;;  %v10560_v16 = vpack.c.bf16 %v8390_v43, %v8388_v7  ;;  %v17510_v43 = vld [vmem:[#allocation80_spill] sm:$0xff] }
 0x4f6   : > { %v5123_v50 = vand.u32 3, %v17499_v13  ;;  %v4411_v3 = vsel %vm17502_vm14, nan, %v4410_v14  ;;  %v5020_v13 = vand.u32 3, %v17507_v53  ;;  %v10562_v14 = vpack.c.bf16 %v8389_v22, %v8387_v55  ;;  %v8391_v53 = vld [vmem:[#allocation7 + $0x40] sm:$0xff] }
 0x4f7   : > { %10292 = vmatmul.mubr.msk.f32.gmra.mrb[26].mxu1 %vm17490_vm13, %v11730_v40  ;;  %vm4713_vm13 = vcmp.eq.s32.totalorder %v4711_v10, 0  ;;  %vm4815_vm14 = vcmp.lt.s32.totalorder %v15644_v54, 2  ;;  %v17513_v10 = vld [vmem:[#allocation68_spill] sm:$0xff]  ;;  %v17516_v55 = vld [vmem:[#allocation82_spill] sm:$0xff] }
 0x4f8   : > { %7813 = vmatprep.mubr.f32.mxu1 %v17475_v23  ;;  %v4715_v26 = vsel %vm4713_vm13, %v13169_v30, %v17494_v12  ;;  %vm4922_vm13 = vcmp.eq.s32.totalorder %v4917_v11, 2  ;;  %v10558_v30 = vpack.c.bf16 %v8385_v48, %v8383_v49  ;;  %v11732_v12 = vld [vmem:[%s12272_s15 + $0x78] sm:$0xff]  ;;  %v17508_v49 = vld [vmem:[#allocation34_spill] sm:$0xff]  ;;  %v17517_v22 = vxor.u32 2147483648, %v17516_v55  ;;  %s10441_s15 = sshll.u32 %s12061_s17, 7  ;;  %s11964_s17 = smov [#allocation11]  }
 0x4f9   : > { %v4719_v48 = vsel %vm4712_vm8, %v4715_v26, %v4718_v2  ;;  %vm4819_vm8 = vcmp.eq.s32.totalorder %v15644_v54, 2  ;;  %v17514_v2 = vld [vmem:[#allocation25_spill] sm:$0xff]  ;;  %s16628_s14 = scalar_lea.hbm %s17665_s11, %s10441_s15  ;;  %s11877_s18 = sshll.u32 %s11964_s17, 4  ;;  %s11878_s18 = int_to_ptr.vmem [resolvable:$false] %s11877_s18 }
 0x4fa   : > { %s11879_s21 = scalar_lea.vmem %s11878_s18, 256  ;;  %p11880_p6 = scmp.lt.s32.totalorder %s16630_s19, %s11878_s18 }
 0x4fb   : > { %10293 = vmatmul.mubr.msk.f32.gmra.mrb[28].mxu1 %vm17493_vm5, %v11731_v52  ;;  %vm4613_vm5 = vcmp.eq.s32.totalorder %v4608_v41, 2  ;;  %v8394_v52 = vld [vmem:[#allocation7 + $0x58] sm:$0xff]  ;;  %v8396_v41 = vld [vmem:[#allocation7 + $0x68] sm:$0xff]  ;;  %p11881_p9 = scmp.lt.s32.totalorder %s11879_s21, %s11873_s26 }
 0x4fc   : > { %7819 = vmatprep.mubr.f32.mxu1 %v17475_v23  ;;  %v4615_v40 = vsel %vm4613_vm5, %v17498_v1, %v17316_v9  ;;  %v10556_v23 = vpack.c.bf16 %v8386_v42, %v8384_v28  ;;  %v17505_v9 = vld [vmem:[#allocation70_spill] sm:$0xff]  ;;  %vm17509_vm5 = vcmask 523264  }
 0x4fd   : > { %v4921_v1 = vsel %vm4919_vm0, %v17505_v9, %v17504_v4  ;;  %v17506_v28 = vxor.u32 2147483648, %v17505_v9  ;;  %v4616_v7 = vsel %vm4609_vm11, %v4612_v59, %v4615_v40  ;;  %vm4816_vm0 = vcmp.eq.s32.totalorder %v15644_v54, 0  ;;  %v17511_v4 = vld [vmem:[#allocation69_spill] sm:$0xff]  ;;  %p11882_p5 = por %p11881_p9, %p11880_p6 }
 0x4fe   : > { %10557 = vmatprep.subr.bf16.mxu0 %v10556_v23  ;;  %v8393_v23 = vld [vmem:[#allocation7 + $0x50] sm:$0xff]  ;;  %v17512_v9 = vxor.u32 2147483648, %v17511_v4  ;;  %vm5125_vm11 = vcmp.eq.s32.totalorder %v5123_v50, 0  ;;  %v17515_v59 = vxor.u32 2147483648, %v17513_v10 }
 0x4ff   : > { %10294 = vmatmul.mubr.msk.f32.gmra.mrb[30].mxu1 %vm17500_vm12, %v11732_v12  ;;  %v4924_v42 = vsel %vm4922_vm13, %v17506_v28, %v17503_v57  ;;  %vm4918_vm12 = vcmp.lt.s32.totalorder %v4917_v11, 2  ;;  %10559 = vmatpush1.bf16.msra.mxu0 %v10558_v30  ;;  %v5329_v12 = vand.u32 3, %v17510_v43  ;;  %v10564_v57 = vpack.c.bf16 %v8394_v52, %v8392_v58  ;;  %v8398_v11 = vld [vmem:[#allocation7 + $0x78] sm:$0xff]  ;;  %p11883_p0 = pnand %p11882_p5, %p11876_p1 }
 0x500   : > { %10295 = vmatprep.mubr.msk.f32.mxu1 %vm17509_vm5, %v17508_v49  ;;  %10561 = vmatprep.subr.bf16.mxu0 %v10560_v16  ;;  %v4925_v61 = vsel %vm4918_vm12, %v4921_v1, %v4924_v42  ;;  %v4818_v26 = vsel %vm4816_vm0, %v17513_v10, %v17512_v9  ;;  %v4821_v40 = vsel %vm4819_vm8, %v17515_v59, %v17511_v4  ;;  %v17518_v30 = vld [vmem:[#allocation81_spill] sm:$0xff]  ;;  %vm5128_vm13 = vcmp.eq.s32.totalorder %v5123_v50, 2  ;;  %v17521_v1 = vld [vmem:[#allocation76_spill] sm:$0xff]  ;;  %v17523_v42 = vld [vmem:[#allocation74_spill] sm:$0xff] }
 0x501   : > { %v5127_v16 = vsel %vm5125_vm11, %v17518_v30, %v17517_v22  ;;  %vm5022_vm5 = vcmp.eq.s32.totalorder %v5020_v13, 0  ;;  %vm17519_vm12 = vcmask 523264   ;;  %v17520_v58 = vxor.u32 2147483648, %v17518_v30  ;;  %v17525_v59 = vld [vmem:[#allocation89_spill] sm:$0xff]  ;;  %v17527_v22 = vld [vmem:[#allocation88_spill] sm:$0xff] }
 0x502   : > { %v17522_v28 = vxor.u32 2147483648, %v17521_v1  ;;  %vm5025_vm0 = vcmp.eq.s32.totalorder %v5020_v13, 2  ;;  %v10566_v43 = vpack.c.bf16 %v8393_v23, %v8391_v53  ;;  %v17524_v4 = vxor.u32 2147483648, %v17523_v42  ;;  %v17529_v53 = vld [vmem:[#allocation49_spill] sm:$0xff] }
 0x503   : > { %7987 = vmatmul.mubr.f32.vlgmr.msra.gmra.mrb[0].mxu1 %v17514_v2  ;;  %v5130_v52 = vsel %vm5128_vm13, %v17520_v58, %v17516_v55  ;;  %10563 = vmatpush1.bf16.msra.mxu0 %v10562_v14  ;;  %vm5331_vm8 = vcmp.eq.s32.totalorder %v5329_v12, 0  ;;  %vm5334_vm11 = vcmp.eq.s32.totalorder %v5329_v12, 2  ;;  %v10568_v10 = vpack.c.bf16 %v8398_v11, %v8396_v41  ;;  %v8397_v2 = vld [vmem:[#allocation7 + $0x70] sm:$0xff] }
 0x504   : > { %10296 = vmatprep.mubr.msk.f32.mxu1 %vm17519_vm12, %v15641_v32  ;;  %v5024_v49 = vsel %vm5022_vm5, %v17523_v42, %v17522_v28  ;;  %v5027_v9 = vsel %vm5025_vm0, %v17524_v4, %v17521_v1  ;;  %10565 = vmatprep.subr.bf16.mxu0 %v10564_v57  ;;  %v8395_v32 = vld [vmem:[#allocation7 + $0x60] sm:$0xff]  ;;  %vm5124_vm12 = vcmp.lt.s32.totalorder %v5123_v50, 2  ;;  %v17526_v55 = vxor.u32 2147483648, %v17525_v59  ;;  %v8400_v28 = vld [vmem:[#allocation7 + $0x88] sm:$0xff]  ;;  %v8402_v1 = vld [vmem:[#allocation7 + $0x98] sm:$0xff] }
 0x505   : > { %v17528_v58 = vxor.u32 2147483648, %v17527_v22  ;;  %v15709_v23 = vand.u32 3, %v17529_v53  ;;  %v17530_v42 = vld [vmem:[#allocation29_spill] sm:$0xff]  ;;  %v4822_v50 = vsel %vm4815_vm14, %v4818_v26, %v4821_v40  ;;  %v5131_v41 = vsel %vm5124_vm12, %v5127_v16, %v5130_v52  ;;  %v17533_v11 = vld [vmem:[#allocation28_spill] sm:$0xff]  ;;  %v8399_v26 = vld [vmem:[#allocation7 + $0x80] sm:$0xff] }
 0x506   : > { %v5333_v30 = vsel %vm5331_vm8, %v17527_v22, %v17526_v55  ;;  %vm17531_vm13 = vweird.f32 %v17530_v42  ;;  %vm5021_vm5 = vcmp.lt.s32.totalorder %v5020_v13, 2  ;;  %vm17532_vm0 = vcmask 523264   ;;  %v17536_v53 = vld [vmem:[#allocation93_spill] sm:$0xff]  ;;  %v8401_v40 = vld [vmem:[#allocation7 + $0x90] sm:$0xff]  ;;  %v17548_v42 = vld [vmem:[#allocation83_spill] sm:$0xff] }
 0x507   : > { %v5336_v14 = vsel %vm5334_vm11, %v17528_v58, %v17525_v59  ;;  %7993 = vmatmul.mubr.f32.gmra.mrb[2].mxu1 %v4411_v3  ;;  %v4720_v57 = vsel %vm17531_vm13, nan, %v4719_v48  ;;  %vm17534_vm8 = vweird.f32 %v17533_v11  ;;  %v5028_v59 = vsel %vm5021_vm5, %v5024_v49, %v5027_v9  ;;  %10567 = vmatpush1.bf16.msra.mxu0 %v10566_v43  ;;  %v17538_v52 = vld [vmem:[#allocation33_spill] sm:$0xff]  ;;  %v8404_v43 = vld [vmem:[#allocation7 + $0xa8] sm:$0xff] }
 0x508   : > { %10297 = vmatprep.mubr.msk.f32.mxu1 %vm17532_vm0, %v4720_v57  ;;  %v4617_v4 = vsel %vm17534_vm8, nan, %v4616_v7  ;;  %vm5330_vm11 = vcmp.lt.s32.totalorder %v5329_v12, 2  ;;  %v10570_v55 = vpack.c.bf16 %v8397_v2, %v8395_v32  ;;  %v4926_v3 = vsel %vm1595_vm4, nan, %v4925_v61  ;;  %10569 = vmatprep.subr.bf16.mxu0 %v10568_v10  ;;  %v17540_v12 = vld [vmem:[#allocation24_spill] sm:$0xff]  ;;  %v8406_v9 = vld [vmem:[#allocation7 + $0xb8] sm:$0xff]  ;;  %v17542_v10 = vld [vmem:[#allocation95_spill] sm:$0xff] }
 0x509   : > { %v5337_v58 = vsel %vm5330_vm11, %v5333_v30, %v5336_v14  ;;  %v5535_v48 = vand.u32 3, %v17536_v53  ;;  %v10572_v54 = vpack.c.bf16 %v8402_v1, %v8400_v28  ;;  %v4823_v16 = vsel %vm1491_vm10, nan, %v4822_v50  ;;  %vm17543_vm10 = vmmov %vm17532_vm0  ;;  %v17544_v30 = vld [vmem:[#allocation36_spill] sm:$0xff]  ;;  %v17551_v13 = vld [vmem:[#allocation99_spill] sm:$0xff] }
 0x50a   : > { %vm17539_vm14 = vweird.f32 %v17538_v52  ;;  %vm5227_vm12 = vcmp.lt.s32.totalorder %v15709_v23, 2  ;;  %v5432_v49 = vand.u32 3, %v17540_v12  ;;  %v5029_v32 = vsel %vm1699_vm9, nan, %v5028_v59  ;;  %v17546_v28 = vld [vmem:[#allocation84_spill] sm:$0xff]  ;;  %v17553_v52 = vld [vmem:[#allocation98_spill] sm:$0xff] }
 0x50b   : > { %v5132_v7 = vsel %vm17539_vm14, nan, %v5131_v41  ;;  %7999 = vmatmul.mubr.f32.gmra.mrb[4].mxu1 %v4617_v4  ;;  %vm5228_vm4 = vcmp.eq.s32.totalorder %v15709_v23, 0  ;;  %vm5231_vm13 = vcmp.eq.s32.totalorder %v15709_v23, 2  ;;  %v5741_v2 = vand.u32 3, %v17542_v10  ;;  %10571 = vmatpush1.bf16.msra.mxu0 %v10570_v55  ;;  %v17550_v4 = vld [vmem:[#allocation43_spill] sm:$0xff]  ;;  %v8405_v53 = vld [vmem:[#allocation7 + $0xb0] sm:$0xff] }
 0x50c   : > { %10298 = vmatprep.mubr.msk.f32.mxu1 %vm17543_vm10, %v4926_v3  ;;  %vm17545_vm5 = vweird.f32 %v17544_v30  ;;  %v17547_v1 = vxor.u32 2147483648, %v17546_v28  ;;  %v17549_v50 = vxor.u32 2147483648, %v17548_v42  ;;  %v10574_v11 = vpack.c.bf16 %v8401_v40, %v8399_v26  ;;  %10573 = vmatprep.subr.bf16.mxu0 %v10572_v54  ;;  %v8403_v3 = vld [vmem:[#allocation7 + $0xa0] sm:$0xff]  ;;  %v8408_v55 = vld [vmem:[#allocation7 + $0xc8] sm:$0xff]  ;;  %v8410_v26 = vld [vmem:[#allocation7 + $0xd8] sm:$0xff] }
 0x50d   : > { %v5338_v14 = vsel %vm17545_vm5, nan, %v5337_v58  ;;  %vm5537_vm9 = vcmp.eq.s32.totalorder %v5535_v48, 0  ;;  %vm5540_vm0 = vcmp.eq.s32.totalorder %v5535_v48, 2  ;;  %v5638_v59 = vand.u32 3, %v17550_v4  ;;  %v17555_v40 = vld [vmem:[#allocation97_spill] sm:$0xff] }
 0x50e   : > { %v5230_v57 = vsel %vm5228_vm4, %v17548_v42, %v17547_v1  ;;  %v5233_v41 = vsel %vm5231_vm13, %v17549_v50, %v17546_v28  ;;  %v10576_v22 = vpack.c.bf16 %v8406_v9, %v8404_v43  ;;  %v17552_v58 = vxor.u32 2147483648, %v17551_v13  ;;  %v17557_v28 = vld [vmem:[#allocation96_spill] sm:$0xff]  ;;  %vm17559_vm13 = vmmov %vm17543_vm10 }
 0x50f   : > { %v17554_v61 = vxor.u32 2147483648, %v17553_v52  ;;  %vm5434_vm8 = vcmp.eq.s32.totalorder %v5432_v49, 0  ;;  %vm5437_vm11 = vcmp.eq.s32.totalorder %v5432_v49, 2  ;;  %8005 = vmatmul.mubr.f32.gmra.mrb[6].mxu1 %v4823_v16  ;;  %v17556_v30 = vxor.u32 2147483648, %v17555_v40  ;;  %10575 = vmatpush1.bf16.msra.mxu0 %v10574_v11  ;;  %v17562_v11 = vld [vmem:[#allocation103_spill] sm:$0xff] }
 0x510   : > { %v5539_v12 = vsel %vm5537_vm9, %v17553_v52, %v17552_v58  ;;  %v17558_v43 = vxor.u32 2147483648, %v17557_v28  ;;  %vm5743_vm14 = vcmp.eq.s32.totalorder %v5741_v2, 0  ;;  %vm5746_vm4 = vcmp.eq.s32.totalorder %v5741_v2, 2  ;;  %10299 = vmatprep.mubr.msk.f32.mxu1 %vm17559_vm13, %v5132_v7  ;;  %10577 = vmatprep.subr.bf16.mxu0 %v10576_v22  ;;  %v8407_v7 = vld [vmem:[#allocation7 + $0xc0] sm:$0xff] }
 0x511   : > { %v5542_v10 = vsel %vm5540_vm0, %v17554_v61, %v17551_v13  ;;  %v5436_v54 = vsel %vm5434_vm8, %v17557_v28, %v17556_v30  ;;  %v17560_v1 = vxor.u32 2147483648, %v17377_v33  ;;  %v17561_v50 = vxor.u32 2147483648, %v17382_v51  ;;  %v8409_v61 = vld [vmem:[#allocation7 + $0xd0] sm:$0xff]  ;;  %v8412_v30 = vld [vmem:[#allocation7 + $0xe8] sm:$0xff]  ;;  %v8411_v28 = vld [vmem:[#allocation7 + $0xe0] sm:$0xff] }
 0x512   : > { %v5439_v9 = vsel %vm5437_vm11, %v17558_v43, %v17555_v40  ;;  %v5947_v4 = vand.u32 3, %v17390_v63  ;;  %v10578_v13 = vpack.c.bf16 %v8405_v53, %v8403_v3  ;;  %v5234_v58 = vsel %vm5227_vm12, %v5230_v57, %v5233_v41  ;;  %v17564_v53 = vld [vmem:[#allocation100_spill] sm:$0xff]  ;;  %vm17566_vm12 = vmmov %vm17559_vm13 }
 0x513   : > { %v5745_v42 = vsel %vm5743_vm14, %v17382_v51, %v17560_v1  ;;  %v5748_v16 = vsel %vm5746_vm4, %v17561_v50, %v17377_v33  ;;  %vm5536_vm10 = vcmp.lt.s32.totalorder %v5535_v48, 2  ;;  %vm5433_vm5 = vcmp.lt.s32.totalorder %v5432_v49, 2  ;;  %v8414_v51 = vld [vmem:[#allocation7 + $0xf8] sm:$0xff]  ;;  %8011 = vmatmul.mubr.f32.gmra.mrb[8].mxu1 %v5029_v32  ;;  %v17574_v1 = vld [vmem:[#allocation40_spill] sm:$0xff]  ;;  %v17575_v50 = vld [vmem:[#allocation38_spill] sm:$0xff] }
 0x514   : > { %v10580_v52 = vpack.c.bf16 %v8410_v26, %v8408_v55  ;;  %v5543_v40 = vsel %vm5536_vm10, %v5539_v12, %v5542_v10  ;;  %vm5742_vm9 = vcmp.lt.s32.totalorder %v5741_v2, 2  ;;  %vm5640_vm0 = vcmp.eq.s32.totalorder %v5638_v59, 0  ;;  %10300 = vmatprep.mubr.msk.f32.mxu1 %vm17566_vm12, %v5338_v14  ;;  %10579 = vmatpush1.bf16.msra.mxu0 %v10578_v13  ;;  %v17569_v10 = vld [vmem:[#allocation112_spill] sm:$0xff] }
 0x515   : > { %vm5643_vm8 = vcmp.eq.s32.totalorder %v5638_v59, 2  ;;  %v5440_v33 = vsel %vm5433_vm5, %v5436_v54, %v5439_v9  ;;  %v5749_v63 = vsel %vm5742_vm9, %v5745_v42, %v5748_v16  ;;  %v17563_v3 = vxor.u32 2147483648, %v17562_v11  ;;  %v8413_v14 = vld [vmem:[#allocation7 + $0xf0] sm:$0xff]  ;;  %v17570_v54 = vld [vmem:[#allocation35_spill] sm:$0xff] }
 0x516   : > { %v17565_v48 = vxor.u32 2147483648, %v17564_v53  ;;  %vm5949_vm11 = vcmp.eq.s32.totalorder %v5947_v4, 0  ;;  %vm5952_vm14 = vcmp.eq.s32.totalorder %v5947_v4, 2  ;;  %v5844_v2 = vand.u32 3, %v15326_v25  ;;  %10581 = vmatprep.subr.bf16.mxu0 %v10580_v52  ;;  %v17572_v25 = vld [vmem:[#allocation39_spill] sm:$0xff] }
 0x517   : > { %v5642_v23 = vsel %vm5640_vm0, %v17564_v53, %v17563_v3  ;;  %v10582_v57 = vpack.c.bf16 %v8409_v61, %v8407_v7  ;;  %v17567_v32 = vxor.u32 2147483648, %v14179_v45  ;;  %v17568_v22 = vxor.u32 2147483648, %v14155_v44  ;;  %v17580_v7 = vld [vmem:[#allocation109_spill] sm:$0xff]  ;;  %v17582_v61 = vld [vmem:[#allocation108_spill] sm:$0xff] }
 0x518   : > { %v5645_v49 = vsel %vm5643_vm8, %v17565_v48, %v17562_v11  ;;  %v6153_v55 = vand.u32 3, %v17569_v10  ;;  %v10584_v26 = vpack.c.bf16 %v8414_v51, %v8412_v30  ;;  %vm17571_vm4 = vweird.f32 %v17570_v54  ;;  %vm17579_vm8 = vmmov %vm17566_vm12  ;;  %v17586_v11 = vld [vmem:[#allocation119_spill] sm:$0xff]  ;;  %v17593_v10 = vld [vmem:[#allocation42_spill] sm:$0xff] }
 0x519   : > { %v5951_v41 = vsel %vm5949_vm11, %v14155_v44, %v17567_v32  ;;  %v5954_v12 = vsel %vm5952_vm14, %v17568_v22, %v14179_v45  ;;  %v5235_v43 = vsel %vm17571_vm4, nan, %v5234_v58  ;;  %vm17573_vm13 = vweird.f32 %v17572_v25  ;;  %v17577_v45 = vld [vmem:[#allocation45_spill] sm:$0xff]  ;;  %10583 = vmatpush1.bf16.msra.mxu0 %v10582_v57  ;;  %v17591_v22 = vld [vmem:[#allocation48_spill] sm:$0xff] }
 0x51a   : > { %v5544_v9 = vsel %vm17573_vm13, nan, %v5543_v40  ;;  %vm5639_vm10 = vcmp.lt.s32.totalorder %v5638_v59, 2  ;;  %v6050_v42 = vand.u32 3, %v17574_v1  ;;  %8017 = vmatmul.mubr.f32.gmra.mrb[10].mxu1 %v5235_v43  ;;  %vm17576_vm5 = vweird.f32 %v17575_v50  ;;  %10585 = vmatprep.subr.bf16.mxu0 %v10584_v26 }
 0x51b   : > { %v5441_v44 = vsel %vm17576_vm5, nan, %v5440_v33  ;;  %vm17578_vm9 = vweird.f32 %v17577_v45  ;;  %v5646_v13 = vsel %vm5639_vm10, %v5642_v23, %v5645_v49  ;;  %vm5948_vm0 = vcmp.lt.s32.totalorder %v5947_v4, 2  ;;  %10301 = vmatprep.mubr.msk.f32.mxu1 %vm17579_vm8, %v5544_v9  ;;  %v17585_v33 = vld [vmem:[#allocation120_spill] sm:$0xff]  ;;  %v17589_v49 = vld [vmem:[#allocation113_spill] sm:$0xff]  ;;  %vm17592_vm5 = vmmov %vm17579_vm8 }
 0x51c   : > { %v5750_v16 = vsel %vm17578_vm9, nan, %v5749_v63  ;;  %v5955_v52 = vsel %vm5948_vm0, %v5951_v41, %v5954_v12  ;;  %vm5846_vm12 = vcmp.eq.s32.totalorder %v5844_v2, 0  ;;  %vm5849_vm11 = vcmp.eq.s32.totalorder %v5844_v2, 2 }
 0x51d   : > { %v10586_v58 = vpack.c.bf16 %v8413_v14, %v8411_v28  ;;  %v17581_v59 = vxor.u32 2147483648, %v17580_v7  ;;  %v17583_v30 = vxor.u32 2147483648, %v17582_v61  ;;  %vm6155_vm14 = vcmp.eq.s32.totalorder %v6153_v55, 0 }
 0x51e   : > { %vm6158_vm4 = vcmp.eq.s32.totalorder %v6153_v55, 2  ;;  %v17584_v4 = vxor.u32 2147483648, %v14352_v19  ;;  %vm6052_vm13 = vcmp.eq.s32.totalorder %v6050_v42, 0  ;;  %vm6055_vm10 = vcmp.eq.s32.totalorder %v6050_v42, 2  ;;  %8023 = vmatmul.mubr.f32.gmra.mrb[12].mxu1 %v5441_v44 }
 0x51f   : > { %v5848_v40 = vsel %vm5846_vm12, %v17582_v61, %v17581_v59  ;;  %v5851_v51 = vsel %vm5849_vm11, %v17583_v30, %v17580_v7  ;;  %v6359_v3 = vand.u32 3, %v17586_v11  ;;  %v17587_v53 = vxor.u32 2147483648, %v17585_v33  ;;  %10302 = vmatprep.mubr.msk.f32.mxu1 %vm17592_vm5, %v5750_v16  ;;  %10587 = vmatpush1.bf16.msra.mxu0 %v10586_v58  ;;  %v17603_v16 = vld [vmem:[#allocation134_spill] sm:$0xff]  ;;  %v17607_v58 = vld [vmem:[#allocation132_spill] sm:$0xff]  ;;  %v17608_v59 = vld [vmem:[#allocation55_spill] sm:$0xff] }
 0x520   : > { %v6157_v63 = vsel %vm6155_vm14, %v17585_v33, %v17584_v4  ;;  %v17588_v48 = vxor.u32 2147483648, %v17407_v39  ;;  %v17590_v32 = vxor.u32 2147483648, %v17589_v49  ;;  %v6256_v12 = vand.u32 3, %v17591_v22  ;;  %v17614_v11 = vld [vmem:[#allocation131_spill] sm:$0xff] }
 0x521   : > { %v6160_v23 = vsel %vm6158_vm4, %v17587_v53, %v14352_v19  ;;  %vm17594_vm9 = vweird.f32 %v17593_v10  ;;  %vm5845_vm0 = vcmp.lt.s32.totalorder %v5844_v2, 2  ;;  %v6565_v28 = vand.u32 3, %v17427_v62  ;;  %v17595_v19 = vld [vmem:[#allocation60_spill] sm:$0xff] }
 0x522   : > { %v6054_v57 = vsel %vm6052_vm13, %v17589_v49, %v17588_v48  ;;  %v6057_v41 = vsel %vm6055_vm10, %v17590_v32, %v17407_v39  ;;  %v5647_v26 = vsel %vm17594_vm9, nan, %v5646_v13  ;;  %vm17596_vm8 = vweird.f32 %v17595_v19  ;;  %vm17599_vm10 = vmmov %vm17592_vm5  ;;  %v17623_v19 = vld [vmem:[#allocation142_spill] sm:$0xff] }
 0x523   : > { %v5956_v14 = vsel %vm17596_vm8, nan, %v5955_v52  ;;  %v5852_v54 = vsel %vm5845_vm0, %v5848_v40, %v5851_v51  ;;  %vm6154_vm12 = vcmp.lt.s32.totalorder %v6153_v55, 2  ;;  %vm6051_vm11 = vcmp.lt.s32.totalorder %v6050_v42, 2  ;;  %8029 = vmatmul.mubr.f32.gmra.mrb[14].mxu1 %v5647_v26  ;;  %v17601_v42 = vld [vmem:[#allocation122_spill] sm:$0xff] }
 0x524   : > { %v6161_v43 = vsel %vm6154_vm12, %v6157_v63, %v6160_v23  ;;  %v6058_v25 = vsel %vm6051_vm11, %v6054_v57, %v6057_v41  ;;  %vm6361_vm14 = vcmp.eq.s32.totalorder %v6359_v3, 0  ;;  %vm6364_vm4 = vcmp.eq.s32.totalorder %v6359_v3, 2  ;;  %10303 = vmatprep.mubr.msk.f32.mxu1 %vm17599_vm10, %v5956_v14  ;;  %v17610_v40 = vld [vmem:[#allocation66_spill] sm:$0xff]  ;;  %v17616_v23 = vld [vmem:[#allocation128_spill] sm:$0xff] }
 0x525   : > { %v17597_v39 = vxor.u32 2147483648, %v17413_v27  ;;  %v17598_v2 = vxor.u32 2147483648, %v17418_v56  ;;  %vm6258_vm13 = vcmp.eq.s32.totalorder %v6256_v12, 0  ;;  %v6462_v1 = vand.u32 3, %v15428_v37  ;;  %v17612_v51 = vld [vmem:[#allocation62_spill] sm:$0xff]  ;;  %v17619_v41 = vld [vmem:[#allocation140_spill] sm:$0xff] }
 0x526   : > { %v17600_v55 = vxor.u32 2147483648, %v17423_v34  ;;  %vm6261_vm5 = vcmp.eq.s32.totalorder %v6256_v12, 2  ;;  %vm6567_vm9 = vcmp.eq.s32.totalorder %v6565_v28, 0  ;;  %vm6570_vm0 = vcmp.eq.s32.totalorder %v6565_v28, 2 }
 0x527   : > { %v6363_v9 = vsel %vm6361_vm14, %v17418_v56, %v17597_v39  ;;  %v6366_v62 = vsel %vm6364_vm4, %v17598_v2, %v17413_v27  ;;  %v17602_v44 = vxor.u32 2147483648, %v17601_v42  ;;  %v17604_v13 = vxor.u32 2147483648, %v17603_v16  ;;  %v17605_v56 = vld [vmem:[#allocation133_spill] sm:$0xff] }
 0x528   : > { %v6260_v50 = vsel %vm6258_vm13, %v17601_v42, %v17600_v55  ;;  %v17606_v37 = vxor.u32 2147483648, %v17605_v56  ;;  %v6771_v7 = vand.u32 3, %v17607_v58  ;;  %vm17609_vm8 = vweird.f32 %v17608_v59  ;;  %v17631_v42 = vld [vmem:[#allocation53_spill] sm:$0xff]  ;;  %v17639_v59 = vld [vmem:[#allocation79_spill] sm:$0xff] }
 0x529   : > { %v6263_v45 = vsel %vm6261_vm5, %v17602_v44, %v17423_v34  ;;  %v6569_v27 = vsel %vm6567_vm9, %v17605_v56, %v17604_v13  ;;  %v5853_v61 = vsel %vm17609_vm8, nan, %v5852_v54  ;;  %vm17611_vm12 = vweird.f32 %v17610_v40  ;;  %v17624_v54 = vld [vmem:[#allocation75_spill] sm:$0xff]  ;;  %v17632_v44 = vld [vmem:[#allocation137_spill] sm:$0xff]  ;;  %v17641_v40 = vld [vmem:[#allocation92_spill] sm:$0xff] }
 0x52a   : > { %v6572_v52 = vsel %vm6570_vm0, %v17606_v37, %v17603_v16  ;;  %v6162_v30 = vsel %vm17611_vm12, nan, %v6161_v43  ;;  %vm6360_vm11 = vcmp.lt.s32.totalorder %v6359_v3, 2  ;;  %8035 = vmatmul.mubr.f32.gmra.mrb[16].mxu1 %v5853_v61  ;;  %vm17613_vm14 = vweird.f32 %v17612_v51  ;;  %v17617_v3 = vld [vmem:[#allocation56_spill] sm:$0xff]  ;;  %v17634_v16 = vld [vmem:[#allocation135_spill] sm:$0xff] }
 0x52b   : > { %v6059_v34 = vsel %vm17613_vm14, nan, %v6058_v25  ;;  %v6367_v4 = vsel %vm6360_vm11, %v6363_v9, %v6366_v62  ;;  %vm6257_vm4 = vcmp.lt.s32.totalorder %v6256_v12, 2  ;;  %vm6566_vm13 = vcmp.lt.s32.totalorder %v6565_v28, 2  ;;  %10304 = vmatprep.mubr.msk.f32.mxu1 %vm17599_vm10, %v6162_v30  ;;  %v17621_v12 = vld [vmem:[#allocation139_spill] sm:$0xff]  ;;  %vm17626_vm11 = vmmov %vm17599_vm10  ;;  %v17627_v25 = vld [vmem:[#allocation72_spill] sm:$0xff] }
 0x52c   : > { %v6264_v33 = vsel %vm6257_vm4, %v6260_v50, %v6263_v45  ;;  %v6573_v63 = vsel %vm6566_vm13, %v6569_v27, %v6572_v52  ;;  %vm6464_vm5 = vcmp.eq.s32.totalorder %v6462_v1, 0  ;;  %vm6467_vm9 = vcmp.eq.s32.totalorder %v6462_v1, 2  ;;  %v17629_v9 = vld [vmem:[#allocation85_spill] sm:$0xff] }
 0x52d   : > { %v17615_v53 = vxor.u32 2147483648, %v17614_v11  ;;  %vm6773_vm0 = vcmp.eq.s32.totalorder %v6771_v7, 0  ;;  %vm6776_vm8 = vcmp.eq.s32.totalorder %v6771_v7, 2  ;;  %v6668_v49 = vand.u32 3, %v17617_v3 }
 0x52e   : > { %v17618_v57 = vxor.u32 2147483648, %v17616_v23  ;;  %v17620_v22 = vxor.u32 2147483648, %v17619_v41  ;;  %v17622_v26 = vxor.u32 2147483648, %v17621_v12  ;;  %v6977_v14 = vand.u32 3, %v17623_v19  ;;  %8041 = vmatmul.mubr.f32.gmra.mrb[18].mxu1 %v6059_v34 }
 0x52f   : > { %v6466_v48 = vsel %vm6464_vm5, %v17616_v23, %v17615_v53  ;;  %vm17625_vm12 = vweird.f32 %v17624_v54  ;;  %vm17628_vm14 = vweird.f32 %v17627_v25  ;;  %vm17630_vm4 = vweird.f32 %v17629_v9  ;;  %v8418_v9 = vld [vmem:[#allocation7 + $0x118] sm:$0xff] }
 0x530   : > { %v6469_v32 = vsel %vm6467_vm9, %v17618_v57, %v17614_v11  ;;  %v6775_v10 = vsel %vm6773_vm0, %v17621_v12, %v17620_v22  ;;  %v6778_v28 = vsel %vm6776_vm8, %v17622_v26, %v17619_v41  ;;  %v6368_v43 = vsel %vm17625_vm12, nan, %v6367_v4  ;;  %vm17638_vm12 = vmmov %vm17626_vm11  ;;  %v17653_v12 = vld [vmem:[#allocation46_spill] sm:$0xff]  ;;  %v17655_v26 = vld [vmem:[#allocation41_spill] sm:$0xff] }
 0x531   : > { %10305 = vmatprep.mubr.msk.f32.mxu1 %vm17626_vm11, %v6368_v43  ;;  %v6265_v39 = vsel %vm17628_vm14, nan, %v6264_v33  ;;  %v6574_v2 = vsel %vm17630_vm4, nan, %v6573_v63  ;;  %vm6463_vm13 = vcmp.lt.s32.totalorder %v6462_v1, 2  ;;  %vm6772_vm10 = vcmp.lt.s32.totalorder %v6771_v7, 2 }
 0x532   : > { %v6470_v62 = vsel %vm6463_vm13, %v6466_v48, %v6469_v32  ;;  %v6779_v55 = vsel %vm6772_vm10, %v6775_v10, %v6778_v28  ;;  %vm6670_vm5 = vcmp.eq.s32.totalorder %v6668_v49, 0  ;;  %v6874_v50 = vand.u32 3, %v17631_v42  ;;  %8047 = vmatmul.mubr.f32.gmra.mrb[20].mxu1 %v6265_v39  ;;  %v17657_v28 = vld [vmem:[#allocation107_spill] sm:$0xff] }
 0x533   : > { %v17633_v45 = vxor.u32 2147483648, %v17632_v44  ;;  %vm6673_vm9 = vcmp.eq.s32.totalorder %v6668_v49, 2  ;;  %vm6979_vm0 = vcmp.eq.s32.totalorder %v6977_v14, 0  ;;  %vm6982_vm8 = vcmp.eq.s32.totalorder %v6977_v14, 2  ;;  %10306 = vmatprep.mubr.msk.f32.mxu1 %vm17638_vm12, %v6574_v2  ;;  %v8416_v39 = vld [vmem:[#allocation7 + $0x108] sm:$0xff]  ;;  %v8415_v2 = vld [vmem:[#allocation7 + $0x100] sm:$0xff] }
 0x534   : > { %v17635_v56 = vxor.u32 2147483648, %v17634_v16  ;;  %v17636_v1 = vxor.u32 2147483648, %v17450_v29  ;;  %v17637_v52 = vxor.u32 2147483648, %v17456_v6  ;;  %v7183_v7 = vand.u32 3, %v17464_v17 }
 0x535   : > { %v6672_v13 = vsel %vm6670_vm5, %v17634_v16, %v17633_v45  ;;  %vm17640_vm11 = vweird.f32 %v17639_v59  ;;  %vm17642_vm14 = vweird.f32 %v17641_v40  ;;  %vm6669_vm4 = vcmp.lt.s32.totalorder %v6668_v49, 2  ;;  %v8419_v45 = vld [vmem:[#allocation7 + $0x120] sm:$0xff]  ;;  %v8428_v59 = vld [vmem:[#allocation7 + $0x168] sm:$0xff] }
 0x536   : > { %v6675_v27 = vsel %vm6673_vm9, %v17635_v56, %v17632_v44  ;;  %v6981_v37 = vsel %vm6979_vm0, %v17456_v6, %v17636_v1  ;;  %v6984_v58 = vsel %vm6982_vm8, %v17637_v52, %v17450_v29  ;;  %v6471_v61 = vsel %vm17640_vm11, nan, %v6470_v62  ;;  %vm17645_vm8 = vmmov %vm17638_vm12  ;;  %v8422_v44 = vld [vmem:[#allocation7 + $0x138] sm:$0xff]  ;;  %v8427_v40 = vld [vmem:[#allocation7 + $0x160] sm:$0xff] }
 0x537   : > { %v6780_v30 = vsel %vm17642_vm14, nan, %v6779_v55  ;;  %vm6978_vm13 = vcmp.lt.s32.totalorder %v6977_v14, 2  ;;  %vm6876_vm10 = vcmp.eq.s32.totalorder %v6874_v50, 0  ;;  %v6676_v51 = vsel %vm6669_vm4, %v6672_v13, %v6675_v27  ;;  %8053 = vmatmul.mubr.f32.gmra.mrb[22].mxu1 %v6471_v61  ;;  %v8417_v55 = vld [vmem:[#allocation7 + $0x110] sm:$0xff]  ;;  %v8424_v27 = vld [vmem:[#allocation7 + $0x148] sm:$0xff]  ;;  %v8426_v1 = vld [vmem:[#allocation7 + $0x158] sm:$0xff] }
 0x538   : > { %v6985_v34 = vsel %vm6978_vm13, %v6981_v37, %v6984_v58  ;;  %v17643_v4 = vxor.u32 2147483648, %v17458_v35  ;;  %vm6879_vm5 = vcmp.eq.s32.totalorder %v6874_v50, 2  ;;  %v17644_v17 = vxor.u32 2147483648, %v17461_v36  ;;  %10307 = vmatprep.mubr.msk.f32.mxu1 %vm17645_vm8, %v6780_v30  ;;  %vm17648_vm13 = vmmov %vm17645_vm8  ;;  %v8421_v13 = vld [vmem:[#allocation7 + $0x130] sm:$0xff]  ;;  %v8423_v37 = vld [vmem:[#allocation7 + $0x140] sm:$0xff] }
 0x539   : > { %vm7185_vm9 = vcmp.eq.s32.totalorder %v7183_v7, 0  ;;  %vm7188_vm0 = vcmp.eq.s32.totalorder %v7183_v7, 2  ;;  %v7080_v33 = vand.u32 3, %v15518_v5  ;;  %v17646_v63 = vxor.u32 2147483648, %v15044_v20  ;;  %v8425_v58 = vld [vmem:[#allocation7 + $0x150] sm:$0xff]  ;;  %v8430_v61 = vld [vmem:[#allocation7 + $0x178] sm:$0xff] }
 0x53a   : > { %v6878_v6 = vsel %vm6876_vm10, %v17461_v36, %v17643_v4  ;;  %v6881_v29 = vsel %vm6879_vm5, %v17644_v17, %v17458_v35  ;;  %v17647_v53 = vxor.u32 2147483648, %v15033_v21  ;;  %v7389_v48 = vand.u32 3, %v15523_v18  ;;  %v8432_v4 = vld [vmem:[#allocation7 + $0x188] sm:$0xff]  ;;  %v8431_v17 = vld [vmem:[#allocation7 + $0x180] sm:$0xff] }
 0x53b   : > { %v7187_v11 = vsel %vm7185_vm9, %v15033_v21, %v17646_v63  ;;  %vm6875_vm12 = vcmp.lt.s32.totalorder %v6874_v50, 2  ;;  %v6677_v35 = vsel %vm3363_vm6, nan, %v6676_v51  ;;  %v6986_v36 = vsel %vm3675_vm2, nan, %v6985_v34  ;;  %v8420_v50 = vld [vmem:[#allocation7 + $0x128] sm:$0xff]  ;;  %v8429_v51 = vld [vmem:[#allocation7 + $0x170] sm:$0xff] }
 0x53c   : > { %v7190_v23 = vsel %vm7188_vm0, %v17647_v53, %v15044_v20  ;;  %v6882_v5 = vsel %vm6875_vm12, %v6878_v6, %v6881_v29  ;;  %vm7184_vm11 = vcmp.lt.s32.totalorder %v7183_v7, 2  ;;  %8059 = vmatmul.mubr.f32.gmra.mrb[24].mxu1 %v6677_v35  ;;  %vm7082_vm14 = vcmp.eq.s32.totalorder %v7080_v33, 0  ;;  %v8434_v6 = vld [vmem:[#allocation7 + $0x198] sm:$0xff]  ;;  %v8437_v35 = vld [vmem:[#allocation7 + $0x1b0] sm:$0xff] }
 0x53d   : > { %v7191_v3 = vsel %vm7184_vm11, %v7187_v11, %v7190_v23  ;;  %vm7085_vm4 = vcmp.eq.s32.totalorder %v7080_v33, 2  ;;  %v7286_v49 = vand.u32 3, %v15547_v46  ;;  %10308 = vmatprep.mubr.msk.f32.mxu1 %vm17648_vm13, %v6986_v36  ;;  %v17649_v21 = vxor.u32 2147483648, %v14954_v31  ;;  %v8436_v11 = vld [vmem:[#allocation7 + $0x1a8] sm:$0xff]  ;;  %v8438_v53 = vld [vmem:[#allocation7 + $0x1b8] sm:$0xff]  ;;  %v8435_v23 = vld [vmem:[#allocation7 + $0x1a0] sm:$0xff] }
 0x53e   : > { %v7087_v18 = vsel %vm7085_vm4, %v17650_v8, %v14954_v31  ;;  %vm7391_vm6 = vcmp.eq.s32.totalorder %v7389_v48, 0  ;;  %vm7394_vm2 = vcmp.eq.s32.totalorder %v7389_v48, 2  ;;  %v17652_v32 = vxor.u32 2147483648, %v15246_v38 }
 0x53f   : > { %v7084_v20 = vsel %vm7082_vm14, %v14948_v60, %v17649_v21  ;;  %v7393_v57 = vsel %vm7391_vm6, %v15246_v38, %v17651_v0  ;;  %v6883_v41 = vsel %vm3571_vm1, nan, %v6882_v5  ;;  %vm7081_vm10 = vcmp.lt.s32.totalorder %v7080_v33, 2  ;;  %v8433_v33 = vld [vmem:[#allocation7 + $0x190] sm:$0xff]  ;;  %v8440_v5 = vld [vmem:[#allocation7 + $0x1c8] sm:$0xff]  ;;  %v8446_v0 = vld [vmem:[#allocation7 + $0x1f8] sm:$0xff] }
 0x540   : > { %v7396_v46 = vsel %vm7394_vm2, %v17652_v32, %v15251_v24  ;;  %vm7390_vm5 = vcmp.lt.s32.totalorder %v7389_v48, 2  ;;  %8065 = vmatmul.mubr.f32.gmra.mrb[26].mxu1 %v6883_v41  ;;  %v7192_v60 = vsel %vm3883_vm15, nan, %v7191_v3  ;;  %v7088_v31 = vsel %vm7081_vm10, %v7084_v20, %v7087_v18  ;;  %vm17660_vm15 = vmmov %vm17645_vm8  ;;  %v8442_v3 = vld [vmem:[#allocation7 + $0x1d8] sm:$0xff]  ;;  %v8441_v20 = vld [vmem:[#allocation7 + $0x1d0] sm:$0xff] }
 0x541   : > { %vm7288_vm9 = vcmp.eq.s32.totalorder %v7286_v49, 0  ;;  %vm7291_vm0 = vcmp.eq.s32.totalorder %v7286_v49, 2  ;;  %10309 = vmatprep.mubr.msk.f32.mxu1 %vm17645_vm8, %v7192_v60  ;;  %v7397_v22 = vsel %vm7390_vm5, %v7393_v57, %v7396_v46  ;;  %v17654_v10 = vxor.u32 2147483648, %v17653_v12  ;;  %v8444_v18 = vld [vmem:[#allocation7 + $0x1e8] sm:$0xff]  ;;  %v8443_v57 = vld [vmem:[#allocation7 + $0x1e0] sm:$0xff]  ;;  %v8445_v46 = vld [vmem:[#allocation7 + $0x1f0] sm:$0xff] }
 0x542   : > { %v17656_v24 = vxor.u32 2147483648, %v17655_v26  ;;  %vm17658_vm1 = vweird.f32 %v17657_v28  ;;  %vm7287_vm12 = vcmp.lt.s32.totalorder %v7286_v49, 2  ;;  %v7398_v14 = vsel %vm4091_vm7, nan, %v7397_v22  ;;  %v8439_v49 = vld [vmem:[#allocation7 + $0x1c0] sm:$0xff]  ;;  %v8845_v60 = vld [vmem:[#allocation8 + $0x8] sm:$0xff] }
 0x543   : > { %v7290_v38 = vsel %vm7288_vm9, %v17655_v26, %v17654_v10  ;;  %v7089_v19 = vsel %vm17658_vm1, nan, %v7088_v31  ;;  %v10588_v62 = vpack.c.bf16 %v8418_v9, %v8416_v39  ;;  %v10590_v42 = vpack.c.bf16 %v8417_v55, %v8415_v2  ;;  %v8847_v31 = vld [vmem:[#allocation8 + $0x18] sm:$0xff] }
 0x544   : > { %v7293_v47 = vsel %vm7291_vm0, %v17656_v24, %v17653_v12  ;;  %8071 = vmatmul.mubr.f32.gmra.mrb[28].mxu1 %v7089_v19  ;;  %v10592_v16 = vpack.c.bf16 %v8422_v44, %v8420_v50  ;;  %v10594_v56 = vpack.c.bf16 %v8421_v13, %v8419_v45  ;;  %v10596_v52 = vpack.c.bf16 %v8426_v1, %v8424_v27 }
 0x545   : > { %v7294_v54 = vsel %vm7287_vm12, %v7290_v38, %v7293_v47  ;;  %10310 = vmatprep.mubr.msk.f32.mxu1 %vm17660_vm15, %v7398_v14  ;;  %10589 = vmatprep.subr.bf16.mxu0 %v10588_v62  ;;  %v10598_v7 = vpack.c.bf16 %v8425_v58, %v8423_v37  ;;  %v10600_v30 = vpack.c.bf16 %v8430_v61, %v8428_v59  ;;  %v8117_v12 = vlaneseq  ;;  %v8115_v38 = vld [vmem:[%s16675_s5] sm:$0x3] }
 0x546   : > { %v7295_v25 = vsel %vm3987_vm3, nan, %v7294_v54  ;;  %10591 = vmatpush1.bf16.msra.mxu0 %v10590_v42  ;;  %v10602_v34 = vpack.c.bf16 %v8429_v51, %v8427_v40  ;;  %v10604_v29 = vpack.c.bf16 %v8434_v6, %v8432_v4  ;;  %v10606_v63 = vpack.c.bf16 %v8433_v33, %v8431_v17 }
 0x547   : > { %10593 = vmatprep.subr.bf16.mxu0 %v10592_v16  ;;  %v10608_v48 = vpack.c.bf16 %v8438_v53, %v8436_v11  ;;  %v10610_v36 = vpack.c.bf16 %v8437_v35, %v8435_v23  ;;  %v10612_v21 = vpack.c.bf16 %v8442_v3, %v8440_v5  ;;  %v10614_v8 = vpack.c.bf16 %v8441_v20, %v8439_v49 }
 0x548   : > { %8077 = vmatmul.mubr.f32.gmra.mrb[30].mxu1 %v7295_v25  ;;  %v10616_v32 = vpack.c.bf16 %v8446_v0, %v8444_v18  ;;  %v10618_v41 = vpack.c.bf16 %v8445_v46, %v8443_v57  ;;  %v10620_v22 = vpack.c.bf16 %v8847_v31, %v8845_v60  ;;  %v8118_v10 = vshrl.u32 %v8117_v12, 7  ;;  %v8844_v46 = vld [vmem:[#allocation8] sm:$0xff]  ;;  %v8846_v31 = vld [vmem:[#allocation8 + $0x10] sm:$0xff]  ;;  %v8851_v12 = vld [vmem:[#allocation8 + $0x38] sm:$0xff] }
 0x54a   : > { %10595 = vmatpush1.bf16.msra.mxu0 %v10594_v56  ;;  %v15934_v26 = vsub.s32 0, %v8118_v10  ;;  %v15939_v24 = vsub.s32 1, %v8118_v10 }
 0x54b   : > { %10597 = vmatprep.subr.bf16.mxu0 %v10596_v52 }
 0x54c   : > { %v15942_v47 = vrot.slane %v8115_v38, %v15934_v26  ;;  %v15945_v28 = vrot.slane %v8115_v38, %v15939_v24 }
 0x54e   : > { %10599 = vmatpush1.bf16.msra.mxu0 %v10598_v7 }
 0x54f   : > { %10601 = vmatprep.subr.bf16.mxu0 %v10600_v30 }
 0x552   : > { %10603 = vmatpush1.bf16.msra.mxu0 %v10602_v34 }
 0x553   : > { %10605 = vmatprep.subr.bf16.mxu0 %v10604_v29 }
 0x556   : > { %10607 = vmatpush1.bf16.msra.mxu0 %v10606_v63 }
 0x557   : > { %10609 = vmatprep.subr.bf16.mxu0 %v10608_v48 }
 0x55a   : > { %10611 = vmatpush1.bf16.msra.mxu0 %v10610_v36 }
 0x55b   : > { %10613 = vmatprep.subr.bf16.mxu0 %v10612_v21 }
 0x55e   : > { %10615 = vmatpush1.bf16.msra.mxu0 %v10614_v8 }
 0x55f   : > { %10617 = vmatprep.subr.bf16.mxu0 %v10616_v32 }
 0x562   : > { %10619 = vmatpush1.bf16.msra.mxu0 %v10618_v41 }
 0x563   : > { %10621 = vmatprep.subr.bf16.mxu0 %v10620_v22  ;;  %v8849_v22 = vld [vmem:[#allocation8 + $0x28] sm:$0xff] }
 0x5d6   : > { %v7988_v19 = vpop.f32.mrb[0].mxu1 }
 0x5d7   : > { %v15948_v15 = vadd.f32 %v15942_v47, %v7988_v19  ;;  %v7990_v14 = vpop.f32.mrb[1].mxu1 }
 0x5d8   : > { %v15951_v54 = vadd.f32 %v15945_v28, %v7990_v14 }
 0x5d9   : > { %v10311_v43 = vmul.f32 -1.442695, %v15948_v15 }
 0x5da   : > { %v10312_v25 = vmul.f32 -1.442695, %v15951_v54  ;;  %v7994_v39 = vpop.f32.mrb[2].mxu1 }
 0x5db   : > { %11201 = vpow2.f32 %v10311_v43  ;;  %v15956_v9 = vadd.f32 %v15942_v47, %v7994_v39  ;;  %v7996_v2 = vpop.f32.mrb[3].mxu1 }
 0x5dc   : > { %11203 = vpow2.f32 %v10312_v25  ;;  %v15959_v62 = vadd.f32 %v15945_v28, %v7996_v2 }
 0x5dd   : > { %v10313_v55 = vmul.f32 -1.442695, %v15956_v9 }
 0x5de   : > { %v10314_v42 = vmul.f32 -1.442695, %v15959_v62  ;;  %v8000_v50 = vpop.f32.mrb[4].mxu1 }
 0x5df   : > { %11205 = vpow2.f32 %v10313_v55  ;;  %v15964_v44 = vadd.f32 %v15942_v47, %v8000_v50  ;;  %v8002_v45 = vpop.f32.mrb[5].mxu1  ;;  %v10622_v50 = vpack.c.bf16 %v8846_v31, %v8844_v46 }
 0x5e0   : > { %11207 = vpow2.f32 %v10314_v42  ;;  %v15967_v16 = vadd.f32 %v15945_v28, %v8002_v45  ;;  %v10624_v45 = vpack.c.bf16 %v8851_v12, %v8849_v22 }
 0x5e1   : > { %v10315_v13 = vmul.f32 -1.442695, %v15964_v44 }
 0x5e2   : > { %v10316_v56 = vmul.f32 -1.442695, %v15967_v16  ;;  %v8006_v27 = vpop.f32.mrb[6].mxu1 }
 0x5e3   : > { %11209 = vpow2.f32 %v10315_v13  ;;  %v15972_v1 = vadd.f32 %v15942_v47, %v8006_v27  ;;  %v8008_v37 = vpop.f32.mrb[7].mxu1  ;;  %v8848_v13 = vld [vmem:[#allocation8 + $0x20] sm:$0xff] }
 0x5e4   : > { %11211 = vpow2.f32 %v10316_v56  ;;  %v15975_v52 = vadd.f32 %v15945_v28, %v8008_v37  ;;  %v8850_v56 = vld [vmem:[#allocation8 + $0x30] sm:$0xff] }
 0x5e5   : > { %v11202_v58 = vpop.eup %11201  ;;  %v10317_v7 = vmul.f32 -1.442695, %v15972_v1 }
 0x5e6   : > { %v11204_v59 = vpop.eup %11203  ;;  %v8255_v61 = vadd.f32 1.0, %v11202_v58  ;;  %v10318_v40 = vmul.f32 -1.442695, %v15975_v52  ;;  %v8012_v30 = vpop.f32.mrb[8].mxu1 }
 0x5e7   : > { %v8256_v51 = vadd.f32 1.0, %v11204_v59  ;;  %11213 = vpow2.f32 %v10317_v7  ;;  %v15980_v34 = vadd.f32 %v15942_v47, %v8012_v30  ;;  %v8014_v4 = vpop.f32.mrb[9].mxu1  ;;  %v8853_v59 = vld [vmem:[#allocation8 + $0x48] sm:$0xff] }
 0x5e8   : > { %11215 = vrcp.f32 %v8255_v61  ;;  %v15983_v6 = vadd.f32 %v15945_v28, %v8014_v4  ;;  %v8855_v61 = vld [vmem:[#allocation8 + $0x58] sm:$0xff] }
 0x5e9   : > { %v11206_v17 = vpop.eup %11205  ;;  %11217 = vrcp.f32 %v8256_v51  ;;  %v10319_v29 = vmul.f32 -1.442695, %v15980_v34 }
 0x5ea   : > { %v11208_v33 = vpop.eup %11207  ;;  %v8257_v63 = vadd.f32 1.0, %v11206_v17  ;;  %11219 = vpow2.f32 %v10318_v40  ;;  %v10320_v11 = vmul.f32 -1.442695, %v15983_v6 }
 0x5eb   : > { %v8258_v23 = vadd.f32 1.0, %v11208_v33  ;;  %11221 = vpow2.f32 %v10319_v29 }
 0x5ec   : > { %11223 = vrcp.f32 %v8257_v63 }
 0x5ed   : > { %v8018_v53 = vpop.f32.mrb[10].mxu1  ;;  %v11210_v5 = vpop.eup %11209  ;;  %11225 = vrcp.f32 %v8258_v23  ;;  %v8852_v23 = vld [vmem:[#allocation8 + $0x40] sm:$0xff] }
 0x5ee   : > { %v15988_v48 = vadd.f32 %v15942_v47, %v8018_v53  ;;  %v8020_v35 = vpop.f32.mrb[11].mxu1  ;;  %v11212_v49 = vpop.eup %11211  ;;  %v8259_v21 = vadd.f32 1.0, %v11210_v5  ;;  %11227 = vpow2.f32 %v10320_v11  ;;  %v10628_v53 = vpack.c.bf16 %v8855_v61, %v8853_v59 }
 0x5ef   : > { %v15991_v36 = vadd.f32 %v15945_v28, %v8020_v35  ;;  %v8260_v18 = vadd.f32 1.0, %v11212_v49  ;;  %v8854_v35 = vld [vmem:[#allocation8 + $0x50] sm:$0xff] }
 0x5f0   : > { %v10321_v3 = vmul.f32 -1.442695, %v15988_v48  ;;  %v10630_v31 = vpack.c.bf16 %v8854_v35, %v8852_v23  ;;  %v8867_v23 = vld [vmem:[#allocation8 + $0xb8] sm:$0xff] }
 0x5f1   : > { %v10322_v20 = vmul.f32 -1.442695, %v15991_v36  ;;  %v8024_v8 = vpop.f32.mrb[12].mxu1  ;;  %v11214_v41 = vpop.eup %11213 }
 0x5f2   : > { %11229 = vpow2.f32 %v10321_v3  ;;  %v15996_v0 = vadd.f32 %v15942_v47, %v8024_v8  ;;  %v8026_v57 = vpop.f32.mrb[13].mxu1  ;;  %v11216_v10 = vpop.eup %11215  ;;  %v8261_v38 = vadd.f32 1.0, %v11214_v41  ;;  %v8859_v8 = vld [vmem:[#allocation8 + $0x78] sm:$0xff] }
 0x5f3   : > { %11231 = vrcp.f32 %v8259_v21  ;;  %v15999_v32 = vadd.f32 %v15945_v28, %v8026_v57  ;;  %v11218_v43 = vpop.eup %11217  ;;  %v8351_v37 = vmul.f32 %v11216_v10, %v15948_v15  ;;  %v10626_v15 = vpack.c.bf16 %v8850_v56, %v8848_v13  ;;  %v8863_v13 = vld [vmem:[#allocation8 + $0x98] sm:$0xff] }
 0x5f4   : > { %11233 = vrcp.f32 %v8260_v18  ;;  %v10323_v60 = vmul.f32 -1.442695, %v15996_v0  ;;  %v11220_v2 = vpop.eup %11219  ;;  %v8352_v55 = vmul.f32 %v11218_v43, %v15951_v54 }
 0x5f5   : > { %11235 = vpow2.f32 %v10322_v20  ;;  %v10324_v19 = vmul.f32 -1.442695, %v15999_v32  ;;  %v11222_v27 = vpop.eup %11221  ;;  %v8262_v58 = vadd.f32 1.0, %v11220_v2  ;;  %v8857_v20 = vld [vmem:[#allocation8 + $0x68] sm:$0xff]  ;;  %v8856_v2 = vld [vmem:[#allocation8 + $0x60] sm:$0xff] }
 0x5f6   : > { %v8030_v14 = vpop.f32.mrb[14].mxu1  ;;  %11237 = vpow2.f32 %v10323_v60  ;;  %v11224_v40 = vpop.eup %11223  ;;  %v8263_v30 = vadd.f32 1.0, %v11222_v27  ;;  %8523 = vmatprep.mubr.f32.mxu0 %v8352_v55  ;;  %v8858_v55 = vld [vmem:[#allocation8 + $0x70] sm:$0xff] }
 0x5f7   : > { %v16004_v25 = vadd.f32 %v15942_v47, %v8030_v14  ;;  %v8032_v39 = vpop.f32.mrb[15].mxu1  ;;  %11239 = vpow2.f32 %v10324_v19  ;;  %v11226_v4 = vpop.eup %11225  ;;  %8524 = vmatmul.mubr.f32.vlgmr.msra.gmra.mrb[32].mxu0 %v8351_v37  ;;  %v8353_v3 = vmul.f32 %v11224_v40, %v15956_v9  ;;  %v10634_v61 = vpack.c.bf16 %v8858_v55, %v8856_v2 }
 0x5f8   : > { %v16008_v42 = vadd.f32 %v15945_v28, %v8032_v39  ;;  %11241 = vrcp.f32 %v8261_v38  ;;  %v11228_v33 = vpop.eup %11227  ;;  %v8354_v63 = vmul.f32 %v11226_v4, %v15959_v62  ;;  %10623 = vmatpush1.bf16.msra.mxu0 %v10622_v50  ;;  %v10632_v38 = vpack.c.bf16 %v8859_v8, %v8857_v20  ;;  %v8862_v4 = vld [vmem:[#allocation8 + $0x90] sm:$0xff] }
 0x5f9   : > { %v10325_v7 = vmul.f32 -1.442695, %v16004_v25  ;;  %11243 = vrcp.f32 %v8262_v58  ;;  %v8264_v49 = vadd.f32 1.0, %v11228_v33  ;;  %10625 = vmatprep.subr.bf16.mxu0 %v10624_v45 }
 0x5fa   : > { %v10326_v54 = vmul.f32 -1.442695, %v16008_v42  ;;  %11245 = vrcp.f32 %v8263_v30  ;;  %8529 = vmatprep.mubr.f32.mxu0 %v8354_v63 }
 0x5fb   : > { %11247 = vpow2.f32 %v10325_v7  ;;  %8530 = vmatmul.mubr.f32.gmra.mrb[34].mxu0 %v8353_v3 }
 0x5fc   : > { %v11230_v5 = vpop.eup %11229  ;;  %11249 = vpow2.f32 %v10326_v54  ;;  %10627 = vmatpush1.bf16.msra.mxu0 %v10626_v15 }
 0x5fd   : > { %v8036_v51 = vpop.f32.mrb[16].mxu1  ;;  %v11232_v18 = vpop.eup %11231  ;;  %v8265_v62 = vadd.f32 1.0, %v11230_v5  ;;  %11251 = vrcp.f32 %v8264_v49  ;;  %10629 = vmatprep.subr.bf16.mxu0 %v10628_v53  ;;  %v8865_v53 = vld [vmem:[#allocation8 + $0xa8] sm:$0xff] }
 0x5fe   : > { %v16014_v17 = vadd.f32 %v15942_v47, %v8036_v51  ;;  %v8038_v29 = vpop.f32.mrb[17].mxu1  ;;  %v11234_v41 = vpop.eup %11233  ;;  %v8355_v14 = vmul.f32 %v11232_v18, %v15964_v44  ;;  %v8860_v51 = vld [vmem:[#allocation8 + $0x80] sm:$0xff] }
 0x5ff   : > { %v16018_v11 = vadd.f32 %v15945_v28, %v8038_v29  ;;  %v11236_v22 = vpop.eup %11235  ;;  %v8356_v12 = vmul.f32 %v11234_v41, %v15967_v16  ;;  %11253 = vrcp.f32 %v8265_v62  ;;  %v8861_v16 = vld [vmem:[#allocation8 + $0x88] sm:$0xff]  ;;  %v10638_v8 = vpack.c.bf16 %v8862_v4, %v8860_v51  ;;  %v8866_v41 = vld [vmem:[#allocation8 + $0xb0] sm:$0xff] }
 0x600   : > { %v10327_v21 = vmul.f32 -1.442695, %v16014_v17  ;;  %v11238_v19 = vpop.eup %11237  ;;  %v8266_v43 = vadd.f32 1.0, %v11236_v22  ;;  %10631 = vmatpush1.bf16.msra.mxu0 %v10630_v31  ;;  %v10636_v54 = vpack.c.bf16 %v8863_v13, %v8861_v16 }
 0x601   : > { %v10328_v57 = vmul.f32 -1.442695, %v16018_v11  ;;  %v8042_v46 = vpop.f32.mrb[18].mxu1  ;;  %v8267_v50 = vadd.f32 1.0, %v11238_v19  ;;  %8535 = vmatprep.mubr.f32.mxu0 %v8356_v12  ;;  %v11240_v56 = vpop.eup %11239  ;;  %10633 = vmatprep.subr.bf16.mxu0 %v10632_v38  ;;  %v8869_v38 = vld [vmem:[#allocation8 + $0xc8] sm:$0xff]  ;;  %v8871_v19 = vld [vmem:[#allocation8 + $0xd8] sm:$0xff] }
 0x602   : > { %v16024_v60 = vadd.f32 %v15942_v47, %v8042_v46  ;;  %v8044_v9 = vpop.f32.mrb[19].mxu1  ;;  %11255 = vpow2.f32 %v10327_v21  ;;  %8536 = vmatmul.mubr.f32.gmra.mrb[36].mxu0 %v8355_v14  ;;  %v11242_v58 = vpop.eup %11241  ;;  %v8268_v7 = vadd.f32 1.0, %v11240_v56  ;;  %v8864_v46 = vld [vmem:[#allocation8 + $0xa0] sm:$0xff] }
 0x603   : > { %v16028_v10 = vadd.f32 %v15945_v28, %v8044_v9  ;;  %11257 = vpow2.f32 %v10328_v57  ;;  %v11244_v40 = vpop.eup %11243  ;;  %v8357_v5 = vmul.f32 %v11242_v58, %v15972_v1  ;;  %v10640_v1 = vpack.c.bf16 %v8867_v23, %v8865_v53 }
 0x604   : > { %v10329_v39 = vmul.f32 -1.442695, %v16024_v60  ;;  %11259 = vrcp.f32 %v8266_v43  ;;  %v11246_v29 = vpop.eup %11245  ;;  %v8358_v15 = vmul.f32 %v11244_v40, %v15975_v52  ;;  %10635 = vmatpush1.bf16.msra.mxu0 %v10634_v61 }
 0x605   : > { %v8048_v45 = vpop.f32.mrb[20].mxu1  ;;  %v10330_v27 = vmul.f32 -1.442695, %v16028_v10  ;;  %11261 = vrcp.f32 %v8267_v50  ;;  %v11248_v35 = vpop.eup %11247  ;;  %10637 = vmatprep.subr.bf16.mxu0 %v10636_v54  ;;  %v8359_v43 = vmul.f32 %v11246_v29, %v15980_v34  ;;  %v10644_v34 = vpack.c.bf16 %v8871_v19, %v8869_v38  ;;  %v8875_v54 = vld [vmem:[#allocation8 + $0xf8] sm:$0xff] }
 0x606   : > { %v16034_v37 = vadd.f32 %v15942_v47, %v8048_v45  ;;  %v8050_v44 = vpop.f32.mrb[21].mxu1  ;;  %11263 = vpow2.f32 %v10329_v39  ;;  %v11250_v21 = vpop.eup %11249  ;;  %v8269_v20 = vadd.f32 1.0, %v11248_v35  ;;  %8541 = vmatprep.mubr.f32.mxu0 %v8358_v15  ;;  %v10642_v45 = vpack.c.bf16 %v8866_v41, %v8864_v46 }
 0x607   : > { %v16037_v59 = vadd.f32 %v15945_v28, %v8050_v44  ;;  %11265 = vrcp.f32 %v8268_v7  ;;  %v11252_v18 = vpop.eup %11251  ;;  %v8270_v62 = vadd.f32 1.0, %v11250_v21  ;;  %8542 = vmatmul.mubr.f32.gmra.mrb[38].mxu0 %v8357_v5  ;;  %v8870_v44 = vld [vmem:[#allocation8 + $0xd0] sm:$0xff] }
 0x608   : > { %v10331_v30 = vmul.f32 -1.442695, %v16034_v37  ;;  %11267 = vpow2.f32 %v10330_v27  ;;  %v8360_v31 = vmul.f32 %v11252_v18, %v15983_v6  ;;  %10639 = vmatpush1.bf16.msra.mxu0 %v10638_v8  ;;  %v8868_v27 = vld [vmem:[#allocation8 + $0xc0] sm:$0xff]  ;;  %v8874_v21 = vld [vmem:[#allocation8 + $0xf0] sm:$0xff] }
 0x609   : > { %v10332_v33 = vmul.f32 -1.442695, %v16037_v59  ;;  %v11254_v9 = vpop.eup %11253  ;;  %10641 = vmatprep.subr.bf16.mxu0 %v10640_v1  ;;  %v10646_v53 = vpack.c.bf16 %v8870_v44, %v8868_v27 }
 0x60a   : > { %v8054_v63 = vpop.f32.mrb[22].mxu1  ;;  %11269 = vpow2.f32 %v10331_v30  ;;  %8547 = vmatprep.mubr.f32.mxu0 %v8360_v31  ;;  %v8873_v30 = vld [vmem:[#allocation8 + $0xe8] sm:$0xff]  ;;  %v8361_v4 = vmul.f32 %v11254_v9, %v15988_v48 }
 0x60b   : > { %v16044_v3 = vadd.f32 %v15942_v47, %v8054_v63  ;;  %v8056_v49 = vpop.f32.mrb[23].mxu1  ;;  %11271 = vpow2.f32 %v10332_v33  ;;  %8548 = vmatmul.mubr.f32.gmra.mrb[40].mxu0 %v8359_v43  ;;  %v10648_v5 = vpack.c.bf16 %v8875_v54, %v8873_v30 }
 0x60c   : > { %v16047_v52 = vadd.f32 %v15945_v28, %v8056_v49  ;;  %11273 = vrcp.f32 %v8269_v20  ;;  %v11256_v14 = vpop.eup %11255  ;;  %10643 = vmatpush1.bf16.msra.mxu0 %v10642_v45  ;;  %v8872_v49 = vld [vmem:[#allocation8 + $0xe0] sm:$0xff] }
 0x60d   : > { %v10333_v57 = vmul.f32 -1.442695, %v16044_v3  ;;  %11275 = vrcp.f32 %v8270_v62  ;;  %v11258_v55 = vpop.eup %11257  ;;  %v8271_v50 = vadd.f32 1.0, %v11256_v14  ;;  %10645 = vmatprep.subr.bf16.mxu0 %v10644_v34 }
 0x60e   : > { %v10334_v22 = vmul.f32 -1.442695, %v16047_v52  ;;  %v11260_v16 = vpop.eup %11259  ;;  %v8272_v13 = vadd.f32 1.0, %v11258_v55 }
 0x60f   : > { %v8060_v12 = vpop.f32.mrb[24].mxu1  ;;  %11277 = vpow2.f32 %v10333_v57  ;;  %v11262_v58 = vpop.eup %11261  ;;  %v8362_v7 = vmul.f32 %v11260_v16, %v15991_v36 }
 0x610   : > { %v16054_v39 = vadd.f32 %v15942_v47, %v8060_v12  ;;  %v8062_v2 = vpop.f32.mrb[25].mxu1  ;;  %11279 = vpow2.f32 %v10334_v22  ;;  %v11264_v51 = vpop.eup %11263  ;;  %v8363_v8 = vmul.f32 %v11262_v58, %v15996_v0  ;;  %10647 = vmatpush1.bf16.msra.mxu0 %v10646_v53  ;;  %v10650_v0 = vpack.c.bf16 %v8874_v21, %v8872_v49 }
 0x611   : > { %v16057_v6 = vadd.f32 %v15945_v28, %v8062_v2  ;;  %11281 = vrcp.f32 %v8271_v50  ;;  %v11266_v33 = vpop.eup %11265  ;;  %v8273_v63 = vadd.f32 1.0, %v11264_v51  ;;  %8553 = vmatprep.mubr.f32.mxu0 %v8362_v7  ;;  %10649 = vmatprep.subr.bf16.mxu0 %v10648_v5 }
 0x612   : > { %v10335_v56 = vmul.f32 -1.442695, %v16054_v39  ;;  %11283 = vrcp.f32 %v8272_v13  ;;  %v11268_v23 = vpop.eup %11267  ;;  %v8364_v35 = vmul.f32 %v11266_v33, %v15999_v32  ;;  %8554 = vmatmul.mubr.f32.gmra.mrb[42].mxu0 %v8361_v4 }
 0x613   : > { %v10336_v61 = vmul.f32 -1.442695, %v16057_v6  ;;  %v8066_v40 = vpop.f32.mrb[26].mxu1  ;;  %v8274_v18 = vadd.f32 1.0, %v11268_v23 }
 0x614   : > { %v16064_v29 = vadd.f32 %v15942_v47, %v8066_v40  ;;  %v8068_v15 = vpop.f32.mrb[27].mxu1  ;;  %11285 = vpow2.f32 %v10335_v56  ;;  %v11270_v20 = vpop.eup %11269  ;;  %8559 = vmatprep.mubr.f32.mxu0 %v8364_v35  ;;  %10651 = vmatpush1.bf16.msra.mxu0 %v10650_v0 }
 0x615   : > { %v16067_v36 = vadd.f32 %v15945_v28, %v8068_v15  ;;  %11287 = vpow2.f32 %v10336_v61  ;;  %v11272_v57 = vpop.eup %11271  ;;  %v8275_v1 = vadd.f32 1.0, %v11270_v20 }
 0x616   : > { %v10337_v48 = vmul.f32 -1.442695, %v16064_v29  ;;  %11289 = vrcp.f32 %v8273_v63  ;;  %v11274_v9 = vpop.eup %11273  ;;  %v8276_v31 = vadd.f32 1.0, %v11272_v57  ;;  %8560 = vmatmul.mubr.f32.gmra.mrb[44].mxu0 %v8363_v8 }
 0x617   : > { %v8072_v62 = vpop.f32.mrb[28].mxu1  ;;  %v10338_v46 = vmul.f32 -1.442695, %v16067_v36  ;;  %v11276_v12 = vpop.eup %11275  ;;  %v8365_v14 = vmul.f32 %v11274_v9, %v16004_v25 }
 0x618   : > { %11291 = vpow2.f32 %v10337_v48  ;;  %v16074_v32 = vadd.f32 %v15942_v47, %v8072_v62  ;;  %v8074_v41 = vpop.f32.mrb[29].mxu1  ;;  %v8366_v43 = vmul.f32 %v11276_v12, %v16008_v42 }
 0x619   : > { %11293 = vrcp.f32 %v8274_v18  ;;  %v16077_v22 = vadd.f32 %v15945_v28, %v8074_v41  ;;  %v11278_v19 = vpop.eup %11277 }
 0x61a   : > { %11295 = vrcp.f32 %v8275_v1  ;;  %v10339_v38 = vmul.f32 -1.442695, %v16074_v32  ;;  %v11280_v55 = vpop.eup %11279  ;;  %v8277_v50 = vadd.f32 1.0, %v11278_v19  ;;  %8565 = vmatprep.mubr.f32.mxu0 %v8366_v43 }
 0x61b   : > { %11297 = vrcp.f32 %v8276_v31  ;;  %v8078_v2 = vpop.f32.mrb[30].mxu1  ;;  %v10340_v45 = vmul.f32 -1.442695, %v16077_v22  ;;  %v11282_v56 = vpop.eup %11281  ;;  %v8278_v34 = vadd.f32 1.0, %v11280_v55  ;;  %8566 = vmatmul.mubr.f32.gmra.mrb[46].mxu0 %v8365_v14 }
 0x61c   : > { %11299 = vpow2.f32 %v10338_v46  ;;  %v16084_v16 = vadd.f32 %v15942_v47, %v8078_v2  ;;  %v8080_v13 = vpop.f32.mrb[31].mxu1  ;;  %v11284_v25 = vpop.eup %11283  ;;  %v8367_v7 = vmul.f32 %v11282_v56, %v16014_v17  ;;  %v8876_v2 = vld [vmem:[#allocation8 + $0x100] sm:$0xff] }
 0x61d   : > { %11301 = vpow2.f32 %v10339_v38  ;;  %v16087_v27 = vadd.f32 %v15945_v28, %v8080_v13  ;;  %v8368_v58 = vmul.f32 %v11284_v25, %v16018_v11  ;;  %v8880_v13 = vld [vmem:[#allocation8 + $0x120] sm:$0xff] }
 0x61e   : > { %11303 = vrcp.f32 %v8277_v50  ;;  %v10341_v42 = vmul.f32 -1.442695, %v16084_v16  ;;  %v11286_v44 = vpop.eup %11285  ;;  %v8878_v50 = vld [vmem:[#allocation8 + $0x110] sm:$0xff] }
 0x61f   : > { %11305 = vrcp.f32 %v8278_v34  ;;  %v11288_v47 = vpop.eup %11287  ;;  %v8279_v61 = vadd.f32 1.0, %v11286_v44  ;;  %v10342_v40 = vmul.f32 -1.442695, %v16087_v27  ;;  %8571 = vmatprep.mubr.f32.mxu0 %v8368_v58  ;;  %v8882_v34 = vld [vmem:[#allocation8 + $0x130] sm:$0xff] }
 0x620   : > { %11307 = vpow2.f32 %v10340_v45  ;;  %v11290_v30 = vpop.eup %11289  ;;  %v8280_v28 = vadd.f32 1.0, %v11288_v47  ;;  %8572 = vmatmul.mubr.f32.gmra.mrb[48].mxu0 %v8367_v7  ;;  %v10654_v45 = vpack.c.bf16 %v8878_v50, %v8876_v2  ;;  %v10658_v25 = vpack.c.bf16 %v8882_v34, %v8880_v13  ;;  %v8886_v58 = vld [vmem:[#allocation8 + $0x150] sm:$0xff]  ;;  %v8889_v7 = vld [vmem:[#allocation8 + $0x168] sm:$0xff] }
 0x621   : > { %11309 = vpow2.f32 %v10341_v42  ;;  %v8369_v17 = vmul.f32 %v11290_v30, %v16024_v60  ;;  %v8884_v42 = vld [vmem:[#allocation8 + $0x140] sm:$0xff] }
 0x622   : > { %v11292_v54 = vpop.eup %11291  ;;  %11311 = vrcp.f32 %v8279_v61  ;;  %v10662_v47 = vpack.c.bf16 %v8886_v58, %v8884_v42  ;;  %v8891_v61 = vld [vmem:[#allocation8 + $0x178] sm:$0xff] }
 0x623   : > { %v11294_v51 = vpop.eup %11293  ;;  %11313 = vrcp.f32 %v8280_v28  ;;  %v8281_v15 = vadd.f32 1.0, %v11292_v54  ;;  %v10664_v30 = vpack.c.bf16 %v8891_v61, %v8889_v7  ;;  %v8890_v28 = vld [vmem:[#allocation8 + $0x170] sm:$0xff] }
 0x624   : > { %v11296_v4 = vpop.eup %11295  ;;  %v8370_v11 = vmul.f32 %v11294_v51, %v16028_v10  ;;  %11315 = vpow2.f32 %v10342_v40  ;;  %v8888_v40 = vld [vmem:[#allocation8 + $0x160] sm:$0xff]  ;;  %v8893_v51 = vld [vmem:[#allocation8 + $0x188] sm:$0xff] }
 0x625   : > { %v11298_v33 = vpop.eup %11297  ;;  %11317 = vrcp.f32 %v8281_v15  ;;  %v8371_v21 = vmul.f32 %v11296_v4, %v16034_v37  ;;  %v10666_v54 = vpack.c.bf16 %v8890_v28, %v8888_v40  ;;  %v8895_v4 = vld [vmem:[#allocation8 + $0x198] sm:$0xff] }
 0x626   : > { %v11300_v63 = vpop.eup %11299  ;;  %v8372_v53 = vmul.f32 %v11298_v33, %v16037_v59  ;;  %8577 = vmatprep.mubr.f32.mxu0 %v8370_v11  ;;  %v8892_v11 = vld [vmem:[#allocation8 + $0x180] sm:$0xff]  ;;  %v10668_v15 = vpack.c.bf16 %v8895_v4, %v8893_v51  ;;  %v8894_v33 = vld [vmem:[#allocation8 + $0x190] sm:$0xff] }
 0x627   : > { %v11302_v23 = vpop.eup %11301  ;;  %v8282_v35 = vadd.f32 1.0, %v11300_v63  ;;  %8578 = vmatmul.mubr.f32.gmra.mrb[50].mxu0 %v8369_v17  ;;  %v10670_v17 = vpack.c.bf16 %v8894_v33, %v8892_v11  ;;  %v8897_v63 = vld [vmem:[#allocation8 + $0x1a8] sm:$0xff] }
 0x628   : > { %v11304_v48 = vpop.eup %11303  ;;  %v8283_v5 = vadd.f32 1.0, %v11302_v23  ;;  %8583 = vmatprep.mubr.f32.mxu0 %v8372_v53  ;;  %v8899_v53 = vld [vmem:[#allocation8 + $0x1b8] sm:$0xff]  ;;  %v8896_v23 = vld [vmem:[#allocation8 + $0x1a0] sm:$0xff] }
 0x629   : > { %v11306_v49 = vpop.eup %11305  ;;  %11319 = vrcp.f32 %v8282_v35  ;;  %v8373_v57 = vmul.f32 %v11304_v48, %v16044_v3  ;;  %v10672_v35 = vpack.c.bf16 %v8899_v53, %v8897_v63  ;;  %v8898_v48 = vld [vmem:[#allocation8 + $0x1b0] sm:$0xff] }
 0x62a   : > { %v11308_v10 = vpop.eup %11307  ;;  %v8374_v20 = vmul.f32 %v11306_v49, %v16047_v52  ;;  %11321 = vrcp.f32 %v8283_v5  ;;  %v10674_v5 = vpack.c.bf16 %v8898_v48, %v8896_v23  ;;  %v8901_v49 = vld [vmem:[#allocation8 + $0x1c8] sm:$0xff] }
 0x62b   : > { %v11310_v8 = vpop.eup %11309  ;;  %v8284_v60 = vadd.f32 1.0, %v11308_v10  ;;  %8584 = vmatmul.mubr.f32.gmra.mrb[52].mxu0 %v8371_v21  ;;  %v8903_v21 = vld [vmem:[#allocation8 + $0x1d8] sm:$0xff]  ;;  %v8900_v10 = vld [vmem:[#allocation8 + $0x1c0] sm:$0xff] }
 0x62c   : > { %v11312_v18 = vpop.eup %11311  ;;  %v8285_v59 = vadd.f32 1.0, %v11310_v8  ;;  %8589 = vmatprep.mubr.f32.mxu0 %v8374_v20  ;;  %v10676_v20 = vpack.c.bf16 %v8903_v21, %v8901_v49  ;;  %v8902_v8 = vld [vmem:[#allocation8 + $0x1d0] sm:$0xff] }
 0x62d   : > { %v11314_v62 = vpop.eup %11313  ;;  %11323 = vrcp.f32 %v8284_v60  ;;  %v8375_v37 = vmul.f32 %v11312_v18, %v16054_v39  ;;  %v10678_v60 = vpack.c.bf16 %v8902_v8, %v8900_v10  ;;  %v8905_v18 = vld [vmem:[#allocation8 + $0x1e8] sm:$0xff] }
 0x62e   : > { %v11316_v1 = vpop.eup %11315  ;;  %v8376_v46 = vmul.f32 %v11314_v62, %v16057_v6  ;;  %11325 = vrcp.f32 %v8285_v59  ;;  %v8907_v59 = vld [vmem:[#allocation8 + $0x1f8] sm:$0xff]  ;;  %v8904_v62 = vld [vmem:[#allocation8 + $0x1e0] sm:$0xff] }
 0x62f   : > { %v8286_v41 = vadd.f32 1.0, %v11316_v1  ;;  %8590 = vmatmul.mubr.f32.gmra.mrb[54].mxu0 %v8373_v57  ;;  %v11318_v52 = vpop.eup %11317  ;;  %v10680_v57 = vpack.c.bf16 %v8907_v59, %v8905_v18  ;;  %v8906_v1 = vld [vmem:[#allocation8 + $0x1f0] sm:$0xff] }
 0x630   : > { %8595 = vmatprep.mubr.f32.mxu0 %v8376_v46  ;;  %v8377_v0 = vmul.f32 %v11318_v52, %v16064_v29  ;;  %v8879_v29 = vld [vmem:[#allocation8 + $0x118] sm:$0xff]  ;;  %v10682_v46 = vpack.c.bf16 %v8906_v1, %v8904_v62  ;;  %v9307_v62 = vld [vmem:[#allocation10 + $0x10] sm:$0xff] }
 0x631   : > { %11327 = vrcp.f32 %v8286_v41  ;;  %v9306_v41 = vld [vmem:[#allocation10 + $0x8] sm:$0xff]  ;;  %v9312_v1 = vld [vmem:[#allocation10 + $0x38] sm:$0xff] }
 0x633   : > { %v11320_v9 = vpop.eup %11319  ;;  %8596 = vmatmul.mubr.f32.gmra.mrb[56].mxu0 %v8375_v37  ;;  %v9308_v37 = vld [vmem:[#allocation10 + $0x18] sm:$0xff] }
 0x634   : > { %v8378_v31 = vmul.f32 %v11320_v9, %v16067_v36  ;;  %v11322_v12 = vpop.eup %11321  ;;  %v8877_v36 = vld [vmem:[#allocation8 + $0x108] sm:$0xff]  ;;  %v10684_v52 = vpack.c.bf16 %v9308_v37, %v9306_v41  ;;  %v8447_v9 = vld [vmem:[%s16677_s7] sm:$0x3] }
 0x635   : > { %v8379_v38 = vmul.f32 %v11322_v12, %v16074_v32  ;;  %v10652_v55 = vpack.c.bf16 %v8879_v29, %v8877_v36  ;;  %v8883_v32 = vld [vmem:[#allocation8 + $0x138] sm:$0xff] }
 0x636   : > { %8601 = vmatprep.mubr.f32.mxu0 %v8378_v31  ;;  %v16111_v31 = vrot.slane %v8447_v9, %v15934_v26 }
 0x637   : > { %v11324_v3 = vpop.eup %11323  ;;  %8602 = vmatmul.mubr.f32.gmra.mrb[58].mxu0 %v8377_v0  ;;  %10653 = vmatprep.subr.bf16.mxu0 %v10652_v55  ;;  %v16114_v0 = vrot.slane %v8447_v9, %v15939_v24 }
 0x638   : > { %v8380_v6 = vmul.f32 %v11324_v3, %v16077_v22  ;;  %v11326_v19 = vpop.eup %11325  ;;  %10655 = vmatpush1.bf16.msra.mxu0 %v10654_v45  ;;  %v8881_v22 = vld [vmem:[#allocation8 + $0x128] sm:$0xff] }
 0x639   : > { %v8381_v43 = vmul.f32 %v11326_v19, %v16084_v16  ;;  %v10656_v56 = vpack.c.bf16 %v8883_v32, %v8881_v22  ;;  %v8887_v16 = vld [vmem:[#allocation8 + $0x158] sm:$0xff] }
 0x63a   : > { %8607 = vmatprep.mubr.f32.mxu0 %v8380_v6 }
 0x63b   : > { %v11328_v14 = vpop.eup %11327  ;;  %8608 = vmatmul.mubr.f32.gmra.mrb[60].mxu0 %v8379_v38  ;;  %10657 = vmatprep.subr.bf16.mxu0 %v10656_v56 }
 0x63c   : > { %v8382_v39 = vmul.f32 %v11328_v14, %v16087_v27  ;;  %10659 = vmatpush1.bf16.msra.mxu0 %v10658_v25  ;;  %v8885_v27 = vld [vmem:[#allocation8 + $0x148] sm:$0xff] }
 0x63d   : > { %v10660_v44 = vpack.c.bf16 %v8887_v16, %v8885_v27 }
 0x63e   : > { %8613 = vmatprep.mubr.f32.mxu0 %v8382_v39 }
 0x63f   : > { %8614 = vmatmul.mubr.f32.gmra.mrb[62].mxu0 %v8381_v43  ;;  %10661 = vmatprep.subr.bf16.mxu0 %v10660_v44 }
 0x640   : > { %10663 = vmatpush1.bf16.msra.mxu0 %v10662_v47 }
 0x641   : > { %10665 = vmatprep.subr.bf16.mxu0 %v10664_v30 }
 0x644   : > { %10667 = vmatpush1.bf16.msra.mxu0 %v10666_v54 }
 0x645   : > { %10669 = vmatprep.subr.bf16.mxu0 %v10668_v15 }
 0x648   : > { %10671 = vmatpush1.bf16.msra.mxu0 %v10670_v17 }
 0x649   : > { %10673 = vmatprep.subr.bf16.mxu0 %v10672_v35 }
 0x64c   : > { %10675 = vmatpush1.bf16.msra.mxu0 %v10674_v5 }
 0x64d   : > { %10677 = vmatprep.subr.bf16.mxu0 %v10676_v20 }
 0x650   : > { %10679 = vmatpush1.bf16.msra.mxu0 %v10678_v60  ;;  %v9305_v60 = vld [vmem:[#allocation10] sm:$0xff] }
 0x651   : > { %10681 = vmatprep.subr.bf16.mxu0 %v10680_v57  ;;  %v9310_v57 = vld [vmem:[#allocation10 + $0x28] sm:$0xff] }
 0x654   : > { %10683 = vmatpush1.bf16.msra.mxu0 %v10682_v46 }
 0x655   : > { %10685 = vmatprep.subr.bf16.mxu0 %v10684_v52 }
 0x6ca   : > { %v8525_v12 = vpop.f32.mrb[32].mxu0 }
 0x6cb   : > { %v16117_v3 = vadd.f32 %v8525_v12, %v16111_v31  ;;  %v8527_v6 = vpop.f32.mrb[33].mxu0 }
 0x6cc   : > { %v16120_v38 = vadd.f32 %v8527_v6, %v16114_v0 }
 0x6cd   : > { %v10343_v19 = vmul.f32 -1.442695, %v16117_v3 }
 0x6ce   : > { %v10344_v14 = vmul.f32 -1.442695, %v16120_v38  ;;  %v8531_v39 = vpop.f32.mrb[34].mxu0 }
 0x6cf   : > { %11329 = vpow2.f32 %v10343_v19  ;;  %v16125_v43 = vadd.f32 %v8531_v39, %v16111_v31  ;;  %v8533_v36 = vpop.f32.mrb[35].mxu0  ;;  %v10688_v39 = vpack.c.bf16 %v9312_v1, %v9310_v57 }
 0x6d0   : > { %11331 = vpow2.f32 %v10344_v14  ;;  %v16128_v29 = vadd.f32 %v8533_v36, %v16114_v0  ;;  %v10686_v14 = vpack.c.bf16 %v9307_v62, %v9305_v60  ;;  %v9309_v36 = vld [vmem:[#allocation10 + $0x20] sm:$0xff] }
 0x6d1   : > { %v10345_v2 = vmul.f32 -1.442695, %v16125_v43 }
 0x6d2   : > { %v10346_v55 = vmul.f32 -1.442695, %v16128_v29 }
 0x6d3   : > { %11333 = vpow2.f32 %v10345_v2  ;;  %v9311_v2 = vld [vmem:[#allocation10 + $0x30] sm:$0xff] }
 0x6d4   : > { %11335 = vpow2.f32 %v10346_v55 }
 0x6d5   : > { %v8537_v50 = vpop.f32.mrb[36].mxu0 }
 0x6d6   : > { %v16133_v45 = vadd.f32 %v8537_v50, %v16111_v31  ;;  %v8539_v22 = vpop.f32.mrb[37].mxu0 }
 0x6d7   : > { %v16136_v32 = vadd.f32 %v8539_v22, %v16114_v0 }
 0x6d8   : > { %v10347_v13 = vmul.f32 -1.442695, %v16133_v45 }
 0x6d9   : > { %v10348_v56 = vmul.f32 -1.442695, %v16136_v32  ;;  %v11330_v25 = vpop.eup %11329 }
 0x6da   : > { %11337 = vpow2.f32 %v10347_v13  ;;  %v8543_v34 = vpop.f32.mrb[38].mxu0  ;;  %v11332_v42 = vpop.eup %11331  ;;  %v8716_v44 = vadd.f32 1.0, %v11330_v25  ;;  %v9316_v25 = vld [vmem:[#allocation10 + $0x58] sm:$0xff] }
 0x6db   : > { %11339 = vpow2.f32 %v10348_v56  ;;  %v16141_v27 = vadd.f32 %v8543_v34, %v16111_v31  ;;  %v8545_v16 = vpop.f32.mrb[39].mxu0  ;;  %v8717_v47 = vadd.f32 1.0, %v11332_v42  ;;  %v9314_v34 = vld [vmem:[#allocation10 + $0x48] sm:$0xff] }
 0x6dc   : > { %v16144_v58 = vadd.f32 %v8545_v16, %v16114_v0  ;;  %11341 = vrcp.f32 %v8716_v44 }
 0x6dd   : > { %v10349_v7 = vmul.f32 -1.442695, %v16141_v27  ;;  %v11334_v30 = vpop.eup %11333  ;;  %11343 = vrcp.f32 %v8717_v47 }
 0x6de   : > { %v10350_v61 = vmul.f32 -1.442695, %v16144_v58  ;;  %v8549_v40 = vpop.f32.mrb[40].mxu0  ;;  %v11336_v51 = vpop.eup %11335  ;;  %v8718_v4 = vadd.f32 1.0, %v11334_v30 }
 0x6df   : > { %v16149_v28 = vadd.f32 %v8549_v40, %v16111_v31  ;;  %v8551_v54 = vpop.f32.mrb[41].mxu0  ;;  %11345 = vpow2.f32 %v10349_v7  ;;  %v8719_v15 = vadd.f32 1.0, %v11336_v51 }
 0x6e0   : > { %v16152_v11 = vadd.f32 %v8551_v54, %v16114_v0  ;;  %11347 = vpow2.f32 %v10350_v61  ;;  %v10692_v54 = vpack.c.bf16 %v9316_v25, %v9314_v34 }
 0x6e1   : > { %v10351_v33 = vmul.f32 -1.442695, %v16149_v28  ;;  %11349 = vrcp.f32 %v8718_v4 }
 0x6e2   : > { %v10352_v17 = vmul.f32 -1.442695, %v16152_v11  ;;  %11351 = vrcp.f32 %v8719_v15 }
 0x6e3   : > { %11353 = vpow2.f32 %v10351_v33 }
 0x6e4   : > { %v11338_v53 = vpop.eup %11337  ;;  %11355 = vpow2.f32 %v10352_v17 }
 0x6e5   : > { %v8555_v63 = vpop.f32.mrb[42].mxu0  ;;  %v11340_v48 = vpop.eup %11339  ;;  %v8720_v5 = vadd.f32 1.0, %v11338_v53  ;;  %v9315_v53 = vld [vmem:[#allocation10 + $0x50] sm:$0xff] }
 0x6e6   : > { %v16157_v23 = vadd.f32 %v8555_v63, %v16111_v31  ;;  %v8557_v35 = vpop.f32.mrb[43].mxu0  ;;  %v8721_v21 = vadd.f32 1.0, %v11340_v48  ;;  %v11342_v46 = vpop.eup %11341  ;;  %v9313_v63 = vld [vmem:[#allocation10 + $0x40] sm:$0xff] }
 0x6e7   : > { %v16160_v49 = vadd.f32 %v8557_v35, %v16114_v0  ;;  %11357 = vrcp.f32 %v8720_v5  ;;  %v11344_v37 = vpop.eup %11343  ;;  %v8812_v50 = vmul.f32 %v11342_v46, %v16117_v3  ;;  %v10690_v3 = vpack.c.bf16 %v9311_v2, %v9309_v36  ;;  %v9318_v5 = vld [vmem:[#allocation10 + $0x68] sm:$0xff] }
 0x6e8   : > { %v10353_v10 = vmul.f32 -1.442695, %v16157_v23  ;;  %11359 = vrcp.f32 %v8721_v21  ;;  %v8813_v12 = vmul.f32 %v11344_v37, %v16120_v38  ;;  %v9320_v21 = vld [vmem:[#allocation10 + $0x78] sm:$0xff] }
 0x6e9   : > { %v10354_v20 = vmul.f32 -1.442695, %v16160_v49  ;;  %v8561_v8 = vpop.f32.mrb[44].mxu0  ;;  %v11346_v9 = vpop.eup %11345  ;;  %v10696_v37 = vpack.c.bf16 %v9320_v21, %v9318_v5 }
 0x6ea   : > { %v16165_v18 = vadd.f32 %v8561_v8, %v16111_v31  ;;  %v8563_v59 = vpop.f32.mrb[45].mxu0  ;;  %11361 = vpow2.f32 %v10353_v10  ;;  %v11348_v55 = vpop.eup %11347  ;;  %v8722_v22 = vadd.f32 1.0, %v11346_v9  ;;  %8984 = vmatprep.mubr.f32.mxu0 %v8813_v12  ;;  %v9319_v9 = vld [vmem:[#allocation10 + $0x70] sm:$0xff] }
 0x6eb   : > { %v16168_v41 = vadd.f32 %v8563_v59, %v16114_v0  ;;  %11363 = vpow2.f32 %v10354_v20  ;;  %v11350_v16 = vpop.eup %11349  ;;  %v8723_v38 = vadd.f32 1.0, %v11348_v55  ;;  %8985 = vmatmul.mubr.f32.vlgmr.msra.gmra.mrb[64].mxu0 %v8812_v50  ;;  %v10694_v59 = vpack.c.bf16 %v9315_v53, %v9313_v63 }
 0x6ec   : > { %v10355_v52 = vmul.f32 -1.442695, %v16165_v18  ;;  %v11352_v44 = vpop.eup %11351  ;;  %10687 = vmatpush1.bf16.msra.mxu0 %v10686_v14  ;;  %v8814_v4 = vmul.f32 %v11350_v16, %v16125_v43  ;;  %v9324_v14 = vld [vmem:[#allocation10 + $0x98] sm:$0xff] }
 0x6ed   : > { %v10356_v6 = vmul.f32 -1.442695, %v16168_v41  ;;  %v11354_v7 = vpop.eup %11353  ;;  %v8815_v61 = vmul.f32 %v11352_v44, %v16128_v29  ;;  %10689 = vmatprep.subr.bf16.mxu0 %v10688_v39 }
 0x6ee   : > { %v8567_v19 = vpop.f32.mrb[46].mxu0  ;;  %11365 = vpow2.f32 %v10355_v52  ;;  %v11356_v51 = vpop.eup %11355  ;;  %v8724_v15 = vadd.f32 1.0, %v11354_v7  ;;  %v9317_v52 = vld [vmem:[#allocation10 + $0x60] sm:$0xff] }
 0x6ef   : > { %v16175_v13 = vadd.f32 %v8567_v19, %v16111_v31  ;;  %v8569_v56 = vpop.f32.mrb[47].mxu0  ;;  %11367 = vpow2.f32 %v10356_v6  ;;  %v8725_v29 = vadd.f32 1.0, %v11356_v51  ;;  %8990 = vmatprep.mubr.f32.mxu0 %v8815_v61  ;;  %v9322_v19 = vld [vmem:[#allocation10 + $0x88] sm:$0xff]  ;;  %v10698_v50 = vpack.c.bf16 %v9319_v9, %v9317_v52 }
 0x6f0   : > { %v16178_v42 = vadd.f32 %v8569_v56, %v16114_v0  ;;  %11369 = vrcp.f32 %v8722_v22  ;;  %8991 = vmatmul.mubr.f32.gmra.mrb[66].mxu0 %v8814_v4  ;;  %v9321_v22 = vld [vmem:[#allocation10 + $0x80] sm:$0xff]  ;;  %v9323_v56 = vld [vmem:[#allocation10 + $0x90] sm:$0xff]  ;;  %v10700_v44 = vpack.c.bf16 %v9324_v14, %v9322_v19  ;;  %v9326_v61 = vld [vmem:[#allocation10 + $0xa8] sm:$0xff] }
 0x6f1   : > { %v10357_v47 = vmul.f32 -1.442695, %v16175_v13  ;;  %11371 = vrcp.f32 %v8723_v38  ;;  %v11358_v35 = vpop.eup %11357  ;;  %10691 = vmatpush1.bf16.msra.mxu0 %v10690_v3  ;;  %v10702_v4 = vpack.c.bf16 %v9323_v56, %v9321_v22  ;;  %v9334_v22 = vld [vmem:[#allocation10 + $0xe8] sm:$0xff]  ;;  %v9336_v56 = vld [vmem:[#allocation10 + $0xf8] sm:$0xff] }
 0x6f2   : > { %v10358_v40 = vmul.f32 -1.442695, %v16178_v42  ;;  %v11360_v10 = vpop.eup %11359  ;;  %v8816_v57 = vmul.f32 %v11358_v35, %v16133_v45  ;;  %10693 = vmatprep.subr.bf16.mxu0 %v10692_v54  ;;  %v9325_v35 = vld [vmem:[#allocation10 + $0xa0] sm:$0xff] }
 0x6f3   : > { %v8573_v30 = vpop.f32.mrb[48].mxu0  ;;  %11373 = vpow2.f32 %v10357_v47  ;;  %v8817_v8 = vmul.f32 %v11360_v10, %v16136_v32 }
 0x6f4   : > { %v16185_v33 = vadd.f32 %v8573_v30, %v16111_v31  ;;  %v8575_v17 = vpop.f32.mrb[49].mxu0  ;;  %11375 = vpow2.f32 %v10358_v40  ;;  %v11362_v20 = vpop.eup %11361  ;;  %v9328_v40 = vld [vmem:[#allocation10 + $0xb8] sm:$0xff] }
 0x6f5   : > { %v16188_v48 = vadd.f32 %v8575_v17, %v16114_v0  ;;  %11377 = vrcp.f32 %v8724_v15  ;;  %v11364_v62 = vpop.eup %11363  ;;  %v8726_v1 = vadd.f32 1.0, %v11362_v20  ;;  %8996 = vmatprep.mubr.f32.mxu0 %v8817_v8  ;;  %10695 = vmatpush1.bf16.msra.mxu0 %v10694_v59  ;;  %v9332_v59 = vld [vmem:[#allocation10 + $0xd8] sm:$0xff] }
 0x6f6   : > { %v10359_v43 = vmul.f32 -1.442695, %v16185_v33  ;;  %11379 = vrcp.f32 %v8725_v29  ;;  %v8727_v12 = vadd.f32 1.0, %v11364_v62  ;;  %8997 = vmatmul.mubr.f32.gmra.mrb[68].mxu0 %v8816_v57  ;;  %10697 = vmatprep.subr.bf16.mxu0 %v10696_v37  ;;  %v9327_v29 = vld [vmem:[#allocation10 + $0xb0] sm:$0xff] }
 0x6f7   : > { %v10360_v60 = vmul.f32 -1.442695, %v16188_v48 }
 0x6f8   : > { %11381 = vpow2.f32 %v10359_v43  ;;  %v11366_v39 = vpop.eup %11365  ;;  %v10704_v43 = vpack.c.bf16 %v9328_v40, %v9326_v61 }
 0x6f9   : > { %11383 = vpow2.f32 %v10360_v60  ;;  %v11368_v36 = vpop.eup %11367  ;;  %v8728_v2 = vadd.f32 1.0, %v11366_v39  ;;  %10699 = vmatpush1.bf16.msra.mxu0 %v10698_v50  ;;  %v9330_v60 = vld [vmem:[#allocation10 + $0xc8] sm:$0xff] }
 0x6fa   : > { %v8579_v46 = vpop.f32.mrb[50].mxu0  ;;  %11385 = vrcp.f32 %v8726_v1  ;;  %v11370_v34 = vpop.eup %11369  ;;  %v8729_v25 = vadd.f32 1.0, %v11368_v36  ;;  %10701 = vmatprep.subr.bf16.mxu0 %v10700_v44  ;;  %v9329_v36 = vld [vmem:[#allocation10 + $0xc0] sm:$0xff] }
 0x6fb   : > { %v16195_v6 = vadd.f32 %v8579_v46, %v16111_v31  ;;  %v8581_v32 = vpop.f32.mrb[51].mxu0  ;;  %11387 = vrcp.f32 %v8727_v12  ;;  %v11372_v47 = vpop.eup %11371  ;;  %v8818_v17 = vmul.f32 %v11370_v34, %v16141_v27  ;;  %v10706_v46 = vpack.c.bf16 %v9327_v29, %v9325_v35 }
 0x6fc   : > { %v16198_v45 = vadd.f32 %v8581_v32, %v16114_v0  ;;  %11389 = vrcp.f32 %v8728_v2  ;;  %v8819_v54 = vmul.f32 %v11372_v47, %v16144_v58  ;;  %v9331_v2 = vld [vmem:[#allocation10 + $0xd0] sm:$0xff] }
 0x6fd   : > { %v10361_v55 = vmul.f32 -1.442695, %v16195_v6  ;;  %v11374_v30 = vpop.eup %11373  ;;  %11391 = vrcp.f32 %v8729_v25  ;;  %10703 = vmatpush1.bf16.msra.mxu0 %v10702_v4  ;;  %v10710_v47 = vpack.c.bf16 %v9331_v2, %v9329_v36 }
 0x6fe   : > { %v10362_v16 = vmul.f32 -1.442695, %v16198_v45  ;;  %v8585_v38 = vpop.f32.mrb[52].mxu0  ;;  %v11376_v15 = vpop.eup %11375  ;;  %v8730_v63 = vadd.f32 1.0, %v11374_v30  ;;  %9002 = vmatprep.mubr.f32.mxu0 %v8819_v54  ;;  %10705 = vmatprep.subr.bf16.mxu0 %v10704_v43  ;;  %v9333_v30 = vld [vmem:[#allocation10 + $0xe0] sm:$0xff]  ;;  %v9335_v54 = vld [vmem:[#allocation10 + $0xf0] sm:$0xff] }
 0x6ff   : > { %v16203_v3 = vadd.f32 %v8585_v38, %v16111_v31  ;;  %v8587_v7 = vpop.f32.mrb[53].mxu0  ;;  %11393 = vpow2.f32 %v10361_v55  ;;  %v11378_v5 = vpop.eup %11377  ;;  %v8731_v21 = vadd.f32 1.0, %v11376_v15  ;;  %9003 = vmatmul.mubr.f32.gmra.mrb[70].mxu0 %v8818_v17 }
 0x700   : > { %v16207_v51 = vadd.f32 %v8587_v7, %v16114_v0  ;;  %11395 = vpow2.f32 %v10362_v16  ;;  %v11380_v20 = vpop.eup %11379  ;;  %v8820_v52 = vmul.f32 %v11378_v5, %v16149_v28 }
 0x701   : > { %v10363_v53 = vmul.f32 -1.442695, %v16203_v3  ;;  %11397 = vrcp.f32 %v8730_v63  ;;  %v8821_v57 = vmul.f32 %v11380_v20, %v16152_v11  ;;  %v10708_v11 = vpack.c.bf16 %v9332_v59, %v9330_v60  ;;  %10707 = vmatpush1.bf16.msra.mxu0 %v10706_v46 }
 0x702   : > { %v10364_v58 = vmul.f32 -1.442695, %v16207_v51  ;;  %v8591_v10 = vpop.f32.mrb[54].mxu0  ;;  %v11382_v62 = vpop.eup %11381  ;;  %11399 = vrcp.f32 %v8731_v21 }
 0x703   : > { %v16213_v27 = vadd.f32 %v8591_v10, %v16111_v31  ;;  %v8593_v8 = vpop.f32.mrb[55].mxu0  ;;  %v11384_v37 = vpop.eup %11383  ;;  %v8732_v9 = vadd.f32 1.0, %v11382_v62  ;;  %11401 = vpow2.f32 %v10363_v53  ;;  %9008 = vmatprep.mubr.f32.mxu0 %v8821_v57  ;;  %10709 = vmatprep.subr.bf16.mxu0 %v10708_v11 }
 0x704   : > { %v16217_v1 = vadd.f32 %v8593_v8, %v16114_v0  ;;  %v11386_v32 = vpop.eup %11385  ;;  %v8733_v19 = vadd.f32 1.0, %v11384_v37  ;;  %11403 = vpow2.f32 %v10364_v58  ;;  %9009 = vmatmul.mubr.f32.gmra.mrb[72].mxu0 %v8820_v52 }
 0x705   : > { %v10365_v12 = vmul.f32 -1.442695, %v16213_v27  ;;  %v11388_v55 = vpop.eup %11387  ;;  %11405 = vrcp.f32 %v8732_v9  ;;  %v8822_v38 = vmul.f32 %v11386_v32, %v16157_v23  ;;  %10711 = vmatpush1.bf16.msra.mxu0 %v10710_v47 }
 0x706   : > { %v10366_v14 = vmul.f32 -1.442695, %v16217_v1  ;;  %v8597_v39 = vpop.f32.mrb[56].mxu0  ;;  %v8823_v34 = vmul.f32 %v11388_v55, %v16160_v49  ;;  %11407 = vrcp.f32 %v8733_v19  ;;  %v11390_v16 = vpop.eup %11389  ;;  %v10712_v49 = vpack.c.bf16 %v9336_v56, %v9334_v22 }
 0x707   : > { %v16223_v28 = vadd.f32 %v8597_v39, %v16111_v31  ;;  %v8599_v50 = vpop.f32.mrb[57].mxu0  ;;  %11409 = vpow2.f32 %v10365_v12  ;;  %v11392_v7 = vpop.eup %11391  ;;  %v8824_v5 = vmul.f32 %v11390_v16, %v16165_v18 }
 0x708   : > { %v16227_v25 = vadd.f32 %v8599_v50, %v16114_v0  ;;  %11411 = vpow2.f32 %v10366_v14  ;;  %9014 = vmatprep.mubr.f32.mxu0 %v8823_v34  ;;  %v8825_v15 = vmul.f32 %v11392_v7, %v16168_v41  ;;  %v10714_v41 = vpack.c.bf16 %v9335_v54, %v9333_v30  ;;  %10713 = vmatprep.subr.bf16.mxu0 %v10712_v49 }
 0x709   : > { %v10367_v44 = vmul.f32 -1.442695, %v16223_v28  ;;  %v11394_v4 = vpop.eup %11393  ;;  %9015 = vmatmul.mubr.f32.gmra.mrb[74].mxu0 %v8822_v38 }
 0x70a   : > { %v10368_v61 = vmul.f32 -1.442695, %v16227_v25  ;;  %v8603_v40 = vpop.f32.mrb[58].mxu0  ;;  %v11396_v63 = vpop.eup %11395  ;;  %v8734_v53 = vadd.f32 1.0, %v11394_v4  ;;  %9020 = vmatprep.mubr.f32.mxu0 %v8825_v15  ;;  %10715 = vmatpush1.bf16.msra.mxu0 %v10714_v41 }
 0x70b   : > { %11413 = vpow2.f32 %v10367_v44  ;;  %v16234_v23 = vadd.f32 %v8603_v40, %v16111_v31  ;;  %v8605_v17 = vpop.f32.mrb[59].mxu0  ;;  %v11398_v29 = vpop.eup %11397  ;;  %v8735_v21 = vadd.f32 1.0, %v11396_v63 }
 0x70c   : > { %11415 = vpow2.f32 %v10368_v61  ;;  %v16237_v35 = vadd.f32 %v8605_v17, %v16114_v0  ;;  %v11400_v10 = vpop.eup %11399  ;;  %v8826_v52 = vmul.f32 %v11398_v29, %v16175_v13 }
 0x70d   : > { %v10369_v58 = vmul.f32 -1.442695, %v16234_v23  ;;  %11417 = vrcp.f32 %v8734_v53  ;;  %v11402_v8 = vpop.eup %11401  ;;  %v8827_v60 = vmul.f32 %v11400_v10, %v16178_v42  ;;  %9021 = vmatmul.mubr.f32.gmra.mrb[76].mxu0 %v8824_v5 }
 0x70e   : > { %v10370_v43 = vmul.f32 -1.442695, %v16237_v35  ;;  %v8609_v20 = vpop.f32.mrb[60].mxu0  ;;  %11419 = vrcp.f32 %v8735_v21  ;;  %v11404_v62 = vpop.eup %11403  ;;  %v8736_v57 = vadd.f32 1.0, %v11402_v8 }
 0x70f   : > { %v16244_v59 = vadd.f32 %v8609_v20, %v16111_v31  ;;  %v8611_v18 = vpop.f32.mrb[61].mxu0  ;;  %11421 = vpow2.f32 %v10369_v58  ;;  %v11406_v37 = vpop.eup %11405  ;;  %v8737_v9 = vadd.f32 1.0, %v11404_v62  ;;  %9026 = vmatprep.mubr.f32.mxu0 %v8827_v60 }
 0x710   : > { %v16247_v46 = vadd.f32 %v8611_v18, %v16114_v0  ;;  %11423 = vpow2.f32 %v10370_v43  ;;  %v11408_v42 = vpop.eup %11407  ;;  %v8828_v22 = vmul.f32 %v11406_v37, %v16185_v33 }
 0x711   : > { %v10371_v12 = vmul.f32 -1.442695, %v16244_v59  ;;  %11425 = vrcp.f32 %v8736_v57  ;;  %v11410_v14 = vpop.eup %11409  ;;  %v8829_v39 = vmul.f32 %v11408_v42, %v16188_v48  ;;  %9027 = vmatmul.mubr.f32.gmra.mrb[78].mxu0 %v8826_v52  ;;  %v9340_v42 = vld [vmem:[#allocation10 + $0x118] sm:$0xff] }
 0x712   : > { %v10372_v32 = vmul.f32 -1.442695, %v16247_v46  ;;  %v8615_v19 = vpop.f32.mrb[62].mxu0  ;;  %11427 = vrcp.f32 %v8737_v9  ;;  %v11412_v13 = vpop.eup %11411  ;;  %v8738_v2 = vadd.f32 1.0, %v11410_v14 }
 0x713   : > { %v16254_v11 = vadd.f32 %v8615_v19, %v16111_v31  ;;  %v8617_v36 = vpop.f32.mrb[63].mxu0  ;;  %11429 = vpow2.f32 %v10371_v12  ;;  %v8739_v56 = vadd.f32 1.0, %v11412_v13  ;;  %9032 = vmatprep.mubr.f32.mxu0 %v8829_v39  ;;  %v9339_v19 = vld [vmem:[#allocation10 + $0x110] sm:$0xff]  ;;  %v9341_v39 = vld [vmem:[#allocation10 + $0x120] sm:$0xff] }
 0x714   : > { %v16257_v55 = vadd.f32 %v8617_v36, %v16114_v0  ;;  %11431 = vpow2.f32 %v10372_v32  ;;  %v9343_v13 = vld [vmem:[#allocation10 + $0x130] sm:$0xff] }
 0x715   : > { %v11414_v50 = vpop.eup %11413  ;;  %11433 = vrcp.f32 %v8738_v2  ;;  %v10373_v31 = vmul.f32 -1.442695, %v16254_v11  ;;  %9033 = vmatmul.mubr.f32.gmra.mrb[80].mxu0 %v8828_v22  ;;  %v10722_v2 = vpack.c.bf16 %v9343_v13, %v9341_v39 }
 0x716   : > { %v11416_v34 = vpop.eup %11415  ;;  %v8740_v48 = vadd.f32 1.0, %v11414_v50  ;;  %11435 = vrcp.f32 %v8739_v56  ;;  %v10374_v38 = vmul.f32 -1.442695, %v16257_v55  ;;  %v9345_v50 = vld [vmem:[#allocation10 + $0x140] sm:$0xff]  ;;  %v9347_v56 = vld [vmem:[#allocation10 + $0x150] sm:$0xff] }
 0x717   : > { %v8741_v16 = vadd.f32 1.0, %v11416_v34  ;;  %v11418_v44 = vpop.eup %11417  ;;  %v10726_v34 = vpack.c.bf16 %v9347_v56, %v9345_v50 }
 0x718   : > { %11437 = vrcp.f32 %v8740_v48  ;;  %v11420_v0 = vpop.eup %11419  ;;  %v8830_v61 = vmul.f32 %v11418_v44, %v16195_v6  ;;  %v9350_v48 = vld [vmem:[#allocation10 + $0x168] sm:$0xff]  ;;  %v9351_v44 = vld [vmem:[#allocation10 + $0x170] sm:$0xff] }
 0x719   : > { %11439 = vrcp.f32 %v8741_v16  ;;  %v11422_v47 = vpop.eup %11421  ;;  %v8831_v33 = vmul.f32 %v11420_v0, %v16198_v45  ;;  %v9349_v16 = vld [vmem:[#allocation10 + $0x160] sm:$0xff] }
 0x71a   : > { %11441 = vpow2.f32 %v10373_v31  ;;  %v11424_v7 = vpop.eup %11423  ;;  %v8742_v40 = vadd.f32 1.0, %v11422_v47  ;;  %v9352_v31 = vld [vmem:[#allocation10 + $0x178] sm:$0xff]  ;;  %v10730_v0 = vpack.c.bf16 %v9351_v44, %v9349_v16  ;;  %v9354_v47 = vld [vmem:[#allocation10 + $0x188] sm:$0xff] }
 0x71b   : > { %11443 = vpow2.f32 %v10374_v38  ;;  %v11426_v49 = vpop.eup %11425  ;;  %v8743_v30 = vadd.f32 1.0, %v11424_v7  ;;  %9038 = vmatprep.mubr.f32.mxu0 %v8831_v33  ;;  %v10728_v38 = vpack.c.bf16 %v9352_v31, %v9350_v48  ;;  %v9356_v33 = vld [vmem:[#allocation10 + $0x198] sm:$0xff]  ;;  %v9353_v7 = vld [vmem:[#allocation10 + $0x180] sm:$0xff] }
 0x71c   : > { %v11428_v54 = vpop.eup %11427  ;;  %11445 = vrcp.f32 %v8742_v40  ;;  %9039 = vmatmul.mubr.f32.gmra.mrb[82].mxu0 %v8830_v61  ;;  %v8832_v63 = vmul.f32 %v11426_v49, %v16203_v3  ;;  %v10732_v61 = vpack.c.bf16 %v9356_v33, %v9354_v47  ;;  %v9355_v40 = vld [vmem:[#allocation10 + $0x190] sm:$0xff] }
 0x71d   : > { %v11430_v4 = vpop.eup %11429  ;;  %v8833_v15 = vmul.f32 %v11428_v54, %v16207_v51  ;;  %11447 = vrcp.f32 %v8743_v30  ;;  %v10734_v49 = vpack.c.bf16 %v9355_v40, %v9353_v7  ;;  %v9358_v30 = vld [vmem:[#allocation10 + $0x1a8] sm:$0xff]  ;;  %v9360_v54 = vld [vmem:[#allocation10 + $0x1b8] sm:$0xff] }
 0x71e   : > { %v11432_v17 = vpop.eup %11431  ;;  %v8744_v45 = vadd.f32 1.0, %v11430_v4  ;;  %v9357_v4 = vld [vmem:[#allocation10 + $0x1a0] sm:$0xff] }
 0x71f   : > { %v11434_v53 = vpop.eup %11433  ;;  %v8745_v29 = vadd.f32 1.0, %v11432_v17  ;;  %9044 = vmatprep.mubr.f32.mxu0 %v8833_v15  ;;  %v10736_v15 = vpack.c.bf16 %v9360_v54, %v9358_v30  ;;  %v9359_v17 = vld [vmem:[#allocation10 + $0x1b0] sm:$0xff] }
 0x720   : > { %v11436_v6 = vpop.eup %11435  ;;  %11449 = vrcp.f32 %v8744_v45  ;;  %9045 = vmatmul.mubr.f32.gmra.mrb[84].mxu0 %v8832_v63  ;;  %v8834_v41 = vmul.f32 %v11434_v53, %v16213_v27  ;;  %v10738_v63 = vpack.c.bf16 %v9359_v17, %v9357_v4  ;;  %v9362_v45 = vld [vmem:[#allocation10 + $0x1c8] sm:$0xff]  ;;  %v9364_v53 = vld [vmem:[#allocation10 + $0x1d8] sm:$0xff] }
 0x721   : > { %v8835_v21 = vmul.f32 %v11436_v6, %v16217_v1  ;;  %11451 = vrcp.f32 %v8745_v29  ;;  %v9361_v29 = vld [vmem:[#allocation10 + $0x1c0] sm:$0xff]  ;;  %v10740_v6 = vpack.c.bf16 %v9364_v53, %v9362_v45 }
 0x722   : > { %v11438_v5 = vpop.eup %11437 }
 0x723   : > { %v11440_v58 = vpop.eup %11439  ;;  %9050 = vmatprep.mubr.f32.mxu0 %v8835_v21  ;;  %v8836_v60 = vmul.f32 %v11438_v5, %v16223_v28  ;;  %v9363_v5 = vld [vmem:[#allocation10 + $0x1d0] sm:$0xff] }
 0x724   : > { %v11442_v10 = vpop.eup %11441  ;;  %v8837_v51 = vmul.f32 %v11440_v58, %v16227_v25  ;;  %9051 = vmatmul.mubr.f32.gmra.mrb[86].mxu0 %v8834_v41  ;;  %v10742_v21 = vpack.c.bf16 %v9363_v5, %v9361_v29  ;;  %v9366_v58 = vld [vmem:[#allocation10 + $0x1e8] sm:$0xff]  ;;  %v9368_v41 = vld [vmem:[#allocation10 + $0x1f8] sm:$0xff] }
 0x725   : > { %v11444_v43 = vpop.eup %11443  ;;  %v8746_v3 = vadd.f32 1.0, %v11442_v10  ;;  %v9365_v10 = vld [vmem:[#allocation10 + $0x1e0] sm:$0xff] }
 0x726   : > { %v8747_v20 = vadd.f32 1.0, %v11444_v43  ;;  %9056 = vmatprep.mubr.f32.mxu0 %v8837_v51  ;;  %v11446_v8 = vpop.eup %11445  ;;  %v10744_v51 = vpack.c.bf16 %v9368_v41, %v9366_v58  ;;  %v9367_v43 = vld [vmem:[#allocation10 + $0x1f0] sm:$0xff] }
 0x727   : > { %11453 = vrcp.f32 %v8746_v3  ;;  %v11448_v18 = vpop.eup %11447  ;;  %v8838_v27 = vmul.f32 %v11446_v8, %v16234_v23  ;;  %v9337_v23 = vld [vmem:[#allocation10 + $0x100] sm:$0xff]  ;;  %v10746_v3 = vpack.c.bf16 %v9367_v43, %v9365_v10 }
 0x728   : > { %11455 = vrcp.f32 %v8747_v20  ;;  %v8839_v1 = vmul.f32 %v11448_v18, %v16237_v35  ;;  %9057 = vmatmul.mubr.f32.gmra.mrb[88].mxu0 %v8836_v60  ;;  %v9338_v35 = vld [vmem:[#allocation10 + $0x108] sm:$0xff]  ;;  %v10718_v14 = vpack.c.bf16 %v9339_v19, %v9337_v23  ;;  %v8908_v20 = vld [vmem:[%s16679_s9] sm:$0x3] }
 0x729   : > { %v10716_v32 = vpack.c.bf16 %v9340_v42, %v9338_v35  ;;  %v16280_v8 = vrot.slane %v8908_v20, %v15934_v26  ;;  %v16283_v60 = vrot.slane %v8908_v20, %v15939_v24 }
 0x72a   : > { %v11450_v62 = vpop.eup %11449  ;;  %9062 = vmatprep.mubr.f32.mxu0 %v8839_v1 }
 0x72b   : > { %v11452_v25 = vpop.eup %11451  ;;  %v8840_v37 = vmul.f32 %v11450_v62, %v16244_v59  ;;  %10717 = vmatprep.subr.bf16.mxu0 %v10716_v32  ;;  %v9344_v59 = vld [vmem:[#allocation10 + $0x138] sm:$0xff] }
 0x72c   : > { %v8841_v57 = vmul.f32 %v11452_v25, %v16247_v46  ;;  %9063 = vmatmul.mubr.f32.gmra.mrb[90].mxu0 %v8838_v27  ;;  %v9342_v46 = vld [vmem:[#allocation10 + $0x128] sm:$0xff] }
 0x72d   : > { %10719 = vmatpush1.bf16.msra.mxu0 %v10718_v14  ;;  %v10720_v36 = vpack.c.bf16 %v9344_v59, %v9342_v46 }
 0x72e   : > { %9068 = vmatprep.mubr.f32.mxu0 %v8841_v57 }
 0x72f   : > { %10721 = vmatprep.subr.bf16.mxu0 %v10720_v36 }
 0x730   : > { %9069 = vmatmul.mubr.f32.gmra.mrb[92].mxu0 %v8840_v37 }
 0x731   : > { %v11454_v52 = vpop.eup %11453  ;;  %10723 = vmatpush1.bf16.msra.mxu0 %v10722_v2 }
 0x732   : > { %v11456_v28 = vpop.eup %11455  ;;  %v8842_v12 = vmul.f32 %v11454_v52, %v16254_v11  ;;  %v9348_v11 = vld [vmem:[#allocation10 + $0x158] sm:$0xff] }
 0x733   : > { %v8843_v9 = vmul.f32 %v11456_v28, %v16257_v55  ;;  %v9346_v55 = vld [vmem:[#allocation10 + $0x148] sm:$0xff] }
 0x734   : > { %v10724_v22 = vpack.c.bf16 %v9348_v11, %v9346_v55 }
 0x735   : > { %9074 = vmatprep.mubr.f32.mxu0 %v8843_v9 }
 0x736   : > { %9075 = vmatmul.mubr.f32.gmra.mrb[94].mxu0 %v8842_v12  ;;  %10725 = vmatprep.subr.bf16.mxu0 %v10724_v22 }
 0x737   : > { %10727 = vmatpush1.bf16.msra.mxu0 %v10726_v34 }
 0x738   : > { %10729 = vmatprep.subr.bf16.mxu0 %v10728_v38 }
 0x73b   : > { %10731 = vmatpush1.bf16.msra.mxu0 %v10730_v0 }
 0x73c   : > { %10733 = vmatprep.subr.bf16.mxu0 %v10732_v61 }
 0x73f   : > { %10735 = vmatpush1.bf16.msra.mxu0 %v10734_v49 }
 0x740   : > { %10737 = vmatprep.subr.bf16.mxu0 %v10736_v15 }
 0x743   : > { %10739 = vmatpush1.bf16.msra.mxu0 %v10738_v63 }
 0x744   : > { %10741 = vmatprep.subr.bf16.mxu0 %v10740_v6 }
 0x747   : > { %10743 = vmatpush1.bf16.msra.mxu0 %v10742_v21 }
 0x748   : > { %10745 = vmatprep.subr.bf16.mxu0 %v10744_v51 }
 0x74b   : > { %10747 = vmatpush1.bf16.msra.mxu0 %v10746_v3 }
 0x7be   : > { %v8986_v18 = vpop.f32.mrb[64].mxu0 }
 0x7bf   : > { %v16286_v1 = vadd.f32 %v8986_v18, %v16280_v8  ;;  %v8988_v62 = vpop.f32.mrb[65].mxu0 }
 0x7c0   : > { %v16289_v27 = vadd.f32 %v8988_v62, %v16283_v60 }
 0x7c1   : > { %v10375_v25 = vmul.f32 -1.442695, %v16286_v1 }
 0x7c2   : > { %v10376_v57 = vmul.f32 -1.442695, %v16289_v27 }
 0x7c3   : > { %v8992_v37 = vpop.f32.mrb[66].mxu0  ;;  %11457 = vpow2.f32 %v10375_v25 }
 0x7c4   : > { %v16294_v52 = vadd.f32 %v8992_v37, %v16280_v8  ;;  %v8994_v28 = vpop.f32.mrb[67].mxu0  ;;  %11459 = vpow2.f32 %v10376_v57 }
 0x7c5   : > { %v16297_v9 = vadd.f32 %v8994_v28, %v16283_v60 }
 0x7c6   : > { %v10377_v12 = vmul.f32 -1.442695, %v16294_v52 }
 0x7c7   : > { %v10378_v35 = vmul.f32 -1.442695, %v16297_v9 }
 0x7c8   : > { %11461 = vpow2.f32 %v10377_v12 }
 0x7c9   : > { %v8998_v42 = vpop.f32.mrb[68].mxu0  ;;  %11463 = vpow2.f32 %v10378_v35 }
 0x7ca   : > { %v16302_v23 = vadd.f32 %v8998_v42, %v16280_v8  ;;  %v9000_v32 = vpop.f32.mrb[69].mxu0 }
 0x7cb   : > { %v16305_v19 = vadd.f32 %v9000_v32, %v16283_v60 }
 0x7cc   : > { %v10379_v14 = vmul.f32 -1.442695, %v16302_v23 }
 0x7cd   : > { %v10380_v46 = vmul.f32 -1.442695, %v16305_v19  ;;  %v11458_v59 = vpop.eup %11457 }
 0x7ce   : > { %11465 = vpow2.f32 %v10379_v14  ;;  %v11460_v36 = vpop.eup %11459  ;;  %v9177_v13 = vadd.f32 1.0, %v11458_v59 }
 0x7cf   : > { %11467 = vpow2.f32 %v10380_v46  ;;  %v9178_v11 = vadd.f32 1.0, %v11460_v36 }
 0x7d0   : > { %11469 = vrcp.f32 %v9177_v13 }
 0x7d1   : > { %11471 = vrcp.f32 %v9178_v11 }
 0x7d2   : > { %v9004_v39 = vpop.f32.mrb[70].mxu0  ;;  %v11462_v56 = vpop.eup %11461 }
 0x7d3   : > { %v16310_v2 = vadd.f32 %v9004_v39, %v16280_v8  ;;  %v9006_v55 = vpop.f32.mrb[71].mxu0  ;;  %v11464_v31 = vpop.eup %11463  ;;  %v9179_v16 = vadd.f32 1.0, %v11462_v56 }
 0x7d4   : > { %v16313_v50 = vadd.f32 %v9006_v55, %v16283_v60  ;;  %v9180_v0 = vadd.f32 1.0, %v11464_v31 }
 0x7d5   : > { %v10381_v22 = vmul.f32 -1.442695, %v16310_v2 }
 0x7d6   : > { %v10382_v34 = vmul.f32 -1.442695, %v16313_v50 }
 0x7d7   : > { %v9010_v48 = vpop.f32.mrb[72].mxu0  ;;  %11473 = vpow2.f32 %v10381_v22 }
 0x7d8   : > { %v16318_v38 = vadd.f32 %v9010_v48, %v16280_v8  ;;  %v9012_v44 = vpop.f32.mrb[73].mxu0  ;;  %11475 = vpow2.f32 %v10382_v34  ;;  %v11466_v7 = vpop.eup %11465 }
 0x7d9   : > { %v16321_v47 = vadd.f32 %v9012_v44, %v16283_v60  ;;  %11477 = vrcp.f32 %v9179_v16  ;;  %v11468_v49 = vpop.eup %11467  ;;  %v9181_v30 = vadd.f32 1.0, %v11466_v7 }
 0x7da   : > { %v10383_v33 = vmul.f32 -1.442695, %v16318_v38  ;;  %11479 = vrcp.f32 %v9180_v0  ;;  %v9182_v15 = vadd.f32 1.0, %v11468_v49  ;;  %v11470_v29 = vpop.eup %11469 }
 0x7db   : > { %v10384_v61 = vmul.f32 -1.442695, %v16321_v47  ;;  %v11472_v21 = vpop.eup %11471  ;;  %v9273_v3 = vmul.f32 %v11470_v29, %v16286_v1 }
 0x7dc   : > { %v9016_v40 = vpop.f32.mrb[74].mxu0  ;;  %11481 = vpow2.f32 %v10383_v33  ;;  %v9274_v10 = vmul.f32 %v11472_v21, %v16289_v27 }
 0x7dd   : > { %v16326_v54 = vadd.f32 %v9016_v40, %v16280_v8  ;;  %v9018_v4 = vpop.f32.mrb[75].mxu0  ;;  %11483 = vpow2.f32 %v10384_v61 }
 0x7de   : > { %v16329_v17 = vadd.f32 %v9018_v4, %v16283_v60  ;;  %11485 = vrcp.f32 %v9181_v30  ;;  %9445 = vmatprep.mubr.f32.mxu0 %v9274_v10 }
 0x7df   : > { %v10385_v63 = vmul.f32 -1.442695, %v16326_v54  ;;  %11487 = vrcp.f32 %v9182_v15  ;;  %9446 = vmatmul.mubr.f32.vlgmr.msra.gmra.mrb[96].mxu0 %v9273_v3 }
 0x7e0   : > { %v10386_v45 = vmul.f32 -1.442695, %v16329_v17  ;;  %v9022_v53 = vpop.f32.mrb[76].mxu0 }
 0x7e1   : > { %11489 = vpow2.f32 %v10385_v63  ;;  %v16334_v6 = vadd.f32 %v9022_v53, %v16280_v8  ;;  %v9024_v5 = vpop.f32.mrb[77].mxu0  ;;  %v11474_v41 = vpop.eup %11473 }
 0x7e2   : > { %11491 = vpow2.f32 %v10386_v45  ;;  %v16337_v58 = vadd.f32 %v9024_v5, %v16283_v60  ;;  %v11476_v43 = vpop.eup %11475  ;;  %v9183_v20 = vadd.f32 1.0, %v11474_v41 }
 0x7e3   : > { %v10387_v51 = vmul.f32 -1.442695, %v16334_v6  ;;  %v11478_v25 = vpop.eup %11477  ;;  %v9184_v57 = vadd.f32 1.0, %v11476_v43 }
 0x7e4   : > { %v10388_v18 = vmul.f32 -1.442695, %v16337_v58  ;;  %v9028_v62 = vpop.f32.mrb[78].mxu0  ;;  %v11480_v12 = vpop.eup %11479  ;;  %v9275_v14 = vmul.f32 %v11478_v25, %v16294_v52 }
 0x7e5   : > { %11493 = vpow2.f32 %v10387_v51  ;;  %v16344_v37 = vadd.f32 %v9028_v62, %v16280_v8  ;;  %v9030_v28 = vpop.f32.mrb[79].mxu0  ;;  %v9276_v1 = vmul.f32 %v11480_v12, %v16297_v9 }
 0x7e6   : > { %11495 = vrcp.f32 %v9183_v20  ;;  %v16347_v27 = vadd.f32 %v9030_v28, %v16283_v60  ;;  %v11482_v35 = vpop.eup %11481 }
 0x7e7   : > { %11497 = vrcp.f32 %v9184_v57  ;;  %v10389_v42 = vmul.f32 -1.442695, %v16344_v37  ;;  %v11484_v32 = vpop.eup %11483  ;;  %v9185_v46 = vadd.f32 1.0, %v11482_v35  ;;  %9451 = vmatprep.mubr.f32.mxu0 %v9276_v1 }
 0x7e8   : > { %11499 = vpow2.f32 %v10388_v18  ;;  %v10390_v59 = vmul.f32 -1.442695, %v16347_v27  ;;  %v9034_v39 = vpop.f32.mrb[80].mxu0  ;;  %v11486_v36 = vpop.eup %11485  ;;  %v9186_v13 = vadd.f32 1.0, %v11484_v32  ;;  %9452 = vmatmul.mubr.f32.gmra.mrb[98].mxu0 %v9275_v14 }
 0x7e9   : > { %11501 = vpow2.f32 %v10389_v42  ;;  %v16354_v55 = vadd.f32 %v9034_v39, %v16280_v8  ;;  %v9036_v11 = vpop.f32.mrb[81].mxu0  ;;  %v11488_v9 = vpop.eup %11487  ;;  %v9277_v31 = vmul.f32 %v11486_v36, %v16302_v23 }
 0x7ea   : > { %11503 = vrcp.f32 %v9185_v46  ;;  %v16357_v22 = vadd.f32 %v9036_v11, %v16283_v60  ;;  %v9278_v56 = vmul.f32 %v11488_v9, %v16305_v19 }
 0x7eb   : > { %v11490_v52 = vpop.eup %11489  ;;  %11505 = vrcp.f32 %v9186_v13  ;;  %v10391_v34 = vmul.f32 -1.442695, %v16354_v55 }
 0x7ec   : > { %v11492_v48 = vpop.eup %11491  ;;  %v9187_v16 = vadd.f32 1.0, %v11490_v52  ;;  %11507 = vpow2.f32 %v10390_v59  ;;  %v10392_v44 = vmul.f32 -1.442695, %v16357_v22  ;;  %9457 = vmatprep.mubr.f32.mxu0 %v9278_v56 }
 0x7ed   : > { %v9188_v0 = vadd.f32 1.0, %v11492_v48  ;;  %11509 = vpow2.f32 %v10391_v34  ;;  %9458 = vmatmul.mubr.f32.gmra.mrb[100].mxu0 %v9277_v31 }
 0x7ee   : > { %11511 = vrcp.f32 %v9187_v16 }
 0x7ef   : > { %v9040_v33 = vpop.f32.mrb[82].mxu0  ;;  %v11494_v7 = vpop.eup %11493  ;;  %11513 = vrcp.f32 %v9188_v0 }
 0x7f0   : > { %v16364_v19 = vadd.f32 %v9040_v33, %v16280_v8  ;;  %v9042_v61 = vpop.f32.mrb[83].mxu0  ;;  %v11496_v40 = vpop.eup %11495  ;;  %v9189_v49 = vadd.f32 1.0, %v11494_v7  ;;  %11515 = vpow2.f32 %v10392_v44 }
 0x7f1   : > { %v16367_v23 = vadd.f32 %v9042_v61, %v16283_v60  ;;  %v11498_v30 = vpop.eup %11497  ;;  %v9279_v5 = vmul.f32 %v11496_v40, %v16310_v2 }
 0x7f2   : > { %v10393_v4 = vmul.f32 -1.442695, %v16364_v19  ;;  %v11500_v15 = vpop.eup %11499  ;;  %v9280_v63 = vmul.f32 %v11498_v30, %v16313_v50  ;;  %11517 = vrcp.f32 %v9189_v49 }
 0x7f3   : > { %v10394_v45 = vmul.f32 -1.442695, %v16367_v23  ;;  %v9046_v53 = vpop.f32.mrb[84].mxu0  ;;  %v11502_v29 = vpop.eup %11501  ;;  %v9190_v21 = vadd.f32 1.0, %v11500_v15 }
 0x7f4   : > { %11519 = vpow2.f32 %v10393_v4  ;;  %v16374_v41 = vadd.f32 %v9046_v53, %v16280_v8  ;;  %v9048_v10 = vpop.f32.mrb[85].mxu0  ;;  %v11504_v51 = vpop.eup %11503  ;;  %v9191_v43 = vadd.f32 1.0, %v11502_v29  ;;  %9463 = vmatprep.mubr.f32.mxu0 %v9280_v63 }
 0x7f5   : > { %11521 = vpow2.f32 %v10394_v45  ;;  %v16377_v3 = vadd.f32 %v9048_v10, %v16283_v60  ;;  %v11506_v50 = vpop.eup %11505  ;;  %9464 = vmatmul.mubr.f32.gmra.mrb[102].mxu0 %v9279_v5  ;;  %v9281_v28 = vmul.f32 %v11504_v51, %v16318_v38 }
 0x7f6   : > { %11523 = vrcp.f32 %v9190_v21  ;;  %v10395_v20 = vmul.f32 -1.442695, %v16374_v41  ;;  %v11508_v18 = vpop.eup %11507  ;;  %v9282_v2 = vmul.f32 %v11506_v50, %v16321_v47 }
 0x7f7   : > { %11525 = vrcp.f32 %v9191_v43  ;;  %v10396_v62 = vmul.f32 -1.442695, %v16377_v3  ;;  %v9052_v25 = vpop.f32.mrb[86].mxu0  ;;  %v11510_v57 = vpop.eup %11509  ;;  %v9192_v12 = vadd.f32 1.0, %v11508_v18 }
 0x7f8   : > { %11527 = vpow2.f32 %v10395_v20  ;;  %v16384_v35 = vadd.f32 %v9052_v25, %v16280_v8  ;;  %v9054_v1 = vpop.f32.mrb[87].mxu0  ;;  %v11512_v42 = vpop.eup %11511  ;;  %v9193_v32 = vadd.f32 1.0, %v11510_v57  ;;  %9469 = vmatprep.mubr.f32.mxu0 %v9282_v2 }
 0x7f9   : > { %11529 = vpow2.f32 %v10396_v62  ;;  %v16387_v14 = vadd.f32 %v9054_v1, %v16283_v60  ;;  %v11514_v47 = vpop.eup %11513  ;;  %9470 = vmatmul.mubr.f32.gmra.mrb[104].mxu0 %v9281_v28  ;;  %v9283_v13 = vmul.f32 %v11512_v42, %v16326_v54 }
 0x7fa   : > { %11531 = vrcp.f32 %v9192_v12  ;;  %v10397_v46 = vmul.f32 -1.442695, %v16384_v35  ;;  %v11516_v59 = vpop.eup %11515  ;;  %v9284_v38 = vmul.f32 %v11514_v47, %v16329_v17 }
 0x7fb   : > { %11533 = vrcp.f32 %v9193_v32  ;;  %v10398_v39 = vmul.f32 -1.442695, %v16387_v14  ;;  %v9058_v36 = vpop.f32.mrb[88].mxu0  ;;  %v9194_v11 = vadd.f32 1.0, %v11516_v59 }
 0x7fc   : > { %11535 = vpow2.f32 %v10397_v46  ;;  %v16394_v9 = vadd.f32 %v9058_v36, %v16280_v8  ;;  %v9060_v52 = vpop.f32.mrb[89].mxu0  ;;  %v11518_v56 = vpop.eup %11517  ;;  %9475 = vmatprep.mubr.f32.mxu0 %v9284_v38 }
 0x7fd   : > { %11537 = vpow2.f32 %v10398_v39  ;;  %v16397_v34 = vadd.f32 %v9060_v52, %v16283_v60  ;;  %9476 = vmatmul.mubr.f32.gmra.mrb[106].mxu0 %v9283_v13  ;;  %v9285_v15 = vmul.f32 %v11518_v56, %v16334_v6 }
 0x7fe   : > { %v11520_v48 = vpop.eup %11519  ;;  %11539 = vrcp.f32 %v9194_v11  ;;  %v10399_v17 = vmul.f32 -1.442695, %v16394_v9 }
 0x7ff   : > { %v11522_v31 = vpop.eup %11521  ;;  %v9195_v16 = vadd.f32 1.0, %v11520_v48  ;;  %v10400_v54 = vmul.f32 -1.442695, %v16397_v34  ;;  %v9064_v44 = vpop.f32.mrb[90].mxu0 }
 0x800   : > { %v11524_v0 = vpop.eup %11523  ;;  %v9196_v33 = vadd.f32 1.0, %v11522_v31  ;;  %11541 = vpow2.f32 %v10399_v17  ;;  %v16402_v7 = vadd.f32 %v9064_v44, %v16280_v8  ;;  %v9066_v61 = vpop.f32.mrb[91].mxu0 }
 0x801   : > { %v11526_v40 = vpop.eup %11525  ;;  %v9286_v49 = vmul.f32 %v11524_v0, %v16337_v58  ;;  %11543 = vrcp.f32 %v9195_v16  ;;  %v16406_v30 = vadd.f32 %v9066_v61, %v16283_v60 }
 0x802   : > { %v11528_v4 = vpop.eup %11527  ;;  %11545 = vrcp.f32 %v9196_v33  ;;  %v10401_v63 = vmul.f32 -1.442695, %v16402_v7  ;;  %v9287_v18 = vmul.f32 %v11526_v40, %v16344_v37 }
 0x803   : > { %v11530_v45 = vpop.eup %11529  ;;  %v9197_v53 = vadd.f32 1.0, %v11528_v4  ;;  %11547 = vpow2.f32 %v10400_v54  ;;  %v10402_v29 = vmul.f32 -1.442695, %v16406_v30  ;;  %v9070_v5 = vpop.f32.mrb[92].mxu0  ;;  %9481 = vmatprep.mubr.f32.mxu0 %v9286_v49 }
 0x804   : > { %v11532_v21 = vpop.eup %11531  ;;  %v9198_v10 = vadd.f32 1.0, %v11530_v45  ;;  %11549 = vpow2.f32 %v10401_v63  ;;  %v16412_v58 = vadd.f32 %v9070_v5, %v16280_v8  ;;  %v9072_v51 = vpop.f32.mrb[93].mxu0  ;;  %9482 = vmatmul.mubr.f32.gmra.mrb[108].mxu0 %v9285_v15 }
 0x805   : > { %v11534_v43 = vpop.eup %11533  ;;  %v9288_v6 = vmul.f32 %v11532_v21, %v16347_v27  ;;  %11551 = vrcp.f32 %v9197_v53  ;;  %v16416_v50 = vadd.f32 %v9072_v51, %v16283_v60 }
 0x806   : > { %v11536_v20 = vpop.eup %11535  ;;  %11553 = vrcp.f32 %v9198_v10  ;;  %v10403_v2 = vmul.f32 -1.442695, %v16412_v58  ;;  %v9289_v47 = vmul.f32 %v11534_v43, %v16354_v55 }
 0x807   : > { %v11538_v62 = vpop.eup %11537  ;;  %v9199_v25 = vadd.f32 1.0, %v11536_v20  ;;  %11555 = vpow2.f32 %v10402_v29  ;;  %v10404_v57 = vmul.f32 -1.442695, %v16416_v50  ;;  %9487 = vmatprep.mubr.f32.mxu0 %v9288_v6 }
 0x808   : > { %v11540_v28 = vpop.eup %11539  ;;  %v9200_v12 = vadd.f32 1.0, %v11538_v62  ;;  %11557 = vpow2.f32 %v10403_v2  ;;  %9488 = vmatmul.mubr.f32.gmra.mrb[110].mxu0 %v9287_v18 }
 0x809   : > { %v9076_v27 = vpop.f32.mrb[94].mxu0  ;;  %v9290_v1 = vmul.f32 %v11540_v28, %v16357_v22  ;;  %11559 = vrcp.f32 %v9199_v25 }
 0x80a   : > { %v16423_v42 = vadd.f32 %v9076_v27, %v16280_v8  ;;  %v9078_v37 = vpop.f32.mrb[95].mxu0  ;;  %v11542_v32 = vpop.eup %11541  ;;  %11561 = vrcp.f32 %v9200_v12 }
 0x80b   : > { %v16427_v46 = vadd.f32 %v9078_v37, %v16283_v60  ;;  %v11544_v59 = vpop.eup %11543  ;;  %v9201_v38 = vadd.f32 1.0, %v11542_v32  ;;  %11563 = vpow2.f32 %v10404_v57  ;;  %9493 = vmatprep.mubr.f32.mxu0 %v9290_v1 }
 0x80c   : > { %v10405_v39 = vmul.f32 -1.442695, %v16423_v42  ;;  %v11546_v36 = vpop.eup %11545  ;;  %9494 = vmatmul.mubr.f32.gmra.mrb[112].mxu0 %v9289_v47  ;;  %v9291_v55 = vmul.f32 %v11544_v59, %v16364_v19 }
 0x80d   : > { %v10406_v22 = vmul.f32 -1.442695, %v16427_v46  ;;  %v11548_v8 = vpop.eup %11547  ;;  %v9292_v13 = vmul.f32 %v11546_v36, %v16367_v23  ;;  %11565 = vrcp.f32 %v9201_v38 }
 0x80e   : > { %v11550_v11 = vpop.eup %11549  ;;  %v9202_v52 = vadd.f32 1.0, %v11548_v8  ;;  %11567 = vpow2.f32 %v10405_v39 }
 0x80f   : > { %v11552_v60 = vpop.eup %11551  ;;  %v9203_v56 = vadd.f32 1.0, %v11550_v11  ;;  %11569 = vpow2.f32 %v10406_v22  ;;  %9499 = vmatprep.mubr.f32.mxu0 %v9292_v13 }
 0x810   : > { %v11554_v48 = vpop.eup %11553  ;;  %11571 = vrcp.f32 %v9202_v52  ;;  %9500 = vmatmul.mubr.f32.gmra.mrb[114].mxu0 %v9291_v55  ;;  %v9293_v54 = vmul.f32 %v11552_v60, %v16374_v41 }
 0x811   : > { %v11556_v17 = vpop.eup %11555  ;;  %v9294_v31 = vmul.f32 %v11554_v48, %v16377_v3  ;;  %11573 = vrcp.f32 %v9203_v56 }
 0x812   : > { %v11558_v16 = vpop.eup %11557  ;;  %v9204_v23 = vadd.f32 1.0, %v11556_v17 }
 0x813   : > { %v11560_v44 = vpop.eup %11559  ;;  %v9205_v0 = vadd.f32 1.0, %v11558_v16  ;;  %9505 = vmatprep.mubr.f32.mxu0 %v9294_v31 }
 0x814   : > { %v11562_v19 = vpop.eup %11561  ;;  %11575 = vrcp.f32 %v9204_v23  ;;  %9506 = vmatmul.mubr.f32.gmra.mrb[116].mxu0 %v9293_v54  ;;  %v9295_v40 = vmul.f32 %v11560_v44, %v16384_v35 }
 0x815   : > { %v11564_v33 = vpop.eup %11563  ;;  %v9296_v61 = vmul.f32 %v11562_v19, %v16387_v14  ;;  %11577 = vrcp.f32 %v9205_v0 }
 0x816   : > { %v9206_v49 = vadd.f32 1.0, %v11564_v33 }
 0x817   : > { %v11566_v4 = vpop.eup %11565  ;;  %9511 = vmatprep.mubr.f32.mxu0 %v9296_v61 }
 0x818   : > { %v11568_v3 = vpop.eup %11567  ;;  %11579 = vrcp.f32 %v9206_v49  ;;  %9512 = vmatmul.mubr.f32.gmra.mrb[118].mxu0 %v9295_v40  ;;  %v9297_v29 = vmul.f32 %v11566_v4, %v16394_v9 }
 0x819   : > { %v11570_v41 = vpop.eup %11569  ;;  %v9207_v15 = vadd.f32 1.0, %v11568_v3 }
 0x81a   : > { %v11572_v63 = vpop.eup %11571  ;;  %v9208_v45 = vadd.f32 1.0, %v11570_v41 }
 0x81b   : > { %v9298_v53 = vmul.f32 %v11572_v63, %v16397_v34  ;;  %11581 = vrcp.f32 %v9207_v15  ;;  %v11574_v14 = vpop.eup %11573 }
 0x81c   : > { %11583 = vrcp.f32 %v9208_v45  ;;  %v9299_v21 = vmul.f32 %v11574_v14, %v16402_v7  ;;  %v9767_v7 = vld [vmem:[%s16682_s12 + $0x8] sm:$0xff] }
 0x81d   : > { %9517 = vmatprep.mubr.f32.mxu0 %v9298_v53  ;;  %9838 = vmatprep.mubr.f32.mxu1 %v9767_v7 }
 0x81e   : > { %v11576_v35 = vpop.eup %11575  ;;  %9518 = vmatmul.mubr.f32.gmra.mrb[120].mxu0 %v9297_v29 }
 0x81f   : > { %v9300_v5 = vmul.f32 %v11576_v35, %v16406_v30  ;;  %v11578_v10 = vpop.eup %11577  ;;  %v9768_v30 = vld [vmem:[%s16683_s13] sm:$0xff] }
 0x820   : > { %v9301_v34 = vmul.f32 %v11578_v10, %v16412_v58  ;;  %v11963_v58 = vmov 0  }
 0x821   : > { %9523 = vmatprep.mubr.f32.mxu0 %v9300_v5  ;;  %11072 = vset.pattern.permute.xlu0 %v11963_v58 }
 0x822   : > { %v11580_v51 = vpop.eup %11579  ;;  %9524 = vmatmul.mubr.f32.gmra.mrb[122].mxu0 %v9299_v21  ;;  %9771 = vperm.xlu0 %11072, %v9768_v30  }
 0x823   : > { %v9302_v43 = vmul.f32 %v11580_v51, %v16416_v50  ;;  %v9369_v50 = vld [vmem:[%s17662_s29] sm:$0x3] }
 0x824   : > { %v16455_v2 = vrot.slane %v9369_v50, %v15934_v26  ;;  %v16458_v62 = vrot.slane %v9369_v50, %v15939_v24 }
 0x825   : > { %v11582_v6 = vpop.eup %11581  ;;  %9529 = vmatprep.mubr.f32.mxu0 %v9302_v43 }
 0x826   : > { %v11584_v9 = vpop.eup %11583  ;;  %9530 = vmatmul.mubr.f32.gmra.mrb[124].mxu0 %v9301_v34  ;;  %v9303_v18 = vmul.f32 %v11582_v6, %v16423_v42 }
 0x827   : > { %v9304_v20 = vmul.f32 %v11584_v9, %v16427_v46 }
 0x829   : > { %9535 = vmatprep.mubr.f32.mxu0 %v9304_v20 }
 0x82a   : > { %9536 = vmatmul.mubr.f32.gmra.mrb[126].mxu0 %v9303_v18 }
 0x8b2   : > { %v9447_v25 = vpop.f32.mrb[96].mxu0 }
 0x8b3   : > { %v16461_v57 = vadd.f32 %v9447_v25, %v16455_v2  ;;  %v9449_v28 = vpop.f32.mrb[97].mxu0 }
 0x8b4   : > { %v16464_v12 = vadd.f32 %v9449_v28, %v16458_v62 }
 0x8b5   : > { %v10407_v27 = vmul.f32 -1.442695, %v16461_v57 }
 0x8b6   : > { %v10408_v1 = vmul.f32 -1.442695, %v16464_v12 }
 0x8b7   : > { %11585 = vpow2.f32 %v10407_v27 }
 0x8b8   : > { %11587 = vpow2.f32 %v10408_v1 }
 0x8bb   : > { %v9453_v42 = vpop.f32.mrb[98].mxu0 }
 0x8bc   : > { %v16469_v26 = vadd.f32 %v9453_v42, %v16455_v2  ;;  %v9455_v37 = vpop.f32.mrb[99].mxu0 }
 0x8bd   : > { %v16472_v24 = vadd.f32 %v9455_v37, %v16458_v62 }
 0x8be   : > { %v10409_v32 = vmul.f32 -1.442695, %v16469_v26 }
 0x8bf   : > { %v10410_v47 = vmul.f32 -1.442695, %v16472_v24 }
 0x8c0   : > { %v9459_v46 = vpop.f32.mrb[100].mxu0  ;;  %11589 = vpow2.f32 %v10409_v32 }
 0x8c1   : > { %v16477_v59 = vadd.f32 %v9459_v46, %v16455_v2  ;;  %v9461_v38 = vpop.f32.mrb[101].mxu0  ;;  %11591 = vpow2.f32 %v10410_v47  ;;  %v11586_v8 = vpop.eup %11585 }
 0x8c2   : > { %v16480_v39 = vadd.f32 %v9461_v38, %v16458_v62  ;;  %v11588_v11 = vpop.eup %11587  ;;  %v9638_v55 = vadd.f32 1.0, %v11586_v8 }
 0x8c3   : > { %v10411_v36 = vmul.f32 -1.442695, %v16477_v59  ;;  %v9639_v56 = vadd.f32 1.0, %v11588_v11 }
 0x8c4   : > { %v10412_v22 = vmul.f32 -1.442695, %v16480_v39 }
 0x8c5   : > { %11593 = vpow2.f32 %v10411_v36 }
 0x8c6   : > { %11595 = vpow2.f32 %v10412_v22 }
 0x8c7   : > { %11597 = vrcp.f32 %v9638_v55 }
 0x8c8   : > { %v9465_v13 = vpop.f32.mrb[102].mxu0  ;;  %11599 = vrcp.f32 %v9639_v56 }
 0x8c9   : > { %v16485_v52 = vadd.f32 %v9465_v13, %v16455_v2  ;;  %v9467_v60 = vpop.f32.mrb[103].mxu0 }
 0x8ca   : > { %v16488_v48 = vadd.f32 %v9467_v60, %v16458_v62  ;;  %v11590_v31 = vpop.eup %11589 }
 0x8cb   : > { %v10413_v17 = vmul.f32 -1.442695, %v16485_v52  ;;  %v11592_v23 = vpop.eup %11591  ;;  %v9640_v44 = vadd.f32 1.0, %v11590_v31 }
 0x8cc   : > { %v10414_v16 = vmul.f32 -1.442695, %v16488_v48  ;;  %v9471_v54 = vpop.f32.mrb[104].mxu0  ;;  %v9641_v33 = vadd.f32 1.0, %v11592_v23 }
 0x8cd   : > { %11601 = vpow2.f32 %v10413_v17  ;;  %v16493_v0 = vadd.f32 %v9471_v54, %v16455_v2  ;;  %v9473_v19 = vpop.f32.mrb[105].mxu0 }
 0x8ce   : > { %11603 = vpow2.f32 %v10414_v16  ;;  %v16496_v61 = vadd.f32 %v9473_v19, %v16458_v62 }
 0x8cf   : > { %11605 = vrcp.f32 %v9640_v44  ;;  %v10415_v40 = vmul.f32 -1.442695, %v16493_v0  ;;  %v11594_v3 = vpop.eup %11593 }
 0x8d0   : > { %11607 = vrcp.f32 %v9641_v33  ;;  %v10416_v49 = vmul.f32 -1.442695, %v16496_v61  ;;  %v9477_v4 = vpop.f32.mrb[106].mxu0  ;;  %v11596_v63 = vpop.eup %11595  ;;  %v9642_v29 = vadd.f32 1.0, %v11594_v3 }
 0x8d1   : > { %11609 = vpow2.f32 %v10415_v40  ;;  %v16501_v41 = vadd.f32 %v9477_v4, %v16455_v2  ;;  %v9479_v15 = vpop.f32.mrb[107].mxu0  ;;  %v11598_v35 = vpop.eup %11597  ;;  %v9643_v5 = vadd.f32 1.0, %v11596_v63 }
 0x8d2   : > { %11611 = vpow2.f32 %v10416_v49  ;;  %v16504_v45 = vadd.f32 %v9479_v15, %v16458_v62  ;;  %v11600_v21 = vpop.eup %11599  ;;  %v9734_v50 = vmul.f32 %v11598_v35, %v16461_v57 }
 0x8d3   : > { %v10417_v53 = vmul.f32 -1.442695, %v16501_v41  ;;  %v9735_v42 = vmul.f32 %v11600_v21, %v16464_v12 }
 0x8d4   : > { %v10418_v14 = vmul.f32 -1.442695, %v16504_v45 }
 0x8d5   : > { %11613 = vpow2.f32 %v10417_v53 }
 0x8d6   : > { %11615 = vpow2.f32 %v10418_v14 }
 0x8d7   : > { %v9483_v10 = vpop.f32.mrb[108].mxu0  ;;  %v11602_v51 = vpop.eup %11601  ;;  %11617 = vrcp.f32 %v9642_v29 }
 0x8d8   : > { %v16509_v43 = vadd.f32 %v9483_v10, %v16455_v2  ;;  %v9485_v34 = vpop.f32.mrb[109].mxu0  ;;  %v11604_v6 = vpop.eup %11603  ;;  %v9644_v9 = vadd.f32 1.0, %v11602_v51  ;;  %11619 = vrcp.f32 %v9643_v5 }
 0x8d9   : > { %v16512_v20 = vadd.f32 %v9485_v34, %v16458_v62  ;;  %v11606_v18 = vpop.eup %11605  ;;  %v9645_v7 = vadd.f32 1.0, %v11604_v6 }
 0x8da   : > { %v10419_v30 = vmul.f32 -1.442695, %v16509_v43  ;;  %v11608_v58 = vpop.eup %11607  ;;  %v9736_v25 = vmul.f32 %v11606_v18, %v16469_v26  ;;  %11621 = vrcp.f32 %v9644_v9 }
 0x8db   : > { %v10420_v28 = vmul.f32 -1.442695, %v16512_v20  ;;  %v9489_v27 = vpop.f32.mrb[110].mxu0  ;;  %v11610_v1 = vpop.eup %11609  ;;  %v9737_v37 = vmul.f32 %v11608_v58, %v16472_v24  ;;  %11623 = vrcp.f32 %v9645_v7 }
 0x8dc   : > { %v16521_v32 = vadd.f32 %v9489_v27, %v16455_v2  ;;  %v9491_v47 = vpop.f32.mrb[111].mxu0  ;;  %v11612_v46 = vpop.eup %11611  ;;  %v10750_v38 = vpack.c.bf16 %v9736_v25, %v9734_v50  ;;  %v9646_v36 = vadd.f32 1.0, %v11610_v1  ;;  %11625 = vpow2.f32 %v10419_v30 }
 0x8dd   : > { %v16524_v57 = vadd.f32 %v9491_v47, %v16458_v62  ;;  %v9647_v26 = vadd.f32 1.0, %v11612_v46  ;;  %11627 = vpow2.f32 %v10420_v28  ;;  %v10748_v8 = vpack.c.bf16 %v9737_v37, %v9735_v42 }
 0x8de   : > { %v10421_v22 = vmul.f32 -1.442695, %v16521_v32  ;;  %11629 = vrcp.f32 %v9646_v36 }
 0x8df   : > { %v10422_v12 = vmul.f32 -1.442695, %v16524_v57  ;;  %v9495_v24 = vpop.f32.mrb[112].mxu0  ;;  %v11614_v13 = vpop.eup %11613  ;;  %11631 = vrcp.f32 %v9647_v26  ;;  %10749 = vmatprep.subr.bf16.mxu1 %v10748_v8 }
 0x8e0   : > { %v16529_v11 = vadd.f32 %v9495_v24, %v16455_v2  ;;  %v9497_v55 = vpop.f32.mrb[113].mxu0  ;;  %v11616_v60 = vpop.eup %11615  ;;  %v9648_v56 = vadd.f32 1.0, %v11614_v13  ;;  %11633 = vpow2.f32 %v10421_v22  ;;  %10751 = vmatpush1.bf16.xpose.msra.mxu1 %v10750_v38 }
 0x8e1   : > { %v16532_v17 = vadd.f32 %v9497_v55, %v16458_v62  ;;  %v9649_v31 = vadd.f32 1.0, %v11616_v60  ;;  %11635 = vpow2.f32 %v10422_v12  ;;  %v11618_v54 = vpop.eup %11617 }
 0x8e2   : > { %v10423_v16 = vmul.f32 -1.442695, %v16529_v11  ;;  %11637 = vrcp.f32 %v9648_v56  ;;  %v11620_v19 = vpop.eup %11619  ;;  %v9738_v15 = vmul.f32 %v11618_v54, %v16477_v59 }
 0x8e3   : > { %v10424_v23 = vmul.f32 -1.442695, %v16532_v17  ;;  %v9501_v44 = vpop.f32.mrb[114].mxu0  ;;  %11639 = vrcp.f32 %v9649_v31  ;;  %v9739_v14 = vmul.f32 %v11620_v19, %v16480_v39 }
 0x8e4   : > { %v16537_v33 = vadd.f32 %v9501_v44, %v16455_v2  ;;  %v9503_v40 = vpop.f32.mrb[115].mxu0  ;;  %v11622_v49 = vpop.eup %11621  ;;  %11641 = vpow2.f32 %v10423_v16 }
 0x8e5   : > { %v16540_v4 = vadd.f32 %v9503_v40, %v16458_v62  ;;  %v11624_v3 = vpop.eup %11623  ;;  %v9740_v63 = vmul.f32 %v11622_v49, %v16485_v52  ;;  %11643 = vpow2.f32 %v10424_v23 }
 0x8e6   : > { %v10425_v53 = vmul.f32 -1.442695, %v16537_v33  ;;  %v11626_v29 = vpop.eup %11625  ;;  %v9741_v35 = vmul.f32 %v11624_v3, %v16488_v48 }
 0x8e7   : > { %v10426_v5 = vmul.f32 -1.442695, %v16540_v4  ;;  %v9507_v21 = vpop.f32.mrb[116].mxu0  ;;  %v11628_v10 = vpop.eup %11627  ;;  %v10754_v51 = vpack.c.bf16 %v9740_v63, %v9738_v15  ;;  %v9650_v34 = vadd.f32 1.0, %v11626_v29 }
 0x8e8   : > { %11645 = vpow2.f32 %v10425_v53  ;;  %v16549_v6 = vadd.f32 %v9507_v21, %v16455_v2  ;;  %v9509_v59 = vpop.f32.mrb[117].mxu0  ;;  %v11630_v52 = vpop.eup %11629  ;;  %v9651_v9 = vadd.f32 1.0, %v11628_v10  ;;  %v10752_v39 = vpack.c.bf16 %v9741_v35, %v9739_v14 }
 0x8e9   : > { %11647 = vpow2.f32 %v10426_v5  ;;  %v16552_v18 = vadd.f32 %v9509_v59, %v16458_v62  ;;  %v11632_v7 = vpop.eup %11631  ;;  %v9742_v38 = vmul.f32 %v11630_v52, %v16493_v0 }
 0x8ea   : > { %11649 = vrcp.f32 %v9650_v34  ;;  %v10427_v48 = vmul.f32 -1.442695, %v16549_v6  ;;  %v11634_v30 = vpop.eup %11633  ;;  %10753 = vmatprep.subr.bf16.mxu1 %v10752_v39  ;;  %v9743_v8 = vmul.f32 %v11632_v7, %v16496_v61 }
 0x8eb   : > { %11651 = vrcp.f32 %v9651_v9  ;;  %v10428_v58 = vmul.f32 -1.442695, %v16552_v18  ;;  %v9513_v50 = vpop.f32.mrb[118].mxu0  ;;  %v11636_v25 = vpop.eup %11635  ;;  %v9652_v28 = vadd.f32 1.0, %v11634_v30  ;;  %10755 = vmatpush1.bf16.xpose.msra.mxu1 %v10754_v51 }
 0x8ec   : > { %11653 = vpow2.f32 %v10427_v48  ;;  %v16557_v27 = vadd.f32 %v9513_v50, %v16455_v2  ;;  %v9515_v1 = vpop.f32.mrb[119].mxu0  ;;  %v11638_v42 = vpop.eup %11637  ;;  %v9653_v37 = vadd.f32 1.0, %v11636_v25 }
 0x8ed   : > { %11655 = vpow2.f32 %v10428_v58  ;;  %v16560_v47 = vadd.f32 %v9515_v1, %v16458_v62  ;;  %v11640_v46 = vpop.eup %11639  ;;  %v9744_v36 = vmul.f32 %v11638_v42, %v16501_v41 }
 0x8ee   : > { %11657 = vrcp.f32 %v9652_v28  ;;  %v10429_v26 = vmul.f32 -1.442695, %v16557_v27  ;;  %v11642_v22 = vpop.eup %11641  ;;  %v9745_v12 = vmul.f32 %v11640_v46, %v16504_v45 }
 0x8ef   : > { %11659 = vrcp.f32 %v9653_v37  ;;  %v10430_v24 = vmul.f32 -1.442695, %v16560_v47  ;;  %v11644_v13 = vpop.eup %11643  ;;  %v10758_v55 = vpack.c.bf16 %v9744_v36, %v9742_v38  ;;  %v9654_v60 = vadd.f32 1.0, %v11642_v22 }
 0x8f0   : > { %11661 = vpow2.f32 %v10429_v26  ;;  %v9655_v56 = vadd.f32 1.0, %v11644_v13  ;;  %v10756_v31 = vpack.c.bf16 %v9745_v12, %v9743_v8 }
 0x8f1   : > { %11663 = vpow2.f32 %v10430_v24  ;;  %v9519_v0 = vpop.f32.mrb[120].mxu0 }
 0x8f2   : > { %v11646_v41 = vpop.eup %11645  ;;  %v16569_v16 = vadd.f32 %v9519_v0, %v16455_v2  ;;  %v9521_v54 = vpop.f32.mrb[121].mxu0  ;;  %11665 = vrcp.f32 %v9654_v60  ;;  %10757 = vmatprep.subr.bf16.mxu1 %v10756_v31 }
 0x8f3   : > { %v11648_v23 = vpop.eup %11647  ;;  %v9656_v61 = vadd.f32 1.0, %v11646_v41  ;;  %v16572_v45 = vadd.f32 %v9521_v54, %v16458_v62  ;;  %11667 = vrcp.f32 %v9655_v56  ;;  %10759 = vmatpush1.bf16.xpose.msra.mxu1 %v10758_v55 }
 0x8f4   : > { %v11650_v44 = vpop.eup %11649  ;;  %v9657_v19 = vadd.f32 1.0, %v11648_v23  ;;  %v10431_v40 = vmul.f32 -1.442695, %v16569_v16 }
 0x8f5   : > { %v11652_v49 = vpop.eup %11651  ;;  %11669 = vrcp.f32 %v9656_v61  ;;  %v10432_v3 = vmul.f32 -1.442695, %v16572_v45  ;;  %v9525_v15 = vpop.f32.mrb[122].mxu0  ;;  %v9746_v59 = vmul.f32 %v11650_v44, %v16509_v43 }
 0x8f6   : > { %v11654_v63 = vpop.eup %11653  ;;  %11671 = vrcp.f32 %v9657_v19  ;;  %v16577_v53 = vadd.f32 %v9525_v15, %v16455_v2  ;;  %v9527_v29 = vpop.f32.mrb[123].mxu0  ;;  %v9747_v48 = vmul.f32 %v11652_v49, %v16512_v20 }
 0x8f7   : > { %v11656_v14 = vpop.eup %11655  ;;  %v9658_v35 = vadd.f32 1.0, %v11654_v63  ;;  %11673 = vpow2.f32 %v10431_v40  ;;  %v16580_v5 = vadd.f32 %v9527_v29, %v16458_v62 }
 0x8f8   : > { %v11658_v21 = vpop.eup %11657  ;;  %v9659_v10 = vadd.f32 1.0, %v11656_v14  ;;  %11675 = vpow2.f32 %v10432_v3  ;;  %v10433_v51 = vmul.f32 -1.442695, %v16577_v53 }
 0x8f9   : > { %v11660_v34 = vpop.eup %11659  ;;  %v9748_v52 = vmul.f32 %v11658_v21, %v16521_v32  ;;  %11677 = vrcp.f32 %v9658_v35  ;;  %v10434_v9 = vmul.f32 -1.442695, %v16580_v5  ;;  %v9531_v39 = vpop.f32.mrb[124].mxu0 }
 0x8fa   : > { %v11662_v7 = vpop.eup %11661  ;;  %v9749_v30 = vmul.f32 %v11660_v34, %v16524_v57  ;;  %11679 = vrcp.f32 %v9659_v10  ;;  %v16589_v58 = vadd.f32 %v9531_v39, %v16455_v2  ;;  %v9533_v50 = vpop.f32.mrb[125].mxu0 }
 0x8fb   : > { %v11664_v25 = vpop.eup %11663  ;;  %v10762_v28 = vpack.c.bf16 %v9748_v52, %v9746_v59  ;;  %v9660_v1 = vadd.f32 1.0, %v11662_v7  ;;  %11681 = vpow2.f32 %v10433_v51  ;;  %v16592_v43 = vadd.f32 %v9533_v50, %v16458_v62 }
 0x8fc   : > { %v9661_v32 = vadd.f32 1.0, %v11664_v25  ;;  %11683 = vpow2.f32 %v10434_v9  ;;  %v10435_v42 = vmul.f32 -1.442695, %v16589_v58  ;;  %v10760_v37 = vpack.c.bf16 %v9749_v30, %v9747_v48  ;;  %v11666_v20 = vpop.eup %11665 }
 0x8fd   : > { %11685 = vrcp.f32 %v9660_v1  ;;  %v10436_v57 = vmul.f32 -1.442695, %v16592_v43  ;;  %v9537_v46 = vpop.f32.mrb[126].mxu0  ;;  %v11668_v38 = vpop.eup %11667  ;;  %v9750_v24 = vmul.f32 %v11666_v20, %v16529_v11 }
 0x8fe   : > { %11687 = vrcp.f32 %v9661_v32  ;;  %v16597_v36 = vadd.f32 %v9537_v46, %v16455_v2  ;;  %v9539_v26 = vpop.f32.mrb[127].mxu0  ;;  %10761 = vmatprep.subr.bf16.mxu1 %v10760_v37  ;;  %v9751_v2 = vmul.f32 %v11668_v38, %v16532_v17  ;;  %v9772_v46 = vpop.permute.xlu0 %9771 }
 0x8ff   : > { %v11670_v22 = vpop.eup %11669  ;;  %11689 = vpow2.f32 %v10435_v42  ;;  %v16600_v8 = vadd.f32 %v9539_v26, %v16458_v62  ;;  %10763 = vmatpush1.bf16.xpose.msra.mxu1 %v10762_v28 }
 0x900   : > { %v11672_v12 = vpop.eup %11671  ;;  %v9752_v13 = vmul.f32 %v11670_v22, %v16537_v33  ;;  %11691 = vpow2.f32 %v10436_v57  ;;  %v10437_v55 = vmul.f32 -1.442695, %v16597_v36 }
 0x901   : > { %v11674_v60 = vpop.eup %11673  ;;  %v9753_v56 = vmul.f32 %v11672_v12, %v16540_v4  ;;  %v10438_v0 = vmul.f32 -1.442695, %v16600_v8 }
 0x902   : > { %v11676_v31 = vpop.eup %11675  ;;  %v10766_v41 = vpack.c.bf16 %v9752_v13, %v9750_v24  ;;  %v9662_v62 = vadd.f32 1.0, %v11674_v60  ;;  %11693 = vpow2.f32 %v10437_v55 }
 0x903   : > { %v11678_v54 = vpop.eup %11677  ;;  %v9663_v23 = vadd.f32 1.0, %v11676_v31  ;;  %11695 = vpow2.f32 %v10438_v0  ;;  %v10764_v11 = vpack.c.bf16 %v9753_v56, %v9751_v2 }
 0x904   : > { %v11680_v61 = vpop.eup %11679  ;;  %11697 = vrcp.f32 %v9662_v62  ;;  %v9754_v49 = vmul.f32 %v11678_v54, %v16549_v6 }
 0x905   : > { %v11682_v33 = vpop.eup %11681  ;;  %10765 = vmatprep.subr.bf16.mxu1 %v10764_v11  ;;  %11699 = vrcp.f32 %v9663_v23  ;;  %v9755_v63 = vmul.f32 %v11680_v61, %v16552_v18 }
 0x906   : > { %v11684_v44 = vpop.eup %11683  ;;  %v9664_v19 = vadd.f32 1.0, %v11682_v33 }
 0x907   : > { %v11686_v40 = vpop.eup %11685  ;;  %v9665_v17 = vadd.f32 1.0, %v11684_v44  ;;  %10767 = vmatpush1.bf16.xpose.msra.mxu1 %v10766_v41 }
 0x908   : > { %v11688_v4 = vpop.eup %11687  ;;  %v9756_v3 = vmul.f32 %v11686_v40, %v16557_v27  ;;  %11701 = vrcp.f32 %v9664_v19 }
 0x909   : > { %v11690_v15 = vpop.eup %11689  ;;  %v9757_v29 = vmul.f32 %v11688_v4, %v16560_v47  ;;  %11703 = vrcp.f32 %v9665_v17 }
 0x90a   : > { %v11692_v14 = vpop.eup %11691  ;;  %v10770_v35 = vpack.c.bf16 %v9756_v3, %v9754_v49  ;;  %v9666_v21 = vadd.f32 1.0, %v11690_v15 }
 0x90b   : > { %v9667_v10 = vadd.f32 1.0, %v11692_v14  ;;  %v10768_v51 = vpack.c.bf16 %v9757_v29, %v9755_v63 }
 0x90c   : > { %v11694_v34 = vpop.eup %11693  ;;  %11705 = vrcp.f32 %v9666_v21 }
 0x90d   : > { %v11696_v59 = vpop.eup %11695  ;;  %v9668_v52 = vadd.f32 1.0, %v11694_v34  ;;  %10769 = vmatprep.subr.bf16.mxu1 %v10768_v51  ;;  %11707 = vrcp.f32 %v9667_v10 }
 0x90e   : > { %v9669_v6 = vadd.f32 1.0, %v11696_v59  ;;  %v11698_v27 = vpop.eup %11697 }
 0x90f   : > { %11709 = vrcp.f32 %v9668_v52  ;;  %10771 = vmatpush1.bf16.xpose.msra.mxu1 %v10770_v35  ;;  %v11700_v18 = vpop.eup %11699  ;;  %v9758_v39 = vmul.f32 %v11698_v27, %v16569_v16 }
 0x910   : > { %11711 = vrcp.f32 %v9669_v6  ;;  %v9759_v48 = vmul.f32 %v11700_v18, %v16572_v45 }
 0x912   : > { %v11702_v9 = vpop.eup %11701 }
 0x913   : > { %v11704_v47 = vpop.eup %11703  ;;  %v9760_v7 = vmul.f32 %v11702_v9, %v16577_v53 }
 0x914   : > { %v9761_v30 = vmul.f32 %v11704_v47, %v16580_v5  ;;  %v9766_v5 = vld [vmem:[%s16682_s12] sm:$0xff] }
 0x915   : > { %v10774_v50 = vpack.c.bf16 %v9760_v7, %v9758_v39 }
 0x916   : > { %v10772_v25 = vpack.c.bf16 %v9761_v30, %v9759_v48  ;;  %v11706_v28 = vpop.eup %11705 }
 0x917   : > { %v11708_v1 = vpop.eup %11707  ;;  %v9762_v37 = vmul.f32 %v11706_v28, %v16589_v58 }
 0x918   : > { %10773 = vmatprep.subr.bf16.mxu1 %v10772_v25  ;;  %v9763_v16 = vmul.f32 %v11708_v1, %v16592_v43 }
 0x919   : > { %v11710_v32 = vpop.eup %11709  ;;  %10775 = vmatpush1.bf16.xpose.msra.mxu1 %v10774_v50 }
 0x91a   : > { %v11712_v42 = vpop.eup %11711  ;;  %v9764_v20 = vmul.f32 %v11710_v32, %v16597_v36 }
 0x91b   : > { %v9765_v53 = vmul.f32 %v11712_v42, %v16600_v8 }
 0x91c   : > { %v10778_v45 = vpack.c.bf16 %v9764_v20, %v9762_v37 }
 0x91d   : > { %v10776_v57 = vpack.c.bf16 %v9765_v53, %v9763_v16 }
 0x91f   : > { %10777 = vmatprep.subr.bf16.mxu1 %v10776_v57 }
 0x921   : > { %10779 = vmatpush1.bf16.xpose.msra.mxu1 %v10778_v45 }
 0x928   : > { %9839 = vmatmul.mubr.f32.vlgmr.msra.gmra.mrb[32].mxu1 %v9766_v5 }
 0x9fb   : > { %v9840_v38 = vpop.f32.mrb[32].mxu1 }
 0x9fc   : > { %v9841_v58 = vadd.f32 %v9840_v38, %v9772_v46  ;;  %v9842_v26 = vpop.f32.mrb[33].mxu1 }
 0x9fe   : > { %v10439_v36 = vmul.f32 -1.442695, %v9841_v58 }
 0xa00   : > { %11713 = vpow2.f32 %v10439_v36 }
 0xa0a   : > { %v11714_v43 = vpop.eup %11713 }
 0xa0b   : > { %v9847_v22 = vadd.f32 1.0, %v11714_v43 }
 0xa0d   : > { %11715 = vrcp.f32 %v9847_v22 }
 0xa17   : > { %v11716_v8 = vpop.eup %11715 }
 0xa18   : > { %9850 = vst [vmem:[%s534_s16] sm:$0xff] %v11716_v8 }
 0xa19   : > { %11886 = shalt.err (!%p11883_p0)
}
 0xa1a   : > { %s11887_s29 = scalar_lea.hbm %s16628_s14, 128  ;;  %s11891_s30 = scalar_lea.hbm %s17665_s11, 256 }
 0xa1b   : > { %p11888_p10 = scmp.ne.s32.totalorder %s16628_s14, %s11887_s29  ;;  %p11892_p4 = scmp.lt.u32.totalorder %s16628_s14, %s17665_s11 }
 0xa1c   : > { %p11893_p12 = scmp.lt.u32.totalorder %s11891_s30, %s11887_s29  ;;  %p11895_p8 = scmp.lt.u32.totalorder %s11887_s29, %s16628_s14 }
 0xa1d   : > { %p11889_p2 = pnand %p11888_p10, %p17666_p11 }
 0xa1e   : > { %p11894_p7 = por %p11893_p12, %p11892_p4 }
 0xa1f   : > { %p11890_p3 = pneg %p11889_p2 }
 0xa20   : > { %p11896_p13 = por %p11895_p8, %p11894_p7 }
 0xa22   : > { %p11897_p1 = pnand %p11896_p13, %p11890_p3 }
 0xa24   : > { %11900 = shalt.err (!%p11897_p1)
}
 0xa25   : > { %10992 = dma.vmem_to_hbm [thread:$0]  (%p17666_p11), %s16630_s19, 128, %s16628_s14, %s9852_s23  }
 0xa26 PF: > { %s17667_s15 = sld [smem:[#allocation19_spill]]  ;;  %s17668_s16 = sld [smem:[#allocation16_spill]] }
 0xa27   : > { %s17669_s24 = sld [smem:[#allocation23_spill]] }
 0xa2c   : > { %p11024_p6 = scmp.ge.s32.totalorder %s17667_s15, 2  ;;  %s9877_s4 = sand.u32 1, %s17668_s16  }
 0xa2d   : > { %p17670_p9 = scmp.ne.s32.totalorder %s17669_s24, 0  ;;  %s9878_s26 = scalar_lea.sflag [#allocation4], %s9877_s4 }
 0xa2f   : > { %p11011_p5 = pnand %p11024_p6, %p17670_p9 }
 0xa31   : > { %11930 = dma.done.wait (!%p11011_p5), %s9878_s26, 128  }
 0xa32   : > { %11932 = vsyncadd (!%p11011_p5), %s9878_s26, 4294967168  ;;  %s17671_s16 = sld [smem:[#allocation20_spill]]  ;;  %s17672_s29 = sld [smem:[#allocation17_spill]] }
 0xa33   : > { %s17673_s30 = sld [smem:[#allocation18_spill]]  ;;  %s17674_s15 = sld [smem:[#allocation21_spill]] }
 0xa38   : > { %p27_p0 = scmp.ge.s32.totalorder %s17671_s16, 4  }
 0xa3a   :  { %29 = sbr.rel (!%p27_p0) target bundleno = 10 (0xa), region = 132 }
 0xa41   :  { %9883 = vsyncpa [#allocation3], 1 }
 0xa42   :  { %9885 = vsyncpa [#allocation3 + $0x1], 1 }
 0xa43   :  { %9886 = vsyncpa [#allocation6], 1 }
 0xa44   :  { %9887 = vsyncpa [#allocation9], 1 }
 0xa45   :  { %9888 = vsyncpa [#allocation4], 1 }
 0xa46   :  { %9890 = vsyncpa [#allocation4 + $0x1], 1 }

</bundles_post_ra>
